<compile_context>
chip_gen: v7x
topology: tpu7x:2x2x1
jax: 0.10.0
libtpu: 0.0.40
codegen_flags: <defaults>
</compile_context>

<pallas_src>
import functools

import numpy as np

import jax
import jax.numpy as jnp
from jax.experimental import pallas as pl
from jax.experimental.pallas import tpu as pltpu


# ----------------------------- fused Pallas kernel -----------------------------

def _lenet_fused_kernel(x_ref, k1_ref, b1_ref, pw1_ref, k2_ref, b2_ref, pw2_ref,
                        w1h_ref, bfc1_ref, w2_ref, w3_ref, b3_ref, sel_ref, o_ref,
                        *, batch):
    """One batch block (TB samples) end-to-end, entirely in VMEM.

    Activations are (rows, lanes) 2-D slabs where sample s occupies rows
    [s*32, s*32+32) and lanes are channels-last (w*C + c).  A 5x5 conv is the sum
    over kernel rows dy of  act[dy : dy+L, :] @ banded_mat[dy]; height pooling is a
    shifted max; width pooling / row compaction use exact 0/1 selector matmuls.
    The trailing zero rows of each block guarantee every shifted slice stays in
    bounds and never mixes samples.
    """
    f32 = jnp.float32
    tb = sel_ref.shape[0]
    rw = sel_ref.shape[1]                     # tb * 32
    x = x_ref[...]                            # (rw + 64, 128), lanes 96..127 are zero

    # ---- conv1 (5x5, 3->6) + bias + ReLU (Dropout1 is identity at inference) ----
    la1 = rw + 40
    z = jnp.dot(x[0:la1, :], k1_ref[0], preferred_element_type=f32)
    for dy in range(1, 5):
        z = z + jnp.dot(x[dy:dy + la1, :], k1_ref[dy], preferred_element_type=f32)
    a1 = jnp.maximum(z + b1_ref[...], 0.0)                                 # (rw+40, 168)

    # ---- 2x2 / stride-2 max-pool #1: rows via shifted max, lanes via selectors ----
    lp1 = rw + 32
    ph = jnp.maximum(a1[0:lp1, :], a1[1:1 + lp1, :])
    a1p = jnp.maximum(jnp.dot(ph, pw1_ref[0], preferred_element_type=f32),
                      jnp.dot(ph, pw1_ref[1], preferred_element_type=f32))  # (rw+32, 128)

    # ---- conv2 (5x5, 6->16) + bias + LeakyReLU(0.01) ----
    la2 = rw + 24
    z = jnp.dot(a1p[0:la2, :], k2_ref[0], preferred_element_type=f32)
    for dy in range(1, 5):
        z = z + jnp.dot(a1p[2 * dy:2 * dy + la2, :], k2_ref[dy],
                        preferred_element_type=f32)
    z = z + b2_ref[...]
    a2 = jnp.where(z > 0, z, 0.01 * z)                                      # (rw+24, 160)

    # ---- 2x2 / stride-2 max-pool #2 ----
    lp2 = rw + 16
    ph2 = jnp.maximum(a2[0:lp2, :], a2[2:2 + lp2, :])
    a2p = jnp.maximum(jnp.dot(ph2, pw2_ref[0], preferred_element_type=f32),
                      jnp.dot(ph2, pw2_ref[1], preferred_element_type=f32))  # (rw+16, 128)

    # ---- FC1 (bias=False, inference BatchNorm1d folded in) as 5 banded matmuls ----
    h1 = jnp.dot(a2p[0:rw, :], w1h_ref[0], preferred_element_type=f32)
    for hp in range(1, 5):
        h1 = h1 + jnp.dot(a2p[4 * hp:4 * hp + rw, :], w1h_ref[hp],
                          preferred_element_type=f32)
    # Compact rows s*32 -> s (one row per sample), add folded-BN bias, LeakyReLU.
    h1 = jnp.dot(sel_ref[...], h1, preferred_element_type=f32) + bfc1_ref[...]  # (tb,128)
    h1 = jnp.where(h1 > 0, h1, 0.01 * h1)
    # ---- FC2 (bias=False) -> LeakyReLU -> FC3 (+bias) ----
    h2 = jnp.dot(h1, w2_ref[...], preferred_element_type=f32)
    h2 = jnp.where(h2 > 0, h2, 0.01 * h2)
    h3 = jnp.dot(h2, w3_ref[...], preferred_element_type=f32) + b3_ref[...]     # (tb,128)

    i = pl.program_id(0)
    start = pl.multiple_of(i * tb, tb)
    o_ref[pl.ds(start, tb), :] = h3

    # ---- last batch block: LogSoftmax over dim 0 (the batch), masking padded rows ----
    @pl.when(i == pl.num_programs(0) - 1)
    def _():
        hall = o_ref[...]                                        # (B_pad, 128), resident
        row = jax.lax.broadcasted_iota(jnp.int32, hall.shape, 0)
        valid = row < batch
        m = jnp.max(jnp.where(valid, hall, -jnp.inf), axis=0, keepdims=True)
        zc = hall - m
        lse = jnp.log(jnp.sum(jnp.where(valid, jnp.exp(zc), 0.0),
                              axis=0, keepdims=True))
        o_ref[...] = zc - lse


# ----------------------------- one-time parameter prep -----------------------------

def _banded_conv_mats(w_oihw, w_in, w_out):
    """For each kernel row dy: (w_in*c_in, w_out*c_out) block-Toeplitz matrix so that
    sum_dy  act[dy:dy+h_out, :] @ mats[dy]  equals the VALID cross-correlation."""
    c_out, c_in, kh, kw = w_oihw.shape
    mats = np.zeros((kh, w_in * c_in, w_out * c_out), np.float32)
    for dy in range(kh):
        for dx in range(kw):
            for wo in range(w_out):
                mats[dy, (wo + dx) * c_in:(wo + dx + 1) * c_in,
                     wo * c_out:(wo + 1) * c_out] = w_oihw[:, :, dy, dx].T
    return mats


def _pool_col_select(w, c):
    """(2, w*c, (w//2)*c): right-multiply selector picking column group 2*wp+parity."""
    half = w // 2
    m = np.zeros((2, w * c, half * c), np.float32)
    for p in range(2):
        for wp in range(half):
            for ch in range(c):
                m[p, (2 * wp + p) * c + ch, wp * c + ch] = 1.0
    return m


def prepare_params(params):
    """Banded conv operands (K zero-padded to 128), lane-padded pooling selectors,
    BatchNorm folded into FC1, FC weights permuted / zero-padded to 128-lane tiles."""
    conv1_w = np.asarray(params["conv1_w"], np.float32)   # (6, 3, 5, 5)
    conv2_w = np.asarray(params["conv2_w"], np.float32)   # (16, 6, 5, 5)

    k1 = np.zeros((5, 128, 168), np.float32)
    k1[:, :96, :] = _banded_conv_mats(conv1_w, w_in=32, w_out=28)
    k2 = np.zeros((5, 128, 160), np.float32)
    k2[:, :84, :] = _banded_conv_mats(conv2_w, w_in=14, w_out=10)
    b1 = np.tile(np.asarray(params["conv1_b"], np.float32), 28).reshape(1, 168)
    b2 = np.tile(np.asarray(params["conv2_b"], np.float32), 10).reshape(1, 160)

    pw1 = np.zeros((2, 168, 128), np.float32)
    pw1[:, :, :84] = _pool_col_select(28, 6)
    pw2 = np.zeros((2, 160, 128), np.float32)
    pw2[:, :, :80] = _pool_col_select(10, 16)

    # FC1 (bias=False) with inference BatchNorm1d(120) folded in (applied once), eps=1e-5.
    s = np.asarray(params["bn2_gamma"], np.float32) / np.sqrt(
        np.asarray(params["bn2_var"], np.float32) + 1e-5)
    w1 = np.asarray(params["fc1_w"], np.float32) * s[:, None]          # (120, 400)
    # PyTorch's result.view(B, -1) flattens NCHW as (c, h, w); our layout after pool2
    # has, per pooled-h row hp, lanes wp*16 + c.  Build one (128,128) matrix per hp.
    w1h = np.zeros((5, 128, 128), np.float32)
    for hp in range(5):
        for wp in range(5):
            for c in range(16):
                w1h[hp, wp * 16 + c, :120] = w1[:, c * 25 + hp * 5 + wp]
    bfc1 = np.zeros((1, 128), np.float32)
    bfc1[0, :120] = (np.asarray(params["bn2_beta"], np.float32)
                     - np.asarray(params["bn2_mean"], np.float32) * s)

    w2 = np.zeros((128, 128), np.float32)
    w2[:120, :84] = np.asarray(params["fc2_w"], np.float32).T
    w3 = np.zeros((128, 128), np.float32)
    w3[:84, :100] = np.asarray(params["fc3_w"], np.float32).T
    b3 = np.zeros((1, 128), np.float32)
    b3[0, :100] = np.asarray(params["fc3_b"], np.float32)

    prepped = dict(k1=k1, b1=b1, pw1=pw1, k2=k2, b2=b2, pw2=pw2,
                   w1h=w1h, bfc1=bfc1, w2=w2, w3=w3, b3=b3)
    return {k: jnp.asarray(v) for k, v in prepped.items()}


# ----------------------------- forward pass -----------------------------

def _const_spec(arr):
    nd = arr.ndim
    return pl.BlockSpec(arr.shape, lambda i: (0,) * nd)


def lenet_forward(x_nchw, prepped):
    B = x_nchw.shape[0]
    TB = min(32, 8 * ((B + 7) // 8))        # samples per grid step (batch folded into MXU M)
    nb = (B + TB - 1) // TB
    B_pad = nb * TB
    RW = TB * 32
    R_full = RW + 64                        # trailing zero rows so every shift is a static slice

    # NCHW -> channels-last rows (B, 32, 32*3); pad lanes 96->128, batch to B_pad,
    # then append 64 zero rows per batch block.
    xt = jnp.transpose(x_nchw, (0, 2, 3, 1)).reshape(B, 32, 96)
    xt = jnp.pad(xt, ((0, B_pad - B), (0, 0), (0, 32)))
    xt = jnp.pad(xt.reshape(nb, RW, 128), ((0, 0), (0, 64), (0, 0)))
    x2 = xt.reshape(nb * R_full, 128)

    # Row-compaction selector: picks row s*32 (the per-sample FC1 row) for each sample.
    sel_np = np.zeros((TB, RW), np.float32)
    sel_np[np.arange(TB), np.arange(TB) * 32] = 1.0
    sel = jnp.asarray(sel_np)

    logits = pl.pallas_call(
        functools.partial(_lenet_fused_kernel, batch=B),
        out_shape=jax.ShapeDtypeStruct((B_pad, 128), jnp.float32),
        grid=(nb,),
        in_specs=[
            pl.BlockSpec((R_full, 128), lambda i: (i, 0)),
            _const_spec(prepped["k1"]), _const_spec(prepped["b1"]),
            _const_spec(prepped["pw1"]), _const_spec(prepped["k2"]),
            _const_spec(prepped["b2"]), _const_spec(prepped["pw2"]),
            _const_spec(prepped["w1h"]), _const_spec(prepped["bfc1"]),
            _const_spec(prepped["w2"]), _const_spec(prepped["w3"]),
            _const_spec(prepped["b3"]), _const_spec(sel),
        ],
        out_specs=pl.BlockSpec((B_pad, 128), lambda i: (0, 0)),
        compiler_params=pltpu.CompilerParams(
            dimension_semantics=("arbitrary",),
            vmem_limit_bytes=32 * 1024 * 1024),
    )(x2, prepped["k1"], prepped["b1"], prepped["pw1"], prepped["k2"], prepped["b2"],
      prepped["pw2"], prepped["w1h"], prepped["bfc1"], prepped["w2"], prepped["w3"],
      prepped["b3"], sel)

    return logits[:B, :100]


# ----------------------------- parameters & reference -----------------------------

def init_params(key):
    ks = jax.random.split(key, 8)

    def xavier(k, shape, fan_in, fan_out):
        bound = (6.0 / (fan_in + fan_out)) ** 0.5
        return jax.random.uniform(k, shape, jnp.float32, -bound, bound)

    return {
        "conv1_w": xavier(ks[0], (6, 3, 5, 5), 3 * 25, 6 * 25),
        "conv1_b": jax.random.uniform(ks[1], (6,), jnp.float32, -0.1, 0.1),
        "conv2_w": xavier(ks[2], (16, 6, 5, 5), 6 * 25, 16 * 25),
        "conv2_b": jax.random.uniform(ks[3], (16,), jnp.float32, -0.1, 0.1),
        "fc1_w": xavier(ks[4], (120, 400), 400, 120),
        "fc2_w": xavier(ks[5], (84, 120), 120, 84),
        "fc3_w": xavier(ks[6], (100, 84), 84, 100),
        "fc3_b": jax.random.uniform(ks[7], (100,), jnp.float32, -0.1, 0.1),
        # BatchNorm1d(120) buffers/affine, PyTorch defaults.
        "bn2_gamma": jnp.ones((120,), jnp.float32),
        "bn2_beta": jnp.zeros((120,), jnp.float32),
        "bn2_mean": jnp.zeros((120,), jnp.float32),
        "bn2_var": jnp.ones((120,), jnp.float32),
    }


def _reference_forward(x_nchw, params):
    """Plain-JAX reference of the same (inference-mode) forward for validation."""
    hi = jax.lax.Precision.HIGHEST
    y = jax.lax.conv_general_dilated(
        x_nchw, params["conv1_w"], (1, 1), "VALID",
        dimension_numbers=("NCHW", "OIHW", "NCHW"), precision=hi)
    y = y + params["conv1_b"][None, :, None, None]
    y = jnp.maximum(y, 0.0)
    b, c, h, w = y.shape
    y = y.reshape(b, c, h // 2, 2, w // 2, 2).max(axis=(3, 5))
    y = jax.lax.conv_general_dilated(
        y, params["conv2_w"], (1, 1), "VALID",
        dimension_numbers=("NCHW", "OIHW", "NCHW"), precision=hi)
    y = y + params["conv2_b"][None, :, None, None]
    y = jnp.where(y > 0, y, 0.01 * y)
    b, c, h, w = y.shape
    y = y.reshape(b, c, h // 2, 2, w // 2, 2).max(axis=(3, 5))
    f = y.reshape(y.shape[0], -1)
    h1 = jnp.dot(f, params["fc1_w"].T, precision=hi)
    s = params["bn2_gamma"] * jax.lax.rsqrt(params["bn2_var"] + 1e-5)
    h1 = (h1 - params["bn2_mean"]) * s + params["bn2_beta"]
    h1 = jnp.where(h1 > 0, h1, 0.01 * h1)
    h2 = jnp.dot(h1, params["fc2_w"].T, precision=hi)
    h2 = jnp.where(h2 > 0, h2, 0.01 * h2)
    h3 = jnp.dot(h2, params["fc3_w"].T, precision=hi) + params["fc3_b"]
    return jax.nn.log_softmax(h3, axis=0)


if __name__ == "__main__":
    key = jax.random.PRNGKey(0)
    pkey, xkey = jax.random.split(key)
    params = init_params(pkey)
    prepped = prepare_params(params)

    # LeNet geometry requires 3x32x32 inputs (so the 16*5*5 flatten works); batch=2.
    x = jax.random.normal(xkey, (2, 3, 32, 32), jnp.float32)

    fwd = jax.jit(lenet_forward)
    out = jax.block_until_ready(fwd(x, prepped))
    assert out.shape == (2, 100)
    assert bool(jnp.all(jnp.isfinite(out)))

    ref = _reference_forward(x, params)
    max_err = float(jnp.max(jnp.abs(out - ref)))
    # In-kernel matmuls use the MXU's default f32 precision (reference uses HIGHEST).
    assert max_err < 6e-2, f"mismatch vs reference: {max_err}"
    print("KERNEL_OK")
</pallas_src>

<mosaic_0001>
module attributes {stable_mosaic.version = 11 : i64} {
  func.func @_lenet_fused_kernel(%arg0: i32, %arg1: memref<320x128xf32, #tpu.memory_space<vmem>>, %arg2: memref<5x128x168xf32, #tpu.memory_space<vmem>>, %arg3: memref<1x168xf32, #tpu.memory_space<vmem>>, %arg4: memref<2x168x128xf32, #tpu.memory_space<vmem>>, %arg5: memref<5x128x160xf32, #tpu.memory_space<vmem>>, %arg6: memref<1x160xf32, #tpu.memory_space<vmem>>, %arg7: memref<2x160x128xf32, #tpu.memory_space<vmem>>, %arg8: memref<5x128x128xf32, #tpu.memory_space<vmem>>, %arg9: memref<1x128xf32, #tpu.memory_space<vmem>>, %arg10: memref<128x128xf32, #tpu.memory_space<vmem>>, %arg11: memref<128x128xf32, #tpu.memory_space<vmem>>, %arg12: memref<1x128xf32, #tpu.memory_space<vmem>>, %arg13: memref<8x256xf32, #tpu.memory_space<vmem>>, %arg14: memref<8x128xf32, #tpu.memory_space<vmem>>) attributes {dimension_semantics = [#tpu.dimension_semantics<arbitrary>], iteration_bounds = array<i64: 1>, scalar_prefetch = 0 : i64, scratch_operands = 0 : i64, tpu.core_type = #tpu.core_type<tc>, window_params = [{transform_indices = @transform_0, window_bounds = array<i64: 320, 128>}, {pipeline_mode = #tpu.pipeline_mode<synchronous>, transform_indices = @transform_1, window_bounds = array<i64: 5, 128, 168>}, {pipeline_mode = #tpu.pipeline_mode<synchronous>, transform_indices = @transform_2, window_bounds = array<i64: 1, 168>}, {pipeline_mode = #tpu.pipeline_mode<synchronous>, transform_indices = @transform_3, window_bounds = array<i64: 2, 168, 128>}, {pipeline_mode = #tpu.pipeline_mode<synchronous>, transform_indices = @transform_4, window_bounds = array<i64: 5, 128, 160>}, {pipeline_mode = #tpu.pipeline_mode<synchronous>, transform_indices = @transform_5, window_bounds = array<i64: 1, 160>}, {pipeline_mode = #tpu.pipeline_mode<synchronous>, transform_indices = @transform_6, window_bounds = array<i64: 2, 160, 128>}, {pipeline_mode = #tpu.pipeline_mode<synchronous>, transform_indices = @transform_7, window_bounds = array<i64: 5, 128, 128>}, {pipeline_mode = #tpu.pipeline_mode<synchronous>, transform_indices = @transform_8, window_bounds = array<i64: 1, 128>}, {pipeline_mode = #tpu.pipeline_mode<synchronous>, transform_indices = @transform_9, window_bounds = array<i64: 128, 128>}, {pipeline_mode = #tpu.pipeline_mode<synchronous>, transform_indices = @transform_10, window_bounds = array<i64: 128, 128>}, {pipeline_mode = #tpu.pipeline_mode<synchronous>, transform_indices = @transform_11, window_bounds = array<i64: 1, 128>}, {pipeline_mode = #tpu.pipeline_mode<synchronous>, transform_indices = @transform_12, window_bounds = array<i64: 8, 256>}, {pipeline_mode = #tpu.pipeline_mode<synchronous>, transform_indices = @transform_13, window_bounds = array<i64: 8, 128>}]} {
    %c0 = arith.constant 0 : index
    %c0_0 = arith.constant 0 : index
    %0 = vector.load %arg1[%c0, %c0_0] : memref<320x128xf32, #tpu.memory_space<vmem>>, vector<320x128xf32>
    %1 = vector.extract_strided_slice %0 {offsets = [0, 0], sizes = [296, 128], strides = [1, 1]} : vector<320x128xf32> to vector<296x128xf32>
    %c0_1 = arith.constant 0 : index
    %c0_2 = arith.constant 0 : index
    %c0_3 = arith.constant 0 : index
    %2 = vector.load %arg2[%c0_1, %c0_2, %c0_3] : memref<5x128x168xf32, #tpu.memory_space<vmem>>, vector<1x128x168xf32>
    %3 = vector.shape_cast %2 : vector<1x128x168xf32> to vector<128x168xf32>
    %cst = arith.constant dense<0.000000e+00> : vector<296x168xf32>
    %4 = tpu.matmul %1, %3, %cst {dimension_numbers = #tpu.dot_dimension_numbers<[1], [0], [0], [1], [0, 0, 1, 1], [], []>} : vector<296x128xf32>, vector<128x168xf32>, vector<296x168xf32> -> vector<296x168xf32>
    %5 = vector.extract_strided_slice %0 {offsets = [1, 0], sizes = [296, 128], strides = [1, 1]} : vector<320x128xf32> to vector<296x128xf32>
    %c1 = arith.constant 1 : index
    %c0_4 = arith.constant 0 : index
    %c0_5 = arith.constant 0 : index
    %6 = vector.load %arg2[%c1, %c0_4, %c0_5] : memref<5x128x168xf32, #tpu.memory_space<vmem>>, vector<1x128x168xf32>
    %7 = vector.shape_cast %6 : vector<1x128x168xf32> to vector<128x168xf32>
    %cst_6 = arith.constant dense<0.000000e+00> : vector<296x168xf32>
    %8 = tpu.matmul %5, %7, %cst_6 {dimension_numbers = #tpu.dot_dimension_numbers<[1], [0], [0], [1], [0, 0, 1, 1], [], []>} : vector<296x128xf32>, vector<128x168xf32>, vector<296x168xf32> -> vector<296x168xf32>
    %9 = arith.addf %4, %8 : vector<296x168xf32>
    %10 = vector.extract_strided_slice %0 {offsets = [2, 0], sizes = [296, 128], strides = [1, 1]} : vector<320x128xf32> to vector<296x128xf32>
    %c2 = arith.constant 2 : index
    %c0_7 = arith.constant 0 : index
    %c0_8 = arith.constant 0 : index
    %11 = vector.load %arg2[%c2, %c0_7, %c0_8] : memref<5x128x168xf32, #tpu.memory_space<vmem>>, vector<1x128x168xf32>
    %12 = vector.shape_cast %11 : vector<1x128x168xf32> to vector<128x168xf32>
    %cst_9 = arith.constant dense<0.000000e+00> : vector<296x168xf32>
    %13 = tpu.matmul %10, %12, %cst_9 {dimension_numbers = #tpu.dot_dimension_numbers<[1], [0], [0], [1], [0, 0, 1, 1], [], []>} : vector<296x128xf32>, vector<128x168xf32>, vector<296x168xf32> -> vector<296x168xf32>
    %14 = arith.addf %9, %13 : vector<296x168xf32>
    %15 = vector.extract_strided_slice %0 {offsets = [3, 0], sizes = [296, 128], strides = [1, 1]} : vector<320x128xf32> to vector<296x128xf32>
    %c3 = arith.constant 3 : index
    %c0_10 = arith.constant 0 : index
    %c0_11 = arith.constant 0 : index
    %16 = vector.load %arg2[%c3, %c0_10, %c0_11] : memref<5x128x168xf32, #tpu.memory_space<vmem>>, vector<1x128x168xf32>
    %17 = vector.shape_cast %16 : vector<1x128x168xf32> to vector<128x168xf32>
    %cst_12 = arith.constant dense<0.000000e+00> : vector<296x168xf32>
    %18 = tpu.matmul %15, %17, %cst_12 {dimension_numbers = #tpu.dot_dimension_numbers<[1], [0], [0], [1], [0, 0, 1, 1], [], []>} : vector<296x128xf32>, vector<128x168xf32>, vector<296x168xf32> -> vector<296x168xf32>
    %19 = arith.addf %14, %18 : vector<296x168xf32>
    %20 = vector.extract_strided_slice %0 {offsets = [4, 0], sizes = [296, 128], strides = [1, 1]} : vector<320x128xf32> to vector<296x128xf32>
    %c4 = arith.constant 4 : index
    %c0_13 = arith.constant 0 : index
    %c0_14 = arith.constant 0 : index
    %21 = vector.load %arg2[%c4, %c0_13, %c0_14] : memref<5x128x168xf32, #tpu.memory_space<vmem>>, vector<1x128x168xf32>
    %22 = vector.shape_cast %21 : vector<1x128x168xf32> to vector<128x168xf32>
    %cst_15 = arith.constant dense<0.000000e+00> : vector<296x168xf32>
    %23 = tpu.matmul %20, %22, %cst_15 {dimension_numbers = #tpu.dot_dimension_numbers<[1], [0], [0], [1], [0, 0, 1, 1], [], []>} : vector<296x128xf32>, vector<128x168xf32>, vector<296x168xf32> -> vector<296x168xf32>
    %24 = arith.addf %19, %23 : vector<296x168xf32>
    %c0_16 = arith.constant 0 : index
    %c0_17 = arith.constant 0 : index
    %25 = vector.load %arg3[%c0_16, %c0_17] : memref<1x168xf32, #tpu.memory_space<vmem>>, vector<1x168xf32>
    %26 = vector.broadcast %25 : vector<1x168xf32> to vector<296x168xf32>
    %27 = arith.addf %24, %26 : vector<296x168xf32>
    %cst_18 = arith.constant 0.000000e+00 : f32
    %28 = vector.broadcast %cst_18 : f32 to vector<296x168xf32>
    %29 = arith.maximumf %27, %28 : vector<296x168xf32>
    %30 = vector.extract_strided_slice %29 {offsets = [0, 0], sizes = [288, 168], strides = [1, 1]} : vector<296x168xf32> to vector<288x168xf32>
    %31 = vector.extract_strided_slice %29 {offsets = [1, 0], sizes = [288, 168], strides = [1, 1]} : vector<296x168xf32> to vector<288x168xf32>
    %32 = arith.maximumf %30, %31 : vector<288x168xf32>
    %c0_19 = arith.constant 0 : index
    %c0_20 = arith.constant 0 : index
    %c0_21 = arith.constant 0 : index
    %33 = vector.load %arg4[%c0_19, %c0_20, %c0_21] : memref<2x168x128xf32, #tpu.memory_space<vmem>>, vector<1x168x128xf32>
    %34 = vector.shape_cast %33 : vector<1x168x128xf32> to vector<168x128xf32>
    %cst_22 = arith.constant dense<0.000000e+00> : vector<288x128xf32>
    %35 = tpu.matmul %32, %34, %cst_22 {dimension_numbers = #tpu.dot_dimension_numbers<[1], [0], [0], [1], [0, 0, 1, 1], [], []>} : vector<288x168xf32>, vector<168x128xf32>, vector<288x128xf32> -> vector<288x128xf32>
    %c1_23 = arith.constant 1 : index
    %c0_24 = arith.constant 0 : index
    %c0_25 = arith.constant 0 : index
    %36 = vector.load %arg4[%c1_23, %c0_24, %c0_25] : memref<2x168x128xf32, #tpu.memory_space<vmem>>, vector<1x168x128xf32>
    %37 = vector.shape_cast %36 : vector<1x168x128xf32> to vector<168x128xf32>
    %cst_26 = arith.constant dense<0.000000e+00> : vector<288x128xf32>
    %38 = tpu.matmul %32, %37, %cst_26 {dimension_numbers = #tpu.dot_dimension_numbers<[1], [0], [0], [1], [0, 0, 1, 1], [], []>} : vector<288x168xf32>, vector<168x128xf32>, vector<288x128xf32> -> vector<288x128xf32>
    %39 = arith.maximumf %35, %38 : vector<288x128xf32>
    %40 = vector.extract_strided_slice %39 {offsets = [0, 0], sizes = [280, 128], strides = [1, 1]} : vector<288x128xf32> to vector<280x128xf32>
    %c0_27 = arith.constant 0 : index
    %c0_28 = arith.constant 0 : index
    %c0_29 = arith.constant 0 : index
    %41 = vector.load %arg5[%c0_27, %c0_28, %c0_29] : memref<5x128x160xf32, #tpu.memory_space<vmem>>, vector<1x128x160xf32>
    %42 = vector.shape_cast %41 : vector<1x128x160xf32> to vector<128x160xf32>
    %cst_30 = arith.constant dense<0.000000e+00> : vector<280x160xf32>
    %43 = tpu.matmul %40, %42, %cst_30 {dimension_numbers = #tpu.dot_dimension_numbers<[1], [0], [0], [1], [0, 0, 1, 1], [], []>} : vector<280x128xf32>, vector<128x160xf32>, vector<280x160xf32> -> vector<280x160xf32>
    %44 = vector.extract_strided_slice %39 {offsets = [2, 0], sizes = [280, 128], strides = [1, 1]} : vector<288x128xf32> to vector<280x128xf32>
    %c1_31 = arith.constant 1 : index
    %c0_32 = arith.constant 0 : index
    %c0_33 = arith.constant 0 : index
    %45 = vector.load %arg5[%c1_31, %c0_32, %c0_33] : memref<5x128x160xf32, #tpu.memory_space<vmem>>, vector<1x128x160xf32>
    %46 = vector.shape_cast %45 : vector<1x128x160xf32> to vector<128x160xf32>
    %cst_34 = arith.constant dense<0.000000e+00> : vector<280x160xf32>
    %47 = tpu.matmul %44, %46, %cst_34 {dimension_numbers = #tpu.dot_dimension_numbers<[1], [0], [0], [1], [0, 0, 1, 1], [], []>} : vector<280x128xf32>, vector<128x160xf32>, vector<280x160xf32> -> vector<280x160xf32>
    %48 = arith.addf %43, %47 : vector<280x160xf32>
    %49 = vector.extract_strided_slice %39 {offsets = [4, 0], sizes = [280, 128], strides = [1, 1]} : vector<288x128xf32> to vector<280x128xf32>
    %c2_35 = arith.constant 2 : index
    %c0_36 = arith.constant 0 : index
    %c0_37 = arith.constant 0 : index
    %50 = vector.load %arg5[%c2_35, %c0_36, %c0_37] : memref<5x128x160xf32, #tpu.memory_space<vmem>>, vector<1x128x160xf32>
    %51 = vector.shape_cast %50 : vector<1x128x160xf32> to vector<128x160xf32>
    %cst_38 = arith.constant dense<0.000000e+00> : vector<280x160xf32>
    %52 = tpu.matmul %49, %51, %cst_38 {dimension_numbers = #tpu.dot_dimension_numbers<[1], [0], [0], [1], [0, 0, 1, 1], [], []>} : vector<280x128xf32>, vector<128x160xf32>, vector<280x160xf32> -> vector<280x160xf32>
    %53 = arith.addf %48, %52 : vector<280x160xf32>
    %54 = vector.extract_strided_slice %39 {offsets = [6, 0], sizes = [280, 128], strides = [1, 1]} : vector<288x128xf32> to vector<280x128xf32>
    %c3_39 = arith.constant 3 : index
    %c0_40 = arith.constant 0 : index
    %c0_41 = arith.constant 0 : index
    %55 = vector.load %arg5[%c3_39, %c0_40, %c0_41] : memref<5x128x160xf32, #tpu.memory_space<vmem>>, vector<1x128x160xf32>
    %56 = vector.shape_cast %55 : vector<1x128x160xf32> to vector<128x160xf32>
    %cst_42 = arith.constant dense<0.000000e+00> : vector<280x160xf32>
    %57 = tpu.matmul %54, %56, %cst_42 {dimension_numbers = #tpu.dot_dimension_numbers<[1], [0], [0], [1], [0, 0, 1, 1], [], []>} : vector<280x128xf32>, vector<128x160xf32>, vector<280x160xf32> -> vector<280x160xf32>
    %58 = arith.addf %53, %57 : vector<280x160xf32>
    %59 = vector.extract_strided_slice %39 {offsets = [8, 0], sizes = [280, 128], strides = [1, 1]} : vector<288x128xf32> to vector<280x128xf32>
    %c4_43 = arith.constant 4 : index
    %c0_44 = arith.constant 0 : index
    %c0_45 = arith.constant 0 : index
    %60 = vector.load %arg5[%c4_43, %c0_44, %c0_45] : memref<5x128x160xf32, #tpu.memory_space<vmem>>, vector<1x128x160xf32>
    %61 = vector.shape_cast %60 : vector<1x128x160xf32> to vector<128x160xf32>
    %cst_46 = arith.constant dense<0.000000e+00> : vector<280x160xf32>
    %62 = tpu.matmul %59, %61, %cst_46 {dimension_numbers = #tpu.dot_dimension_numbers<[1], [0], [0], [1], [0, 0, 1, 1], [], []>} : vector<280x128xf32>, vector<128x160xf32>, vector<280x160xf32> -> vector<280x160xf32>
    %63 = arith.addf %58, %62 : vector<280x160xf32>
    %c0_47 = arith.constant 0 : index
    %c0_48 = arith.constant 0 : index
    %64 = vector.load %arg6[%c0_47, %c0_48] : memref<1x160xf32, #tpu.memory_space<vmem>>, vector<1x160xf32>
    %65 = vector.broadcast %64 : vector<1x160xf32> to vector<280x160xf32>
    %66 = arith.addf %63, %65 : vector<280x160xf32>
    %cst_49 = arith.constant 0.000000e+00 : f32
    %67 = vector.broadcast %cst_49 : f32 to vector<280x160xf32>
    %68 = arith.cmpf ogt, %66, %67 : vector<280x160xf32>
    %cst_50 = arith.constant 0.00999999977 : f32
    %69 = vector.broadcast %cst_50 : f32 to vector<280x160xf32>
    %70 = arith.mulf %69, %66 : vector<280x160xf32>
    %71 = arith.select %68, %66, %70 : vector<280x160xi1>, vector<280x160xf32>
    %72 = vector.extract_strided_slice %71 {offsets = [0, 0], sizes = [272, 160], strides = [1, 1]} : vector<280x160xf32> to vector<272x160xf32>
    %73 = vector.extract_strided_slice %71 {offsets = [2, 0], sizes = [272, 160], strides = [1, 1]} : vector<280x160xf32> to vector<272x160xf32>
    %74 = arith.maximumf %72, %73 : vector<272x160xf32>
    %c0_51 = arith.constant 0 : index
    %c0_52 = arith.constant 0 : index
    %c0_53 = arith.constant 0 : index
    %75 = vector.load %arg7[%c0_51, %c0_52, %c0_53] : memref<2x160x128xf32, #tpu.memory_space<vmem>>, vector<1x160x128xf32>
    %76 = vector.shape_cast %75 : vector<1x160x128xf32> to vector<160x128xf32>
    %cst_54 = arith.constant dense<0.000000e+00> : vector<272x128xf32>
    %77 = tpu.matmul %74, %76, %cst_54 {dimension_numbers = #tpu.dot_dimension_numbers<[1], [0], [0], [1], [0, 0, 1, 1], [], []>} : vector<272x160xf32>, vector<160x128xf32>, vector<272x128xf32> -> vector<272x128xf32>
    %c1_55 = arith.constant 1 : index
    %c0_56 = arith.constant 0 : index
    %c0_57 = arith.constant 0 : index
    %78 = vector.load %arg7[%c1_55, %c0_56, %c0_57] : memref<2x160x128xf32, #tpu.memory_space<vmem>>, vector<1x160x128xf32>
    %79 = vector.shape_cast %78 : vector<1x160x128xf32> to vector<160x128xf32>
    %cst_58 = arith.constant dense<0.000000e+00> : vector<272x128xf32>
    %80 = tpu.matmul %74, %79, %cst_58 {dimension_numbers = #tpu.dot_dimension_numbers<[1], [0], [0], [1], [0, 0, 1, 1], [], []>} : vector<272x160xf32>, vector<160x128xf32>, vector<272x128xf32> -> vector<272x128xf32>
    %81 = arith.maximumf %77, %80 : vector<272x128xf32>
    %82 = vector.extract_strided_slice %81 {offsets = [0, 0], sizes = [256, 128], strides = [1, 1]} : vector<272x128xf32> to vector<256x128xf32>
    %c0_59 = arith.constant 0 : index
    %c0_60 = arith.constant 0 : index
    %c0_61 = arith.constant 0 : index
    %83 = vector.load %arg8[%c0_59, %c0_60, %c0_61] : memref<5x128x128xf32, #tpu.memory_space<vmem>>, vector<1x128x128xf32>
    %84 = vector.shape_cast %83 : vector<1x128x128xf32> to vector<128x128xf32>
    %cst_62 = arith.constant dense<0.000000e+00> : vector<256x128xf32>
    %85 = tpu.matmul %82, %84, %cst_62 {dimension_numbers = #tpu.dot_dimension_numbers<[1], [0], [0], [1], [0, 0, 1, 1], [], []>} : vector<256x128xf32>, vector<128x128xf32>, vector<256x128xf32> -> vector<256x128xf32>
    %86 = vector.extract_strided_slice %81 {offsets = [4, 0], sizes = [256, 128], strides = [1, 1]} : vector<272x128xf32> to vector<256x128xf32>
    %c1_63 = arith.constant 1 : index
    %c0_64 = arith.constant 0 : index
    %c0_65 = arith.constant 0 : index
    %87 = vector.load %arg8[%c1_63, %c0_64, %c0_65] : memref<5x128x128xf32, #tpu.memory_space<vmem>>, vector<1x128x128xf32>
    %88 = vector.shape_cast %87 : vector<1x128x128xf32> to vector<128x128xf32>
    %cst_66 = arith.constant dense<0.000000e+00> : vector<256x128xf32>
    %89 = tpu.matmul %86, %88, %cst_66 {dimension_numbers = #tpu.dot_dimension_numbers<[1], [0], [0], [1], [0, 0, 1, 1], [], []>} : vector<256x128xf32>, vector<128x128xf32>, vector<256x128xf32> -> vector<256x128xf32>
    %90 = arith.addf %85, %89 : vector<256x128xf32>
    %91 = vector.extract_strided_slice %81 {offsets = [8, 0], sizes = [256, 128], strides = [1, 1]} : vector<272x128xf32> to vector<256x128xf32>
    %c2_67 = arith.constant 2 : index
    %c0_68 = arith.constant 0 : index
    %c0_69 = arith.constant 0 : index
    %92 = vector.load %arg8[%c2_67, %c0_68, %c0_69] : memref<5x128x128xf32, #tpu.memory_space<vmem>>, vector<1x128x128xf32>
    %93 = vector.shape_cast %92 : vector<1x128x128xf32> to vector<128x128xf32>
    %cst_70 = arith.constant dense<0.000000e+00> : vector<256x128xf32>
    %94 = tpu.matmul %91, %93, %cst_70 {dimension_numbers = #tpu.dot_dimension_numbers<[1], [0], [0], [1], [0, 0, 1, 1], [], []>} : vector<256x128xf32>, vector<128x128xf32>, vector<256x128xf32> -> vector<256x128xf32>
    %95 = arith.addf %90, %94 : vector<256x128xf32>
    %96 = vector.extract_strided_slice %81 {offsets = [12, 0], sizes = [256, 128], strides = [1, 1]} : vector<272x128xf32> to vector<256x128xf32>
    %c3_71 = arith.constant 3 : index
    %c0_72 = arith.constant 0 : index
    %c0_73 = arith.constant 0 : index
    %97 = vector.load %arg8[%c3_71, %c0_72, %c0_73] : memref<5x128x128xf32, #tpu.memory_space<vmem>>, vector<1x128x128xf32>
    %98 = vector.shape_cast %97 : vector<1x128x128xf32> to vector<128x128xf32>
    %cst_74 = arith.constant dense<0.000000e+00> : vector<256x128xf32>
    %99 = tpu.matmul %96, %98, %cst_74 {dimension_numbers = #tpu.dot_dimension_numbers<[1], [0], [0], [1], [0, 0, 1, 1], [], []>} : vector<256x128xf32>, vector<128x128xf32>, vector<256x128xf32> -> vector<256x128xf32>
    %100 = arith.addf %95, %99 : vector<256x128xf32>
    %101 = vector.extract_strided_slice %81 {offsets = [16, 0], sizes = [256, 128], strides = [1, 1]} : vector<272x128xf32> to vector<256x128xf32>
    %c4_75 = arith.constant 4 : index
    %c0_76 = arith.constant 0 : index
    %c0_77 = arith.constant 0 : index
    %102 = vector.load %arg8[%c4_75, %c0_76, %c0_77] : memref<5x128x128xf32, #tpu.memory_space<vmem>>, vector<1x128x128xf32>
    %103 = vector.shape_cast %102 : vector<1x128x128xf32> to vector<128x128xf32>
    %cst_78 = arith.constant dense<0.000000e+00> : vector<256x128xf32>
    %104 = tpu.matmul %101, %103, %cst_78 {dimension_numbers = #tpu.dot_dimension_numbers<[1], [0], [0], [1], [0, 0, 1, 1], [], []>} : vector<256x128xf32>, vector<128x128xf32>, vector<256x128xf32> -> vector<256x128xf32>
    %105 = arith.addf %100, %104 : vector<256x128xf32>
    %c0_79 = arith.constant 0 : index
    %c0_80 = arith.constant 0 : index
    %106 = vector.load %arg13[%c0_79, %c0_80] : memref<8x256xf32, #tpu.memory_space<vmem>>, vector<8x256xf32>
    %cst_81 = arith.constant dense<0.000000e+00> : vector<8x128xf32>
    %107 = tpu.matmul %106, %105, %cst_81 {dimension_numbers = #tpu.dot_dimension_numbers<[1], [0], [0], [1], [0, 0, 1, 1], [], []>} : vector<8x256xf32>, vector<256x128xf32>, vector<8x128xf32> -> vector<8x128xf32>
    %c0_82 = arith.constant 0 : index
    %c0_83 = arith.constant 0 : index
    %108 = vector.load %arg9[%c0_82, %c0_83] : memref<1x128xf32, #tpu.memory_space<vmem>>, vector<1x128xf32>
    %109 = vector.broadcast %108 : vector<1x128xf32> to vector<8x128xf32>
    %110 = arith.addf %107, %109 : vector<8x128xf32>
    %cst_84 = arith.constant 0.000000e+00 : f32
    %111 = vector.broadcast %cst_84 : f32 to vector<8x128xf32>
    %112 = arith.cmpf ogt, %110, %111 : vector<8x128xf32>
    %cst_85 = arith.constant 0.00999999977 : f32
    %113 = vector.broadcast %cst_85 : f32 to vector<8x128xf32>
    %114 = arith.mulf %113, %110 : vector<8x128xf32>
    %115 = arith.select %112, %110, %114 : vector<8x128xi1>, vector<8x128xf32>
    %c0_86 = arith.constant 0 : index
    %c0_87 = arith.constant 0 : index
    %116 = vector.load %arg10[%c0_86, %c0_87] : memref<128x128xf32, #tpu.memory_space<vmem>>, vector<128x128xf32>
    %cst_88 = arith.constant dense<0.000000e+00> : vector<8x128xf32>
    %117 = tpu.matmul %115, %116, %cst_88 {dimension_numbers = #tpu.dot_dimension_numbers<[1], [0], [0], [1], [0, 0, 1, 1], [], []>} : vector<8x128xf32>, vector<128x128xf32>, vector<8x128xf32> -> vector<8x128xf32>
    %cst_89 = arith.constant 0.000000e+00 : f32
    %118 = vector.broadcast %cst_89 : f32 to vector<8x128xf32>
    %119 = arith.cmpf ogt, %117, %118 : vector<8x128xf32>
    %cst_90 = arith.constant 0.00999999977 : f32
    %120 = vector.broadcast %cst_90 : f32 to vector<8x128xf32>
    %121 = arith.mulf %120, %117 : vector<8x128xf32>
    %122 = arith.select %119, %117, %121 : vector<8x128xi1>, vector<8x128xf32>
    %c0_91 = arith.constant 0 : index
    %c0_92 = arith.constant 0 : index
    %123 = vector.load %arg11[%c0_91, %c0_92] : memref<128x128xf32, #tpu.memory_space<vmem>>, vector<128x128xf32>
    %cst_93 = arith.constant dense<0.000000e+00> : vector<8x128xf32>
    %124 = tpu.matmul %122, %123, %cst_93 {dimension_numbers = #tpu.dot_dimension_numbers<[1], [0], [0], [1], [0, 0, 1, 1], [], []>} : vector<8x128xf32>, vector<128x128xf32>, vector<8x128xf32> -> vector<8x128xf32>
    %c0_94 = arith.constant 0 : index
    %c0_95 = arith.constant 0 : index
    %125 = vector.load %arg12[%c0_94, %c0_95] : memref<1x128xf32, #tpu.memory_space<vmem>>, vector<1x128xf32>
    %126 = vector.broadcast %125 : vector<1x128xf32> to vector<8x128xf32>
    %127 = arith.addf %124, %126 : vector<8x128xf32>
    %c8_i32 = arith.constant 8 : i32
    %128 = arith.muli %arg0, %c8_i32 : i32
    %129 = tpu.assume_multiple %128, 8 : i32
    %130 = arith.index_cast %129 : i32 to index
    %c0_96 = arith.constant 0 : index
    %131 = vector.load %arg14[%130, %c0_96] : memref<8x128xf32, #tpu.memory_space<vmem>>, vector<8x128xf32>
    tpu.vector_store %arg14[%130, %c0_96], %127 {strides = array<i32>} : memref<8x128xf32, #tpu.memory_space<vmem>>, vector<8x128xf32>,
    %c0_i32 = arith.constant 0 : i32
    %132 = arith.cmpi eq, %arg0, %c0_i32 : i32
    %133 = arith.extui %132 : i1 to i32
    %c0_i32_97 = arith.constant 0 : i32
    %134 = arith.cmpi ne, %133, %c0_i32_97 : i32
    scf.if %134 {
      %c0_98 = arith.constant 0 : index
      %c0_99 = arith.constant 0 : index
      %135 = vector.load %arg14[%c0_98, %c0_99] : memref<8x128xf32, #tpu.memory_space<vmem>>, vector<8x128xf32>
      %136 = tpu.iota {dimensions = array<i32: 0>} : vector<8x128xi32>
      %c2_i32 = arith.constant 2 : i32
      %137 = vector.broadcast %c2_i32 : i32 to vector<8x128xi32>
      %138 = arith.cmpi slt, %136, %137 : vector<8x128xi32>
      %cst_100 = arith.constant 0xFF800000 : f32
      %139 = vector.broadcast %cst_100 : f32 to vector<8x128xf32>
      %140 = arith.select %138, %135, %139 : vector<8x128xi1>, vector<8x128xf32>
      %cst_101 = arith.constant dense<0xFF800000> : vector<128xf32>
      %141 = vector.multi_reduction <maximumf>, %140, %cst_101 [0] : vector<8x128xf32> to vector<128xf32>
      %142 = vector.shape_cast %141 : vector<128xf32> to vector<1x128xf32>
      %143 = vector.broadcast %142 : vector<1x128xf32> to vector<8x128xf32>
      %144 = arith.subf %135, %143 : vector<8x128xf32>
      %145 = math.exp %144 : vector<8x128xf32>
      %cst_102 = arith.constant 0.000000e+00 : f32
      %146 = vector.broadcast %cst_102 : f32 to vector<8x128xf32>
      %147 = arith.select %138, %145, %146 : vector<8x128xi1>, vector<8x128xf32>
      %cst_103 = arith.constant dense<0.000000e+00> : vector<128xf32>
      %148 = vector.multi_reduction <add>, %147, %cst_103 [0] : vector<8x128xf32> to vector<128xf32>
      %149 = vector.shape_cast %148 : vector<128xf32> to vector<1x128xf32>
      %150 = math.log %149 : vector<1x128xf32>
      %151 = vector.broadcast %150 : vector<1x128xf32> to vector<8x128xf32>
      %152 = arith.subf %144, %151 : vector<8x128xf32>
      %c0_104 = arith.constant 0 : index
      %c0_105 = arith.constant 0 : index
      %153 = vector.load %arg14[%c0_104, %c0_105] : memref<8x128xf32, #tpu.memory_space<vmem>>, vector<8x128xf32>
      tpu.vector_store %arg14[%c0_104, %c0_105], %152 {strides = array<i32>} : memref<8x128xf32, #tpu.memory_space<vmem>>, vector<8x128xf32>,
    } else {
    }
    return
  }
  func.func @transform_0(%arg0: i32) -> (i32, i32) {
    %c0_i32 = arith.constant 0 : i32
    %c0_i32_0 = arith.constant 0 : i32
    return %arg0, %c0_i32 : i32, i32
  }
  func.func @transform_1(%arg0: i32) -> (i32, i32, i32) {
    %c0_i32 = arith.constant 0 : i32
    %c0_i32_0 = arith.constant 0 : i32
    %c0_i32_1 = arith.constant 0 : i32
    %c0_i32_2 = arith.constant 0 : i32
    return %c0_i32, %c0_i32_0, %c0_i32_1 : i32, i32, i32
  }
  func.func @transform_2(%arg0: i32) -> (i32, i32) {
    %c0_i32 = arith.constant 0 : i32
    %c0_i32_0 = arith.constant 0 : i32
    %c0_i32_1 = arith.constant 0 : i32
    return %c0_i32, %c0_i32_0 : i32, i32
  }
  func.func @transform_3(%arg0: i32) -> (i32, i32, i32) {
    %c0_i32 = arith.constant 0 : i32
    %c0_i32_0 = arith.constant 0 : i32
    %c0_i32_1 = arith.constant 0 : i32
    %c0_i32_2 = arith.constant 0 : i32
    return %c0_i32, %c0_i32_0, %c0_i32_1 : i32, i32, i32
  }
  func.func @transform_4(%arg0: i32) -> (i32, i32, i32) {
    %c0_i32 = arith.constant 0 : i32
    %c0_i32_0 = arith.constant 0 : i32
    %c0_i32_1 = arith.constant 0 : i32
    %c0_i32_2 = arith.constant 0 : i32
    return %c0_i32, %c0_i32_0, %c0_i32_1 : i32, i32, i32
  }
  func.func @transform_5(%arg0: i32) -> (i32, i32) {
    %c0_i32 = arith.constant 0 : i32
    %c0_i32_0 = arith.constant 0 : i32
    %c0_i32_1 = arith.constant 0 : i32
    return %c0_i32, %c0_i32_0 : i32, i32
  }
  func.func @transform_6(%arg0: i32) -> (i32, i32, i32) {
    %c0_i32 = arith.constant 0 : i32
    %c0_i32_0 = arith.constant 0 : i32
    %c0_i32_1 = arith.constant 0 : i32
    %c0_i32_2 = arith.constant 0 : i32
    return %c0_i32, %c0_i32_0, %c0_i32_1 : i32, i32, i32
  }
  func.func @transform_7(%arg0: i32) -> (i32, i32, i32) {
    %c0_i32 = arith.constant 0 : i32
    %c0_i32_0 = arith.constant 0 : i32
    %c0_i32_1 = arith.constant 0 : i32
    %c0_i32_2 = arith.constant 0 : i32
    return %c0_i32, %c0_i32_0, %c0_i32_1 : i32, i32, i32
  }
  func.func @transform_8(%arg0: i32) -> (i32, i32) {
    %c0_i32 = arith.constant 0 : i32
    %c0_i32_0 = arith.constant 0 : i32
    %c0_i32_1 = arith.constant 0 : i32
    return %c0_i32, %c0_i32_0 : i32, i32
  }
  func.func @transform_9(%arg0: i32) -> (i32, i32) {
    %c0_i32 = arith.constant 0 : i32
    %c0_i32_0 = arith.constant 0 : i32
    %c0_i32_1 = arith.constant 0 : i32
    return %c0_i32, %c0_i32_0 : i32, i32
  }
  func.func @transform_10(%arg0: i32) -> (i32, i32) {
    %c0_i32 = arith.constant 0 : i32
    %c0_i32_0 = arith.constant 0 : i32
    %c0_i32_1 = arith.constant 0 : i32
    return %c0_i32, %c0_i32_0 : i32, i32
  }
  func.func @transform_11(%arg0: i32) -> (i32, i32) {
    %c0_i32 = arith.constant 0 : i32
    %c0_i32_0 = arith.constant 0 : i32
    %c0_i32_1 = arith.constant 0 : i32
    return %c0_i32, %c0_i32_0 : i32, i32
  }
  func.func @transform_12(%arg0: i32) -> (i32, i32) {
    %c0_i32 = arith.constant 0 : i32
    %c0_i32_0 = arith.constant 0 : i32
    %c0_i32_1 = arith.constant 0 : i32
    return %c0_i32, %c0_i32_0 : i32, i32
  }
  func.func @transform_13(%arg0: i32) -> (i32, i32) {
    %c0_i32 = arith.constant 0 : i32
    %c0_i32_0 = arith.constant 0 : i32
    %c0_i32_1 = arith.constant 0 : i32
    return %c0_i32, %c0_i32_0 : i32, i32
  }
}

</mosaic_0001>

<bundles_post_ra>
// kernel: lenet_forward.1
= control target key start
LH: loop header
LB: loop body
LE: loop exit
PB: predicated region body
PF: predicated region fallthrough
CT: control target
= control target key end

     0   :  { %v15900_v3 = vmov 0.0   ;;  %vm185_vm0 = vcmask 1046528   ;;  %vm905_vm1 = vcmask 1045504   ;;  %vm1412_vm2 = vcmask 1044480   ;;  %s15886_s1 = inlined_call_operand.vmem [shape: f32[5,128,168], index: 1, kind: input, shape index: {}]   ;;  %s15887_s0 = inlined_call_operand.vmem [shape: f32[320,128], index: 0, kind: input, shape index: {}]   ;;  %s15888_s3 = inlined_call_operand.vmem [shape: f32[2,168,128], index: 3, kind: input, shape index: {}]   ;;  %s15889_s2 = inlined_call_operand.vmem [shape: f32[1,168], index: 2, kind: input, shape index: {}]   ;;  %s15890_s4 = inlined_call_operand.vmem [shape: f32[5,128,160], index: 4, kind: input, shape index: {}]   ;;  %s15891_s6 = inlined_call_operand.vmem [shape: f32[2,160,128], index: 6, kind: input, shape index: {}]   ;;  %s15892_s5 = inlined_call_operand.vmem [shape: f32[1,160], index: 5, kind: input, shape index: {}]   ;;  %s15893_s7 = inlined_call_operand.vmem [shape: f32[5,128,128], index: 7, kind: input, shape index: {}]   ;;  %s15894_s12 = inlined_call_operand.vmem [shape: f32[8,256], index: 12, kind: input, shape index: {}]   ;;  %s15895_s9 = inlined_call_operand.vmem [shape: f32[128,128], index: 9, kind: input, shape index: {}]   ;;  %s15896_s8 = inlined_call_operand.vmem [shape: f32[1,128], index: 8, kind: input, shape index: {}]   ;;  %s15897_s10 = inlined_call_operand.vmem [shape: f32[128,128], index: 10, kind: input, shape index: {}]   ;;  %s15898_s11 = inlined_call_operand.vmem [shape: f32[1,128], index: 11, kind: input, shape index: {}]   ;;  %s15899_s13 = inlined_call_operand.vmem [shape: f32[8,128], index: 13, kind: output, shape index: {}]  }
   0x1   :  { %v8723_v0 = vld [vmem:[%s15886_s1 + $0x108] sm:$0xff]  ;;  %v8725_v1 = vld [vmem:[%s15886_s1 + $0x118] sm:$0xff]  ;;  %v8722_v2 = vld [vmem:[%s15886_s1 + $0x100] sm:$0xff]  ;;  %362 = vmatprep.mubr.f32.mxu0 %v15900_v3  ;;  %vm1919_vm3 = vcmask 1043456   ;;  %vm2938_vm4 = vcmask 326656   ;;  %vm4869_vm5 = vcmask 1041408  }
   0x2   :  { %v10004_v4 = vpack.c.bf16 %v8725_v1, %v8723_v0  ;;  %v8724_v5 = vld [vmem:[%s15886_s1 + $0x110] sm:$0xff]  ;;  %v8727_v6 = vld [vmem:[%s15886_s1 + $0x128] sm:$0xff]  ;;  %v8729_v7 = vld [vmem:[%s15886_s1 + $0x138] sm:$0xff]  ;;  %vm6355_vm10 = vcmask 261120  }
   0x3   :  { %v10006_v8 = vpack.c.bf16 %v8724_v5, %v8722_v2  ;;  %v10008_v9 = vpack.c.bf16 %v8729_v7, %v8727_v6  ;;  %v8726_v10 = vld [vmem:[%s15886_s1 + $0x120] sm:$0xff]  ;;  %v8728_v11 = vld [vmem:[%s15886_s1 + $0x130] sm:$0xff]  ;;  %v8731_v12 = vld [vmem:[%s15886_s1 + $0x148] sm:$0xff] }
   0x4   :  { %10005 = vmatprep.subr.bf16.mxu0 %v10004_v4  ;;  %v8733_v13 = vld [vmem:[%s15886_s1 + $0x158] sm:$0xff]  ;;  %v10010_v14 = vpack.c.bf16 %v8728_v11, %v8726_v10  ;;  %v8730_v16 = vld [vmem:[%s15886_s1 + $0x140] sm:$0xff]  ;;  %v8732_v17 = vld [vmem:[%s15886_s1 + $0x150] sm:$0xff] }
   0x5   :  { %10007 = vmatpush1.bf16.msra.mxu0 %v10006_v8  ;;  %v10012_v15 = vpack.c.bf16 %v8733_v13, %v8731_v12  ;;  %v8735_v18 = vld [vmem:[%s15886_s1 + $0x168] sm:$0xff]  ;;  %v8737_v19 = vld [vmem:[%s15886_s1 + $0x178] sm:$0xff]  ;;  %v10014_v20 = vpack.c.bf16 %v8732_v17, %v8730_v16  ;;  %v8734_v22 = vld [vmem:[%s15886_s1 + $0x160] sm:$0xff] }
   0x6   :  { %10009 = vmatprep.subr.bf16.mxu0 %v10008_v9  ;;  %v10016_v21 = vpack.c.bf16 %v8737_v19, %v8735_v18  ;;  %v8736_v23 = vld [vmem:[%s15886_s1 + $0x170] sm:$0xff]  ;;  %v8739_v24 = vld [vmem:[%s15886_s1 + $0x188] sm:$0xff]  ;;  %v8741_v25 = vld [vmem:[%s15886_s1 + $0x198] sm:$0xff] }
   0x7   :  { %v10018_v26 = vpack.c.bf16 %v8736_v23, %v8734_v22  ;;  %v10020_v27 = vpack.c.bf16 %v8741_v25, %v8739_v24  ;;  %v8738_v28 = vld [vmem:[%s15886_s1 + $0x180] sm:$0xff]  ;;  %v8740_v29 = vld [vmem:[%s15886_s1 + $0x190] sm:$0xff]  ;;  %v8743_v30 = vld [vmem:[%s15886_s1 + $0x1a8] sm:$0xff] }
   0x8   :  { %v8745_v31 = vld [vmem:[%s15886_s1 + $0x1b8] sm:$0xff]  ;;  %v10022_v32 = vpack.c.bf16 %v8740_v29, %v8738_v28  ;;  %v8742_v34 = vld [vmem:[%s15886_s1 + $0x1a0] sm:$0xff]  ;;  %v8744_v35 = vld [vmem:[%s15886_s1 + $0x1b0] sm:$0xff] }
   0x9   :  { %10011 = vmatpush1.bf16.msra.mxu0 %v10010_v14  ;;  %v10024_v33 = vpack.c.bf16 %v8745_v31, %v8743_v30  ;;  %v8747_v36 = vld [vmem:[%s15886_s1 + $0x1c8] sm:$0xff]  ;;  %v8749_v37 = vld [vmem:[%s15886_s1 + $0x1d8] sm:$0xff]  ;;  %v10026_v38 = vpack.c.bf16 %v8744_v35, %v8742_v34  ;;  %v8746_v40 = vld [vmem:[%s15886_s1 + $0x1c0] sm:$0xff] }
   0xa   :  { %10013 = vmatprep.subr.bf16.mxu0 %v10012_v15  ;;  %v10028_v39 = vpack.c.bf16 %v8749_v37, %v8747_v36  ;;  %v8748_v41 = vld [vmem:[%s15886_s1 + $0x1d0] sm:$0xff]  ;;  %v8751_v42 = vld [vmem:[%s15886_s1 + $0x1e8] sm:$0xff]  ;;  %v8753_v43 = vld [vmem:[%s15886_s1 + $0x1f8] sm:$0xff] }
   0xb   :  { %v10030_v44 = vpack.c.bf16 %v8748_v41, %v8746_v40  ;;  %v8750_v45 = vld [vmem:[%s15886_s1 + $0x1e0] sm:$0xff]  ;;  %v10032_v46 = vpack.c.bf16 %v8753_v43, %v8751_v42  ;;  %v8752_v47 = vld [vmem:[%s15886_s1 + $0x1f0] sm:$0xff]  ;;  %v11633_v49 = vld [vmem:[%s15887_s0 + $0x8] sm:$0xff] }
   0xc   :  { %v11628_v48 = vld [vmem:[%s15887_s0] sm:$0xff]  ;;  %v83_v50 = vld [vmem:[%s15886_s1 + $0x8] sm:$0xff]  ;;  %v85_v51 = vld [vmem:[%s15886_s1 + $0x18] sm:$0xff]  ;;  %v10034_v52 = vpack.c.bf16 %v8752_v47, %v8750_v45  ;;  %v187_v54 = vrot.slane %v11633_v49, 1 }
   0xd   :  { %10015 = vmatpush1.bf16.msra.mxu0 %v10014_v20  ;;  %v186_v53 = vrot.slane %v11628_v48, 1  ;;  %v11646_v55 = vld [vmem:[%s15887_s0 + $0x10] sm:$0xff]  ;;  %v10036_v56 = vpack.c.bf16 %v85_v51, %v83_v50  ;;  %v82_v57 = vld [vmem:[%s15886_s1] sm:$0xff]  ;;  %v87_v59 = vld [vmem:[%s15886_s1 + $0x28] sm:$0xff] }
   0xe   :  { %10017 = vmatprep.subr.bf16.mxu0 %v10016_v21  ;;  %v84_v58 = vld [vmem:[%s15886_s1 + $0x10] sm:$0xff]  ;;  %v89_v60 = vld [vmem:[%s15886_s1 + $0x38] sm:$0xff]  ;;  %v189_v62 = vrot.slane %v11646_v55, 1  ;;  %v86_v2 = vld [vmem:[%s15886_s1 + $0x20] sm:$0xff] }
   0xf   :  { %v188_v61 = vsel %vm185_vm0, %v186_v53, %v187_v54  ;;  %v10038_v63 = vpack.c.bf16 %v84_v58, %v82_v57  ;;  %v11665_v0 = vld [vmem:[%s15887_s0 + $0x18] sm:$0xff]  ;;  %v10040_v1 = vpack.c.bf16 %v89_v60, %v87_v59  ;;  %v88_v4 = vld [vmem:[%s15886_s1 + $0x30] sm:$0xff]  ;;  %v91_v5 = vld [vmem:[%s15886_s1 + $0x48] sm:$0xff] }
  0x10   :  { %v93_v6 = vld [vmem:[%s15886_s1 + $0x58] sm:$0xff]  ;;  %v190_v7 = vsel %vm185_vm0, %v187_v54, %v189_v62  ;;  %v191_v8 = vrot.slane %v11665_v0, 1  ;;  %v10042_v9 = vpack.c.bf16 %v88_v4, %v86_v2  ;;  %v11685_v10 = vld [vmem:[%s15887_s0 + $0x20] sm:$0xff]  ;;  %v92_v13 = vld [vmem:[%s15886_s1 + $0x50] sm:$0xff] }
  0x11   :  { %10019 = vmatpush1.bf16.msra.mxu0 %v10018_v26  ;;  %v10044_v11 = vpack.c.bf16 %v93_v6, %v91_v5  ;;  %v90_v12 = vld [vmem:[%s15886_s1 + $0x40] sm:$0xff]  ;;  %v95_v14 = vld [vmem:[%s15886_s1 + $0x68] sm:$0xff]  ;;  %v97_v15 = vld [vmem:[%s15886_s1 + $0x78] sm:$0xff]  ;;  %v193_v17 = vrot.slane %v11685_v10, 1 }
  0x12   :  { %10021 = vmatprep.subr.bf16.mxu0 %v10020_v27  ;;  %v192_v16 = vsel %vm185_vm0, %v189_v62, %v191_v8  ;;  %v10046_v18 = vpack.c.bf16 %v92_v13, %v90_v12  ;;  %v11705_v19 = vld [vmem:[%s15887_s0 + $0x28] sm:$0xff]  ;;  %v10048_v20 = vpack.c.bf16 %v97_v15, %v95_v14  ;;  %v94_v21 = vld [vmem:[%s15886_s1 + $0x60] sm:$0xff]  ;;  %v96_v22 = vld [vmem:[%s15886_s1 + $0x70] sm:$0xff] }
  0x13   :  { %v99_v23 = vld [vmem:[%s15886_s1 + $0x88] sm:$0xff]  ;;  %v101_v24 = vld [vmem:[%s15886_s1 + $0x98] sm:$0xff]  ;;  %v194_v25 = vsel %vm185_vm0, %v191_v8, %v193_v17  ;;  %v195_v26 = vrot.slane %v11705_v19, 1  ;;  %v10050_v27 = vpack.c.bf16 %v96_v22, %v94_v21  ;;  %v11725_v28 = vld [vmem:[%s15887_s0 + $0x30] sm:$0xff] }
  0x14   :  { %v10052_v29 = vpack.c.bf16 %v101_v24, %v99_v23  ;;  %v98_v30 = vld [vmem:[%s15886_s1 + $0x80] sm:$0xff]  ;;  %v100_v31 = vld [vmem:[%s15886_s1 + $0x90] sm:$0xff]  ;;  %v197_v35 = vrot.slane %v11725_v28, 1  ;;  %v11745_v37 = vld [vmem:[%s15887_s0 + $0x38] sm:$0xff] }
  0x15   :  { %10023 = vmatpush1.bf16.msra.mxu0 %v10022_v32  ;;  %v103_v32 = vld [vmem:[%s15886_s1 + $0xa8] sm:$0xff]  ;;  %v196_v34 = vsel %vm185_vm0, %v193_v17, %v195_v26  ;;  %v10054_v36 = vpack.c.bf16 %v100_v31, %v98_v30  ;;  %v104_v40 = vld [vmem:[%s15886_s1 + $0xb0] sm:$0xff]  ;;  %v109_v42 = vld [vmem:[%s15886_s1 + $0xd8] sm:$0xff] }
  0x16   :  { %10025 = vmatprep.subr.bf16.mxu0 %v10024_v33  ;;  %v105_v33 = vld [vmem:[%s15886_s1 + $0xb8] sm:$0xff]  ;;  %v107_v41 = vld [vmem:[%s15886_s1 + $0xc8] sm:$0xff]  ;;  %v198_v43 = vsel %vm185_vm0, %v195_v26, %v197_v35  ;;  %v106_v50 = vld [vmem:[%s15886_s1 + $0xc0] sm:$0xff] }
  0x17   :  { %v10060_v47 = vpack.c.bf16 %v109_v42, %v107_v41  ;;  %v108_v51 = vld [vmem:[%s15886_s1 + $0xd0] sm:$0xff]  ;;  %v113_v53 = vld [vmem:[%s15886_s1 + $0xf8] sm:$0xff]  ;;  %v11785_v58 = vld [vmem:[%s15887_s0 + $0x48] sm:$0xff] }
  0x18   :  { %v10062_v57 = vpack.c.bf16 %v108_v51, %v106_v50  ;;  %v110_v60 = vld [vmem:[%s15886_s1 + $0xe0] sm:$0xff]  ;;  %v11799_v2 = vld [vmem:[%s15887_s0 + $0x50] sm:$0xff]  ;;  %v11807_v6 = vld [vmem:[%s15887_s0 + $0x58] sm:$0xff] }
  0x19   :  { %10027 = vmatpush1.bf16.msra.mxu0 %v10026_v38  ;;  %v10056_v38 = vpack.c.bf16 %v105_v33, %v103_v32  ;;  %v205_v5 = vrot.slane %v11799_v2, 1  ;;  %v207_v8 = vrot.slane %v11807_v6, 1  ;;  %v11823_v13 = vld [vmem:[%s15887_s0 + $0x68] sm:$0xff]  ;;  %v11847_v23 = vld [vmem:[%s15887_s0 + $0x80] sm:$0xff]  ;;  %v11863_v30 = vld [vmem:[%s15887_s0 + $0x90] sm:$0xff] }
  0x1a   :  { %10029 = vmatprep.subr.bf16.mxu0 %v10028_v39  ;;  %v102_v39 = vld [vmem:[%s15886_s1 + $0xa0] sm:$0xff]  ;;  %v211_v15 = vrot.slane %v11823_v13, 1  ;;  %v11855_v26 = vld [vmem:[%s15887_s0 + $0x88] sm:$0xff]  ;;  %v221_v32 = vrot.slane %v11863_v30, 1  ;;  %v11871_v33 = vld [vmem:[%s15887_s0 + $0x98] sm:$0xff] }
  0x1b   :  { %v10058_v45 = vpack.c.bf16 %v104_v40, %v102_v39  ;;  %v11887_v40 = vld [vmem:[%s15887_s0 + $0xa8] sm:$0xff] }
  0x1c   :  { %v227_v42 = vrot.slane %v11887_v40, 1 }
  0x1d   :  { %10031 = vmatpush1.bf16.msra.mxu0 %v10030_v44  ;;  %v199_v44 = vrot.slane %v11745_v37, 1 }
  0x1e   :  { %10033 = vmatprep.subr.bf16.mxu0 %v10032_v46  ;;  %v11765_v46 = vld [vmem:[%s15887_s0 + $0x40] sm:$0xff] }
  0x1f   :  { %v200_v54 = vsel %vm185_vm0, %v197_v35, %v199_v44  ;;  %v223_v35 = vrot.slane %v11871_v33, 1 }
  0x21   :  { %10035 = vmatpush1.bf16.msra.mxu0 %v10034_v52  ;;  %v111_v52 = vld [vmem:[%s15886_s1 + $0xe8] sm:$0xff] }
  0x22   :  { %10037 = vmatprep.subr.bf16.mxu0 %v10036_v56  ;;  %v201_v56 = vrot.slane %v11765_v46, 1  ;;  %v10064_v59 = vpack.c.bf16 %v113_v53, %v111_v52  ;;  %v11911_v52 = vld [vmem:[%s15887_s0 + $0xc0] sm:$0xff] }
  0x24   :  { %363 = vmatmul.mubr.f32.vlgmr.msra.gmra.mrb[0].mxu0 %v188_v61  ;;  %v112_v61 = vld [vmem:[%s15886_s1 + $0xf0] sm:$0xff]  ;;  %v202_v62 = vsel %vm185_vm0, %v199_v44, %v201_v56 }
  0x25   :  { %368 = vmatprep.mubr.f32.mxu0 %v15900_v3  ;;  %10039 = vmatpush1.bf16.msra.mxu0 %v10038_v63  ;;  %v203_v63 = vrot.slane %v11785_v58, 1 }
  0x26   :  { %10041 = vmatprep.subr.bf16.mxu0 %v10040_v1  ;;  %v10066_v1 = vpack.c.bf16 %v112_v61, %v110_v60  ;;  %v11927_v60 = vld [vmem:[%s15887_s0 + $0xd0] sm:$0xff] }
  0x27   :  { %v204_v4 = vsel %vm185_vm0, %v201_v56, %v203_v63  ;;  %v11919_v56 = vld [vmem:[%s15887_s0 + $0xc8] sm:$0xff] }
  0x28   :  { %369 = vmatmul.mubr.f32.gmra.mrb[2].mxu0 %v190_v7  ;;  %v206_v7 = vsel %vm185_vm0, %v203_v63, %v205_v5  ;;  %v11935_v63 = vld [vmem:[%s15887_s0 + $0xd8] sm:$0xff] }
  0x29   :  { %374 = vmatprep.mubr.f32.mxu0 %v15900_v3  ;;  %10043 = vmatpush1.bf16.msra.mxu0 %v10042_v9  ;;  %v11815_v9 = vld [vmem:[%s15887_s0 + $0x60] sm:$0xff] }
  0x2a   :  { %10045 = vmatprep.subr.bf16.mxu0 %v10044_v11  ;;  %v208_v11 = vsel %vm185_vm0, %v205_v5, %v207_v8  ;;  %v209_v12 = vrot.slane %v11815_v9, 1  ;;  %v11943_v5 = vld [vmem:[%s15887_s0 + $0xe0] sm:$0xff] }
  0x2c   :  { %375 = vmatmul.mubr.f32.gmra.mrb[4].mxu0 %v192_v16  ;;  %v210_v14 = vsel %vm185_vm0, %v207_v8, %v209_v12  ;;  %v11831_v16 = vld [vmem:[%s15887_s0 + $0x70] sm:$0xff]  ;;  %v212_v17 = vsel %vm185_vm0, %v209_v12, %v211_v15  ;;  %v241_v8 = vrot.slane %v11943_v5, 1 }
  0x2d   :  { %380 = vmatprep.mubr.f32.mxu0 %v15900_v3  ;;  %10047 = vmatpush1.bf16.msra.mxu0 %v10046_v18  ;;  %v213_v18 = vrot.slane %v11831_v16, 1 }
  0x2e   :  { %10049 = vmatprep.subr.bf16.mxu0 %v10048_v20  ;;  %v11839_v20 = vld [vmem:[%s15887_s0 + $0x78] sm:$0xff] }
  0x2f   :  { %v214_v21 = vsel %vm185_vm0, %v211_v15, %v213_v18  ;;  %v215_v22 = vrot.slane %v11839_v20, 1  ;;  %v11959_v15 = vld [vmem:[%s15887_s0 + $0xf0] sm:$0xff] }
  0x30   :  { %381 = vmatmul.mubr.f32.gmra.mrb[6].mxu0 %v194_v25  ;;  %v217_v25 = vrot.slane %v11847_v23, 1 }
  0x31   :  { %386 = vmatprep.mubr.f32.mxu0 %v15900_v3  ;;  %10051 = vmatpush1.bf16.msra.mxu0 %v10050_v27  ;;  %v216_v24 = vsel %vm185_vm0, %v213_v18, %v215_v22  ;;  %v245_v18 = vrot.slane %v11959_v15, 1 }
  0x32   :  { %10053 = vmatprep.subr.bf16.mxu0 %v10052_v29  ;;  %v218_v27 = vsel %vm185_vm0, %v215_v22, %v217_v25  ;;  %v219_v29 = vrot.slane %v11855_v26, 1 }
  0x34   :  { %387 = vmatmul.mubr.f32.gmra.mrb[8].mxu0 %v196_v34  ;;  %v220_v31 = vsel %vm185_vm0, %v217_v25, %v219_v29  ;;  %v222_v34 = vsel %vm185_vm0, %v219_v29, %v221_v32  ;;  %v11975_v25 = vld [vmem:[%s15887_s0 + $0x100] sm:$0xff] }
  0x35   :  { %392 = vmatprep.mubr.f32.mxu0 %v15900_v3  ;;  %10055 = vmatpush1.bf16.msra.mxu0 %v10054_v36  ;;  %v11879_v36 = vld [vmem:[%s15887_s0 + $0xa0] sm:$0xff]  ;;  %v249_v29 = vrot.slane %v11975_v25, 1 }
  0x36   :  { %10057 = vmatprep.subr.bf16.mxu0 %v10056_v38  ;;  %v224_v38 = vsel %vm185_vm0, %v221_v32, %v223_v35  ;;  %v225_v39 = vrot.slane %v11879_v36, 1 }
  0x38   :  { %393 = vmatmul.mubr.f32.gmra.mrb[10].mxu0 %v198_v43  ;;  %v226_v41 = vsel %vm185_vm0, %v223_v35, %v225_v39  ;;  %v11895_v43 = vld [vmem:[%s15887_s0 + $0xb0] sm:$0xff]  ;;  %v228_v44 = vsel %vm185_vm0, %v225_v39, %v227_v42  ;;  %v8757_v39 = vld [vmem:[%s15886_s1 + $0x218] sm:$0xff] }
  0x39   :  { %398 = vmatprep.mubr.f32.mxu0 %v15900_v3  ;;  %10059 = vmatpush1.bf16.msra.mxu0 %v10058_v45  ;;  %v229_v45 = vrot.slane %v11895_v43, 1  ;;  %v11991_v35 = vld [vmem:[%s15887_s0 + $0x110] sm:$0xff] }
  0x3a   :  { %10061 = vmatprep.subr.bf16.mxu0 %v10060_v47  ;;  %v11903_v47 = vld [vmem:[%s15887_s0 + $0xb8] sm:$0xff] }
  0x3b   :  { %v230_v50 = vsel %vm185_vm0, %v227_v42, %v229_v45  ;;  %v231_v51 = vrot.slane %v11903_v47, 1  ;;  %v253_v42 = vrot.slane %v11991_v35, 1 }
  0x3c   :  { %399 = vmatmul.mubr.f32.gmra.mrb[12].mxu0 %v200_v54  ;;  %v233_v54 = vrot.slane %v11911_v52, 1 }
  0x3d   :  { %404 = vmatprep.mubr.f32.mxu0 %v15900_v3  ;;  %10063 = vmatpush1.bf16.msra.mxu0 %v10062_v57  ;;  %v232_v53 = vsel %vm185_vm0, %v229_v45, %v231_v51  ;;  %v12005_v45 = vld [vmem:[%s15887_s0 + $0x118] sm:$0xff] }
  0x3e   :  { %10065 = vmatprep.subr.bf16.mxu0 %v10064_v59  ;;  %v234_v57 = vsel %vm185_vm0, %v231_v51, %v233_v54  ;;  %v235_v59 = vrot.slane %v11919_v56, 1  ;;  %v255_v51 = vrot.slane %v12005_v45, 1 }
  0x40   :  { %405 = vmatmul.mubr.f32.gmra.mrb[14].mxu0 %v202_v62  ;;  %v236_v61 = vsel %vm185_vm0, %v233_v54, %v235_v59  ;;  %v237_v62 = vrot.slane %v11927_v60, 1  ;;  %v256_v54 = vsel %vm185_vm0, %v253_v42, %v255_v51 }
  0x41   :  { %410 = vmatprep.mubr.f32.mxu0 %v15900_v3  ;;  %10067 = vmatpush1.bf16.msra.mxu0 %v10066_v1 }
  0x42   :  { %v238_v1 = vsel %vm185_vm0, %v235_v59, %v237_v62  ;;  %v12021_v59 = vld [vmem:[%s15887_s0 + $0x128] sm:$0xff] }
  0x44   :  { %411 = vmatmul.mubr.f32.gmra.mrb[16].mxu0 %v204_v4  ;;  %v239_v4 = vrot.slane %v11935_v63, 1 }
  0x45   :  { %416 = vmatprep.mubr.f32.mxu0 %v15900_v3 }
  0x46   :  { %v242_v12 = vsel %vm185_vm0, %v239_v4, %v241_v8 }
  0x48   :  { %417 = vmatmul.mubr.f32.gmra.mrb[18].mxu0 %v206_v7  ;;  %v240_v7 = vsel %vm185_vm0, %v237_v62, %v239_v4  ;;  %v259_v62 = vrot.slane %v12021_v59, 1  ;;  %v8754_v4 = vld [vmem:[%s15886_s1 + $0x200] sm:$0xff] }
  0x49   :  { %422 = vmatprep.mubr.f32.mxu0 %v15900_v3 }
  0x4c   :  { %423 = vmatmul.mubr.f32.gmra.mrb[20].mxu0 %v208_v11  ;;  %v11951_v11 = vld [vmem:[%s15887_s0 + $0xe8] sm:$0xff] }
  0x4d   :  { %428 = vmatprep.mubr.f32.mxu0 %v15900_v3 }
  0x50   :  { %429 = vmatmul.mubr.f32.gmra.mrb[22].mxu0 %v210_v14  ;;  %v243_v14 = vrot.slane %v11951_v11, 1 }
  0x51   :  { %434 = vmatprep.mubr.f32.mxu0 %v15900_v3 }
  0x52   :  { %v246_v22 = vsel %vm185_vm0, %v243_v14, %v245_v18 }
  0x54   :  { %435 = vmatmul.mubr.f32.gmra.mrb[24].mxu0 %v212_v17  ;;  %v244_v17 = vsel %vm185_vm0, %v241_v8, %v243_v14  ;;  %v8759_v8 = vld [vmem:[%s15886_s1 + $0x228] sm:$0xff] }
  0x55   :  { %440 = vmatprep.mubr.f32.mxu0 %v15900_v3 }
  0x58   :  { %441 = vmatmul.mubr.f32.gmra.mrb[26].mxu0 %v214_v21  ;;  %v11967_v21 = vld [vmem:[%s15887_s0 + $0xf8] sm:$0xff] }
  0x59   :  { %446 = vmatprep.mubr.f32.mxu0 %v15900_v3 }
  0x5c   :  { %447 = vmatmul.mubr.f32.gmra.mrb[28].mxu0 %v216_v24  ;;  %v247_v24 = vrot.slane %v11967_v21, 1 }
  0x5d   :  { %452 = vmatprep.mubr.f32.mxu0 %v15900_v3 }
  0x5e   :  { %v250_v32 = vsel %vm185_vm0, %v247_v24, %v249_v29 }
  0x60   :  { %453 = vmatmul.mubr.f32.gmra.mrb[30].mxu0 %v218_v27  ;;  %v248_v27 = vsel %vm185_vm0, %v245_v18, %v247_v24  ;;  %v8758_v18 = vld [vmem:[%s15886_s1 + $0x220] sm:$0xff]  ;;  %v8763_v24 = vld [vmem:[%s15886_s1 + $0x248] sm:$0xff] }
  0x61   :  { %458 = vmatprep.mubr.f32.mxu0 %v15900_v3 }
  0x64   :  { %459 = vmatmul.mubr.f32.gmra.mrb[32].mxu0 %v220_v31  ;;  %v11983_v31 = vld [vmem:[%s15887_s0 + $0x108] sm:$0xff] }
  0x65   :  { %464 = vmatprep.mubr.f32.mxu0 %v15900_v3 }
  0x68   :  { %465 = vmatmul.mubr.f32.gmra.mrb[34].mxu0 %v222_v34  ;;  %v251_v34 = vrot.slane %v11983_v31, 1 }
  0x69   :  { %470 = vmatprep.mubr.f32.mxu0 %v15900_v3 }
  0x6c   :  { %471 = vmatmul.mubr.f32.gmra.mrb[36].mxu0 %v224_v38  ;;  %v8755_v38 = vld [vmem:[%s15886_s1 + $0x208] sm:$0xff] }
  0x6d   :  { %476 = vmatprep.mubr.f32.mxu0 %v15900_v3 }
  0x70   :  { %477 = vmatmul.mubr.f32.gmra.mrb[38].mxu0 %v226_v41  ;;  %v252_v41 = vsel %vm185_vm0, %v249_v29, %v251_v34 }
  0x71   :  { %482 = vmatprep.mubr.f32.mxu0 %v15900_v3 }
  0x74   :  { %483 = vmatmul.mubr.f32.gmra.mrb[40].mxu0 %v228_v44  ;;  %v10068_v44 = vpack.c.bf16 %v8757_v39, %v8755_v38  ;;  %v8764_v38 = vld [vmem:[%s15886_s1 + $0x250] sm:$0xff]  ;;  %v8767_v39 = vld [vmem:[%s15886_s1 + $0x268] sm:$0xff] }
  0x75   :  { %488 = vmatprep.mubr.f32.mxu0 %v15900_v3 }
  0x76   :  { %10069 = vmatprep.subr.bf16.mxu0 %v10068_v44 }
  0x78   :  { %489 = vmatmul.mubr.f32.gmra.mrb[42].mxu0 %v230_v50  ;;  %v254_v50 = vsel %vm185_vm0, %v251_v34, %v253_v42  ;;  %v8762_v34 = vld [vmem:[%s15886_s1 + $0x240] sm:$0xff] }
  0x79   :  { %494 = vmatprep.mubr.f32.mxu0 %v15900_v3  ;;  %v10078_v42 = vpack.c.bf16 %v8764_v38, %v8762_v34  ;;  %v8780_v34 = vld [vmem:[%s15886_s1 + $0x2d0] sm:$0xff]  ;;  %v8783_v38 = vld [vmem:[%s15886_s1 + $0x2e8] sm:$0xff] }
  0x7c   :  { %495 = vmatmul.mubr.f32.gmra.mrb[44].mxu0 %v232_v53  ;;  %v12013_v53 = vld [vmem:[%s15887_s0 + $0x120] sm:$0xff] }
  0x7d   :  { %500 = vmatprep.mubr.f32.mxu0 %v15900_v3 }
  0x80   :  { %501 = vmatmul.mubr.f32.gmra.mrb[46].mxu0 %v234_v57  ;;  %v257_v57 = vrot.slane %v12013_v53, 1 }
  0x81   :  { %506 = vmatprep.mubr.f32.mxu0 %v15900_v3 }
  0x84   :  { %507 = vmatmul.mubr.f32.gmra.mrb[48].mxu0 %v236_v61  ;;  %v258_v61 = vsel %vm185_vm0, %v255_v51, %v257_v57  ;;  %v8768_v51 = vld [vmem:[%s15886_s1 + $0x270] sm:$0xff] }
  0x85   :  { %512 = vmatprep.mubr.f32.mxu0 %v15900_v3 }
  0x88   :  { %513 = vmatmul.mubr.f32.gmra.mrb[50].mxu0 %v238_v1  ;;  %v260_v1 = vsel %vm185_vm0, %v257_v57, %v259_v62  ;;  %v8773_v57 = vld [vmem:[%s15886_s1 + $0x298] sm:$0xff] }
  0x89   :  { %518 = vmatprep.mubr.f32.mxu0 %v15900_v3 }
  0x8c   :  { %519 = vmatmul.mubr.f32.gmra.mrb[52].mxu0 %v240_v7  ;;  %v8756_v7 = vld [vmem:[%s15886_s1 + $0x210] sm:$0xff] }
  0x8d   :  { %524 = vmatprep.mubr.f32.mxu0 %v15900_v3  ;;  %v10070_v14 = vpack.c.bf16 %v8756_v7, %v8754_v4  ;;  %v8772_v4 = vld [vmem:[%s15886_s1 + $0x290] sm:$0xff]  ;;  %v8775_v7 = vld [vmem:[%s15886_s1 + $0x2a8] sm:$0xff] }
  0x90   :  { %525 = vmatmul.mubr.f32.gmra.mrb[54].mxu0 %v242_v12  ;;  %v8761_v12 = vld [vmem:[%s15886_s1 + $0x238] sm:$0xff] }
  0x91   :  { %530 = vmatprep.mubr.f32.mxu0 %v15900_v3 }
  0x94   :  { %531 = vmatmul.mubr.f32.gmra.mrb[56].mxu0 %v244_v17  ;;  %v10072_v17 = vpack.c.bf16 %v8761_v12, %v8759_v8  ;;  %v8777_v8 = vld [vmem:[%s15886_s1 + $0x2b8] sm:$0xff] }
  0x95   :  { %536 = vmatprep.mubr.f32.mxu0 %v15900_v3 }
  0x98   :  { %537 = vmatmul.mubr.f32.gmra.mrb[58].mxu0 %v246_v22  ;;  %v8760_v22 = vld [vmem:[%s15886_s1 + $0x230] sm:$0xff] }
  0x99   :  { %542 = vmatprep.mubr.f32.mxu0 %v15900_v3  ;;  %v10074_v29 = vpack.c.bf16 %v8760_v22, %v8758_v18  ;;  %v8776_v18 = vld [vmem:[%s15886_s1 + $0x2b0] sm:$0xff]  ;;  %v8779_v22 = vld [vmem:[%s15886_s1 + $0x2c8] sm:$0xff] }
  0x9c   :  { %543 = vmatmul.mubr.f32.gmra.mrb[60].mxu0 %v248_v27  ;;  %v8765_v27 = vld [vmem:[%s15886_s1 + $0x258] sm:$0xff] }
  0x9d   :  { %548 = vmatprep.mubr.f32.mxu0 %v15900_v3 }
  0xa0   :  { %549 = vmatmul.mubr.f32.gmra.mrb[62].mxu0 %v250_v32  ;;  %v10076_v32 = vpack.c.bf16 %v8765_v27, %v8763_v24  ;;  %v8781_v24 = vld [vmem:[%s15886_s1 + $0x2d8] sm:$0xff] }
  0xa1   :  { %554 = vmatprep.mubr.f32.mxu0 %v15900_v3 }
  0xa4   :  { %555 = vmatmul.mubr.f32.gmra.mrb[64].mxu0 %v252_v41  ;;  %v8769_v41 = vld [vmem:[%s15886_s1 + $0x278] sm:$0xff] }
  0xa5   :  { %560 = vmatprep.mubr.f32.mxu0 %v15900_v3  ;;  %v10080_v44 = vpack.c.bf16 %v8769_v41, %v8767_v39  ;;  %v8785_v39 = vld [vmem:[%s15886_s1 + $0x2f8] sm:$0xff] }
  0xa8   :  { %561 = vmatmul.mubr.f32.gmra.mrb[66].mxu0 %v254_v50  ;;  %v8766_v50 = vld [vmem:[%s15886_s1 + $0x260] sm:$0xff] }
  0xa9   :  { %566 = vmatprep.mubr.f32.mxu0 %v15900_v3 }
  0xac   :  { %567 = vmatmul.mubr.f32.gmra.mrb[68].mxu0 %v256_v54  ;;  %v8771_v54 = vld [vmem:[%s15886_s1 + $0x288] sm:$0xff] }
  0xad   :  { %572 = vmatprep.mubr.f32.mxu0 %v15900_v3  ;;  %v10084_v62 = vpack.c.bf16 %v8773_v57, %v8771_v54  ;;  %v8787_v54 = vld [vmem:[%s15886_s1 + $0x308] sm:$0xff]  ;;  %v8789_v57 = vld [vmem:[%s15886_s1 + $0x318] sm:$0xff] }
  0xb0   :  { %573 = vmatmul.mubr.f32.gmra.mrb[70].mxu0 %v258_v61  ;;  %v10082_v61 = vpack.c.bf16 %v8768_v51, %v8766_v50  ;;  %v8784_v50 = vld [vmem:[%s15886_s1 + $0x2f0] sm:$0xff] }
  0xb1   :  { %578 = vmatprep.mubr.f32.mxu0 %v15900_v3 }
  0xb4   :  { %579 = vmatmul.mubr.f32.gmra.mrb[72].mxu0 %v260_v1  ;;  %v8770_v1 = vld [vmem:[%s15886_s1 + $0x280] sm:$0xff] }
  0xb5   :  { %649 = vmatprep.mubr.f32.mxu0 %v15900_v3  ;;  %v10086_v12 = vpack.c.bf16 %v8772_v4, %v8770_v1  ;;  %v907_v1 = vrot.slane %v11633_v49, 2  ;;  %v8786_v4 = vld [vmem:[%s15886_s1 + $0x300] sm:$0xff] }
  0xb8   :  { %650 = vmatmul.mubr.f32.vlgmr.msra.gmra.mrb[0].mxu0 %v11628_v48 }
  0xb9   :  { %655 = vmatprep.mubr.f32.mxu0 %v15900_v3  ;;  %10071 = vmatpush1.bf16.msra.mxu0 %v10070_v14  ;;  %v10088_v14 = vpack.c.bf16 %v8777_v8, %v8775_v7  ;;  %v8788_v7 = vld [vmem:[%s15886_s1 + $0x310] sm:$0xff]  ;;  %v8791_v8 = vld [vmem:[%s15886_s1 + $0x328] sm:$0xff] }
  0xba   :  { %10073 = vmatprep.subr.bf16.mxu0 %v10072_v17  ;;  %v8774_v17 = vld [vmem:[%s15886_s1 + $0x2a0] sm:$0xff] }
  0xbb   :  { %v10090_v27 = vpack.c.bf16 %v8776_v18, %v8774_v17  ;;  %v8790_v18 = vld [vmem:[%s15886_s1 + $0x320] sm:$0xff] }
  0xbc   :  { %656 = vmatmul.mubr.f32.gmra.mrb[2].mxu0 %v11633_v49  ;;  %v909_v49 = vrot.slane %v11646_v55, 2 }
  0xbd   :  { %661 = vmatprep.mubr.f32.mxu0 %v15900_v3  ;;  %10075 = vmatpush1.bf16.msra.mxu0 %v10074_v29  ;;  %v10092_v29 = vpack.c.bf16 %v8781_v24, %v8779_v22  ;;  %v8792_v22 = vld [vmem:[%s15886_s1 + $0x330] sm:$0xff]  ;;  %v8795_v24 = vld [vmem:[%s15886_s1 + $0x348] sm:$0xff] }
  0xbe   :  { %10077 = vmatprep.subr.bf16.mxu0 %v10076_v32  ;;  %v8778_v32 = vld [vmem:[%s15886_s1 + $0x2c0] sm:$0xff] }
  0xbf   :  { %v10094_v41 = vpack.c.bf16 %v8780_v34, %v8778_v32  ;;  %v10106_v32 = vpack.c.bf16 %v8792_v22, %v8790_v18  ;;  %v8806_v22 = vld [vmem:[%s15886_s1 + $0x3a0] sm:$0xff] }
  0xc0   :  { %662 = vmatmul.mubr.f32.gmra.mrb[4].mxu0 %v11646_v55  ;;  %v910_v55 = vsel %vm905_vm1, %v907_v1, %v909_v49 }
  0xc1   :  { %667 = vmatprep.mubr.f32.mxu0 %v15900_v3  ;;  %10079 = vmatpush1.bf16.msra.mxu0 %v10078_v42  ;;  %v10096_v42 = vpack.c.bf16 %v8785_v39, %v8783_v38  ;;  %v8794_v38 = vld [vmem:[%s15886_s1 + $0x340] sm:$0xff]  ;;  %v8796_v39 = vld [vmem:[%s15886_s1 + $0x350] sm:$0xff] }
  0xc2   :  { %10081 = vmatprep.subr.bf16.mxu0 %v10080_v44  ;;  %v8782_v44 = vld [vmem:[%s15886_s1 + $0x2e0] sm:$0xff] }
  0xc3   :  { %v10098_v51 = vpack.c.bf16 %v8784_v50, %v8782_v44  ;;  %v913_v44 = vrot.slane %v11685_v10, 2  ;;  %v10110_v50 = vpack.c.bf16 %v8796_v39, %v8794_v38  ;;  %v8810_v38 = vld [vmem:[%s15886_s1 + $0x3c0] sm:$0xff]  ;;  %v8812_v39 = vld [vmem:[%s15886_s1 + $0x3d0] sm:$0xff] }
  0xc4   :  { %668 = vmatmul.mubr.f32.gmra.mrb[6].mxu0 %v11665_v0 }
  0xc5   :  { %673 = vmatprep.mubr.f32.mxu0 %v15900_v3  ;;  %10083 = vmatpush1.bf16.msra.mxu0 %v10082_v61  ;;  %v10100_v61 = vpack.c.bf16 %v8789_v57, %v8787_v54  ;;  %v8798_v54 = vld [vmem:[%s15886_s1 + $0x360] sm:$0xff]  ;;  %v8800_v57 = vld [vmem:[%s15886_s1 + $0x370] sm:$0xff] }
  0xc6   :  { %10085 = vmatprep.subr.bf16.mxu0 %v10084_v62  ;;  %v906_v62 = vrot.slane %v11628_v48, 2 }
  0xc8   :  { %674 = vmatmul.mubr.f32.gmra.mrb[8].mxu0 %v11685_v10  ;;  %v908_v48 = vsel %vm905_vm1, %v906_v62, %v907_v1  ;;  %v8805_v10 = vld [vmem:[%s15886_s1 + $0x398] sm:$0xff]  ;;  %v915_v1 = vrot.slane %v11705_v19, 2 }
  0xc9   :  { %679 = vmatprep.mubr.f32.mxu0 %v15900_v3  ;;  %10087 = vmatpush1.bf16.msra.mxu0 %v10086_v12  ;;  %v8793_v12 = vld [vmem:[%s15886_s1 + $0x338] sm:$0xff] }
  0xca   :  { %10089 = vmatprep.subr.bf16.mxu0 %v10088_v14  ;;  %v10102_v14 = vpack.c.bf16 %v8788_v7, %v8786_v4  ;;  %v10104_v17 = vpack.c.bf16 %v8793_v12, %v8791_v8  ;;  %v10114_v4 = vpack.c.bf16 %v8800_v57, %v8798_v54  ;;  %v8802_v8 = vld [vmem:[%s15886_s1 + $0x380] sm:$0xff]  ;;  %v8804_v12 = vld [vmem:[%s15886_s1 + $0x390] sm:$0xff] }
  0xcb   :  { %v8816_v54 = vld [vmem:[%s15886_s1 + $0x3f0] sm:$0xff] }
  0xcc   :  { %680 = vmatmul.mubr.f32.gmra.mrb[10].mxu0 %v11705_v19  ;;  %v8809_v19 = vld [vmem:[%s15886_s1 + $0x3b8] sm:$0xff] }
  0xcd   :  { %685 = vmatprep.mubr.f32.mxu0 %v15900_v3  ;;  %10091 = vmatpush1.bf16.msra.mxu0 %v10090_v27  ;;  %v8797_v27 = vld [vmem:[%s15886_s1 + $0x358] sm:$0xff] }
  0xce   :  { %10093 = vmatprep.subr.bf16.mxu0 %v10092_v29  ;;  %v911_v29 = vrot.slane %v11665_v0, 2  ;;  %v10108_v34 = vpack.c.bf16 %v8797_v27, %v8795_v24  ;;  %v8801_v0 = vld [vmem:[%s15886_s1 + $0x378] sm:$0xff]  ;;  %v8808_v24 = vld [vmem:[%s15886_s1 + $0x3b0] sm:$0xff]  ;;  %v8811_v27 = vld [vmem:[%s15886_s1 + $0x3c8] sm:$0xff] }
  0xd0   :  { %686 = vmatmul.mubr.f32.gmra.mrb[12].mxu0 %v11725_v28  ;;  %v914_v62 = vsel %vm905_vm1, %v911_v29, %v913_v44 }
  0xd1   :  { %691 = vmatprep.mubr.f32.mxu0 %v15900_v3  ;;  %10095 = vmatpush1.bf16.msra.mxu0 %v10094_v41  ;;  %v8799_v41 = vld [vmem:[%s15886_s1 + $0x368] sm:$0xff] }
  0xd2   :  { %10097 = vmatprep.subr.bf16.mxu0 %v10096_v42  ;;  %v912_v42 = vsel %vm905_vm1, %v909_v49, %v911_v29  ;;  %v916_v49 = vsel %vm905_vm1, %v913_v44, %v915_v1  ;;  %v919_v29 = vrot.slane %v11745_v37, 2  ;;  %v10126_v44 = vpack.c.bf16 %v8812_v39, %v8810_v38 }
  0xd4   :  { %692 = vmatmul.mubr.f32.gmra.mrb[14].mxu0 %v11745_v37  ;;  %v8817_v37 = vld [vmem:[%s15886_s1 + $0x3f8] sm:$0xff] }
  0xd5   :  { %697 = vmatprep.mubr.f32.mxu0 %v15900_v3  ;;  %10099 = vmatpush1.bf16.msra.mxu0 %v10098_v51  ;;  %v10112_v51 = vpack.c.bf16 %v8801_v0, %v8799_v41  ;;  %v8815_v41 = vld [vmem:[%s15886_s1 + $0x3e8] sm:$0xff] }
  0xd6   :  { %10101 = vmatprep.subr.bf16.mxu0 %v10100_v61  ;;  %v8803_v61 = vld [vmem:[%s15886_s1 + $0x388] sm:$0xff] }
  0xd7   :  { %v10116_v7 = vpack.c.bf16 %v8805_v10, %v8803_v61  ;;  %v923_v61 = vrot.slane %v11785_v58, 2 }
  0xd8   :  { %698 = vmatmul.mubr.f32.gmra.mrb[16].mxu0 %v11765_v46 }
  0xd9   :  { %703 = vmatprep.mubr.f32.mxu0 %v15900_v3 }
  0xdc   :  { %704 = vmatmul.mubr.f32.gmra.mrb[18].mxu0 %v11785_v58 }
  0xdd   :  { %709 = vmatprep.mubr.f32.mxu0 %v15900_v3 }
  0xe0   :  { %710 = vmatmul.mubr.f32.gmra.mrb[20].mxu0 %v11799_v2 }
  0xe1   :  { %715 = vmatprep.mubr.f32.mxu0 %v15900_v3 }
  0xe4   :  { %716 = vmatmul.mubr.f32.gmra.mrb[22].mxu0 %v11807_v6 }
  0xe5   :  { %721 = vmatprep.mubr.f32.mxu0 %v15900_v3 }
  0xe8   :  { %722 = vmatmul.mubr.f32.gmra.mrb[24].mxu0 %v11815_v9 }
  0xe9   :  { %727 = vmatprep.mubr.f32.mxu0 %v15900_v3 }
  0xec   :  { %728 = vmatmul.mubr.f32.gmra.mrb[26].mxu0 %v11823_v13 }
  0xed   :  { %733 = vmatprep.mubr.f32.mxu0 %v15900_v3 }
  0xf0   :  { %734 = vmatmul.mubr.f32.gmra.mrb[28].mxu0 %v11831_v16 }
  0xf1   :  { %739 = vmatprep.mubr.f32.mxu0 %v15900_v3 }
  0xf4   :  { %740 = vmatmul.mubr.f32.gmra.mrb[30].mxu0 %v11839_v20 }
  0xf5   :  { %745 = vmatprep.mubr.f32.mxu0 %v15900_v3 }
  0xf8   :  { %746 = vmatmul.mubr.f32.gmra.mrb[32].mxu0 %v11847_v23 }
  0xf9   :  { %751 = vmatprep.mubr.f32.mxu0 %v15900_v3 }
  0xfc   :  { %752 = vmatmul.mubr.f32.gmra.mrb[34].mxu0 %v11855_v26 }
  0xfd   :  { %757 = vmatprep.mubr.f32.mxu0 %v15900_v3 }
 0x100   :  { %758 = vmatmul.mubr.f32.gmra.mrb[36].mxu0 %v11863_v30 }
 0x101   :  { %763 = vmatprep.mubr.f32.mxu0 %v15900_v3 }
 0x104   :  { %764 = vmatmul.mubr.f32.gmra.mrb[38].mxu0 %v11871_v33 }
 0x105   :  { %769 = vmatprep.mubr.f32.mxu0 %v15900_v3 }
 0x108   :  { %770 = vmatmul.mubr.f32.gmra.mrb[40].mxu0 %v11879_v36 }
 0x109   :  { %775 = vmatprep.mubr.f32.mxu0 %v15900_v3 }
 0x10c   :  { %776 = vmatmul.mubr.f32.gmra.mrb[42].mxu0 %v11887_v40 }
 0x10d   :  { %781 = vmatprep.mubr.f32.mxu0 %v15900_v3 }
 0x110   :  { %782 = vmatmul.mubr.f32.gmra.mrb[44].mxu0 %v11895_v43 }
 0x111   :  { %787 = vmatprep.mubr.f32.mxu0 %v15900_v3 }
 0x114   :  { %788 = vmatmul.mubr.f32.gmra.mrb[46].mxu0 %v11903_v47 }
 0x115   :  { %793 = vmatprep.mubr.f32.mxu0 %v15900_v3 }
 0x118   :  { %794 = vmatmul.mubr.f32.gmra.mrb[48].mxu0 %v11911_v52 }
 0x119   :  { %799 = vmatprep.mubr.f32.mxu0 %v15900_v3 }
 0x11c   :  { %800 = vmatmul.mubr.f32.gmra.mrb[50].mxu0 %v11919_v56 }
 0x11d   :  { %805 = vmatprep.mubr.f32.mxu0 %v15900_v3 }
 0x120   :  { %806 = vmatmul.mubr.f32.gmra.mrb[52].mxu0 %v11927_v60 }
 0x121   :  { %811 = vmatprep.mubr.f32.mxu0 %v15900_v3 }
 0x124   :  { %812 = vmatmul.mubr.f32.gmra.mrb[54].mxu0 %v11935_v63 }
 0x125   :  { %817 = vmatprep.mubr.f32.mxu0 %v15900_v3 }
 0x128   :  { %818 = vmatmul.mubr.f32.gmra.mrb[56].mxu0 %v11943_v5 }
 0x129   :  { %823 = vmatprep.mubr.f32.mxu0 %v15900_v3 }
 0x12c   :  { %824 = vmatmul.mubr.f32.gmra.mrb[58].mxu0 %v11951_v11 }
 0x12d   :  { %829 = vmatprep.mubr.f32.mxu0 %v15900_v3 }
 0x130   :  { %830 = vmatmul.mubr.f32.gmra.mrb[60].mxu0 %v11959_v15 }
 0x131   :  { %835 = vmatprep.mubr.f32.mxu0 %v15900_v3 }
 0x134   :  { %836 = vmatmul.mubr.f32.gmra.mrb[62].mxu0 %v11967_v21 }
 0x135   :  { %841 = vmatprep.mubr.f32.mxu0 %v15900_v3 }
 0x138   :  { %842 = vmatmul.mubr.f32.gmra.mrb[64].mxu0 %v11975_v25 }
 0x139   :  { %847 = vmatprep.mubr.f32.mxu0 %v15900_v3 }
 0x13c   :  { %848 = vmatmul.mubr.f32.gmra.mrb[66].mxu0 %v11983_v31 }
 0x13d   :  { %853 = vmatprep.mubr.f32.mxu0 %v15900_v3 }
 0x140   :  { %854 = vmatmul.mubr.f32.gmra.mrb[68].mxu0 %v11991_v35 }
 0x141   :  { %859 = vmatprep.mubr.f32.mxu0 %v15900_v3 }
 0x144   :  { %860 = vmatmul.mubr.f32.gmra.mrb[70].mxu0 %v12005_v45 }
 0x145   :  { %865 = vmatprep.mubr.f32.mxu0 %v15900_v3 }
 0x148   :  { %866 = vmatmul.mubr.f32.gmra.mrb[72].mxu0 %v12013_v53 }
 0x149   :  { %1082 = vmatprep.mubr.f32.mxu0 %v15900_v3 }
 0x14c   :  { %1083 = vmatmul.mubr.f32.vlgmr.msra.gmra.mrb[0].mxu0 %v908_v48  ;;  %v8807_v48 = vld [vmem:[%s15886_s1 + $0x3a8] sm:$0xff] }
 0x14d   :  { %1088 = vmatprep.mubr.f32.mxu0 %v15900_v3  ;;  %10103 = vmatpush1.bf16.msra.mxu0 %v10102_v14  ;;  %v917_v14 = vrot.slane %v11725_v28, 2  ;;  %v10120_v18 = vpack.c.bf16 %v8809_v19, %v8807_v48  ;;  %v8813_v28 = vld [vmem:[%s15886_s1 + $0x3d8] sm:$0xff] }
 0x14e   :  { %10105 = vmatprep.subr.bf16.mxu0 %v10104_v17  ;;  %v10118_v17 = vpack.c.bf16 %v8804_v12, %v8802_v8  ;;  %v931_v8 = vrot.slane %v11823_v13, 2  ;;  %v937_v13 = vrot.slane %v11847_v23, 2  ;;  %v943_v23 = vrot.slane %v11871_v33, 2 }
 0x14f   :  { %v920_v0 = vsel %vm905_vm1, %v917_v14, %v919_v29  ;;  %v949_v33 = vrot.slane %v11895_v43, 2  ;;  %v955_v43 = vrot.slane %v11919_v56, 2  ;;  %v961_v56 = vrot.slane %v11943_v5, 2 }
 0x150   :  { %1089 = vmatmul.mubr.f32.gmra.mrb[2].mxu0 %v910_v55  ;;  %v918_v55 = vsel %vm905_vm1, %v915_v1, %v917_v14  ;;  %v967_v5 = vrot.slane %v11967_v21, 2  ;;  %v8821_v21 = vld [vmem:[%s15886_s1 + $0x418] sm:$0xff] }
 0x151   :  { %1094 = vmatprep.mubr.f32.mxu0 %v15900_v3  ;;  %10107 = vmatpush1.bf16.msra.mxu0 %v10106_v32  ;;  %v10122_v32 = vpack.c.bf16 %v8808_v24, %v8806_v22 }
 0x152   :  { %10109 = vmatprep.subr.bf16.mxu0 %v10108_v34  ;;  %v10124_v34 = vpack.c.bf16 %v8813_v28, %v8811_v27 }
 0x154   :  { %1095 = vmatmul.mubr.f32.gmra.mrb[4].mxu0 %v912_v42  ;;  %v921_v42 = vrot.slane %v11765_v46, 2 }
 0x155   :  { %1100 = vmatprep.mubr.f32.mxu0 %v15900_v3  ;;  %10111 = vmatpush1.bf16.msra.mxu0 %v10110_v50  ;;  %v10128_v50 = vpack.c.bf16 %v8817_v37, %v8815_v41 }
 0x156   :  { %10113 = vmatprep.subr.bf16.mxu0 %v10112_v51  ;;  %v8814_v51 = vld [vmem:[%s15886_s1 + $0x3e0] sm:$0xff]  ;;  %v922_v57 = vsel %vm905_vm1, %v919_v29, %v921_v42  ;;  %v924_v10 = vsel %vm905_vm1, %v921_v42, %v923_v61  ;;  %v8819_v42 = vld [vmem:[%s15886_s1 + $0x408] sm:$0xff] }
 0x157   :  { %v10130_v46 = vpack.c.bf16 %v8816_v54, %v8814_v51  ;;  %v975_v51 = vrot.slane %v12005_v45, 2  ;;  %v12409_v45 = vld [vmem:[%s15887_s0] sm:$0xff] }
 0x158   :  { %1101 = vmatmul.mubr.f32.gmra.mrb[6].mxu0 %v914_v62  ;;  %v925_v62 = vrot.slane %v11799_v2, 2 }
 0x159   :  { %1106 = vmatprep.mubr.f32.mxu0 %v15900_v3  ;;  %10115 = vmatpush1.bf16.msra.mxu0 %v10114_v4  ;;  %v927_v4 = vrot.slane %v11807_v6, 2  ;;  %v933_v6 = vrot.slane %v11831_v16, 2  ;;  %v939_v16 = vrot.slane %v11855_v26, 2  ;;  %v945_v26 = vrot.slane %v11879_v36, 2 }
 0x15a   :  { %10117 = vmatprep.subr.bf16.mxu0 %v10116_v7  ;;  %v926_v1 = vsel %vm905_vm1, %v923_v61, %v925_v62  ;;  %v929_v7 = vrot.slane %v11815_v9, 2  ;;  %v935_v9 = vrot.slane %v11839_v20, 2  ;;  %v941_v20 = vrot.slane %v11863_v30, 2 }
 0x15b   :  { %v928_v58 = vsel %vm905_vm1, %v925_v62, %v927_v4  ;;  %v934_v48 = vsel %vm905_vm1, %v931_v8, %v933_v6  ;;  %v940_v14 = vsel %vm905_vm1, %v937_v13, %v939_v16  ;;  %v946_v22 = vsel %vm905_vm1, %v943_v23, %v945_v26 }
 0x15c   :  { %1107 = vmatmul.mubr.f32.gmra.mrb[8].mxu0 %v916_v49  ;;  %v930_v2 = vsel %vm905_vm1, %v927_v4, %v929_v7  ;;  %v932_v12 = vsel %vm905_vm1, %v929_v7, %v931_v8  ;;  %v936_v19 = vsel %vm905_vm1, %v933_v6, %v935_v9  ;;  %v938_v49 = vsel %vm905_vm1, %v935_v9, %v937_v13  ;;  %v8823_v4 = vld [vmem:[%s15886_s1 + $0x428] sm:$0xff]  ;;  %v8824_v9 = vld [vmem:[%s15886_s1 + $0x430] sm:$0xff]  ;;  %v8829_v13 = vld [vmem:[%s15886_s1 + $0x458] sm:$0xff] }
 0x15d   :  { %1112 = vmatprep.mubr.f32.mxu0 %v15900_v3  ;;  %10119 = vmatpush1.bf16.msra.mxu0 %v10118_v17  ;;  %v942_v17 = vsel %vm905_vm1, %v939_v16, %v941_v20  ;;  %v947_v30 = vrot.slane %v11887_v40, 2  ;;  %v951_v36 = vrot.slane %v11903_v47, 2  ;;  %v953_v40 = vrot.slane %v11911_v52, 2  ;;  %v12455_v16 = vld [vmem:[%s15887_s0 + $0x18] sm:$0xff] }
 0x15e   :  { %10121 = vmatprep.subr.bf16.mxu0 %v10120_v18  ;;  %v944_v18 = vsel %vm905_vm1, %v941_v20, %v943_v23  ;;  %v957_v47 = vrot.slane %v11927_v60, 2  ;;  %v959_v52 = vrot.slane %v11935_v63, 2  ;;  %v963_v60 = vrot.slane %v11951_v11, 2  ;;  %v8826_v23 = vld [vmem:[%s15886_s1 + $0x440] sm:$0xff] }
 0x15f   :  { %v948_v24 = vsel %vm905_vm1, %v945_v26, %v947_v30  ;;  %v950_v27 = vsel %vm905_vm1, %v947_v30, %v949_v33  ;;  %v952_v28 = vsel %vm905_vm1, %v949_v33, %v951_v36  ;;  %v956_v29 = vsel %vm905_vm1, %v953_v40, %v955_v43  ;;  %v8831_v26 = vld [vmem:[%s15886_s1 + $0x468] sm:$0xff] }
 0x160   :  { %1113 = vmatmul.mubr.f32.gmra.mrb[10].mxu0 %v918_v55  ;;  %v954_v55 = vsel %vm905_vm1, %v951_v36, %v953_v40  ;;  %v962_v38 = vsel %vm905_vm1, %v959_v52, %v961_v56  ;;  %v964_v39 = vsel %vm905_vm1, %v961_v56, %v963_v60  ;;  %v965_v63 = vrot.slane %v11959_v15, 2  ;;  %v8832_v40 = vld [vmem:[%s15886_s1 + $0x470] sm:$0xff]  ;;  %v8834_v56 = vld [vmem:[%s15886_s1 + $0x480] sm:$0xff] }
 0x161   :  { %1118 = vmatprep.mubr.f32.mxu0 %v15900_v3  ;;  %10123 = vmatpush1.bf16.msra.mxu0 %v10122_v32  ;;  %v958_v32 = vsel %vm905_vm1, %v955_v43, %v957_v47  ;;  %v969_v11 = vrot.slane %v11975_v25, 2  ;;  %v971_v15 = vrot.slane %v11983_v31, 2  ;;  %v979_v61 = vrot.slane %v12021_v59, 2  ;;  %v8818_v59 = vld [vmem:[%s15886_s1 + $0x400] sm:$0xff]  ;;  %v8837_v43 = vld [vmem:[%s15886_s1 + $0x498] sm:$0xff] }
 0x162   :  { %10125 = vmatprep.subr.bf16.mxu0 %v10124_v34  ;;  %v960_v34 = vsel %vm905_vm1, %v957_v47, %v959_v52  ;;  %v966_v41 = vsel %vm905_vm1, %v963_v60, %v965_v63  ;;  %v968_v37 = vsel %vm905_vm1, %v965_v63, %v967_v5  ;;  %v12495_v47 = vld [vmem:[%s15887_s0 + $0x28] sm:$0xff] }
 0x163   :  { %v972_v25 = vsel %vm905_vm1, %v969_v11, %v971_v15  ;;  %v8839_v60 = vld [vmem:[%s15886_s1 + $0x4a8] sm:$0xff] }
 0x164   :  { %1119 = vmatmul.mubr.f32.gmra.mrb[12].mxu0 %v920_v0  ;;  %v970_v0 = vsel %vm905_vm1, %v967_v5, %v969_v11 }
 0x165   :  { %1124 = vmatprep.mubr.f32.mxu0 %v15900_v3  ;;  %10127 = vmatpush1.bf16.msra.mxu0 %v10126_v44  ;;  %v973_v44 = vrot.slane %v11991_v35, 2 }
 0x166   :  { %10129 = vmatprep.subr.bf16.mxu0 %v10128_v50  ;;  %v10132_v50 = vpack.c.bf16 %v8821_v21, %v8819_v42  ;;  %v8843_v42 = vld [vmem:[%s15886_s1 + $0x4c8] sm:$0xff]  ;;  %v8845_v21 = vld [vmem:[%s15886_s1 + $0x4d8] sm:$0xff] }
 0x167   :  { %v974_v31 = vsel %vm905_vm1, %v971_v15, %v973_v44  ;;  %v976_v54 = vsel %vm905_vm1, %v973_v44, %v975_v51  ;;  %v8840_v15 = vld [vmem:[%s15886_s1 + $0x4b0] sm:$0xff]  ;;  %v12535_v44 = vld [vmem:[%s15887_s0 + $0x38] sm:$0xff] }
 0x168   :  { %1125 = vmatmul.mubr.f32.gmra.mrb[14].mxu0 %v922_v57  ;;  %v977_v57 = vrot.slane %v12013_v53, 2  ;;  %v12415_v53 = vld [vmem:[%s15887_s0 + $0x8] sm:$0xff] }
 0x169   :  { %1130 = vmatprep.mubr.f32.mxu0 %v15900_v3  ;;  %10131 = vmatpush1.bf16.msra.mxu0 %v10130_v46  ;;  %v1414_v62 = vrot.slane %v12415_v53, 3 }
 0x16a   :  { %10133 = vmatprep.subr.bf16.mxu0 %v10132_v50  ;;  %v978_v35 = vsel %vm905_vm1, %v975_v51, %v977_v57  ;;  %v980_v46 = vsel %vm905_vm1, %v977_v57, %v979_v61  ;;  %v1426_v50 = vrot.slane %v12535_v44, 3  ;;  %v10156_v51 = vpack.c.bf16 %v8845_v21, %v8843_v42  ;;  %v8844_v57 = vld [vmem:[%s15886_s1 + $0x4d0] sm:$0xff]  ;;  %v8849_v61 = vld [vmem:[%s15886_s1 + $0x4f8] sm:$0xff]  ;;  %v12665_v42 = vld [vmem:[%s15887_s0 + $0xa8] sm:$0xff] }
 0x16b   :  { %v1454_v21 = vrot.slane %v12665_v42, 3 }
 0x16c   :  { %1131 = vmatmul.mubr.f32.gmra.mrb[16].mxu0 %v924_v10  ;;  %v1413_v10 = vrot.slane %v12409_v45, 3 }
 0x16d   :  { %1136 = vmatprep.mubr.f32.mxu0 %v15900_v3 }
 0x16e   :  { %v1415_v7 = vsel %vm1412_vm2, %v1413_v10, %v1414_v62  ;;  %v12555_v10 = vld [vmem:[%s15887_s0 + $0x40] sm:$0xff] }
 0x170   :  { %1137 = vmatmul.mubr.f32.gmra.mrb[18].mxu0 %v926_v1  ;;  %v8820_v1 = vld [vmem:[%s15886_s1 + $0x410] sm:$0xff] }
 0x171   :  { %1142 = vmatprep.mubr.f32.mxu0 %v15900_v3 }
 0x174   :  { %1143 = vmatmul.mubr.f32.gmra.mrb[20].mxu0 %v928_v58  ;;  %v8825_v58 = vld [vmem:[%s15886_s1 + $0x438] sm:$0xff] }
 0x175   :  { %1148 = vmatprep.mubr.f32.mxu0 %v15900_v3  ;;  %v10136_v6 = vpack.c.bf16 %v8825_v58, %v8823_v4  ;;  %v8846_v4 = vld [vmem:[%s15886_s1 + $0x4e0] sm:$0xff]  ;;  %v8848_v58 = vld [vmem:[%s15886_s1 + $0x4f0] sm:$0xff] }
 0x178   :  { %1149 = vmatmul.mubr.f32.gmra.mrb[22].mxu0 %v930_v2  ;;  %v12435_v2 = vld [vmem:[%s15887_s0 + $0x10] sm:$0xff] }
 0x179   :  { %1154 = vmatprep.mubr.f32.mxu0 %v15900_v3  ;;  %v1416_v8 = vrot.slane %v12435_v2, 3 }
 0x17c   :  { %1155 = vmatmul.mubr.f32.gmra.mrb[24].mxu0 %v932_v12  ;;  %v10134_v12 = vpack.c.bf16 %v8820_v1, %v8818_v59 }
 0x17d   :  { %1160 = vmatprep.mubr.f32.mxu0 %v15900_v3 }
 0x180   :  { %1161 = vmatmul.mubr.f32.gmra.mrb[26].mxu0 %v934_v48  ;;  %v8822_v48 = vld [vmem:[%s15886_s1 + $0x420] sm:$0xff] }
 0x181   :  { %1166 = vmatprep.mubr.f32.mxu0 %v15900_v3  ;;  %v10138_v20 = vpack.c.bf16 %v8824_v9, %v8822_v48  ;;  %v12577_v9 = vld [vmem:[%s15887_s0 + $0x50] sm:$0xff] }
 0x184   :  { %1167 = vmatmul.mubr.f32.gmra.mrb[28].mxu0 %v936_v19  ;;  %v8827_v19 = vld [vmem:[%s15886_s1 + $0x448] sm:$0xff] }
 0x185   :  { %1172 = vmatprep.mubr.f32.mxu0 %v15900_v3 }
 0x188   :  { %1173 = vmatmul.mubr.f32.gmra.mrb[30].mxu0 %v938_v49  ;;  %v1417_v49 = vsel %vm1412_vm2, %v1414_v62, %v1416_v8  ;;  %v1428_v62 = vrot.slane %v12555_v10, 3 }
 0x189   :  { %1178 = vmatprep.mubr.f32.mxu0 %v15900_v3 }
 0x18c   :  { %1179 = vmatmul.mubr.f32.gmra.mrb[32].mxu0 %v940_v14  ;;  %v1418_v14 = vrot.slane %v12455_v16, 3 }
 0x18d   :  { %1184 = vmatprep.mubr.f32.mxu0 %v15900_v3 }
 0x18e   :  { %v1419_v30 = vsel %vm1412_vm2, %v1416_v8, %v1418_v14  ;;  %v12569_v8 = vld [vmem:[%s15887_s0 + $0x48] sm:$0xff] }
 0x190   :  { %1185 = vmatmul.mubr.f32.gmra.mrb[34].mxu0 %v942_v17  ;;  %v10140_v17 = vpack.c.bf16 %v8829_v13, %v8827_v19  ;;  %v1432_v19 = vrot.slane %v12577_v9, 3 }
 0x191   :  { %1190 = vmatprep.mubr.f32.mxu0 %v15900_v3 }
 0x194   :  { %1191 = vmatmul.mubr.f32.gmra.mrb[36].mxu0 %v944_v18  ;;  %v8828_v18 = vld [vmem:[%s15886_s1 + $0x450] sm:$0xff] }
 0x195   :  { %1196 = vmatprep.mubr.f32.mxu0 %v15900_v3 }
 0x198   :  { %1197 = vmatmul.mubr.f32.gmra.mrb[38].mxu0 %v946_v22  ;;  %v8833_v22 = vld [vmem:[%s15886_s1 + $0x478] sm:$0xff] }
 0x199   :  { %1202 = vmatprep.mubr.f32.mxu0 %v15900_v3  ;;  %v10144_v36 = vpack.c.bf16 %v8833_v22, %v8831_v26  ;;  %v12601_v26 = vld [vmem:[%s15887_s0 + $0x68] sm:$0xff] }
 0x19a   :  { %v1438_v22 = vrot.slane %v12601_v26, 3 }
 0x19c   :  { %1203 = vmatmul.mubr.f32.gmra.mrb[40].mxu0 %v948_v24  ;;  %v12475_v24 = vld [vmem:[%s15887_s0 + $0x20] sm:$0xff] }
 0x19d   :  { %1208 = vmatprep.mubr.f32.mxu0 %v15900_v3  ;;  %v1420_v33 = vrot.slane %v12475_v24, 3 }
 0x1a0   :  { %1209 = vmatmul.mubr.f32.gmra.mrb[42].mxu0 %v950_v27  ;;  %v10142_v27 = vpack.c.bf16 %v8828_v18, %v8826_v23 }
 0x1a1   :  { %1214 = vmatprep.mubr.f32.mxu0 %v15900_v3 }
 0x1a4   :  { %1215 = vmatmul.mubr.f32.gmra.mrb[44].mxu0 %v952_v28  ;;  %v8830_v28 = vld [vmem:[%s15886_s1 + $0x460] sm:$0xff] }
 0x1a5   :  { %1220 = vmatprep.mubr.f32.mxu0 %v15900_v3  ;;  %v10146_v52 = vpack.c.bf16 %v8832_v40, %v8830_v28  ;;  %v12617_v28 = vld [vmem:[%s15887_s0 + $0x78] sm:$0xff] }
 0x1a6   :  { %v1442_v40 = vrot.slane %v12617_v28, 3 }
 0x1a8   :  { %1221 = vmatmul.mubr.f32.gmra.mrb[46].mxu0 %v954_v55  ;;  %v8835_v55 = vld [vmem:[%s15886_s1 + $0x488] sm:$0xff] }
 0x1a9   :  { %1226 = vmatprep.mubr.f32.mxu0 %v15900_v3 }
 0x1ac   :  { %1227 = vmatmul.mubr.f32.gmra.mrb[48].mxu0 %v956_v29  ;;  %v1421_v29 = vsel %vm1412_vm2, %v1418_v14, %v1420_v33 }
 0x1ad   :  { %1232 = vmatprep.mubr.f32.mxu0 %v15900_v3 }
 0x1b0   :  { %1233 = vmatmul.mubr.f32.gmra.mrb[50].mxu0 %v958_v32  ;;  %v1422_v32 = vrot.slane %v12495_v47, 3 }
 0x1b1   :  { %1238 = vmatprep.mubr.f32.mxu0 %v15900_v3 }
 0x1b2   :  { %v1423_v63 = vsel %vm1412_vm2, %v1420_v33, %v1422_v32  ;;  %v12609_v33 = vld [vmem:[%s15887_s0 + $0x70] sm:$0xff] }
 0x1b4   :  { %1239 = vmatmul.mubr.f32.gmra.mrb[52].mxu0 %v960_v34  ;;  %v10148_v34 = vpack.c.bf16 %v8837_v43, %v8835_v55  ;;  %v12625_v43 = vld [vmem:[%s15887_s0 + $0x80] sm:$0xff] }
 0x1b5   :  { %1244 = vmatprep.mubr.f32.mxu0 %v15900_v3 }
 0x1b8   :  { %1245 = vmatmul.mubr.f32.gmra.mrb[54].mxu0 %v962_v38  ;;  %v8836_v38 = vld [vmem:[%s15886_s1 + $0x490] sm:$0xff] }
 0x1b9   :  { %1250 = vmatprep.mubr.f32.mxu0 %v15900_v3 }
 0x1bc   :  { %1251 = vmatmul.mubr.f32.gmra.mrb[56].mxu0 %v964_v39  ;;  %v8841_v39 = vld [vmem:[%s15886_s1 + $0x4b8] sm:$0xff] }
 0x1bd   :  { %1256 = vmatprep.mubr.f32.mxu0 %v15900_v3  ;;  %v10152_v11 = vpack.c.bf16 %v8841_v39, %v8839_v60 }
 0x1c0   :  { %1257 = vmatmul.mubr.f32.gmra.mrb[58].mxu0 %v966_v41  ;;  %v12515_v41 = vld [vmem:[%s15887_s0 + $0x30] sm:$0xff] }
 0x1c1   :  { %1262 = vmatprep.mubr.f32.mxu0 %v15900_v3  ;;  %v1424_v5 = vrot.slane %v12515_v41, 3 }
 0x1c4   :  { %1263 = vmatmul.mubr.f32.gmra.mrb[60].mxu0 %v968_v37  ;;  %v10150_v37 = vpack.c.bf16 %v8836_v38, %v8834_v56  ;;  %v12641_v38 = vld [vmem:[%s15887_s0 + $0x90] sm:$0xff] }
 0x1c5   :  { %1268 = vmatprep.mubr.f32.mxu0 %v15900_v3  ;;  %v1448_v60 = vrot.slane %v12641_v38, 3 }
 0x1c8   :  { %1269 = vmatmul.mubr.f32.gmra.mrb[62].mxu0 %v970_v0  ;;  %v8838_v0 = vld [vmem:[%s15886_s1 + $0x4a0] sm:$0xff] }
 0x1c9   :  { %1274 = vmatprep.mubr.f32.mxu0 %v15900_v3 }
 0x1cc   :  { %1275 = vmatmul.mubr.f32.gmra.mrb[64].mxu0 %v972_v25  ;;  %v1425_v25 = vsel %vm1412_vm2, %v1422_v32, %v1424_v5 }
 0x1cd   :  { %1280 = vmatprep.mubr.f32.mxu0 %v15900_v3 }
 0x1d0   :  { %1281 = vmatmul.mubr.f32.gmra.mrb[66].mxu0 %v974_v31  ;;  %v10154_v31 = vpack.c.bf16 %v8840_v15, %v8838_v0 }
 0x1d1   :  { %1286 = vmatprep.mubr.f32.mxu0 %v15900_v3 }
 0x1d4   :  { %1287 = vmatmul.mubr.f32.gmra.mrb[68].mxu0 %v976_v54  ;;  %v8842_v54 = vld [vmem:[%s15886_s1 + $0x4c0] sm:$0xff] }
 0x1d5   :  { %1292 = vmatprep.mubr.f32.mxu0 %v15900_v3  ;;  %v10158_v59 = vpack.c.bf16 %v8844_v57, %v8842_v54  ;;  %v12681_v54 = vld [vmem:[%s15887_s0 + $0xb8] sm:$0xff] }
 0x1d6   :  { %v1458_v57 = vrot.slane %v12681_v54, 3 }
 0x1d8   :  { %1293 = vmatmul.mubr.f32.gmra.mrb[70].mxu0 %v978_v35  ;;  %v8847_v35 = vld [vmem:[%s15886_s1 + $0x4e8] sm:$0xff] }
 0x1d9   :  { %1298 = vmatprep.mubr.f32.mxu0 %v15900_v3  ;;  %v10160_v1 = vpack.c.bf16 %v8849_v61, %v8847_v35  ;;  %v12689_v61 = vld [vmem:[%s15887_s0 + $0xc0] sm:$0xff] }
 0x1dc   :  { %1299 = vmatmul.mubr.f32.gmra.mrb[72].mxu0 %v980_v46  ;;  %v1427_v46 = vsel %vm1412_vm2, %v1424_v5, %v1426_v50 }
 0x1dd   :  { %1589 = vmatprep.mubr.f32.mxu0 %v15900_v3 }
 0x1e0   :  { %1590 = vmatmul.mubr.f32.vlgmr.msra.gmra.mrb[0].mxu0 %v1415_v7  ;;  %v1429_v7 = vsel %vm1412_vm2, %v1426_v50, %v1428_v62  ;;  %v12673_v50 = vld [vmem:[%s15887_s0 + $0xb0] sm:$0xff] }
 0x1e1   :  { %1595 = vmatprep.mubr.f32.mxu0 %v15900_v3  ;;  %10135 = vmatpush1.bf16.msra.mxu0 %v10134_v12  ;;  %v1430_v12 = vrot.slane %v12569_v8, 3 }
 0x1e2   :  { %10137 = vmatprep.subr.bf16.mxu0 %v10136_v6  ;;  %v10162_v6 = vpack.c.bf16 %v8848_v58, %v8846_v4  ;;  %v12705_v58 = vld [vmem:[%s15887_s0 + $0xd0] sm:$0xff] }
 0x1e3   :  { %v1431_v48 = vsel %vm1412_vm2, %v1428_v62, %v1430_v12  ;;  %v1433_v13 = vsel %vm1412_vm2, %v1430_v12, %v1432_v19 }
 0x1e4   :  { %1596 = vmatmul.mubr.f32.gmra.mrb[2].mxu0 %v1417_v49  ;;  %v12585_v49 = vld [vmem:[%s15887_s0 + $0x58] sm:$0xff] }
 0x1e5   :  { %1601 = vmatprep.mubr.f32.mxu0 %v15900_v3  ;;  %10139 = vmatpush1.bf16.msra.mxu0 %v10138_v20  ;;  %v1434_v14 = vrot.slane %v12585_v49, 3 }
 0x1e6   :  { %10141 = vmatprep.subr.bf16.mxu0 %v10140_v17  ;;  %v12593_v17 = vld [vmem:[%s15887_s0 + $0x60] sm:$0xff] }
 0x1e7   :  { %v1435_v20 = vsel %vm1412_vm2, %v1432_v19, %v1434_v14  ;;  %v1436_v23 = vrot.slane %v12593_v17, 3 }
 0x1e8   :  { %1602 = vmatmul.mubr.f32.gmra.mrb[4].mxu0 %v1419_v30 }
 0x1e9   :  { %1607 = vmatprep.mubr.f32.mxu0 %v15900_v3  ;;  %10143 = vmatpush1.bf16.msra.mxu0 %v10142_v27  ;;  %v1437_v18 = vsel %vm1412_vm2, %v1434_v14, %v1436_v23  ;;  %v1439_v30 = vsel %vm1412_vm2, %v1436_v23, %v1438_v22  ;;  %v1440_v27 = vrot.slane %v12609_v33, 3  ;;  %v12729_v23 = vld [vmem:[%s15887_s0 + $0xe8] sm:$0xff] }
 0x1ea   :  { %10145 = vmatprep.subr.bf16.mxu0 %v10144_v36 }
 0x1eb   :  { %v1441_v36 = vsel %vm1412_vm2, %v1438_v22, %v1440_v27  ;;  %v1443_v55 = vsel %vm1412_vm2, %v1440_v27, %v1442_v40 }
 0x1ec   :  { %1608 = vmatmul.mubr.f32.gmra.mrb[6].mxu0 %v1421_v29  ;;  %v1444_v29 = vrot.slane %v12625_v43, 3 }
 0x1ed   :  { %1613 = vmatprep.mubr.f32.mxu0 %v15900_v3  ;;  %10147 = vmatpush1.bf16.msra.mxu0 %v10146_v52  ;;  %v12633_v52 = vld [vmem:[%s15887_s0 + $0x88] sm:$0xff] }
 0x1ee   :  { %10149 = vmatprep.subr.bf16.mxu0 %v10148_v34  ;;  %v1445_v32 = vsel %vm1412_vm2, %v1442_v40, %v1444_v29  ;;  %v1446_v34 = vrot.slane %v12633_v52, 3  ;;  %v12745_v40 = vld [vmem:[%s15887_s0 + $0xf8] sm:$0xff] }
 0x1f0   :  { %1614 = vmatmul.mubr.f32.gmra.mrb[8].mxu0 %v1423_v63  ;;  %v1447_v56 = vsel %vm1412_vm2, %v1444_v29, %v1446_v34  ;;  %v1449_v39 = vsel %vm1412_vm2, %v1446_v34, %v1448_v60  ;;  %v12649_v63 = vld [vmem:[%s15887_s0 + $0x98] sm:$0xff] }
 0x1f1   :  { %1619 = vmatprep.mubr.f32.mxu0 %v15900_v3  ;;  %10151 = vmatpush1.bf16.msra.mxu0 %v10150_v37  ;;  %v1450_v5 = vrot.slane %v12649_v63, 3 }
 0x1f2   :  { %10153 = vmatprep.subr.bf16.mxu0 %v10152_v11  ;;  %v12657_v11 = vld [vmem:[%s15887_s0 + $0xa0] sm:$0xff] }
 0x1f3   :  { %v1451_v37 = vsel %vm1412_vm2, %v1448_v60, %v1450_v5  ;;  %v1452_v0 = vrot.slane %v12657_v11, 3  ;;  %v12761_v60 = vld [vmem:[%s15887_s0 + $0x108] sm:$0xff] }
 0x1f4   :  { %1620 = vmatmul.mubr.f32.gmra.mrb[10].mxu0 %v1425_v25 }
 0x1f5   :  { %1625 = vmatprep.mubr.f32.mxu0 %v15900_v3  ;;  %10155 = vmatpush1.bf16.msra.mxu0 %v10154_v31  ;;  %v1453_v15 = vsel %vm1412_vm2, %v1450_v5, %v1452_v0  ;;  %v1455_v25 = vsel %vm1412_vm2, %v1452_v0, %v1454_v21  ;;  %v1456_v31 = vrot.slane %v12673_v50, 3 }
 0x1f6   :  { %10157 = vmatprep.subr.bf16.mxu0 %v10156_v51 }
 0x1f7   :  { %v1457_v51 = vsel %vm1412_vm2, %v1454_v21, %v1456_v31  ;;  %v1459_v35 = vsel %vm1412_vm2, %v1456_v31, %v1458_v57  ;;  %v12777_v21 = vld [vmem:[%s15887_s0 + $0x118] sm:$0xff] }
 0x1f8   :  { %1626 = vmatmul.mubr.f32.gmra.mrb[12].mxu0 %v1427_v46  ;;  %v1460_v46 = vrot.slane %v12689_v61, 3 }
 0x1f9   :  { %1631 = vmatprep.mubr.f32.mxu0 %v15900_v3  ;;  %10159 = vmatpush1.bf16.msra.mxu0 %v10158_v59  ;;  %v12697_v59 = vld [vmem:[%s15887_s0 + $0xc8] sm:$0xff] }
 0x1fa   :  { %10161 = vmatprep.subr.bf16.mxu0 %v10160_v1  ;;  %v1461_v62 = vsel %vm1412_vm2, %v1458_v57, %v1460_v46  ;;  %v1462_v1 = vrot.slane %v12697_v59, 3 }
 0x1fc   :  { %1632 = vmatmul.mubr.f32.gmra.mrb[14].mxu0 %v1429_v7  ;;  %v1463_v4 = vsel %vm1412_vm2, %v1460_v46, %v1462_v1  ;;  %v1464_v7 = vrot.slane %v12705_v58, 3  ;;  %v12793_v46 = vld [vmem:[%s15887_s0 + $0x128] sm:$0xff] }
 0x1fd   :  { %1637 = vmatprep.mubr.f32.mxu0 %v15900_v3  ;;  %10163 = vmatpush1.bf16.msra.mxu0 %v10162_v6  ;;  %v12713_v6 = vld [vmem:[%s15887_s0 + $0xd8] sm:$0xff] }
 0x1fe   :  { %v1465_v12 = vsel %vm1412_vm2, %v1462_v1, %v1464_v7 }
 0x200   :  { %1638 = vmatmul.mubr.f32.gmra.mrb[16].mxu0 %v1431_v48  ;;  %v1466_v48 = vrot.slane %v12713_v6, 3 }
 0x201   :  { %1643 = vmatprep.mubr.f32.mxu0 %v15900_v3 }
 0x202   :  { %v1467_v19 = vsel %vm1412_vm2, %v1464_v7, %v1466_v48  ;;  %v1921_v7 = vrot.slane %v12415_v53, 4  ;;  %v1927_v53 = vrot.slane %v12475_v24, 4  ;;  %v1933_v24 = vrot.slane %v12535_v44, 4  ;;  %v8887_v44 = vld [vmem:[%s15888_s3 + $0xb0] sm:$0xff] }
 0x204   :  { %1644 = vmatmul.mubr.f32.gmra.mrb[18].mxu0 %v1433_v13  ;;  %v12721_v13 = vld [vmem:[%s15887_s0 + $0xe0] sm:$0xff] }
 0x205   :  { %1649 = vmatprep.mubr.f32.mxu0 %v15900_v3  ;;  %v1468_v14 = vrot.slane %v12721_v13, 3 }
 0x208   :  { %1650 = vmatmul.mubr.f32.gmra.mrb[20].mxu0 %v1435_v20  ;;  %v1469_v20 = vsel %vm1412_vm2, %v1466_v48, %v1468_v14  ;;  %v1923_v48 = vrot.slane %v12435_v2, 4  ;;  %v1929_v2 = vrot.slane %v12495_v47, 4  ;;  %v2917_v47 = vld [vmem:[%s15888_s3] sm:$0xff] }
 0x209   :  { %1655 = vmatprep.mubr.f32.mxu0 %v15900_v3 }
 0x20c   :  { %1656 = vmatmul.mubr.f32.gmra.mrb[22].mxu0 %v1437_v18  ;;  %v1470_v18 = vrot.slane %v12729_v23, 3 }
 0x20d   :  { %1661 = vmatprep.mubr.f32.mxu0 %v15900_v3 }
 0x20e   :  { %v1471_v22 = vsel %vm1412_vm2, %v1468_v14, %v1470_v18  ;;  %v1925_v14 = vrot.slane %v12455_v16, 4  ;;  %v1931_v16 = vrot.slane %v12515_v41, 4  ;;  %v8886_v41 = vld [vmem:[%s15888_s3 + $0xa8] sm:$0xff] }
 0x210   :  { %1662 = vmatmul.mubr.f32.gmra.mrb[24].mxu0 %v1439_v30  ;;  %v12737_v30 = vld [vmem:[%s15887_s0 + $0xf0] sm:$0xff] }
 0x211   :  { %1667 = vmatprep.mubr.f32.mxu0 %v15900_v3  ;;  %v1472_v27 = vrot.slane %v12737_v30, 3 }
 0x214   :  { %1668 = vmatmul.mubr.f32.gmra.mrb[26].mxu0 %v1441_v36  ;;  %v1473_v36 = vsel %vm1412_vm2, %v1470_v18, %v1472_v27  ;;  %v1930_v18 = vsel %vm1919_vm3, %v1927_v53, %v1929_v2 }
 0x215   :  { %1673 = vmatprep.mubr.f32.mxu0 %v15900_v3 }
 0x218   :  { %1674 = vmatmul.mubr.f32.gmra.mrb[28].mxu0 %v1443_v55  ;;  %v1474_v55 = vrot.slane %v12745_v40, 3 }
 0x219   :  { %1679 = vmatprep.mubr.f32.mxu0 %v15900_v3 }
 0x21a   :  { %v1475_v29 = vsel %vm1412_vm2, %v1472_v27, %v1474_v55  ;;  %v15902_v27 = vmov 0.0|0.0  }
 0x21b   :  { %10164 = vmatprep.subr.bf16.mxu1 %v15902_v27  ;;  %10194 = vmatprep.subr.bf16.mxu0 %v15902_v27 }
 0x21c   :  { %1680 = vmatmul.mubr.f32.gmra.mrb[30].mxu0 %v1445_v32  ;;  %v12753_v32 = vld [vmem:[%s15887_s0 + $0x100] sm:$0xff] }
 0x21d   :  { %1685 = vmatprep.mubr.f32.mxu0 %v15900_v3  ;;  %v1476_v34 = vrot.slane %v12753_v32, 3 }
 0x220   :  { %1686 = vmatmul.mubr.f32.gmra.mrb[32].mxu0 %v1447_v56  ;;  %v1477_v56 = vsel %vm1412_vm2, %v1474_v55, %v1476_v34 }
 0x221   :  { %1691 = vmatprep.mubr.f32.mxu0 %v15900_v3 }
 0x224   :  { %1692 = vmatmul.mubr.f32.gmra.mrb[34].mxu0 %v1449_v39  ;;  %v1478_v39 = vrot.slane %v12761_v60, 3 }
 0x225   :  { %1697 = vmatprep.mubr.f32.mxu0 %v15900_v3 }
 0x226   :  { %v1479_v5 = vsel %vm1412_vm2, %v1476_v34, %v1478_v39  ;;  %v2920_v34 = vld [vmem:[%s15888_s3 + $0x18] sm:$0xff] }
 0x228   :  { %1698 = vmatmul.mubr.f32.gmra.mrb[36].mxu0 %v1451_v37  ;;  %v12769_v37 = vld [vmem:[%s15887_s0 + $0x110] sm:$0xff] }
 0x229   :  { %1703 = vmatprep.mubr.f32.mxu0 %v15900_v3  ;;  %v1480_v0 = vrot.slane %v12769_v37, 3 }
 0x22c   :  { %1704 = vmatmul.mubr.f32.gmra.mrb[38].mxu0 %v1453_v15  ;;  %v1481_v15 = vsel %vm1412_vm2, %v1478_v39, %v1480_v0  ;;  %v8888_v39 = vld [vmem:[%s15888_s3 + $0xb8] sm:$0xff] }
 0x22d   :  { %1709 = vmatprep.mubr.f32.mxu0 %v15900_v3 }
 0x230   :  { %1710 = vmatmul.mubr.f32.gmra.mrb[40].mxu0 %v1455_v25  ;;  %v1482_v25 = vrot.slane %v12777_v21, 3 }
 0x231   :  { %1715 = vmatprep.mubr.f32.mxu0 %v15900_v3 }
 0x232   :  { %v1483_v31 = vsel %vm1412_vm2, %v1480_v0, %v1482_v25 }
 0x234   :  { %1716 = vmatmul.mubr.f32.gmra.mrb[42].mxu0 %v1457_v51  ;;  %v12785_v51 = vld [vmem:[%s15887_s0 + $0x120] sm:$0xff] }
 0x235   :  { %1721 = vmatprep.mubr.f32.mxu0 %v15900_v3  ;;  %v1484_v57 = vrot.slane %v12785_v51, 3 }
 0x238   :  { %1722 = vmatmul.mubr.f32.gmra.mrb[44].mxu0 %v1459_v35  ;;  %v1485_v35 = vsel %vm1412_vm2, %v1482_v25, %v1484_v57  ;;  %v1935_v25 = vrot.slane %v12555_v10, 4  ;;  %v8890_v10 = vld [vmem:[%s15888_s3 + $0xc8] sm:$0xff] }
 0x239   :  { %1727 = vmatprep.mubr.f32.mxu0 %v15900_v3 }
 0x23c   :  { %1728 = vmatmul.mubr.f32.gmra.mrb[46].mxu0 %v1461_v62  ;;  %v1486_v62 = vrot.slane %v12793_v46, 3 }
 0x23d   :  { %1733 = vmatprep.mubr.f32.mxu0 %v15900_v3 }
 0x23e   :  { %v1487_v1 = vsel %vm1412_vm2, %v1484_v57, %v1486_v62  ;;  %v2921_v57 = vld [vmem:[%s15888_s3 + $0x20] sm:$0xff]  ;;  %v8891_v62 = vld [vmem:[%s15888_s3 + $0xd0] sm:$0xff] }
 0x240   :  { %1734 = vmatmul.mubr.f32.gmra.mrb[48].mxu0 %v1463_v4  ;;  %v1920_v4 = vrot.slane %v12409_v45, 4  ;;  %v1926_v45 = vsel %vm1919_vm3, %v1923_v48, %v1925_v14 }
 0x241   :  { %1739 = vmatprep.mubr.f32.mxu0 %v15900_v3 }
 0x244   :  { %1740 = vmatmul.mubr.f32.gmra.mrb[50].mxu0 %v1465_v12  ;;  %v1922_v12 = vsel %vm1919_vm3, %v1920_v4, %v1921_v7  ;;  %v1936_v4 = vsel %vm1919_vm3, %v1933_v24, %v1935_v25 }
 0x245   :  { %1745 = vmatprep.mubr.f32.mxu0 %v15900_v3 }
 0x248   :  { %1746 = vmatmul.mubr.f32.gmra.mrb[52].mxu0 %v1467_v19  ;;  %v1924_v19 = vsel %vm1919_vm3, %v1921_v7, %v1923_v48  ;;  %v1937_v7 = vrot.slane %v12569_v8, 4  ;;  %v2923_v48 = vld [vmem:[%s15888_s3 + $0x30] sm:$0xff]  ;;  %v8892_v8 = vld [vmem:[%s15888_s3 + $0xd8] sm:$0xff] }
 0x249   :  { %1751 = vmatprep.mubr.f32.mxu0 %v15900_v3 }
 0x24c   :  { %1752 = vmatmul.mubr.f32.gmra.mrb[54].mxu0 %v1469_v20  ;;  %v1928_v20 = vsel %vm1919_vm3, %v1925_v14, %v1927_v53  ;;  %v8893_v14 = vld [vmem:[%s15888_s3 + $0xe0] sm:$0xff]  ;;  %v1938_v53 = vsel %vm1919_vm3, %v1935_v25, %v1937_v7  ;;  %v2930_v25 = vld [vmem:[%s15888_s3 + $0x68] sm:$0xff] }
 0x24d   :  { %1757 = vmatprep.mubr.f32.mxu0 %v15900_v3 }
 0x250   :  { %1758 = vmatmul.mubr.f32.gmra.mrb[56].mxu0 %v1471_v22  ;;  %v1932_v22 = vsel %vm1919_vm3, %v1929_v2, %v1931_v16  ;;  %v12890_v2 = vpack.c.bf16 %v8893_v14, %v8892_v8  ;;  %v1953_v14 = vrot.slane %v12633_v52, 4  ;;  %v1959_v52 = vrot.slane %v12657_v11, 4 }
 0x251   :  { %1763 = vmatprep.mubr.f32.mxu0 %v15900_v3  ;;  %v1965_v11 = vrot.slane %v12681_v54, 4 }
 0x254   :  { %1764 = vmatmul.mubr.f32.gmra.mrb[58].mxu0 %v1473_v36  ;;  %v2918_v36 = vld [vmem:[%s15888_s3 + $0x8] sm:$0xff] }
 0x255   :  { %1769 = vmatprep.mubr.f32.mxu0 %v15900_v3  ;;  %v10165_v55 = vpack.c.bf16 %v2918_v36, %v2917_v47  ;;  %v1941_v36 = vrot.slane %v12585_v49, 4  ;;  %v8896_v49 = vld [vmem:[%s15888_s3 + $0xf8] sm:$0xff] }
 0x257   :  { %10166 = vmatpush1.bf16.msra.mxu1 %v10165_v55  ;;  %v2927_v55 = vld [vmem:[%s15888_s3 + $0x50] sm:$0xff] }
 0x258   :  { %1770 = vmatmul.mubr.f32.gmra.mrb[60].mxu0 %v1475_v29  ;;  %v2919_v29 = vld [vmem:[%s15888_s3 + $0x10] sm:$0xff]  ;;  %10167 = vmatprep.subr.bf16.mxu1 %v15902_v27 }
 0x259   :  { %1775 = vmatprep.mubr.f32.mxu0 %v15900_v3  ;;  %v10168_v0 = vpack.c.bf16 %v2920_v34, %v2919_v29  ;;  %v8897_v29 = vld [vmem:[%s15888_s3 + $0x100] sm:$0xff] }
 0x25b   :  { %10169 = vmatpush1.bf16.msra.mxu1 %v10168_v0  ;;  %v12930_v0 = vpack.c.bf16 %v8897_v29, %v8896_v49  ;;  %v2934_v49 = vld [vmem:[%s15888_s3 + $0x88] sm:$0xff] }
 0x25c   :  { %1776 = vmatmul.mubr.f32.gmra.mrb[62].mxu0 %v1477_v56  ;;  %v12838_v56 = vpack.c.bf16 %v8887_v44, %v8886_v41  ;;  %10170 = vmatprep.subr.bf16.mxu1 %v15902_v27  ;;  %v2928_v44 = vld [vmem:[%s15888_s3 + $0x58] sm:$0xff]  ;;  %v8902_v29 = vld [vmem:[%s15888_s3 + $0x128] sm:$0xff] }
 0x25d   :  { %1781 = vmatprep.mubr.f32.mxu0 %v15900_v3  ;;  %v10180_v34 = vpack.c.bf16 %v2928_v44, %v2927_v55  ;;  %v2933_v44 = vld [vmem:[%s15888_s3 + $0x80] sm:$0xff] }
 0x260   :  { %1782 = vmatmul.mubr.f32.gmra.mrb[64].mxu0 %v1479_v5  ;;  %v8889_v5 = vld [vmem:[%s15888_s3 + $0xc0] sm:$0xff] }
 0x261   :  { %1787 = vmatprep.mubr.f32.mxu0 %v15900_v3 }
 0x264   :  { %1788 = vmatmul.mubr.f32.gmra.mrb[66].mxu0 %v1481_v15  ;;  %v1934_v15 = vsel %vm1919_vm3, %v1931_v16, %v1933_v24  ;;  %v2926_v16 = vld [vmem:[%s15888_s3 + $0x48] sm:$0xff] }
 0x265   :  { %1793 = vmatprep.mubr.f32.mxu0 %v15900_v3 }
 0x268   :  { %1794 = vmatmul.mubr.f32.gmra.mrb[68].mxu0 %v1483_v31  ;;  %v12850_v31 = vpack.c.bf16 %v8889_v5, %v8888_v39  ;;  %v1943_v5 = vrot.slane %v12593_v17, 4  ;;  %v8898_v17 = vld [vmem:[%s15888_s3 + $0x108] sm:$0xff] }
 0x269   :  { %1799 = vmatprep.mubr.f32.mxu0 %v15900_v3 }
 0x26c   :  { %1800 = vmatmul.mubr.f32.gmra.mrb[70].mxu0 %v1485_v35  ;;  %v2922_v35 = vld [vmem:[%s15888_s3 + $0x28] sm:$0xff] }
 0x26d   :  { %1805 = vmatprep.mubr.f32.mxu0 %v15900_v3 }
 0x270   :  { %1806 = vmatmul.mubr.f32.gmra.mrb[72].mxu0 %v1487_v1  ;;  %v10171_v1 = vpack.c.bf16 %v2922_v35, %v2921_v57  ;;  %v8899_v57 = vld [vmem:[%s15888_s3 + $0x110] sm:$0xff] }
 0x271   :  { %2096 = vmatprep.mubr.f32.mxu0 %v15900_v3 }
 0x272   :  { %10172 = vmatpush1.bf16.msra.mxu1 %v10171_v1  ;;  %v12950_v1 = vpack.c.bf16 %v8899_v57, %v8898_v17  ;;  %v2936_v17 = vld [vmem:[%s15888_s3 + $0x98] sm:$0xff] }
 0x273   :  { %10173 = vmatprep.subr.bf16.mxu1 %v15902_v27  ;;  %v8904_v57 = vld [vmem:[%s15888_s3 + $0x138] sm:$0xff] }
 0x274   :  { %2097 = vmatmul.mubr.f32.vlgmr.msra.gmra.mrb[0].mxu0 %v1922_v12  ;;  %v12870_v12 = vpack.c.bf16 %v8891_v62, %v8890_v10  ;;  %v1944_v10 = vsel %vm1919_vm3, %v1941_v36, %v1943_v5  ;;  %v1945_v62 = vrot.slane %v12601_v26, 4 }
 0x275   :  { %2102 = vmatprep.mubr.f32.mxu0 %v15900_v3  ;;  %10196 = vmatpush1.bf16.msra.mxu0 %v12838_v56 }
 0x276   :  { %10197 = vmatprep.subr.bf16.mxu0 %v15902_v27 }
 0x278   :  { %2103 = vmatmul.mubr.f32.gmra.mrb[2].mxu0 %v1924_v19  ;;  %v2924_v19 = vld [vmem:[%s15888_s3 + $0x38] sm:$0xff] }
 0x279   :  { %2108 = vmatprep.mubr.f32.mxu0 %v15900_v3  ;;  %10199 = vmatpush1.bf16.msra.mxu0 %v12850_v31 }
 0x27a   :  { %10200 = vmatprep.subr.bf16.mxu0 %v15902_v27 }
 0x27c   :  { %2109 = vmatmul.mubr.f32.gmra.mrb[4].mxu0 %v1926_v45  ;;  %v10174_v45 = vpack.c.bf16 %v2924_v19, %v2923_v48  ;;  %v1949_v48 = vrot.slane %v12617_v28, 4  ;;  %v1955_v28 = vrot.slane %v12641_v38, 4  ;;  %v1961_v38 = vrot.slane %v12665_v42, 4  ;;  %v2932_v42 = vld [vmem:[%s15888_s3 + $0x78] sm:$0xff] }
 0x27d   :  { %2114 = vmatprep.mubr.f32.mxu0 %v15900_v3  ;;  %10202 = vmatpush1.bf16.msra.mxu0 %v12870_v12 }
 0x27e   :  { %10203 = vmatprep.subr.bf16.mxu0 %v15902_v27  ;;  %10175 = vmatpush1.bf16.msra.mxu1 %v10174_v45 }
 0x27f   :  { %10176 = vmatprep.subr.bf16.mxu1 %v15902_v27 }
 0x280   :  { %2115 = vmatmul.mubr.f32.gmra.mrb[6].mxu0 %v1928_v20  ;;  %v1939_v20 = vrot.slane %v12577_v9, 4  ;;  %v8894_v9 = vld [vmem:[%s15888_s3 + $0xe8] sm:$0xff] }
 0x281   :  { %2120 = vmatprep.mubr.f32.mxu0 %v15900_v3  ;;  %10205 = vmatpush1.bf16.msra.mxu0 %v12890_v2 }
 0x282   :  { %v1940_v47 = vsel %vm1919_vm3, %v1937_v7, %v1939_v20  ;;  %10206 = vmatprep.subr.bf16.mxu0 %v15902_v27  ;;  %v1942_v39 = vsel %vm1919_vm3, %v1939_v20, %v1941_v36  ;;  %v1947_v7 = vrot.slane %v12609_v33, 4  ;;  %v1951_v33 = vrot.slane %v12625_v43, 4 }
 0x283   :  { %v1957_v43 = vrot.slane %v12649_v63, 4  ;;  %v1963_v63 = vrot.slane %v12673_v50, 4  ;;  %v1967_v36 = vrot.slane %v12689_v61, 4  ;;  %v10189_v61 = vpack.c.bf16 %v2934_v49, %v2933_v44 }
 0x284   :  { %2121 = vmatmul.mubr.f32.gmra.mrb[8].mxu0 %v1930_v18  ;;  %v2925_v18 = vld [vmem:[%s15888_s3 + $0x40] sm:$0xff]  ;;  %v1948_v26 = vsel %vm1919_vm3, %v1945_v62, %v1947_v7  ;;  %v1950_v19 = vsel %vm1919_vm3, %v1947_v7, %v1949_v48  ;;  %v1952_v8 = vsel %vm1919_vm3, %v1949_v48, %v1951_v33  ;;  %v1954_v45 = vsel %vm1919_vm3, %v1951_v33, %v1953_v14  ;;  %v13056_v48 = vld [vmem:[%s15888_s3 + $0x148] sm:$0xff] }
 0x285   :  { %2126 = vmatprep.mubr.f32.mxu0 %v15900_v3  ;;  %v10177_v24 = vpack.c.bf16 %v2926_v16, %v2925_v18  ;;  %v1958_v20 = vsel %vm1919_vm3, %v1955_v28, %v1957_v43  ;;  %v1960_v18 = vsel %vm1919_vm3, %v1957_v43, %v1959_v52  ;;  %v1962_v16 = vsel %vm1919_vm3, %v1959_v52, %v1961_v38 }
 0x286   :  { %v1966_v54 = vsel %vm1919_vm3, %v1963_v63, %v1965_v11 }
 0x287   :  { %10178 = vmatpush1.bf16.msra.mxu1 %v10177_v24  ;;  %v8900_v24 = vld [vmem:[%s15888_s3 + $0x118] sm:$0xff] }
 0x288   :  { %2127 = vmatmul.mubr.f32.gmra.mrb[10].mxu0 %v1932_v22  ;;  %v8895_v22 = vld [vmem:[%s15888_s3 + $0xf0] sm:$0xff]  ;;  %10179 = vmatprep.subr.bf16.mxu1 %v15902_v27 }
 0x289   :  { %2132 = vmatprep.mubr.f32.mxu0 %v15900_v3  ;;  %v12910_v41 = vpack.c.bf16 %v8895_v22, %v8894_v9  ;;  %v1964_v9 = vsel %vm1919_vm3, %v1961_v38, %v1963_v63  ;;  %v2931_v22 = vld [vmem:[%s15888_s3 + $0x70] sm:$0xff] }
 0x28a   :  { %v10186_v50 = vpack.c.bf16 %v2932_v42, %v2931_v22 }
 0x28b   :  { %10208 = vmatpush1.bf16.msra.mxu0 %v12910_v41  ;;  %10181 = vmatpush1.bf16.msra.mxu1 %v10180_v34  ;;  %v8903_v34 = vld [vmem:[%s15888_s3 + $0x130] sm:$0xff] }
 0x28c   :  { %2133 = vmatmul.mubr.f32.gmra.mrb[12].mxu0 %v1934_v15  ;;  %v2929_v15 = vld [vmem:[%s15888_s3 + $0x60] sm:$0xff]  ;;  %10209 = vmatprep.subr.bf16.mxu0 %v15902_v27 }
 0x28d   :  { %2138 = vmatprep.mubr.f32.mxu0 %v15900_v3  ;;  %v10183_v35 = vpack.c.bf16 %v2930_v25, %v2929_v15  ;;  %10182 = vmatprep.subr.bf16.mxu1 %v15902_v27  ;;  %v13022_v15 = vpack.c.bf16 %v8903_v34, %v8902_v29  ;;  %v2935_v25 = vld [vmem:[%s15888_s3 + $0x90] sm:$0xff] }
 0x28f   :  { %10211 = vmatpush1.bf16.msra.mxu0 %v12930_v0  ;;  %10184 = vmatpush1.bf16.msra.mxu1 %v10183_v35  ;;  %v8905_v35 = vld [vmem:[%s15888_s3 + $0x140] sm:$0xff] }
 0x290   :  { %2139 = vmatmul.mubr.f32.gmra.mrb[14].mxu0 %v1936_v4  ;;  %10212 = vmatprep.subr.bf16.mxu0 %v15902_v27  ;;  %v1946_v4 = vsel %vm1919_vm3, %v1943_v5, %v1945_v62  ;;  %v1969_v5 = vrot.slane %v12697_v59, 4  ;;  %v10192_v59 = vpack.c.bf16 %v2936_v17, %v2935_v25  ;;  %v1971_v62 = vrot.slane %v12705_v58, 4  ;;  %v2937_v58 = vld [vmem:[%s15888_s3 + $0xa0] sm:$0xff] }
 0x291   :  { %2144 = vmatprep.mubr.f32.mxu0 %v15900_v3  ;;  %10185 = vmatprep.subr.bf16.mxu1 %v15902_v27 }
 0x292   :  { %v1972_v7 = vsel %vm1919_vm3, %v1969_v5, %v1971_v62 }
 0x293   :  { %10214 = vmatpush1.bf16.msra.mxu0 %v12950_v1  ;;  %10187 = vmatpush1.bf16.msra.mxu1 %v10186_v50 }
 0x294   :  { %2145 = vmatmul.mubr.f32.gmra.mrb[16].mxu0 %v1938_v53  ;;  %10215 = vmatprep.subr.bf16.mxu0 %v15902_v27  ;;  %v1956_v53 = vsel %vm1919_vm3, %v1953_v14, %v1955_v28 }
 0x295   :  { %2150 = vmatprep.mubr.f32.mxu0 %v15900_v3  ;;  %10188 = vmatprep.subr.bf16.mxu1 %v15902_v27 }
 0x297   :  { %10190 = vmatpush1.bf16.msra.mxu1 %v10189_v61 }
 0x298   :  { %2151 = vmatmul.mubr.f32.gmra.mrb[18].mxu0 %v1940_v47  ;;  %v8901_v47 = vld [vmem:[%s15888_s3 + $0x120] sm:$0xff]  ;;  %10191 = vmatprep.subr.bf16.mxu1 %v15902_v27 }
 0x299   :  { %2156 = vmatprep.mubr.f32.mxu0 %v15900_v3  ;;  %v13002_v55 = vpack.c.bf16 %v8901_v47, %v8900_v24 }
 0x29b   :  { %10217 = vmatpush1.bf16.msra.mxu0 %v13002_v55  ;;  %10193 = vmatpush1.bf16.msra.mxu1 %v10192_v59 }
 0x29c   :  { %2157 = vmatmul.mubr.f32.gmra.mrb[20].mxu0 %v1942_v39  ;;  %10218 = vmatprep.subr.bf16.mxu0 %v15902_v27  ;;  %v1968_v39 = vsel %vm1919_vm3, %v1965_v11, %v1967_v36 }
 0x29d   :  { %2162 = vmatprep.mubr.f32.mxu0 %v15900_v3  ;;  %3087 = vmatprep.subr.mxu1 %v15900_v3 }
 0x29f   :  { %10220 = vmatpush1.bf16.msra.mxu0 %v13022_v15  ;;  %3088 = vmatpush1.msra.mxu1 %v2937_v58 }
 0x2a0   :  { %2163 = vmatmul.mubr.f32.gmra.mrb[22].mxu0 %v1944_v10  ;;  %10221 = vmatprep.subr.bf16.mxu0 %v15902_v27  ;;  %v1970_v10 = vsel %vm1919_vm3, %v1967_v36, %v1969_v5 }
 0x2a1   :  { %2168 = vmatprep.mubr.f32.mxu0 %v15900_v3  ;;  %10684 = vmatprep.subr.bf16.mxu1 %v15902_v27 }
 0x2a4   :  { %2169 = vmatmul.mubr.f32.gmra.mrb[24].mxu0 %v1946_v4  ;;  %v13042_v4 = vpack.c.bf16 %v8905_v35, %v8904_v57 }
 0x2a5   :  { %2174 = vmatprep.mubr.f32.mxu0 %v15900_v3 }
 0x2a6   :  { %10223 = vmatpush1.bf16.msra.mxu0 %v13042_v4 }
 0x2a7   :  { %3354 = vmatprep.subr.mxu0 %v15900_v3 }
 0x2a8   :  { %2175 = vmatmul.mubr.f32.gmra.mrb[26].mxu0 %v1948_v26  ;;  %v1973_v26 = vrot.slane %v12713_v6, 4 }
 0x2a9   :  { %2180 = vmatprep.mubr.f32.mxu0 %v15900_v3 }
 0x2aa   :  { %3355 = vmatpush1.msra.mxu0 %v13056_v48  ;;  %v1974_v6 = vsel %vm1919_vm3, %v1971_v62, %v1973_v26 }
 0x2ab   :  { %10384 = vmatprep.subr.bf16.mxu0 %v15902_v27 }
 0x2ac   :  { %2181 = vmatmul.mubr.f32.gmra.mrb[28].mxu0 %v1950_v19  ;;  %v1975_v19 = vrot.slane %v12721_v13, 4  ;;  %v1981_v13 = vrot.slane %v12745_v40, 4  ;;  %v1987_v40 = vrot.slane %v12769_v37, 4  ;;  %v1993_v37 = vrot.slane %v12793_v46, 4 }
 0x2ad   :  { %2186 = vmatprep.mubr.f32.mxu0 %v15900_v3 }
 0x2ae   :  { %v1976_v33 = vsel %vm1919_vm3, %v1973_v26, %v1975_v19 }
 0x2b0   :  { %2187 = vmatmul.mubr.f32.gmra.mrb[30].mxu0 %v1952_v8  ;;  %v1977_v8 = vrot.slane %v12729_v23, 4  ;;  %v1983_v23 = vrot.slane %v12753_v32, 4  ;;  %v1989_v32 = vrot.slane %v12777_v21, 4  ;;  %v2395_v21 = vlaneseq }
 0x2b1   :  { %2192 = vmatprep.mubr.f32.mxu0 %v15900_v3 }
 0x2b2   :  { %v1978_v14 = vsel %vm1919_vm3, %v1975_v19, %v1977_v8  ;;  %v1984_v43 = vsel %vm1919_vm3, %v1981_v13, %v1983_v23  ;;  %v13093_v63 = vshrl.u32 %v2395_v21, 7 }
 0x2b4   :  { %2193 = vmatmul.mubr.f32.gmra.mrb[32].mxu0 %v1954_v45  ;;  %v1979_v45 = vrot.slane %v12737_v30, 4  ;;  %v1985_v30 = vrot.slane %v12761_v60, 4  ;;  %v1991_v60 = vrot.slane %v12785_v51, 4  ;;  %15941 = vst [vmem:[#allocation2_spill] sm:$0xff] %v13093_v63  ;;  %v2393_v51 = vld [vmem:[%s15889_s2] sm:$0x3] }
 0x2b5   :  { %2198 = vmatprep.mubr.f32.mxu0 %v15900_v3  ;;  %v2401_v11 = vsub.s32 1, %v13093_v63 }
 0x2b6   :  { %v1980_v28 = vsel %vm1919_vm3, %v1977_v8, %v1979_v45  ;;  %v1988_v52 = vsel %vm1919_vm3, %v1985_v30, %v1987_v40  ;;  %v1992_v38 = vsel %vm1919_vm3, %v1989_v32, %v1991_v60 }
 0x2b7   :  { %v13106_v22 = vrot.slane %v2393_v51, %v2401_v11 }
 0x2b8   :  { %2199 = vmatmul.mubr.f32.gmra.mrb[34].mxu0 %v1956_v53  ;;  %v1982_v53 = vsel %vm1919_vm3, %v1979_v45, %v1981_v13 }
 0x2b9   :  { %2204 = vmatprep.mubr.f32.mxu0 %v15900_v3 }
 0x2bc   :  { %2205 = vmatmul.mubr.f32.gmra.mrb[36].mxu0 %v1958_v20  ;;  %v1986_v20 = vsel %vm1919_vm3, %v1983_v23, %v1985_v30 }
 0x2bd   :  { %2210 = vmatprep.mubr.f32.mxu0 %v15900_v3 }
 0x2c0   :  { %2211 = vmatmul.mubr.f32.gmra.mrb[38].mxu0 %v1960_v18  ;;  %v1990_v18 = vsel %vm1919_vm3, %v1987_v40, %v1989_v32 }
 0x2c1   :  { %2216 = vmatprep.mubr.f32.mxu0 %v15900_v3 }
 0x2c4   :  { %2217 = vmatmul.mubr.f32.gmra.mrb[40].mxu0 %v1962_v16  ;;  %v1994_v16 = vsel %vm1919_vm3, %v1991_v60, %v1993_v37 }
 0x2c5   :  { %2222 = vmatprep.mubr.f32.mxu0 %v15900_v3 }
 0x2c8   :  { %2223 = vmatmul.mubr.f32.gmra.mrb[42].mxu0 %v1964_v9  ;;  %v2397_v9 = vsub.s32 0, %v13093_v63 }
 0x2c9   :  { %2228 = vmatprep.mubr.f32.mxu0 %v15900_v3 }
 0x2ca   :  { %v13102_v46 = vrot.slane %v2393_v51, %v2397_v9 }
 0x2cc   :  { %2229 = vmatmul.mubr.f32.gmra.mrb[44].mxu0 %v1966_v54 }
 0x2cd   :  { %2234 = vmatprep.mubr.f32.mxu0 %v15900_v3 }
 0x2d0   :  { %2235 = vmatmul.mubr.f32.gmra.mrb[46].mxu0 %v1968_v39 }
 0x2d1   :  { %2240 = vmatprep.mubr.f32.mxu0 %v15900_v3 }
 0x2d4   :  { %2241 = vmatmul.mubr.f32.gmra.mrb[48].mxu0 %v1970_v10 }
 0x2d5   :  { %2246 = vmatprep.mubr.f32.mxu0 %v15900_v3 }
 0x2d8   :  { %2247 = vmatmul.mubr.f32.gmra.mrb[50].mxu0 %v1972_v7 }
 0x2d9   :  { %2252 = vmatprep.mubr.f32.mxu0 %v15900_v3 }
 0x2dc   :  { %2253 = vmatmul.mubr.f32.gmra.mrb[52].mxu0 %v1974_v6 }
 0x2dd   :  { %2258 = vmatprep.mubr.f32.mxu0 %v15900_v3 }
 0x2e0   :  { %2259 = vmatmul.mubr.f32.gmra.mrb[54].mxu0 %v1976_v33 }
 0x2e1   :  { %2264 = vmatprep.mubr.f32.mxu0 %v15900_v3 }
 0x2e4   :  { %2265 = vmatmul.mubr.f32.gmra.mrb[56].mxu0 %v1978_v14 }
 0x2e5   :  { %2270 = vmatprep.mubr.f32.mxu0 %v15900_v3 }
 0x2e8   :  { %2271 = vmatmul.mubr.f32.gmra.mrb[58].mxu0 %v1980_v28 }
 0x2e9   :  { %2276 = vmatprep.mubr.f32.mxu0 %v15900_v3 }
 0x2ec   :  { %2277 = vmatmul.mubr.f32.gmra.mrb[60].mxu0 %v1982_v53 }
 0x2ed   :  { %2282 = vmatprep.mubr.f32.mxu0 %v15900_v3 }
 0x2f0   :  { %2283 = vmatmul.mubr.f32.gmra.mrb[62].mxu0 %v1984_v43 }
 0x2f1   :  { %2288 = vmatprep.mubr.f32.mxu0 %v15900_v3 }
 0x2f4   :  { %2289 = vmatmul.mubr.f32.gmra.mrb[64].mxu0 %v1986_v20 }
 0x2f5   :  { %2294 = vmatprep.mubr.f32.mxu0 %v15900_v3 }
 0x2f8   :  { %2295 = vmatmul.mubr.f32.gmra.mrb[66].mxu0 %v1988_v52 }
 0x2f9   :  { %2300 = vmatprep.mubr.f32.mxu0 %v15900_v3 }
 0x2fc   :  { %2301 = vmatmul.mubr.f32.gmra.mrb[68].mxu0 %v1990_v18 }
 0x2fd   :  { %2306 = vmatprep.mubr.f32.mxu0 %v15900_v3 }
 0x300   :  { %2307 = vmatmul.mubr.f32.gmra.mrb[70].mxu0 %v1992_v38 }
 0x301   :  { %2312 = vmatprep.mubr.f32.mxu0 %v15900_v3 }
 0x304   :  { %2313 = vmatmul.mubr.f32.gmra.mrb[72].mxu0 %v1994_v16 }
 0x347   :  { %v2098_v42 = vpop.f32.mrb[0].mxu0 }
 0x348   :  { %v2405_v24 = vadd.f32 %v13102_v46, %v2098_v42  ;;  %v2100_v50 = vpop.f32.mrb[1].mxu0 }
 0x349   :  { %v2406_v47 = vadd.f32 %v13106_v22, %v2100_v50 }
 0x34a   :  { %v2479_v36 = vmax.f32 %v2405_v24, 0.0 }
 0x34b   :  { %v2104_v54 = vpop.f32.mrb[2].mxu0  ;;  %v2480_v61 = vmax.f32 %v2406_v47, 0.0 }
 0x34c   :  { %v2407_v44 = vadd.f32 %v13102_v46, %v2104_v54  ;;  %v2106_v49 = vpop.f32.mrb[3].mxu0  ;;  %v2627_v25 = vrot.slane %v2479_v36, 1 }
 0x34d   :  { %v2408_v29 = vadd.f32 %v13106_v22, %v2106_v49  ;;  %v2630_v62 = vrot.slane %v2480_v61, 1 }
 0x34e   :  { %v2481_v34 = vmax.f32 %v2407_v44, 0.0 }
 0x34f   :  { %v2482_v39 = vmax.f32 %v2408_v29, 0.0  ;;  %v2110_v5 = vpop.f32.mrb[4].mxu0 }
 0x350   :  { %v2628_v17 = vrot.slane %v2481_v34, 1  ;;  %v2409_v57 = vadd.f32 %v13102_v46, %v2110_v5  ;;  %v2112_v59 = vpop.f32.mrb[5].mxu0 }
 0x351   :  { %v2631_v35 = vrot.slane %v2482_v39, 1  ;;  %v2410_v10 = vadd.f32 %v13106_v22, %v2112_v59 }
 0x352   :  { %v2483_v7 = vmax.f32 %v2409_v57, 0.0  ;;  %v2629_v26 = vsel %vm185_vm0, %v2627_v25, %v2628_v17 }
 0x353   :  { %v2484_v58 = vmax.f32 %v2410_v10, 0.0  ;;  %v2116_v6 = vpop.f32.mrb[6].mxu0  ;;  %v2632_v19 = vsel %vm185_vm0, %v2630_v62, %v2631_v35  ;;  %v2845_v33 = vmax.f32 %v2479_v36, %v2629_v26 }
 0x354   :  { %v2633_v8 = vrot.slane %v2483_v7, 1  ;;  %v2411_v14 = vadd.f32 %v13102_v46, %v2116_v6  ;;  %v2118_v45 = vpop.f32.mrb[7].mxu0  ;;  %v2846_v28 = vmax.f32 %v2480_v61, %v2632_v19 }
 0x355   :  { %v2635_v13 = vrot.slane %v2484_v58, 1  ;;  %v2412_v53 = vadd.f32 %v13106_v22, %v2118_v45 }
 0x356   :  { %v2485_v23 = vmax.f32 %v2411_v14, 0.0  ;;  %8850 = vmatprep.mubr.msk.f32.mxu1 %vm2938_vm4, %v2846_v28  ;;  %8907 = vmatprep.mubr.msk.f32.mxu0 %vm2938_vm4, %v2846_v28  ;;  %v2634_v43 = vsel %vm185_vm0, %v2628_v17, %v2633_v8 }
 0x357   :  { %v2486_v30 = vmax.f32 %v2412_v53, 0.0  ;;  %v2122_v20 = vpop.f32.mrb[8].mxu0  ;;  %3112 = vmatmul.mubr.f32.vlgmr.msra.gmra.mrb[0].mxu1 %v2845_v33  ;;  %3379 = vmatmul.mubr.f32.vlgmr.msra.gmra.mrb[74].mxu0 %v2845_v33  ;;  %v2636_v40 = vsel %vm185_vm0, %v2631_v35, %v2635_v13  ;;  %v2847_v52 = vmax.f32 %v2481_v34, %v2634_v43 }
 0x358   :  { %v2637_v32 = vrot.slane %v2485_v23, 1  ;;  %v2413_v18 = vadd.f32 %v13102_v46, %v2122_v20  ;;  %v2124_v60 = vpop.f32.mrb[9].mxu0  ;;  %v2848_v38 = vmax.f32 %v2482_v39, %v2636_v40  ;;  %10695 = vmatpush1.bf16.msra.mxu1 %v12838_v56 }
 0x359   :  { %v2639_v37 = vrot.slane %v2486_v30, 1  ;;  %v2414_v16 = vadd.f32 %v13106_v22, %v2124_v60  ;;  %10685 = vmatprep.subr.bf16.mxu1 %v15902_v27 }
 0x35a   :  { %v2487_v21 = vmax.f32 %v2413_v18, 0.0  ;;  %8851 = vmatprep.mubr.msk.f32.mxu1 %vm2938_vm4, %v2848_v38  ;;  %8908 = vmatprep.mubr.msk.f32.mxu0 %vm2938_vm4, %v2848_v38  ;;  %v2638_v51 = vsel %vm185_vm0, %v2633_v8, %v2637_v32 }
 0x35b   :  { %v2488_v42 = vmax.f32 %v2414_v16, 0.0  ;;  %v2128_v24 = vpop.f32.mrb[10].mxu0  ;;  %3117 = vmatmul.mubr.f32.gmra.mrb[2].mxu1 %v2847_v52  ;;  %3384 = vmatmul.mubr.f32.gmra.mrb[76].mxu0 %v2847_v52  ;;  %v2640_v50 = vsel %vm185_vm0, %v2635_v13, %v2639_v37  ;;  %v2849_v47 = vmax.f32 %v2483_v7, %v2638_v51 }
 0x35c   :  { %v2641_v56 = vrot.slane %v2487_v21, 1  ;;  %v2415_v54 = vadd.f32 %v13102_v46, %v2128_v24  ;;  %v2130_v36 = vpop.f32.mrb[11].mxu0  ;;  %v2850_v44 = vmax.f32 %v2484_v58, %v2640_v50  ;;  %10696 = vmatpush1.bf16.msra.mxu1 %v12850_v31 }
 0x35d   :  { %v2643_v49 = vrot.slane %v2488_v42, 1  ;;  %v2416_v29 = vadd.f32 %v13106_v22, %v2130_v36  ;;  %10686 = vmatprep.subr.bf16.mxu1 %v15902_v27 }
 0x35e   :  { %v2489_v61 = vmax.f32 %v2415_v54, 0.0  ;;  %8852 = vmatprep.mubr.msk.f32.mxu1 %vm2938_vm4, %v2850_v44  ;;  %8909 = vmatprep.mubr.msk.f32.mxu0 %vm2938_vm4, %v2850_v44  ;;  %v2642_v34 = vsel %vm185_vm0, %v2637_v32, %v2641_v56 }
 0x35f   :  { %v2490_v39 = vmax.f32 %v2416_v29, 0.0  ;;  %v2134_v5 = vpop.f32.mrb[12].mxu0  ;;  %3122 = vmatmul.mubr.f32.gmra.mrb[4].mxu1 %v2849_v47  ;;  %3389 = vmatmul.mubr.f32.gmra.mrb[78].mxu0 %v2849_v47  ;;  %v2644_v25 = vsel %vm185_vm0, %v2639_v37, %v2643_v49  ;;  %v2851_v17 = vmax.f32 %v2485_v23, %v2642_v34 }
 0x360   :  { %v2645_v31 = vrot.slane %v2489_v61, 1  ;;  %v2417_v57 = vadd.f32 %v13102_v46, %v2134_v5  ;;  %v2136_v59 = vpop.f32.mrb[13].mxu0  ;;  %v2852_v35 = vmax.f32 %v2486_v30, %v2644_v25  ;;  %10697 = vmatpush1.bf16.msra.mxu1 %v12870_v12 }
 0x361   :  { %v2647_v10 = vrot.slane %v2490_v39, 1  ;;  %v2418_v62 = vadd.f32 %v13106_v22, %v2136_v59  ;;  %10687 = vmatprep.subr.bf16.mxu1 %v15902_v27 }
 0x362   :  { %v2491_v7 = vmax.f32 %v2417_v57, 0.0  ;;  %8853 = vmatprep.mubr.msk.f32.mxu1 %vm2938_vm4, %v2852_v35  ;;  %8910 = vmatprep.mubr.msk.f32.mxu0 %vm2938_vm4, %v2852_v35  ;;  %v2646_v26 = vsel %vm185_vm0, %v2641_v56, %v2645_v31 }
 0x363   :  { %v2492_v58 = vmax.f32 %v2418_v62, 0.0  ;;  %v2140_v6 = vpop.f32.mrb[14].mxu0  ;;  %3127 = vmatmul.mubr.f32.gmra.mrb[6].mxu1 %v2851_v17  ;;  %3394 = vmatmul.mubr.f32.gmra.mrb[80].mxu0 %v2851_v17  ;;  %v2648_v19 = vsel %vm185_vm0, %v2643_v49, %v2647_v10  ;;  %v2853_v33 = vmax.f32 %v2487_v21, %v2646_v26 }
 0x364   :  { %v2649_v12 = vrot.slane %v2491_v7, 1  ;;  %v2419_v8 = vadd.f32 %v13102_v46, %v2140_v6  ;;  %v2142_v14 = vpop.f32.mrb[15].mxu0  ;;  %v2854_v45 = vmax.f32 %v2488_v42, %v2648_v19  ;;  %10698 = vmatpush1.bf16.msra.mxu1 %v12890_v2 }
 0x365   :  { %v2651_v28 = vrot.slane %v2492_v58, 1  ;;  %v2420_v13 = vadd.f32 %v13106_v22, %v2142_v14  ;;  %10688 = vmatprep.subr.bf16.mxu1 %v15902_v27 }
 0x366   :  { %v2493_v53 = vmax.f32 %v2419_v8, 0.0  ;;  %8854 = vmatprep.mubr.msk.f32.mxu1 %vm2938_vm4, %v2854_v45  ;;  %8911 = vmatprep.mubr.msk.f32.mxu0 %vm2938_vm4, %v2854_v45  ;;  %v2650_v23 = vsel %vm185_vm0, %v2645_v31, %v2649_v12 }
 0x367   :  { %v2494_v43 = vmax.f32 %v2420_v13, 0.0  ;;  %v2146_v30 = vpop.f32.mrb[16].mxu0  ;;  %3132 = vmatmul.mubr.f32.gmra.mrb[8].mxu1 %v2853_v33  ;;  %3399 = vmatmul.mubr.f32.gmra.mrb[82].mxu0 %v2853_v33  ;;  %v2652_v20 = vsel %vm185_vm0, %v2647_v10, %v2651_v28  ;;  %v2855_v40 = vmax.f32 %v2489_v61, %v2650_v23 }
 0x368   :  { %v2653_v2 = vrot.slane %v2493_v53, 1  ;;  %v2421_v52 = vadd.f32 %v13102_v46, %v2146_v30  ;;  %v2148_v32 = vpop.f32.mrb[17].mxu0  ;;  %v2856_v18 = vmax.f32 %v2490_v39, %v2652_v20  ;;  %10699 = vmatpush1.bf16.msra.mxu1 %v12910_v41 }
 0x369   :  { %v2655_v60 = vrot.slane %v2494_v43, 1  ;;  %v2422_v38 = vadd.f32 %v13106_v22, %v2148_v32  ;;  %10689 = vmatprep.subr.bf16.mxu1 %v15902_v27 }
 0x36a   :  { %v2495_v37 = vmax.f32 %v2421_v52, 0.0  ;;  %8855 = vmatprep.mubr.msk.f32.mxu1 %vm2938_vm4, %v2856_v18  ;;  %8912 = vmatprep.mubr.msk.f32.mxu0 %vm2938_vm4, %v2856_v18  ;;  %v2654_v16 = vsel %vm185_vm0, %v2649_v12, %v2653_v2 }
 0x36b   :  { %v2496_v21 = vmax.f32 %v2422_v38, 0.0  ;;  %v2152_v51 = vpop.f32.mrb[18].mxu0  ;;  %3137 = vmatmul.mubr.f32.gmra.mrb[10].mxu1 %v2855_v40  ;;  %3404 = vmatmul.mubr.f32.gmra.mrb[84].mxu0 %v2855_v40  ;;  %v2656_v42 = vsel %vm185_vm0, %v2651_v28, %v2655_v60  ;;  %v2857_v24 = vmax.f32 %v2491_v7, %v2654_v16 }
 0x36c   :  { %v2657_v41 = vrot.slane %v2495_v37, 1  ;;  %v2423_v50 = vadd.f32 %v13102_v46, %v2152_v51  ;;  %v2154_v47 = vpop.f32.mrb[19].mxu0  ;;  %v2858_v56 = vmax.f32 %v2492_v58, %v2656_v42  ;;  %10700 = vmatpush1.bf16.msra.mxu1 %v12930_v0 }
 0x36d   :  { %v2659_v54 = vrot.slane %v2496_v21, 1  ;;  %v2424_v36 = vadd.f32 %v13106_v22, %v2154_v47  ;;  %10690 = vmatprep.subr.bf16.mxu1 %v15902_v27 }
 0x36e   :  { %v2497_v44 = vmax.f32 %v2423_v50, 0.0  ;;  %8856 = vmatprep.mubr.msk.f32.mxu1 %vm2938_vm4, %v2858_v56  ;;  %8913 = vmatprep.mubr.msk.f32.mxu0 %vm2938_vm4, %v2858_v56  ;;  %v2658_v49 = vsel %vm185_vm0, %v2653_v2, %v2657_v41 }
 0x36f   :  { %v2660_v29 = vsel %vm185_vm0, %v2655_v60, %v2659_v54  ;;  %v2498_v61 = vmax.f32 %v2424_v36, 0.0  ;;  %v2158_v34 = vpop.f32.mrb[20].mxu0  ;;  %3142 = vmatmul.mubr.f32.gmra.mrb[12].mxu1 %v2857_v24  ;;  %3409 = vmatmul.mubr.f32.gmra.mrb[86].mxu0 %v2857_v24  ;;  %v2859_v39 = vmax.f32 %v2493_v53, %v2658_v49 }
 0x370   :  { %v2661_v0 = vrot.slane %v2497_v44, 1  ;;  %v2425_v5 = vadd.f32 %v13102_v46, %v2158_v34  ;;  %v2160_v25 = vpop.f32.mrb[21].mxu0  ;;  %v2860_v17 = vmax.f32 %v2494_v43, %v2660_v29  ;;  %10701 = vmatpush1.bf16.msra.mxu1 %v12950_v1 }
 0x371   :  { %v2663_v31 = vrot.slane %v2498_v61, 1  ;;  %v2426_v57 = vadd.f32 %v13106_v22, %v2160_v25  ;;  %10691 = vmatprep.subr.bf16.mxu1 %v15902_v27 }
 0x372   :  { %v2499_v59 = vmax.f32 %v2425_v5, 0.0  ;;  %8857 = vmatprep.mubr.msk.f32.mxu1 %vm2938_vm4, %v2860_v17  ;;  %8914 = vmatprep.mubr.msk.f32.mxu0 %vm2938_vm4, %v2860_v17  ;;  %v2662_v35 = vsel %vm185_vm0, %v2657_v41, %v2661_v0 }
 0x373   :  { %v2664_v10 = vsel %vm185_vm0, %v2659_v54, %v2663_v31  ;;  %v2500_v62 = vmax.f32 %v2426_v57, 0.0  ;;  %v2164_v7 = vpop.f32.mrb[22].mxu0  ;;  %3147 = vmatmul.mubr.f32.gmra.mrb[14].mxu1 %v2859_v39  ;;  %3414 = vmatmul.mubr.f32.gmra.mrb[88].mxu0 %v2859_v39  ;;  %v2861_v26 = vmax.f32 %v2495_v37, %v2662_v35  ;;  %v8944_v35 = vld [vmem:[%s15890_s4 + $0x108] sm:$0xff] }
 0x374   :  { %v2665_v1 = vrot.slane %v2499_v59, 1  ;;  %v2427_v58 = vadd.f32 %v13102_v46, %v2164_v7  ;;  %v2166_v6 = vpop.f32.mrb[23].mxu0  ;;  %v2862_v19 = vmax.f32 %v2496_v21, %v2664_v10  ;;  %10702 = vmatpush1.bf16.msra.mxu1 %v13002_v55  ;;  %v8946_v10 = vld [vmem:[%s15890_s4 + $0x118] sm:$0xff] }
 0x375   :  { %v2667_v33 = vrot.slane %v2500_v62, 1  ;;  %v2428_v12 = vadd.f32 %v13106_v22, %v2166_v6  ;;  %10692 = vmatprep.subr.bf16.mxu1 %v15902_v27 }
 0x376   :  { %v2501_v8 = vmax.f32 %v2427_v58, 0.0  ;;  %8858 = vmatprep.mubr.msk.f32.mxu1 %vm2938_vm4, %v2862_v19  ;;  %8915 = vmatprep.mubr.msk.f32.mxu0 %vm2938_vm4, %v2862_v19  ;;  %v2666_v14 = vsel %vm185_vm0, %v2661_v0, %v2665_v1 }
 0x377   :  { %v2668_v45 = vsel %vm185_vm0, %v2663_v31, %v2667_v33  ;;  %v2502_v28 = vmax.f32 %v2428_v12, 0.0  ;;  %v2170_v13 = vpop.f32.mrb[24].mxu0  ;;  %3152 = vmatmul.mubr.f32.gmra.mrb[16].mxu1 %v2861_v26  ;;  %3419 = vmatmul.mubr.f32.gmra.mrb[90].mxu0 %v2861_v26  ;;  %v2863_v53 = vmax.f32 %v2497_v44, %v2666_v14  ;;  %v10224_v26 = vpack.c.bf16 %v8946_v10, %v8944_v35 }
 0x378   :  { %v2669_v55 = vrot.slane %v2501_v8, 1  ;;  %v2429_v23 = vadd.f32 %v13102_v46, %v2170_v13  ;;  %v2172_v43 = vpop.f32.mrb[25].mxu0  ;;  %v2864_v30 = vmax.f32 %v2498_v61, %v2668_v45  ;;  %10703 = vmatpush1.bf16.msra.mxu1 %v13022_v15 }
 0x379   :  { %v2671_v20 = vrot.slane %v2502_v28, 1  ;;  %v2430_v40 = vadd.f32 %v13106_v22, %v2172_v43  ;;  %10693 = vmatprep.subr.bf16.mxu1 %v15902_v27 }
 0x37a   :  { %v2503_v2 = vmax.f32 %v2429_v23, 0.0  ;;  %8859 = vmatprep.mubr.msk.f32.mxu1 %vm2938_vm4, %v2864_v30  ;;  %8916 = vmatprep.mubr.msk.f32.mxu0 %vm2938_vm4, %v2864_v30  ;;  %v2670_v52 = vsel %vm185_vm0, %v2665_v1, %v2669_v55 }
 0x37b   :  { %v2672_v32 = vsel %vm185_vm0, %v2667_v33, %v2671_v20  ;;  %v2504_v18 = vmax.f32 %v2430_v40, 0.0  ;;  %v2176_v60 = vpop.f32.mrb[26].mxu0  ;;  %3157 = vmatmul.mubr.f32.gmra.mrb[18].mxu1 %v2863_v53  ;;  %3424 = vmatmul.mubr.f32.gmra.mrb[92].mxu0 %v2863_v53  ;;  %v2865_v38 = vmax.f32 %v2499_v59, %v2670_v52 }
 0x37c   :  { %v2673_v15 = vrot.slane %v2503_v2, 1  ;;  %v2431_v37 = vadd.f32 %v13102_v46, %v2176_v60  ;;  %v2178_v16 = vpop.f32.mrb[27].mxu0  ;;  %v2866_v21 = vmax.f32 %v2500_v62, %v2672_v32  ;;  %10704 = vmatpush1.bf16.msra.mxu1 %v13042_v4 }
 0x37d   :  { %v2675_v51 = vrot.slane %v2504_v18, 1  ;;  %v2432_v42 = vadd.f32 %v13106_v22, %v2178_v16  ;;  %10694 = vmatprep.subr.mxu1 %v15900_v3 }
 0x37e   :  { %v2505_v24 = vmax.f32 %v2431_v37, 0.0  ;;  %8860 = vmatprep.mubr.msk.f32.mxu1 %vm2938_vm4, %v2866_v21  ;;  %8917 = vmatprep.mubr.msk.f32.mxu0 %vm2938_vm4, %v2866_v21  ;;  %v2674_v41 = vsel %vm185_vm0, %v2669_v55, %v2673_v15 }
 0x37f   :  { %v2676_v50 = vsel %vm185_vm0, %v2671_v20, %v2675_v51  ;;  %v2506_v47 = vmax.f32 %v2432_v42, 0.0  ;;  %v2182_v56 = vpop.f32.mrb[28].mxu0  ;;  %3162 = vmatmul.mubr.f32.gmra.mrb[20].mxu1 %v2865_v38  ;;  %3429 = vmatmul.mubr.f32.gmra.mrb[94].mxu0 %v2865_v38  ;;  %v2867_v54 = vmax.f32 %v2501_v8, %v2674_v41 }
 0x380   :  { %v2677_v4 = vrot.slane %v2505_v24, 1  ;;  %v2433_v36 = vadd.f32 %v13102_v46, %v2182_v56  ;;  %v2184_v44 = vpop.f32.mrb[29].mxu0  ;;  %v2868_v49 = vmax.f32 %v2502_v28, %v2676_v50  ;;  %10705 = vmatpush1.msra.mxu1 %v13056_v48 }
 0x381   :  { %v2679_v29 = vrot.slane %v2506_v47, 1  ;;  %v2434_v61 = vadd.f32 %v13106_v22, %v2184_v44  ;;  %10225 = vmatprep.subr.bf16.mxu1 %v10224_v26 }
 0x382   :  { %v2507_v34 = vmax.f32 %v2433_v36, 0.0  ;;  %8861 = vmatprep.mubr.msk.f32.mxu1 %vm2938_vm4, %v2868_v49  ;;  %8918 = vmatprep.mubr.msk.f32.mxu0 %vm2938_vm4, %v2868_v49  ;;  %v2678_v39 = vsel %vm185_vm0, %v2673_v15, %v2677_v4 }
 0x383   :  { %v2680_v0 = vsel %vm185_vm0, %v2675_v51, %v2679_v29  ;;  %v2508_v5 = vmax.f32 %v2434_v61, 0.0  ;;  %v2188_v25 = vpop.f32.mrb[30].mxu0  ;;  %3167 = vmatmul.mubr.f32.gmra.mrb[22].mxu1 %v2867_v54  ;;  %3434 = vmatmul.mubr.f32.gmra.mrb[96].mxu0 %v2867_v54  ;;  %v2869_v17 = vmax.f32 %v2503_v2, %v2678_v39 }
 0x384   :  { %v2681_v31 = vrot.slane %v2507_v34, 1  ;;  %v2435_v48 = vadd.f32 %v13102_v46, %v2188_v25  ;;  %v2190_v57 = vpop.f32.mrb[31].mxu0  ;;  %v2870_v59 = vmax.f32 %v2504_v18, %v2680_v0 }
 0x385   :  { %v2683_v62 = vrot.slane %v2508_v5, 1  ;;  %v2436_v7 = vadd.f32 %v13106_v22, %v2190_v57 }
 0x386   :  { %v2509_v1 = vmax.f32 %v2435_v48, 0.0  ;;  %8862 = vmatprep.mubr.msk.f32.mxu1 %vm2938_vm4, %v2870_v59  ;;  %8919 = vmatprep.mubr.msk.f32.mxu0 %vm2938_vm4, %v2870_v59  ;;  %v2682_v58 = vsel %vm185_vm0, %v2677_v4, %v2681_v31 }
 0x387   :  { %v2684_v6 = vsel %vm185_vm0, %v2679_v29, %v2683_v62  ;;  %v2510_v19 = vmax.f32 %v2436_v7, 0.0  ;;  %v2194_v33 = vpop.f32.mrb[32].mxu0  ;;  %3172 = vmatmul.mubr.f32.gmra.mrb[24].mxu1 %v2869_v17  ;;  %3439 = vmatmul.mubr.f32.gmra.mrb[98].mxu0 %v2869_v17  ;;  %v2871_v12 = vmax.f32 %v2505_v24, %v2682_v58 }
 0x388   :  { %v2685_v8 = vrot.slane %v2509_v1, 1  ;;  %v2437_v14 = vadd.f32 %v13102_v46, %v2194_v33  ;;  %v2196_v45 = vpop.f32.mrb[33].mxu0  ;;  %v2872_v28 = vmax.f32 %v2506_v47, %v2684_v6 }
 0x389   :  { %v2687_v13 = vrot.slane %v2510_v19, 1  ;;  %v2438_v53 = vadd.f32 %v13106_v22, %v2196_v45 }
 0x38a   :  { %v2511_v55 = vmax.f32 %v2437_v14, 0.0  ;;  %8863 = vmatprep.mubr.msk.f32.mxu1 %vm2938_vm4, %v2872_v28  ;;  %8920 = vmatprep.mubr.msk.f32.mxu0 %vm2938_vm4, %v2872_v28  ;;  %v2686_v23 = vsel %vm185_vm0, %v2681_v31, %v2685_v8 }
 0x38b   :  { %v2688_v43 = vsel %vm185_vm0, %v2683_v62, %v2687_v13  ;;  %v2512_v30 = vmax.f32 %v2438_v53, 0.0  ;;  %v2200_v20 = vpop.f32.mrb[34].mxu0  ;;  %3177 = vmatmul.mubr.f32.gmra.mrb[26].mxu1 %v2871_v12  ;;  %3444 = vmatmul.mubr.f32.gmra.mrb[100].mxu0 %v2871_v12  ;;  %v2873_v40 = vmax.f32 %v2507_v34, %v2686_v23 }
 0x38c   :  { %v2689_v2 = vrot.slane %v2511_v55, 1  ;;  %v2439_v52 = vadd.f32 %v13102_v46, %v2200_v20  ;;  %v2202_v32 = vpop.f32.mrb[35].mxu0  ;;  %v2874_v18 = vmax.f32 %v2508_v5, %v2688_v43 }
 0x38d   :  { %v2691_v60 = vrot.slane %v2512_v30, 1  ;;  %v2440_v38 = vadd.f32 %v13106_v22, %v2202_v32 }
 0x38e   :  { %v2513_v15 = vmax.f32 %v2439_v52, 0.0  ;;  %8864 = vmatprep.mubr.msk.f32.mxu1 %vm2938_vm4, %v2874_v18  ;;  %8921 = vmatprep.mubr.msk.f32.mxu0 %vm2938_vm4, %v2874_v18  ;;  %v2690_v37 = vsel %vm185_vm0, %v2685_v8, %v2689_v2 }
 0x38f   :  { %v2692_v16 = vsel %vm185_vm0, %v2687_v13, %v2691_v60  ;;  %v2514_v21 = vmax.f32 %v2440_v38, 0.0  ;;  %v2206_v51 = vpop.f32.mrb[36].mxu0  ;;  %3182 = vmatmul.mubr.f32.gmra.mrb[28].mxu1 %v2873_v40  ;;  %3449 = vmatmul.mubr.f32.gmra.mrb[102].mxu0 %v2873_v40  ;;  %v2875_v42 = vmax.f32 %v2509_v1, %v2690_v37 }
 0x390   :  { %v2693_v24 = vrot.slane %v2513_v15, 1  ;;  %v2441_v41 = vadd.f32 %v13102_v46, %v2206_v51  ;;  %v2208_v50 = vpop.f32.mrb[37].mxu0  ;;  %v2876_v47 = vmax.f32 %v2510_v19, %v2692_v16 }
 0x391   :  { %v2695_v56 = vrot.slane %v2514_v21, 1  ;;  %v2442_v54 = vadd.f32 %v13106_v22, %v2208_v50 }
 0x392   :  { %v2515_v4 = vmax.f32 %v2441_v41, 0.0  ;;  %8865 = vmatprep.mubr.msk.f32.mxu1 %vm2938_vm4, %v2876_v47  ;;  %8922 = vmatprep.mubr.msk.f32.mxu0 %vm2938_vm4, %v2876_v47  ;;  %v2694_v36 = vsel %vm185_vm0, %v2689_v2, %v2693_v24 }
 0x393   :  { %v2696_v44 = vsel %vm185_vm0, %v2691_v60, %v2695_v56  ;;  %v2516_v49 = vmax.f32 %v2442_v54, 0.0  ;;  %v2212_v29 = vpop.f32.mrb[38].mxu0  ;;  %3187 = vmatmul.mubr.f32.gmra.mrb[30].mxu1 %v2875_v42  ;;  %3454 = vmatmul.mubr.f32.gmra.mrb[104].mxu0 %v2875_v42  ;;  %v2877_v61 = vmax.f32 %v2511_v55, %v2694_v36 }
 0x394   :  { %v2697_v34 = vrot.slane %v2515_v4, 1  ;;  %v2443_v39 = vadd.f32 %v13102_v46, %v2212_v29  ;;  %v2214_v0 = vpop.f32.mrb[39].mxu0  ;;  %v2878_v5 = vmax.f32 %v2512_v30, %v2696_v44 }
 0x395   :  { %v2699_v25 = vrot.slane %v2516_v49, 1  ;;  %v2444_v17 = vadd.f32 %v13106_v22, %v2214_v0 }
 0x396   :  { %v2517_v31 = vmax.f32 %v2443_v39, 0.0  ;;  %8866 = vmatprep.mubr.msk.f32.mxu1 %vm2938_vm4, %v2878_v5  ;;  %8923 = vmatprep.mubr.msk.f32.mxu0 %vm2938_vm4, %v2878_v5  ;;  %v2698_v48 = vsel %vm185_vm0, %v2693_v24, %v2697_v34 }
 0x397   :  { %v2700_v57 = vsel %vm185_vm0, %v2695_v56, %v2699_v25  ;;  %v2518_v59 = vmax.f32 %v2444_v17, 0.0  ;;  %v2218_v35 = vpop.f32.mrb[40].mxu0  ;;  %3192 = vmatmul.mubr.f32.gmra.mrb[32].mxu1 %v2877_v61  ;;  %3459 = vmatmul.mubr.f32.gmra.mrb[106].mxu0 %v2877_v61  ;;  %v2879_v10 = vmax.f32 %v2513_v15, %v2698_v48 }
 0x398   :  { %v2701_v62 = vrot.slane %v2517_v31, 1  ;;  %v2445_v7 = vadd.f32 %v13102_v46, %v2218_v35  ;;  %v2220_v26 = vpop.f32.mrb[41].mxu0  ;;  %v2880_v1 = vmax.f32 %v2514_v21, %v2700_v57 }
 0x399   :  { %v2703_v58 = vrot.slane %v2518_v59, 1  ;;  %v2446_v6 = vadd.f32 %v13106_v22, %v2220_v26 }
 0x39a   :  { %v2519_v19 = vmax.f32 %v2445_v7, 0.0  ;;  %8867 = vmatprep.mubr.msk.f32.mxu1 %vm2938_vm4, %v2880_v1  ;;  %8924 = vmatprep.mubr.msk.f32.mxu0 %vm2938_vm4, %v2880_v1  ;;  %v2702_v33 = vsel %vm185_vm0, %v2697_v34, %v2701_v62 }
 0x39b   :  { %v2704_v12 = vsel %vm185_vm0, %v2699_v25, %v2703_v58  ;;  %v2520_v8 = vmax.f32 %v2446_v6, 0.0  ;;  %v2224_v14 = vpop.f32.mrb[42].mxu0  ;;  %3197 = vmatmul.mubr.f32.gmra.mrb[34].mxu1 %v2879_v10  ;;  %3464 = vmatmul.mubr.f32.gmra.mrb[108].mxu0 %v2879_v10  ;;  %v2881_v45 = vmax.f32 %v2515_v4, %v2702_v33 }
 0x39c   :  { %v2705_v28 = vrot.slane %v2519_v19, 1  ;;  %v2447_v13 = vadd.f32 %v13102_v46, %v2224_v14  ;;  %v2226_v53 = vpop.f32.mrb[43].mxu0  ;;  %v2882_v55 = vmax.f32 %v2516_v49, %v2704_v12 }
 0x39d   :  { %v2707_v23 = vrot.slane %v2520_v8, 1  ;;  %v2448_v43 = vadd.f32 %v13106_v22, %v2226_v53 }
 0x39e   :  { %v2521_v30 = vmax.f32 %v2447_v13, 0.0  ;;  %8868 = vmatprep.mubr.msk.f32.mxu1 %vm2938_vm4, %v2882_v55  ;;  %8925 = vmatprep.mubr.msk.f32.mxu0 %vm2938_vm4, %v2882_v55  ;;  %v2706_v20 = vsel %vm185_vm0, %v2701_v62, %v2705_v28 }
 0x39f   :  { %v2708_v40 = vsel %vm185_vm0, %v2703_v58, %v2707_v23  ;;  %v2522_v2 = vmax.f32 %v2448_v43, 0.0  ;;  %v2230_v52 = vpop.f32.mrb[44].mxu0  ;;  %3202 = vmatmul.mubr.f32.gmra.mrb[36].mxu1 %v2881_v45  ;;  %3469 = vmatmul.mubr.f32.gmra.mrb[110].mxu0 %v2881_v45  ;;  %v2883_v32 = vmax.f32 %v2517_v31, %v2706_v20 }
 0x3a0   :  { %v2709_v18 = vrot.slane %v2521_v30, 1  ;;  %v2449_v60 = vadd.f32 %v13102_v46, %v2230_v52  ;;  %v2232_v38 = vpop.f32.mrb[45].mxu0  ;;  %v2884_v15 = vmax.f32 %v2518_v59, %v2708_v40 }
 0x3a1   :  { %v2711_v37 = vrot.slane %v2522_v2, 1  ;;  %v2450_v16 = vadd.f32 %v13106_v22, %v2232_v38 }
 0x3a2   :  { %v2523_v21 = vmax.f32 %v2449_v60, 0.0  ;;  %8869 = vmatprep.mubr.msk.f32.mxu1 %vm2938_vm4, %v2884_v15  ;;  %8926 = vmatprep.mubr.msk.f32.mxu0 %vm2938_vm4, %v2884_v15  ;;  %v2710_v51 = vsel %vm185_vm0, %v2705_v28, %v2709_v18 }
 0x3a3   :  { %v2712_v42 = vsel %vm185_vm0, %v2707_v23, %v2711_v37  ;;  %v2524_v24 = vmax.f32 %v2450_v16, 0.0  ;;  %v2236_v41 = vpop.f32.mrb[46].mxu0  ;;  %3207 = vmatmul.mubr.f32.gmra.mrb[38].mxu1 %v2883_v32  ;;  %3474 = vmatmul.mubr.f32.gmra.mrb[112].mxu0 %v2883_v32  ;;  %v2885_v50 = vmax.f32 %v2519_v19, %v2710_v51 }
 0x3a4   :  { %v2713_v47 = vrot.slane %v2523_v21, 1  ;;  %v2451_v56 = vadd.f32 %v13102_v46, %v2236_v41  ;;  %v2238_v54 = vpop.f32.mrb[47].mxu0  ;;  %v2886_v4 = vmax.f32 %v2520_v8, %v2712_v42 }
 0x3a5   :  { %v2715_v36 = vrot.slane %v2524_v24, 1  ;;  %v2452_v44 = vadd.f32 %v13106_v22, %v2238_v54 }
 0x3a6   :  { %v2525_v49 = vmax.f32 %v2451_v56, 0.0  ;;  %8870 = vmatprep.mubr.msk.f32.mxu1 %vm2938_vm4, %v2886_v4  ;;  %8927 = vmatprep.mubr.msk.f32.mxu0 %vm2938_vm4, %v2886_v4  ;;  %v2714_v29 = vsel %vm185_vm0, %v2709_v18, %v2713_v47 }
 0x3a7   :  { %v2716_v61 = vsel %vm185_vm0, %v2711_v37, %v2715_v36  ;;  %v2526_v34 = vmax.f32 %v2452_v44, 0.0  ;;  %v2242_v39 = vpop.f32.mrb[48].mxu0  ;;  %3212 = vmatmul.mubr.f32.gmra.mrb[40].mxu1 %v2885_v50  ;;  %3479 = vmatmul.mubr.f32.gmra.mrb[114].mxu0 %v2885_v50  ;;  %v2887_v0 = vmax.f32 %v2521_v30, %v2714_v29 }
 0x3a8   :  { %v2717_v5 = vrot.slane %v2525_v49, 1  ;;  %v2453_v25 = vadd.f32 %v13102_v46, %v2242_v39  ;;  %v2244_v17 = vpop.f32.mrb[49].mxu0  ;;  %v2888_v31 = vmax.f32 %v2522_v2, %v2716_v61 }
 0x3a9   :  { %v2719_v48 = vrot.slane %v2526_v34, 1  ;;  %v2454_v57 = vadd.f32 %v13106_v22, %v2244_v17 }
 0x3aa   :  { %v2527_v59 = vmax.f32 %v2453_v25, 0.0  ;;  %8871 = vmatprep.mubr.msk.f32.mxu1 %vm2938_vm4, %v2888_v31  ;;  %8928 = vmatprep.mubr.msk.f32.mxu0 %vm2938_vm4, %v2888_v31  ;;  %v2718_v35 = vsel %vm185_vm0, %v2713_v47, %v2717_v5 }
 0x3ab   :  { %v2720_v10 = vsel %vm185_vm0, %v2715_v36, %v2719_v48  ;;  %v2528_v62 = vmax.f32 %v2454_v57, 0.0  ;;  %v2248_v7 = vpop.f32.mrb[50].mxu0  ;;  %3217 = vmatmul.mubr.f32.gmra.mrb[42].mxu1 %v2887_v0  ;;  %3484 = vmatmul.mubr.f32.gmra.mrb[116].mxu0 %v2887_v0  ;;  %v2889_v26 = vmax.f32 %v2523_v21, %v2718_v35 }
 0x3ac   :  { %v2721_v1 = vrot.slane %v2527_v59, 1  ;;  %v2455_v58 = vadd.f32 %v13102_v46, %v2248_v7  ;;  %v2250_v6 = vpop.f32.mrb[51].mxu0  ;;  %v2890_v19 = vmax.f32 %v2524_v24, %v2720_v10 }
 0x3ad   :  { %v2723_v33 = vrot.slane %v2528_v62, 1  ;;  %v2456_v12 = vadd.f32 %v13106_v22, %v2250_v6 }
 0x3ae   :  { %v2529_v8 = vmax.f32 %v2455_v58, 0.0  ;;  %8872 = vmatprep.mubr.msk.f32.mxu1 %vm2938_vm4, %v2890_v19  ;;  %8929 = vmatprep.mubr.msk.f32.mxu0 %vm2938_vm4, %v2890_v19  ;;  %v2722_v14 = vsel %vm185_vm0, %v2717_v5, %v2721_v1 }
 0x3af   :  { %v2724_v45 = vsel %vm185_vm0, %v2719_v48, %v2723_v33  ;;  %v2530_v28 = vmax.f32 %v2456_v12, 0.0  ;;  %v2254_v13 = vpop.f32.mrb[52].mxu0  ;;  %3222 = vmatmul.mubr.f32.gmra.mrb[44].mxu1 %v2889_v26  ;;  %3489 = vmatmul.mubr.f32.gmra.mrb[118].mxu0 %v2889_v26  ;;  %v2891_v53 = vmax.f32 %v2525_v49, %v2722_v14 }
 0x3b0   :  { %v2725_v55 = vrot.slane %v2529_v8, 1  ;;  %v2457_v23 = vadd.f32 %v13102_v46, %v2254_v13  ;;  %v2256_v43 = vpop.f32.mrb[53].mxu0  ;;  %v2892_v30 = vmax.f32 %v2526_v34, %v2724_v45 }
 0x3b1   :  { %v2727_v20 = vrot.slane %v2530_v28, 1  ;;  %v2458_v40 = vadd.f32 %v13106_v22, %v2256_v43 }
 0x3b2   :  { %v2531_v2 = vmax.f32 %v2457_v23, 0.0  ;;  %8873 = vmatprep.mubr.msk.f32.mxu1 %vm2938_vm4, %v2892_v30  ;;  %8930 = vmatprep.mubr.msk.f32.mxu0 %vm2938_vm4, %v2892_v30  ;;  %v2726_v52 = vsel %vm185_vm0, %v2721_v1, %v2725_v55 }
 0x3b3   :  { %v2728_v32 = vsel %vm185_vm0, %v2723_v33, %v2727_v20  ;;  %v2532_v18 = vmax.f32 %v2458_v40, 0.0  ;;  %v2260_v60 = vpop.f32.mrb[54].mxu0  ;;  %3227 = vmatmul.mubr.f32.gmra.mrb[46].mxu1 %v2891_v53  ;;  %3494 = vmatmul.mubr.f32.gmra.mrb[120].mxu0 %v2891_v53  ;;  %v2893_v38 = vmax.f32 %v2527_v59, %v2726_v52 }
 0x3b4   :  { %v2729_v15 = vrot.slane %v2531_v2, 1  ;;  %v2459_v37 = vadd.f32 %v13102_v46, %v2260_v60  ;;  %v2262_v16 = vpop.f32.mrb[55].mxu0  ;;  %v2894_v21 = vmax.f32 %v2528_v62, %v2728_v32 }
 0x3b5   :  { %v2731_v51 = vrot.slane %v2532_v18, 1  ;;  %v2460_v42 = vadd.f32 %v13106_v22, %v2262_v16 }
 0x3b6   :  { %v2533_v24 = vmax.f32 %v2459_v37, 0.0  ;;  %8874 = vmatprep.mubr.msk.f32.mxu1 %vm2938_vm4, %v2894_v21  ;;  %8931 = vmatprep.mubr.msk.f32.mxu0 %vm2938_vm4, %v2894_v21  ;;  %v2730_v41 = vsel %vm185_vm0, %v2725_v55, %v2729_v15 }
 0x3b7   :  { %v2732_v50 = vsel %vm185_vm0, %v2727_v20, %v2731_v51  ;;  %v2534_v47 = vmax.f32 %v2460_v42, 0.0  ;;  %v2266_v56 = vpop.f32.mrb[56].mxu0  ;;  %3232 = vmatmul.mubr.f32.gmra.mrb[48].mxu1 %v2893_v38  ;;  %3499 = vmatmul.mubr.f32.gmra.mrb[122].mxu0 %v2893_v38  ;;  %v2895_v54 = vmax.f32 %v2529_v8, %v2730_v41 }
 0x3b8   :  { %v2733_v4 = vrot.slane %v2533_v24, 1  ;;  %v2461_v36 = vadd.f32 %v13102_v46, %v2266_v56  ;;  %v2268_v44 = vpop.f32.mrb[57].mxu0  ;;  %v2896_v49 = vmax.f32 %v2530_v28, %v2732_v50 }
 0x3b9   :  { %v2735_v29 = vrot.slane %v2534_v47, 1  ;;  %v2462_v61 = vadd.f32 %v13106_v22, %v2268_v44 }
 0x3ba   :  { %v2535_v34 = vmax.f32 %v2461_v36, 0.0  ;;  %8875 = vmatprep.mubr.msk.f32.mxu1 %vm2938_vm4, %v2896_v49  ;;  %8932 = vmatprep.mubr.msk.f32.mxu0 %vm2938_vm4, %v2896_v49  ;;  %v2734_v39 = vsel %vm185_vm0, %v2729_v15, %v2733_v4 }
 0x3bb   :  { %v2736_v0 = vsel %vm185_vm0, %v2731_v51, %v2735_v29  ;;  %v2536_v5 = vmax.f32 %v2462_v61, 0.0  ;;  %v2272_v25 = vpop.f32.mrb[58].mxu0  ;;  %3237 = vmatmul.mubr.f32.gmra.mrb[50].mxu1 %v2895_v54  ;;  %3504 = vmatmul.mubr.f32.gmra.mrb[124].mxu0 %v2895_v54  ;;  %v2897_v17 = vmax.f32 %v2531_v2, %v2734_v39 }
 0x3bc   :  { %v2737_v31 = vrot.slane %v2535_v34, 1  ;;  %v2463_v48 = vadd.f32 %v13102_v46, %v2272_v25  ;;  %v2274_v57 = vpop.f32.mrb[59].mxu0  ;;  %v2898_v59 = vmax.f32 %v2532_v18, %v2736_v0 }
 0x3bd   :  { %v2739_v35 = vrot.slane %v2536_v5, 1  ;;  %v2464_v10 = vadd.f32 %v13106_v22, %v2274_v57 }
 0x3be   :  { %v2537_v62 = vmax.f32 %v2463_v48, 0.0  ;;  %8876 = vmatprep.mubr.msk.f32.mxu1 %vm2938_vm4, %v2898_v59  ;;  %8933 = vmatprep.mubr.msk.f32.mxu0 %vm2938_vm4, %v2898_v59  ;;  %v2738_v7 = vsel %vm185_vm0, %v2733_v4, %v2737_v31 }
 0x3bf   :  { %v2740_v26 = vsel %vm185_vm0, %v2735_v29, %v2739_v35  ;;  %v2538_v1 = vmax.f32 %v2464_v10, 0.0  ;;  %v2278_v58 = vpop.f32.mrb[60].mxu0  ;;  %3242 = vmatmul.mubr.f32.gmra.mrb[52].mxu1 %v2897_v17  ;;  %3509 = vmatmul.mubr.f32.gmra.mrb[126].mxu0 %v2897_v17  ;;  %v2899_v6 = vmax.f32 %v2533_v24, %v2738_v7 }
 0x3c0   :  { %v2741_v19 = vrot.slane %v2537_v62, 1  ;;  %v2465_v33 = vadd.f32 %v13102_v46, %v2278_v58  ;;  %v2280_v12 = vpop.f32.mrb[61].mxu0  ;;  %v2900_v8 = vmax.f32 %v2534_v47, %v2740_v26 }
 0x3c1   :  { %v2743_v14 = vrot.slane %v2538_v1, 1  ;;  %v2466_v45 = vadd.f32 %v13106_v22, %v2280_v12 }
 0x3c2   :  { %v2539_v28 = vmax.f32 %v2465_v33, 0.0  ;;  %8877 = vmatprep.mubr.msk.f32.mxu1 %vm2938_vm4, %v2900_v8  ;;  %8934 = vmatprep.mubr.msk.f32.mxu0 %vm2938_vm4, %v2900_v8  ;;  %v2742_v13 = vsel %vm185_vm0, %v2737_v31, %v2741_v19 }
 0x3c3   :  { %v2744_v53 = vsel %vm185_vm0, %v2739_v35, %v2743_v14  ;;  %v2540_v55 = vmax.f32 %v2466_v45, 0.0  ;;  %v2284_v23 = vpop.f32.mrb[62].mxu0  ;;  %3247 = vmatmul.mubr.f32.gmra.mrb[54].mxu1 %v2899_v6  ;;  %3514 = vmatmul.mubr.f32.gmra.mrb[128].mxu0 %v2899_v6  ;;  %v13311_v43 = vmax.f32 %v2535_v34, %v2742_v13 }
 0x3c4   :  { %v2745_v30 = vrot.slane %v2539_v28, 1  ;;  %v2467_v20 = vadd.f32 %v13102_v46, %v2284_v23  ;;  %v2286_v40 = vpop.f32.mrb[63].mxu0  ;;  %v13314_v2 = vmax.f32 %v2536_v5, %v2744_v53 }
 0x3c5   :  { %v2747_v52 = vrot.slane %v2540_v55, 1  ;;  %v2468_v32 = vadd.f32 %v13106_v22, %v2286_v40 }
 0x3c6   :  { %v2541_v18 = vmax.f32 %v2467_v20, 0.0  ;;  %8878 = vmatprep.mubr.msk.f32.mxu1 %vm2938_vm4, %v13314_v2  ;;  %v2746_v60 = vsel %vm185_vm0, %v2741_v19, %v2745_v30 }
 0x3c7   :  { %v2748_v38 = vsel %vm185_vm0, %v2743_v14, %v2747_v52  ;;  %v2542_v15 = vmax.f32 %v2468_v32, 0.0  ;;  %v2290_v37 = vpop.f32.mrb[64].mxu0  ;;  %3252 = vmatmul.mubr.f32.gmra.mrb[56].mxu1 %v13311_v43  ;;  %v13322_v16 = vmax.f32 %v2537_v62, %v2746_v60 }
 0x3c8   :  { %v2749_v21 = vrot.slane %v2541_v18, 1  ;;  %v2469_v51 = vadd.f32 %v13102_v46, %v2290_v37  ;;  %v2292_v42 = vpop.f32.mrb[65].mxu0  ;;  %v13325_v24 = vmax.f32 %v2538_v1, %v2748_v38 }
 0x3c9   :  { %v2751_v41 = vrot.slane %v2542_v15, 1  ;;  %v2470_v50 = vadd.f32 %v13106_v22, %v2292_v42 }
 0x3ca   :  { %v2543_v47 = vmax.f32 %v2469_v51, 0.0  ;;  %8879 = vmatprep.mubr.msk.f32.mxu1 %vm2938_vm4, %v13325_v24  ;;  %v2750_v56 = vsel %vm185_vm0, %v2745_v30, %v2749_v21 }
 0x3cb   :  { %v2752_v54 = vsel %vm185_vm0, %v2747_v52, %v2751_v41  ;;  %v2544_v4 = vmax.f32 %v2470_v50, 0.0  ;;  %v2296_v36 = vpop.f32.mrb[66].mxu0  ;;  %3257 = vmatmul.mubr.f32.gmra.mrb[58].mxu1 %v13322_v16  ;;  %v13333_v44 = vmax.f32 %v2539_v28, %v2750_v56 }
 0x3cc   :  { %v2753_v49 = vrot.slane %v2543_v47, 1  ;;  %v2471_v29 = vadd.f32 %v13102_v46, %v2296_v36  ;;  %v2298_v61 = vpop.f32.mrb[67].mxu0  ;;  %v13336_v34 = vmax.f32 %v2540_v55, %v2752_v54 }
 0x3cd   :  { %v2755_v39 = vrot.slane %v2544_v4, 1  ;;  %v2472_v0 = vadd.f32 %v13106_v22, %v2298_v61  ;;  %v8948_v61 = vld [vmem:[%s15890_s4 + $0x128] sm:$0xff] }
 0x3ce   :  { %v2545_v5 = vmax.f32 %v2471_v29, 0.0  ;;  %8880 = vmatprep.mubr.msk.f32.mxu1 %vm2938_vm4, %v13336_v34  ;;  %v2754_v25 = vsel %vm185_vm0, %v2749_v21, %v2753_v49  ;;  %v8945_v29 = vld [vmem:[%s15890_s4 + $0x110] sm:$0xff] }
 0x3cf   :  { %v2756_v17 = vsel %vm185_vm0, %v2751_v41, %v2755_v39  ;;  %v2546_v31 = vmax.f32 %v2472_v0, 0.0  ;;  %v2302_v48 = vpop.f32.mrb[68].mxu0  ;;  %3262 = vmatmul.mubr.f32.gmra.mrb[60].mxu1 %v13333_v44  ;;  %v13344_v57 = vmax.f32 %v2541_v18, %v2754_v25  ;;  %v8947_v25 = vld [vmem:[%s15890_s4 + $0x120] sm:$0xff] }
 0x3d0   :  { %v2757_v59 = vrot.slane %v2545_v5, 1  ;;  %v2473_v35 = vadd.f32 %v13102_v46, %v2302_v48  ;;  %v2304_v10 = vpop.f32.mrb[69].mxu0  ;;  %v13347_v62 = vmax.f32 %v2542_v15, %v2756_v17  ;;  %v8949_v17 = vld [vmem:[%s15890_s4 + $0x130] sm:$0xff]  ;;  %v8954_v48 = vld [vmem:[%s15890_s4 + $0x158] sm:$0xff] }
 0x3d1   :  { %v2759_v7 = vrot.slane %v2546_v31, 1  ;;  %v2474_v26 = vadd.f32 %v13106_v22, %v2304_v10  ;;  %v8953_v10 = vld [vmem:[%s15890_s4 + $0x150] sm:$0xff] }
 0x3d2   :  { %v2547_v1 = vmax.f32 %v2473_v35, 0.0  ;;  %8881 = vmatprep.mubr.msk.f32.mxu1 %vm2938_vm4, %v13347_v62  ;;  %v2758_v58 = vsel %vm185_vm0, %v2753_v49, %v2757_v59  ;;  %v8943_v49 = vld [vmem:[%s15890_s4 + $0x100] sm:$0xff] }
 0x3d3   :  { %v2760_v6 = vsel %vm185_vm0, %v2755_v39, %v2759_v7  ;;  %v2548_v19 = vmax.f32 %v2474_v26, 0.0  ;;  %v2308_v33 = vpop.f32.mrb[70].mxu0  ;;  %3267 = vmatmul.mubr.f32.gmra.mrb[62].mxu1 %v13344_v57  ;;  %v13355_v12 = vmax.f32 %v2543_v47, %v2758_v58  ;;  %v8950_v39 = vld [vmem:[%s15890_s4 + $0x138] sm:$0xff]  ;;  %v10226_v0 = vpack.c.bf16 %v8945_v29, %v8943_v49  ;;  %v8951_v35 = vld [vmem:[%s15890_s4 + $0x140] sm:$0xff]  ;;  %v8957_v58 = vld [vmem:[%s15890_s4 + $0x170] sm:$0xff] }
 0x3d4   :  { %v2761_v8 = vrot.slane %v2547_v1, 1  ;;  %v2475_v14 = vadd.f32 %v13102_v46, %v2308_v33  ;;  %v2310_v45 = vpop.f32.mrb[71].mxu0  ;;  %v13358_v28 = vmax.f32 %v2544_v4, %v2760_v6  ;;  %v8960_v6 = vld [vmem:[%s15890_s4 + $0x188] sm:$0xff]  ;;  %v8959_v33 = vld [vmem:[%s15890_s4 + $0x180] sm:$0xff] }
 0x3d5   :  { %v2763_v13 = vrot.slane %v2548_v19, 1  ;;  %v2476_v53 = vadd.f32 %v13106_v22, %v2310_v45 }
 0x3d6   :  { %v2549_v55 = vmax.f32 %v2475_v14, 0.0  ;;  %8882 = vmatprep.mubr.msk.f32.mxu1 %vm2938_vm4, %v13358_v28  ;;  %v2762_v23 = vsel %vm185_vm0, %v2757_v59, %v2761_v8  ;;  %v8964_v14 = vld [vmem:[%s15890_s4 + $0x1a8] sm:$0xff] }
 0x3d7   :  { %v2764_v30 = vsel %vm185_vm0, %v2759_v7, %v2763_v13  ;;  %v2550_v20 = vmax.f32 %v2476_v53, 0.0  ;;  %v2314_v40 = vpop.f32.mrb[72].mxu0  ;;  %3272 = vmatmul.mubr.f32.gmra.mrb[64].mxu1 %v13355_v12  ;;  %v13366_v52 = vmax.f32 %v2545_v5, %v2762_v23  ;;  %v10228_v5 = vpack.c.bf16 %v8950_v39, %v8948_v61  ;;  %v8956_v7 = vld [vmem:[%s15890_s4 + $0x168] sm:$0xff]  ;;  %v8965_v53 = vld [vmem:[%s15890_s4 + $0x1b0] sm:$0xff] }
 0x3d8   :  { %v2765_v32 = vrot.slane %v2549_v55, 1  ;;  %v2477_v18 = vadd.f32 %v13102_v46, %v2314_v40  ;;  %v2316_v60 = vpop.f32.mrb[73].mxu0  ;;  %v13369_v38 = vmax.f32 %v2546_v31, %v2764_v30  ;;  %v8952_v31 = vld [vmem:[%s15890_s4 + $0x148] sm:$0xff]  ;;  %v8967_v30 = vld [vmem:[%s15890_s4 + $0x1c0] sm:$0xff] }
 0x3d9   :  { %v2767_v15 = vrot.slane %v2550_v20, 1  ;;  %v2478_v37 = vadd.f32 %v13106_v22, %v2316_v60  ;;  %v10232_v59 = vpack.c.bf16 %v8954_v48, %v8952_v31  ;;  %v8972_v40 = vld [vmem:[%s15890_s4 + $0x1e8] sm:$0xff]  ;;  %v8971_v60 = vld [vmem:[%s15890_s4 + $0x1e0] sm:$0xff] }
 0x3da   :  { %v2551_v21 = vmax.f32 %v2477_v18, 0.0  ;;  %8883 = vmatprep.mubr.msk.f32.mxu1 %vm2938_vm4, %v13369_v38  ;;  %v2766_v51 = vsel %vm185_vm0, %v2761_v8, %v2765_v32  ;;  %v8961_v8 = vld [vmem:[%s15890_s4 + $0x190] sm:$0xff] }
 0x3db   :  { %v2768_v42 = vsel %vm185_vm0, %v2763_v13, %v2767_v15  ;;  %v2552_v41 = vmax.f32 %v2478_v37, 0.0  ;;  %3277 = vmatmul.mubr.f32.gmra.mrb[66].mxu1 %v13366_v52  ;;  %v13377_v50 = vmax.f32 %v2547_v1, %v2766_v51  ;;  %v8955_v1 = vld [vmem:[%s15890_s4 + $0x160] sm:$0xff] }
 0x3dc   :  { %v2769_v46 = vrot.slane %v2551_v21, 1  ;;  %v13379_v47 = vmax.f32 %v2548_v19, %v2768_v42  ;;  %v8963_v13 = vld [vmem:[%s15890_s4 + $0x1a0] sm:$0xff] }
 0x3dd   :  { %v2771_v56 = vrot.slane %v2552_v41, 1 }
 0x3de   :  { %8884 = vmatprep.mubr.msk.f32.mxu1 %vm2938_vm4, %v13379_v47  ;;  %v2770_v22 = vsel %vm185_vm0, %v2765_v32, %v2769_v46 }
 0x3df   :  { %v2772_v54 = vsel %vm185_vm0, %v2767_v15, %v2771_v56  ;;  %3282 = vmatmul.mubr.f32.gmra.mrb[68].mxu1 %v13377_v50  ;;  %v13386_v4 = vmax.f32 %v2549_v55, %v2770_v22  ;;  %v8968_v55 = vld [vmem:[%s15890_s4 + $0x1c8] sm:$0xff] }
 0x3e0   :  { %v13388_v36 = vmax.f32 %v2550_v20, %v2772_v54  ;;  %v8969_v20 = vld [vmem:[%s15890_s4 + $0x1d0] sm:$0xff] }
 0x3e1   :  { %v10250_v32 = vpack.c.bf16 %v8969_v20, %v8967_v30  ;;  %v3599_v20 = vld [vmem:[%s15890_s4 + $0x20] sm:$0xff] }
 0x3e2   :  { %8885 = vmatprep.mubr.msk.f32.mxu1 %vm2938_vm4, %v13388_v36 }
 0x3e3   :  { %3287 = vmatmul.mubr.f32.gmra.mrb[70].mxu1 %v13386_v4 }
 0x3e4   :  { %8935 = vmatprep.mubr.msk.f32.mxu1 %vm2938_vm4, %v13314_v2  ;;  %v10230_v2 = vpack.c.bf16 %v8949_v17, %v8947_v25 }
 0x3e7   :  { %3519 = vmatmul.mubr.f32.vlgmr.msra.gmra.mrb[72].mxu1 %v13311_v43  ;;  %v8958_v43 = vld [vmem:[%s15890_s4 + $0x178] sm:$0xff] }
 0x3e8   :  { %8936 = vmatprep.mubr.msk.f32.mxu1 %vm2938_vm4, %v13325_v24  ;;  %10227 = vmatpush1.bf16.msra.mxu1 %v10226_v0  ;;  %v10234_v24 = vpack.c.bf16 %v8953_v10, %v8951_v35  ;;  %v10236_v26 = vpack.c.bf16 %v8958_v43, %v8956_v7 }
 0x3e9   :  { %10229 = vmatprep.subr.bf16.mxu1 %v10228_v5 }
 0x3eb   :  { %3524 = vmatmul.mubr.f32.gmra.mrb[74].mxu1 %v13322_v16  ;;  %v8962_v16 = vld [vmem:[%s15890_s4 + $0x198] sm:$0xff] }
 0x3ec   :  { %8937 = vmatprep.mubr.msk.f32.mxu1 %vm2938_vm4, %v13336_v34  ;;  %10231 = vmatpush1.bf16.msra.mxu1 %v10230_v2  ;;  %v10238_v34 = vpack.c.bf16 %v8957_v58, %v8955_v1  ;;  %v10240_v19 = vpack.c.bf16 %v8962_v16, %v8960_v6  ;;  %v3596_v1 = vld [vmem:[%s15890_s4 + $0x8] sm:$0xff]  ;;  %v3598_v58 = vld [vmem:[%s15890_s4 + $0x18] sm:$0xff]  ;;  %v3595_v6 = vld [vmem:[%s15890_s4] sm:$0xff] }
 0x3ed   :  { %10233 = vmatprep.subr.bf16.mxu1 %v10232_v59  ;;  %v10256_v16 = vpack.c.bf16 %v3598_v58, %v3596_v1  ;;  %v3614_v1 = vld [vmem:[%s15890_s4 + $0x98] sm:$0xff] }
 0x3ef   :  { %3529 = vmatmul.mubr.f32.gmra.mrb[76].mxu1 %v13333_v44  ;;  %v8966_v44 = vld [vmem:[%s15890_s4 + $0x1b8] sm:$0xff] }
 0x3f0   :  { %8938 = vmatprep.mubr.msk.f32.mxu1 %vm2938_vm4, %v13347_v62  ;;  %10235 = vmatpush1.bf16.msra.mxu1 %v10234_v24  ;;  %v10242_v62 = vpack.c.bf16 %v8961_v8, %v8959_v33  ;;  %v10244_v45 = vpack.c.bf16 %v8966_v44, %v8964_v14 }
 0x3f1   :  { %10237 = vmatprep.subr.bf16.mxu1 %v10236_v26 }
 0x3f3   :  { %3534 = vmatmul.mubr.f32.gmra.mrb[78].mxu1 %v13344_v57  ;;  %v8970_v57 = vld [vmem:[%s15890_s4 + $0x1d8] sm:$0xff] }
 0x3f4   :  { %8939 = vmatprep.mubr.msk.f32.mxu1 %vm2938_vm4, %v13358_v28  ;;  %10239 = vmatpush1.bf16.msra.mxu1 %v10238_v34  ;;  %v10246_v28 = vpack.c.bf16 %v8965_v53, %v8963_v13  ;;  %v10248_v23 = vpack.c.bf16 %v8970_v57, %v8968_v55  ;;  %v3597_v34 = vld [vmem:[%s15890_s4 + $0x10] sm:$0xff]  ;;  %v3600_v55 = vld [vmem:[%s15890_s4 + $0x28] sm:$0xff]  ;;  %v3602_v57 = vld [vmem:[%s15890_s4 + $0x38] sm:$0xff] }
 0x3f5   :  { %10241 = vmatprep.subr.bf16.mxu1 %v10240_v19  ;;  %v10258_v33 = vpack.c.bf16 %v3597_v34, %v3595_v6  ;;  %v10260_v30 = vpack.c.bf16 %v3602_v57, %v3600_v55  ;;  %v3611_v34 = vld [vmem:[%s15890_s4 + $0x80] sm:$0xff]  ;;  %v3618_v55 = vld [vmem:[%s15890_s4 + $0xb8] sm:$0xff] }
 0x3f7   :  { %3539 = vmatmul.mubr.f32.gmra.mrb[80].mxu1 %v13355_v12  ;;  %v8974_v12 = vld [vmem:[%s15890_s4 + $0x1f8] sm:$0xff] }
 0x3f8   :  { %8940 = vmatprep.mubr.msk.f32.mxu1 %vm2938_vm4, %v13369_v38  ;;  %10243 = vmatpush1.bf16.msra.mxu1 %v10242_v62  ;;  %v10252_v18 = vpack.c.bf16 %v8974_v12, %v8972_v40  ;;  %v8973_v38 = vld [vmem:[%s15890_s4 + $0x1f0] sm:$0xff] }
 0x3f9   :  { %10245 = vmatprep.subr.bf16.mxu1 %v10244_v45  ;;  %v3601_v40 = vld [vmem:[%s15890_s4 + $0x30] sm:$0xff] }
 0x3fb   :  { %3544 = vmatmul.mubr.f32.gmra.mrb[82].mxu1 %v13366_v52  ;;  %v10254_v52 = vpack.c.bf16 %v8973_v38, %v8971_v60  ;;  %v10262_v38 = vpack.c.bf16 %v3601_v40, %v3599_v20  ;;  %v3617_v20 = vld [vmem:[%s15890_s4 + $0xb0] sm:$0xff] }
 0x3fc   :  { %8941 = vmatprep.mubr.msk.f32.mxu1 %vm2938_vm4, %v13379_v47  ;;  %10247 = vmatpush1.bf16.msra.mxu1 %v10246_v28 }
 0x3fd   :  { %10249 = vmatprep.subr.bf16.mxu1 %v10248_v23 }
 0x3ff   :  { %3549 = vmatmul.mubr.f32.gmra.mrb[84].mxu1 %v13377_v50 }
 0x400   :  { %8942 = vmatprep.mubr.msk.f32.mxu1 %vm2938_vm4, %v13388_v36  ;;  %10251 = vmatpush1.bf16.msra.mxu1 %v10250_v32 }
 0x401   :  { %10253 = vmatprep.subr.bf16.mxu1 %v10252_v18 }
 0x403   :  { %3554 = vmatmul.mubr.f32.gmra.mrb[86].mxu1 %v13386_v4 }
 0x404   :  { %10255 = vmatpush1.bf16.msra.mxu1 %v10254_v52  ;;  %3866 = vmatprep.mubr.f32.mxu1 %v15900_v3 }
 0x405   :  { %10257 = vmatprep.subr.bf16.mxu1 %v10256_v16 }
 0x42a   :  { %v3113_v15 = vpop.f32.mrb[0].mxu1  ;;  %v3380_v37 = vpop.f32.mrb[74].mxu0 }
 0x42b   :  { %v13508_v21 = vmax.f32 %v3113_v15, %v3380_v37  ;;  %v3115_v51 = vpop.f32.mrb[1].mxu1  ;;  %v3382_v42 = vpop.f32.mrb[75].mxu0  ;;  %v3604_v15 = vld [vmem:[%s15890_s4 + $0x48] sm:$0xff]  ;;  %v3606_v37 = vld [vmem:[%s15890_s4 + $0x58] sm:$0xff] }
 0x42d   :  { %v3696_v22 = vrot.slane %v13508_v21, 2 }
 0x42e   :  { %v3118_v41 = vpop.f32.mrb[2].mxu1  ;;  %v3385_v46 = vpop.f32.mrb[76].mxu0 }
 0x42f   :  { %v13510_v50 = vmax.f32 %v3118_v41, %v3385_v46  ;;  %v3120_v47 = vpop.f32.mrb[3].mxu1  ;;  %v3387_v56 = vpop.f32.mrb[77].mxu0  ;;  %v10264_v41 = vpack.c.bf16 %v3606_v37, %v3604_v15  ;;  %v3603_v46 = vld [vmem:[%s15890_s4 + $0x40] sm:$0xff]  ;;  %v3620_v15 = vld [vmem:[%s15890_s4 + $0xc8] sm:$0xff]  ;;  %v3622_v37 = vld [vmem:[%s15890_s4 + $0xd8] sm:$0xff] }
 0x430   :  { %v3605_v47 = vld [vmem:[%s15890_s4 + $0x50] sm:$0xff] }
 0x431   :  { %v3697_v54 = vrot.slane %v13510_v50, 2 }
 0x432   :  { %v3123_v4 = vpop.f32.mrb[4].mxu1  ;;  %v3390_v36 = vpop.f32.mrb[78].mxu0 }
 0x433   :  { %v13514_v49 = vmax.f32 %v3123_v4, %v3390_v36  ;;  %v3125_v29 = vpop.f32.mrb[5].mxu1  ;;  %v3392_v61 = vpop.f32.mrb[79].mxu0  ;;  %v3698_v39 = vsel %vm905_vm1, %v3696_v22, %v3697_v54  ;;  %v10266_v36 = vpack.c.bf16 %v3605_v47, %v3603_v46  ;;  %v3619_v46 = vld [vmem:[%s15890_s4 + $0xc0] sm:$0xff]  ;;  %v3621_v47 = vld [vmem:[%s15890_s4 + $0xd0] sm:$0xff] }
 0x434   :  { %3867 = vmatmul.mubr.f32.vlgmr.msra.gmra.mrb[88].mxu1 %v3698_v39  ;;  %v3608_v61 = vld [vmem:[%s15890_s4 + $0x68] sm:$0xff]  ;;  %v3610_v39 = vld [vmem:[%s15890_s4 + $0x78] sm:$0xff] }
 0x435   :  { %3872 = vmatprep.mubr.f32.mxu1 %v15900_v3  ;;  %v3699_v0 = vrot.slane %v13514_v49, 2  ;;  %10259 = vmatpush1.bf16.msra.mxu1 %v10258_v33 }
 0x436   :  { %v3128_v5 = vpop.f32.mrb[6].mxu1  ;;  %v3395_v25 = vpop.f32.mrb[80].mxu0  ;;  %10261 = vmatprep.subr.bf16.mxu1 %v10260_v30  ;;  %v3615_v30 = vld [vmem:[%s15890_s4 + $0xa0] sm:$0xff] }
 0x437   :  { %v13519_v17 = vmax.f32 %v3128_v5, %v3395_v25  ;;  %v3130_v31 = vpop.f32.mrb[7].mxu1  ;;  %v3397_v48 = vpop.f32.mrb[81].mxu0  ;;  %v3700_v2 = vsel %vm905_vm1, %v3697_v54, %v3699_v0  ;;  %v10268_v25 = vpack.c.bf16 %v3610_v39, %v3608_v61  ;;  %v3624_v39 = vld [vmem:[%s15890_s4 + $0xe8] sm:$0xff] }
 0x438   :  { %3873 = vmatmul.mubr.f32.gmra.mrb[90].mxu1 %v3700_v2  ;;  %v3607_v31 = vld [vmem:[%s15890_s4 + $0x60] sm:$0xff]  ;;  %v3609_v48 = vld [vmem:[%s15890_s4 + $0x70] sm:$0xff] }
 0x439   :  { %3878 = vmatprep.mubr.f32.mxu1 %v15900_v3  ;;  %v3701_v59 = vrot.slane %v13519_v17, 2  ;;  %10263 = vmatpush1.bf16.msra.mxu1 %v10262_v38  ;;  %v10278_v38 = vpack.c.bf16 %v3617_v20, %v3615_v30 }
 0x43a   :  { %v3133_v35 = vpop.f32.mrb[8].mxu1  ;;  %v3400_v10 = vpop.f32.mrb[82].mxu0  ;;  %10265 = vmatprep.subr.bf16.mxu1 %v10264_v41  ;;  %v10280_v41 = vpack.c.bf16 %v3622_v37, %v3620_v15 }
 0x43b   :  { %v13524_v7 = vmax.f32 %v3133_v35, %v3400_v10  ;;  %v3135_v43 = vpop.f32.mrb[9].mxu1  ;;  %v3402_v24 = vpop.f32.mrb[83].mxu0  ;;  %v3702_v26 = vsel %vm905_vm1, %v3699_v0, %v3701_v59 }
 0x43c   :  { %3879 = vmatmul.mubr.f32.gmra.mrb[92].mxu1 %v3702_v26  ;;  %v10270_v43 = vpack.c.bf16 %v3609_v48, %v3607_v31  ;;  %v3612_v26 = vld [vmem:[%s15890_s4 + $0x88] sm:$0xff]  ;;  %v3623_v48 = vld [vmem:[%s15890_s4 + $0xe0] sm:$0xff] }
 0x43d   :  { %3884 = vmatprep.mubr.f32.mxu1 %v15900_v3  ;;  %v3703_v19 = vrot.slane %v13524_v7, 2  ;;  %10267 = vmatpush1.bf16.msra.mxu1 %v10266_v36  ;;  %v10272_v16 = vpack.c.bf16 %v3614_v1, %v3612_v26 }
 0x43e   :  { %v3138_v8 = vpop.f32.mrb[10].mxu1  ;;  %v3405_v14 = vpop.f32.mrb[84].mxu0  ;;  %10269 = vmatprep.subr.bf16.mxu1 %v10268_v25 }
 0x43f   :  { %v13541_v44 = vmax.f32 %v3138_v8, %v3405_v14  ;;  %v3140_v62 = vpop.f32.mrb[11].mxu1  ;;  %v3407_v45 = vpop.f32.mrb[85].mxu0  ;;  %v3704_v13 = vsel %vm905_vm1, %v3701_v59, %v3703_v19 }
 0x440   :  { %3885 = vmatmul.mubr.f32.gmra.mrb[94].mxu1 %v3704_v13 }
 0x441   :  { %3890 = vmatprep.mubr.f32.mxu1 %v15900_v3  ;;  %v3705_v53 = vrot.slane %v13541_v44, 2  ;;  %10271 = vmatpush1.bf16.msra.mxu1 %v10270_v43 }
 0x442   :  { %v3143_v28 = vpop.f32.mrb[12].mxu1  ;;  %v3410_v23 = vpop.f32.mrb[86].mxu0  ;;  %10273 = vmatprep.subr.bf16.mxu1 %v10272_v16 }
 0x443   :  { %v13558_v12 = vmax.f32 %v3143_v28, %v3410_v23  ;;  %v3145_v32 = vpop.f32.mrb[13].mxu1  ;;  %v3412_v18 = vpop.f32.mrb[87].mxu0  ;;  %v3706_v60 = vsel %vm905_vm1, %v3703_v19, %v3705_v53  ;;  %v3613_v19 = vld [vmem:[%s15890_s4 + $0x90] sm:$0xff] }
 0x444   :  { %3891 = vmatmul.mubr.f32.gmra.mrb[96].mxu1 %v3706_v60  ;;  %v10274_v45 = vpack.c.bf16 %v3613_v19, %v3611_v34 }
 0x445   :  { %3896 = vmatprep.mubr.f32.mxu1 %v15900_v3  ;;  %v3707_v52 = vrot.slane %v13558_v12, 2 }
 0x446   :  { %v3148_v51 = vpop.f32.mrb[14].mxu1  ;;  %v3415_v42 = vpop.f32.mrb[88].mxu0  ;;  %10275 = vmatpush1.bf16.msra.mxu1 %v10274_v45 }
 0x447   :  { %v13575_v56 = vmax.f32 %v3148_v51, %v3415_v42  ;;  %v3150_v22 = vpop.f32.mrb[15].mxu1  ;;  %v3417_v54 = vpop.f32.mrb[89].mxu0  ;;  %v3708_v4 = vsel %vm905_vm1, %v3705_v53, %v3707_v52  ;;  %v3616_v53 = vld [vmem:[%s15890_s4 + $0xa8] sm:$0xff] }
 0x448   :  { %3897 = vmatmul.mubr.f32.gmra.mrb[98].mxu1 %v3708_v4  ;;  %v10276_v23 = vpack.c.bf16 %v3618_v55, %v3616_v53 }
 0x449   :  { %3902 = vmatprep.mubr.f32.mxu1 %v15900_v3  ;;  %v3709_v29 = vrot.slane %v13575_v56, 2 }
 0x44a   :  { %v3153_v0 = vpop.f32.mrb[16].mxu1  ;;  %v3420_v5 = vpop.f32.mrb[90].mxu0  ;;  %10277 = vmatprep.subr.bf16.mxu1 %v10276_v23 }
 0x44b   :  { %v13592_v2 = vmax.f32 %v3153_v0, %v3420_v5  ;;  %v3155_v59 = vpop.f32.mrb[17].mxu1  ;;  %v3422_v35 = vpop.f32.mrb[91].mxu0  ;;  %v3710_v10 = vsel %vm905_vm1, %v3707_v52, %v3709_v29  ;;  %10279 = vmatpush1.bf16.msra.mxu1 %v10278_v38  ;;  %v3626_v0 = vld [vmem:[%s15890_s4 + $0xf8] sm:$0xff] }
 0x44c   :  { %3903 = vmatmul.mubr.f32.gmra.mrb[100].mxu1 %v3710_v10  ;;  %10281 = vmatprep.subr.bf16.mxu1 %v10280_v41  ;;  %v10284_v31 = vpack.c.bf16 %v3626_v0, %v3624_v39  ;;  %v3625_v59 = vld [vmem:[%s15890_s4 + $0xf0] sm:$0xff] }
 0x44d   :  { %3908 = vmatprep.mubr.f32.mxu1 %v15900_v3  ;;  %v3711_v24 = vrot.slane %v13592_v2, 2  ;;  %v10286_v26 = vpack.c.bf16 %v3625_v59, %v3623_v48 }
 0x44e   :  { %v3158_v58 = vpop.f32.mrb[18].mxu1  ;;  %v3425_v6 = vpop.f32.mrb[92].mxu0 }
 0x44f   :  { %v13609_v33 = vmax.f32 %v3158_v58, %v3425_v6  ;;  %v3160_v8 = vpop.f32.mrb[19].mxu1  ;;  %v3427_v14 = vpop.f32.mrb[93].mxu0  ;;  %v3712_v62 = vsel %vm905_vm1, %v3709_v29, %v3711_v24  ;;  %v10282_v29 = vpack.c.bf16 %v3621_v47, %v3619_v46 }
 0x450   :  { %3909 = vmatmul.mubr.f32.gmra.mrb[102].mxu1 %v3712_v62 }
 0x451   :  { %3914 = vmatprep.mubr.f32.mxu1 %v15900_v3  ;;  %v3713_v13 = vrot.slane %v13609_v33, 2  ;;  %10283 = vmatpush1.bf16.msra.mxu1 %v10282_v29 }
 0x452   :  { %v3163_v57 = vpop.f32.mrb[20].mxu1  ;;  %v3430_v28 = vpop.f32.mrb[94].mxu0  ;;  %10285 = vmatprep.subr.bf16.mxu1 %v10284_v31 }
 0x453   :  { %v13626_v40 = vmax.f32 %v3163_v57, %v3430_v28  ;;  %v3165_v32 = vpop.f32.mrb[21].mxu1  ;;  %v3432_v18 = vpop.f32.mrb[95].mxu0  ;;  %v3714_v60 = vsel %vm905_vm1, %v3711_v24, %v3713_v13 }
 0x454   :  { %3915 = vmatmul.mubr.f32.gmra.mrb[104].mxu1 %v3714_v60 }
 0x455   :  { %3920 = vmatprep.mubr.f32.mxu1 %v15900_v3  ;;  %v3715_v52 = vrot.slane %v13626_v40, 2  ;;  %10287 = vmatpush1.bf16.msra.mxu1 %v10286_v26 }
 0x456   :  { %v3168_v51 = vpop.f32.mrb[22].mxu1  ;;  %v3435_v42 = vpop.f32.mrb[96].mxu0 }
 0x457   :  { %v13643_v22 = vmax.f32 %v3168_v51, %v3435_v42  ;;  %v3170_v54 = vpop.f32.mrb[23].mxu1  ;;  %v3437_v4 = vpop.f32.mrb[97].mxu0  ;;  %v3716_v36 = vsel %vm905_vm1, %v3713_v13, %v3715_v52 }
 0x458   :  { %3921 = vmatmul.mubr.f32.gmra.mrb[106].mxu1 %v3716_v36 }
 0x459   :  { %3926 = vmatprep.mubr.f32.mxu1 %v15900_v3  ;;  %v3717_v61 = vrot.slane %v13643_v22, 2 }
 0x45a   :  { %v3173_v5 = vpop.f32.mrb[24].mxu1  ;;  %v3440_v25 = vpop.f32.mrb[98].mxu0 }
 0x45b   :  { %v13660_v35 = vmax.f32 %v3173_v5, %v3440_v25  ;;  %v3175_v10 = vpop.f32.mrb[25].mxu1  ;;  %v3442_v43 = vpop.f32.mrb[99].mxu0  ;;  %v3718_v24 = vsel %vm905_vm1, %v3715_v52, %v3717_v61 }
 0x45c   :  { %3927 = vmatmul.mubr.f32.gmra.mrb[108].mxu1 %v3718_v24 }
 0x45d   :  { %3932 = vmatprep.mubr.f32.mxu1 %v15900_v3  ;;  %v3719_v1 = vrot.slane %v13660_v35, 2 }
 0x45e   :  { %v3178_v58 = vpop.f32.mrb[26].mxu1  ;;  %v3445_v6 = vpop.f32.mrb[100].mxu0 }
 0x45f   :  { %v13665_v16 = vmax.f32 %v3178_v58, %v3445_v6  ;;  %v3180_v34 = vpop.f32.mrb[27].mxu1  ;;  %v3447_v19 = vpop.f32.mrb[101].mxu0  ;;  %v3720_v8 = vsel %vm905_vm1, %v3717_v61, %v3719_v1 }
 0x460   :  { %3933 = vmatmul.mubr.f32.gmra.mrb[110].mxu1 %v3720_v8 }
 0x461   :  { %3938 = vmatprep.mubr.f32.mxu1 %v15900_v3  ;;  %v3721_v14 = vrot.slane %v13665_v16, 2 }
 0x462   :  { %v3183_v62 = vpop.f32.mrb[28].mxu1  ;;  %v3450_v45 = vpop.f32.mrb[102].mxu0 }
 0x463   :  { %v13670_v13 = vmax.f32 %v3183_v62, %v3450_v45  ;;  %v3185_v53 = vpop.f32.mrb[29].mxu1  ;;  %v3452_v55 = vpop.f32.mrb[103].mxu0  ;;  %v3722_v57 = vsel %vm905_vm1, %v3719_v1, %v3721_v14 }
 0x464   :  { %3939 = vmatmul.mubr.f32.gmra.mrb[112].mxu1 %v3722_v57 }
 0x465   :  { %3944 = vmatprep.mubr.f32.mxu1 %v15900_v3  ;;  %v3723_v28 = vrot.slane %v13670_v13, 2 }
 0x466   :  { %v3188_v23 = vpop.f32.mrb[30].mxu1  ;;  %v3455_v30 = vpop.f32.mrb[104].mxu0 }
 0x467   :  { %v13675_v20 = vmax.f32 %v3188_v23, %v3455_v30  ;;  %v3190_v32 = vpop.f32.mrb[31].mxu1  ;;  %v3457_v18 = vpop.f32.mrb[105].mxu0  ;;  %v3724_v60 = vsel %vm905_vm1, %v3721_v14, %v3723_v28 }
 0x468   :  { %3945 = vmatmul.mubr.f32.gmra.mrb[114].mxu1 %v3724_v60 }
 0x469   :  { %3950 = vmatprep.mubr.f32.mxu1 %v15900_v3  ;;  %v3725_v38 = vrot.slane %v13675_v20, 2 }
 0x46a   :  { %v3193_v52 = vpop.f32.mrb[32].mxu1  ;;  %v3460_v15 = vpop.f32.mrb[106].mxu0 }
 0x46b   :  { %v13680_v37 = vmax.f32 %v3193_v52, %v3460_v15  ;;  %v3195_v51 = vpop.f32.mrb[33].mxu1  ;;  %v3462_v42 = vpop.f32.mrb[107].mxu0  ;;  %v3726_v41 = vsel %vm905_vm1, %v3723_v28, %v3725_v38 }
 0x46c   :  { %3951 = vmatmul.mubr.f32.gmra.mrb[116].mxu1 %v3726_v41 }
 0x46d   :  { %3956 = vmatprep.mubr.f32.mxu1 %v15900_v3  ;;  %v3727_v46 = vrot.slane %v13680_v37, 2 }
 0x46e   :  { %v3198_v47 = vpop.f32.mrb[34].mxu1  ;;  %v3465_v54 = vpop.f32.mrb[108].mxu0 }
 0x46f   :  { %v13685_v4 = vmax.f32 %v3198_v47, %v3465_v54  ;;  %v3200_v36 = vpop.f32.mrb[35].mxu1  ;;  %v3467_v29 = vpop.f32.mrb[109].mxu0  ;;  %v3728_v61 = vsel %vm905_vm1, %v3725_v38, %v3727_v46 }
 0x470   :  { %3957 = vmatmul.mubr.f32.gmra.mrb[118].mxu1 %v3728_v61 }
 0x471   :  { %3962 = vmatprep.mubr.f32.mxu1 %v15900_v3  ;;  %v3729_v39 = vrot.slane %v13685_v4, 2 }
 0x472   :  { %v3203_v0 = vpop.f32.mrb[36].mxu1  ;;  %v3470_v5 = vpop.f32.mrb[110].mxu0 }
 0x473   :  { %v13690_v25 = vmax.f32 %v3203_v0, %v3470_v5  ;;  %v3205_v31 = vpop.f32.mrb[37].mxu1  ;;  %v3472_v48 = vpop.f32.mrb[111].mxu0  ;;  %v3730_v59 = vsel %vm905_vm1, %v3727_v46, %v3729_v39 }
 0x474   :  { %3963 = vmatmul.mubr.f32.gmra.mrb[120].mxu1 %v3730_v59 }
 0x475   :  { %3968 = vmatprep.mubr.f32.mxu1 %v15900_v3  ;;  %v3731_v10 = vrot.slane %v13690_v25, 2 }
 0x476   :  { %v3208_v43 = vpop.f32.mrb[38].mxu1  ;;  %v3475_v24 = vpop.f32.mrb[112].mxu0 }
 0x477   :  { %v13695_v26 = vmax.f32 %v3208_v43, %v3475_v24  ;;  %v3210_v1 = vpop.f32.mrb[39].mxu1  ;;  %v3477_v58 = vpop.f32.mrb[113].mxu0  ;;  %v3732_v6 = vsel %vm905_vm1, %v3729_v39, %v3731_v10 }
 0x478   :  { %3969 = vmatmul.mubr.f32.gmra.mrb[122].mxu1 %v3732_v6 }
 0x479   :  { %3974 = vmatprep.mubr.f32.mxu1 %v15900_v3  ;;  %v3733_v34 = vrot.slane %v13695_v26, 2 }
 0x47a   :  { %v3213_v19 = vpop.f32.mrb[40].mxu1  ;;  %v3480_v8 = vpop.f32.mrb[114].mxu0 }
 0x47b   :  { %v13700_v14 = vmax.f32 %v3213_v19, %v3480_v8  ;;  %v3215_v62 = vpop.f32.mrb[41].mxu1  ;;  %v3482_v45 = vpop.f32.mrb[115].mxu0  ;;  %v3734_v53 = vsel %vm905_vm1, %v3731_v10, %v3733_v34 }
 0x47c   :  { %3975 = vmatmul.mubr.f32.gmra.mrb[124].mxu1 %v3734_v53 }
 0x47d   :  { %3980 = vmatprep.mubr.f32.mxu1 %v15900_v3  ;;  %v3735_v55 = vrot.slane %v13700_v14, 2 }
 0x47e   :  { %v3218_v57 = vpop.f32.mrb[42].mxu1  ;;  %v3485_v28 = vpop.f32.mrb[116].mxu0 }
 0x47f   :  { %v13705_v23 = vmax.f32 %v3218_v57, %v3485_v28  ;;  %v3220_v30 = vpop.f32.mrb[43].mxu1  ;;  %v3487_v32 = vpop.f32.mrb[117].mxu0  ;;  %v3736_v18 = vsel %vm905_vm1, %v3733_v34, %v3735_v55 }
 0x480   :  { %3981 = vmatmul.mubr.f32.gmra.mrb[126].mxu1 %v3736_v18 }
 0x481   :  { %3986 = vmatprep.mubr.f32.mxu1 %v15900_v3  ;;  %v3737_v60 = vrot.slane %v13705_v23, 2 }
 0x482   :  { %v3223_v38 = vpop.f32.mrb[44].mxu1  ;;  %v3490_v52 = vpop.f32.mrb[118].mxu0 }
 0x483   :  { %v13710_v15 = vmax.f32 %v3223_v38, %v3490_v52  ;;  %v3225_v51 = vpop.f32.mrb[45].mxu1  ;;  %v3492_v42 = vpop.f32.mrb[119].mxu0  ;;  %v3738_v41 = vsel %vm905_vm1, %v3735_v55, %v3737_v60 }
 0x484   :  { %3987 = vmatmul.mubr.f32.gmra.mrb[128].mxu1 %v3738_v41 }
 0x485   :  { %3992 = vmatprep.mubr.f32.mxu1 %v15900_v3  ;;  %v3739_v46 = vrot.slane %v13710_v15, 2 }
 0x486   :  { %v3228_v47 = vpop.f32.mrb[46].mxu1  ;;  %v3495_v54 = vpop.f32.mrb[120].mxu0 }
 0x487   :  { %v13715_v36 = vmax.f32 %v3228_v47, %v3495_v54  ;;  %v3230_v29 = vpop.f32.mrb[47].mxu1  ;;  %v3497_v61 = vpop.f32.mrb[121].mxu0  ;;  %v3740_v39 = vsel %vm905_vm1, %v3737_v60, %v3739_v46 }
 0x488   :  { %3993 = vmatmul.mubr.f32.gmra.mrb[130].mxu1 %v3740_v39 }
 0x489   :  { %3998 = vmatprep.mubr.f32.mxu1 %v15900_v3  ;;  %v3741_v0 = vrot.slane %v13715_v36, 2 }
 0x48a   :  { %v3233_v5 = vpop.f32.mrb[48].mxu1  ;;  %v3500_v31 = vpop.f32.mrb[122].mxu0 }
 0x48b   :  { %v13720_v48 = vmax.f32 %v3233_v5, %v3500_v31  ;;  %v3235_v59 = vpop.f32.mrb[49].mxu1  ;;  %v3502_v10 = vpop.f32.mrb[123].mxu0  ;;  %v3742_v43 = vsel %vm905_vm1, %v3739_v46, %v3741_v0 }
 0x48c   :  { %3999 = vmatmul.mubr.f32.gmra.mrb[132].mxu1 %v3742_v43 }
 0x48d   :  { %4004 = vmatprep.mubr.f32.mxu1 %v15900_v3  ;;  %v3743_v24 = vrot.slane %v13720_v48, 2 }
 0x48e   :  { %v3238_v1 = vpop.f32.mrb[50].mxu1  ;;  %v3505_v58 = vpop.f32.mrb[124].mxu0 }
 0x48f   :  { %v13725_v6 = vmax.f32 %v3238_v1, %v3505_v58  ;;  %v3240_v34 = vpop.f32.mrb[51].mxu1  ;;  %v3507_v19 = vpop.f32.mrb[125].mxu0  ;;  %v3744_v8 = vsel %vm905_vm1, %v3741_v0, %v3743_v24 }
 0x490   :  { %4005 = vmatmul.mubr.f32.gmra.mrb[134].mxu1 %v3744_v8 }
 0x491   :  { %4010 = vmatprep.mubr.f32.mxu1 %v15900_v3  ;;  %v3745_v62 = vrot.slane %v13725_v6, 2 }
 0x492   :  { %v3243_v45 = vpop.f32.mrb[52].mxu1  ;;  %v3510_v53 = vpop.f32.mrb[126].mxu0 }
 0x493   :  { %v13730_v55 = vmax.f32 %v3243_v45, %v3510_v53  ;;  %v3245_v57 = vpop.f32.mrb[53].mxu1  ;;  %v3512_v28 = vpop.f32.mrb[127].mxu0  ;;  %v3746_v30 = vsel %vm905_vm1, %v3743_v24, %v3745_v62 }
 0x494   :  { %4011 = vmatmul.mubr.f32.gmra.mrb[136].mxu1 %v3746_v30 }
 0x495   :  { %4016 = vmatprep.mubr.f32.mxu1 %v15900_v3  ;;  %v3747_v32 = vrot.slane %v13730_v55, 2 }
 0x496   :  { %v3248_v18 = vpop.f32.mrb[54].mxu1  ;;  %v3515_v60 = vpop.f32.mrb[128].mxu0 }
 0x497   :  { %v13735_v38 = vmax.f32 %v3248_v18, %v3515_v60  ;;  %v3250_v52 = vpop.f32.mrb[55].mxu1  ;;  %v3517_v51 = vpop.f32.mrb[129].mxu0  ;;  %v3748_v42 = vsel %vm905_vm1, %v3745_v62, %v3747_v32 }
 0x498   :  { %4017 = vmatmul.mubr.f32.gmra.mrb[138].mxu1 %v3748_v42 }
 0x499   :  { %4022 = vmatprep.mubr.f32.mxu1 %v15900_v3  ;;  %v3749_v41 = vrot.slane %v13735_v38, 2 }
 0x49a   :  { %v3253_v46 = vpop.f32.mrb[56].mxu1 }
 0x49b   :  { %v3255_v47 = vpop.f32.mrb[57].mxu1  ;;  %v3750_v54 = vsel %vm905_vm1, %v3747_v32, %v3749_v41 }
 0x49c   :  { %4023 = vmatmul.mubr.f32.gmra.mrb[140].mxu1 %v3750_v54 }
 0x49d   :  { %4028 = vmatprep.mubr.f32.mxu1 %v15900_v3 }
 0x49e   :  { %v3258_v29 = vpop.f32.mrb[58].mxu1 }
 0x49f   :  { %v3260_v61 = vpop.f32.mrb[59].mxu1 }
 0x4a0   :  { %v8976_v61 = vld [vmem:[%s15890_s4 + $0x208] sm:$0xff] }
 0x4a2   :  { %v3263_v39 = vpop.f32.mrb[60].mxu1 }
 0x4a3   :  { %v3265_v0 = vpop.f32.mrb[61].mxu1 }
 0x4a6   :  { %v3268_v5 = vpop.f32.mrb[62].mxu1 }
 0x4a7   :  { %v3270_v31 = vpop.f32.mrb[63].mxu1 }
 0x4aa   :  { %v3273_v59 = vpop.f32.mrb[64].mxu1 }
 0x4ab   :  { %v3275_v10 = vpop.f32.mrb[65].mxu1 }
 0x4ae   :  { %v3278_v43 = vpop.f32.mrb[66].mxu1 }
 0x4af   :  { %v3280_v24 = vpop.f32.mrb[67].mxu1 }
 0x4b2   :  { %v3283_v1 = vpop.f32.mrb[68].mxu1 }
 0x4b3   :  { %v3285_v58 = vpop.f32.mrb[69].mxu1 }
 0x4b6   :  { %v3288_v34 = vpop.f32.mrb[70].mxu1 }
 0x4b7   :  { %v3290_v19 = vpop.f32.mrb[71].mxu1 }
 0x4ba   :  { %v3520_v8 = vpop.f32.mrb[72].mxu1 }
 0x4bb   :  { %v13742_v62 = vmax.f32 %v3253_v46, %v3520_v8  ;;  %v3522_v45 = vpop.f32.mrb[73].mxu1 }
 0x4bd   :  { %v3751_v53 = vrot.slane %v13742_v62, 2 }
 0x4be   :  { %v3525_v57 = vpop.f32.mrb[74].mxu1 }
 0x4bf   :  { %v13745_v28 = vmax.f32 %v3258_v29, %v3525_v57  ;;  %v3527_v30 = vpop.f32.mrb[75].mxu1  ;;  %v3752_v32 = vsel %vm905_vm1, %v3749_v41, %v3751_v53 }
 0x4c0   :  { %4029 = vmatmul.mubr.f32.gmra.mrb[142].mxu1 %v3752_v32 }
 0x4c1   :  { %4034 = vmatprep.mubr.f32.mxu1 %v15900_v3  ;;  %v3753_v18 = vrot.slane %v13745_v28, 2 }
 0x4c2   :  { %v3530_v60 = vpop.f32.mrb[76].mxu1 }
 0x4c3   :  { %v13750_v52 = vmax.f32 %v3263_v39, %v3530_v60  ;;  %v3532_v51 = vpop.f32.mrb[77].mxu1  ;;  %v3754_v42 = vsel %vm905_vm1, %v3751_v53, %v3753_v18  ;;  %v8978_v39 = vld [vmem:[%s15890_s4 + $0x218] sm:$0xff] }
 0x4c4   :  { %4035 = vmatmul.mubr.f32.gmra.mrb[144].mxu1 %v3754_v42  ;;  %v10288_v31 = vpack.c.bf16 %v8978_v39, %v8976_v61  ;;  %v8982_v39 = vld [vmem:[%s15890_s4 + $0x238] sm:$0xff] }
 0x4c5   :  { %4040 = vmatprep.mubr.f32.mxu1 %v15900_v3  ;;  %v3755_v46 = vrot.slane %v13750_v52, 2 }
 0x4c6   :  { %v3535_v47 = vpop.f32.mrb[78].mxu1  ;;  %10289 = vmatprep.subr.bf16.mxu1 %v10288_v31 }
 0x4c7   :  { %v13755_v54 = vmax.f32 %v3268_v5, %v3535_v47  ;;  %v3537_v41 = vpop.f32.mrb[79].mxu1  ;;  %v3756_v29 = vsel %vm905_vm1, %v3753_v18, %v3755_v46 }
 0x4c8   :  { %4041 = vmatmul.mubr.f32.gmra.mrb[146].mxu1 %v3756_v29  ;;  %v8975_v41 = vld [vmem:[%s15890_s4 + $0x200] sm:$0xff]  ;;  %v8977_v29 = vld [vmem:[%s15890_s4 + $0x210] sm:$0xff] }
 0x4c9   :  { %4046 = vmatprep.mubr.f32.mxu1 %v15900_v3  ;;  %v3757_v0 = vrot.slane %v13755_v54, 2 }
 0x4ca   :  { %v3540_v10 = vpop.f32.mrb[80].mxu1 }
 0x4cb   :  { %v13766_v5 = vmax.f32 %v3273_v59, %v3540_v10  ;;  %v3542_v24 = vpop.f32.mrb[81].mxu1  ;;  %v3758_v58 = vsel %vm905_vm1, %v3755_v46, %v3757_v0  ;;  %v8979_v10 = vld [vmem:[%s15890_s4 + $0x220] sm:$0xff] }
 0x4cc   :  { %4047 = vmatmul.mubr.f32.gmra.mrb[148].mxu1 %v3758_v58  ;;  %v8981_v24 = vld [vmem:[%s15890_s4 + $0x230] sm:$0xff]  ;;  %v8984_v58 = vld [vmem:[%s15890_s4 + $0x248] sm:$0xff] }
 0x4cd   :  { %4052 = vmatprep.mubr.f32.mxu1 %v15900_v3  ;;  %v3759_v19 = vrot.slane %v13766_v5, 2 }
 0x4ce   :  { %v3545_v8 = vpop.f32.mrb[82].mxu1 }
 0x4cf   :  { %v13771_v45 = vmax.f32 %v3278_v43, %v3545_v8  ;;  %v3547_v53 = vpop.f32.mrb[83].mxu1  ;;  %v3760_v57 = vsel %vm905_vm1, %v3757_v0, %v3759_v19  ;;  %v10290_v0 = vpack.c.bf16 %v8977_v29, %v8975_v41  ;;  %v10294_v8 = vpack.c.bf16 %v8981_v24, %v8979_v10  ;;  %v8995_v24 = vld [vmem:[%s15890_s4 + $0x2a0] sm:$0xff] }
 0x4d0   :  { %4053 = vmatmul.mubr.f32.gmra.mrb[150].mxu1 %v3760_v57  ;;  %v8983_v57 = vld [vmem:[%s15890_s4 + $0x240] sm:$0xff] }
 0x4d1   :  { %4058 = vmatprep.mubr.f32.mxu1 %v15900_v3  ;;  %v3761_v59 = vrot.slane %v13771_v45, 2 }
 0x4d2   :  { %v3550_v30 = vpop.f32.mrb[84].mxu1 }
 0x4d3   :  { %v13776_v32 = vmax.f32 %v3283_v1, %v3550_v30  ;;  %v3552_v18 = vpop.f32.mrb[85].mxu1  ;;  %v3762_v60 = vsel %vm905_vm1, %v3759_v19, %v3761_v59  ;;  %v8986_v19 = vld [vmem:[%s15890_s4 + $0x258] sm:$0xff]  ;;  %v8988_v30 = vld [vmem:[%s15890_s4 + $0x268] sm:$0xff] }
 0x4d4   :  { %4059 = vmatmul.mubr.f32.gmra.mrb[152].mxu1 %v3762_v60  ;;  %v10296_v53 = vpack.c.bf16 %v8986_v19, %v8984_v58  ;;  %v8990_v18 = vld [vmem:[%s15890_s4 + $0x278] sm:$0xff]  ;;  %v8997_v58 = vld [vmem:[%s15890_s4 + $0x2b0] sm:$0xff]  ;;  %v9000_v19 = vld [vmem:[%s15890_s4 + $0x2c8] sm:$0xff] }
 0x4d5   :  { %4064 = vmatprep.mubr.f32.mxu1 %v15900_v3  ;;  %v3763_v43 = vrot.slane %v13776_v32, 2 }
 0x4d6   :  { %v3555_v51 = vpop.f32.mrb[86].mxu1 }
 0x4d7   :  { %v13781_v42 = vmax.f32 %v3288_v34, %v3555_v51  ;;  %v3557_v46 = vpop.f32.mrb[87].mxu1  ;;  %v3764_v47 = vsel %vm905_vm1, %v3761_v59, %v3763_v43  ;;  %v8980_v34 = vld [vmem:[%s15890_s4 + $0x228] sm:$0xff]  ;;  %v8985_v59 = vld [vmem:[%s15890_s4 + $0x250] sm:$0xff]  ;;  %v8987_v51 = vld [vmem:[%s15890_s4 + $0x260] sm:$0xff] }
 0x4d8   :  { %4065 = vmatmul.mubr.f32.gmra.mrb[154].mxu1 %v3764_v47  ;;  %v10292_v31 = vpack.c.bf16 %v8982_v39, %v8980_v34  ;;  %v10298_v60 = vpack.c.bf16 %v8985_v59, %v8983_v57  ;;  %v8989_v46 = vld [vmem:[%s15890_s4 + $0x270] sm:$0xff]  ;;  %v8992_v47 = vld [vmem:[%s15890_s4 + $0x288] sm:$0xff]  ;;  %v8999_v59 = vld [vmem:[%s15890_s4 + $0x2c0] sm:$0xff] }
 0x4d9   :  { %4070 = vmatprep.mubr.f32.mxu1 %v15900_v3  ;;  %v3765_v1 = vrot.slane %v13781_v42, 2  ;;  %v10302_v41 = vpack.c.bf16 %v8989_v46, %v8987_v51  ;;  %v8993_v34 = vld [vmem:[%s15890_s4 + $0x290] sm:$0xff]  ;;  %v8996_v39 = vld [vmem:[%s15890_s4 + $0x2a8] sm:$0xff]  ;;  %v9003_v46 = vld [vmem:[%s15890_s4 + $0x2e0] sm:$0xff] }
 0x4db   :  { %v3766_v61 = vsel %vm905_vm1, %v3763_v43, %v3765_v1  ;;  %v10300_v43 = vpack.c.bf16 %v8990_v18, %v8988_v30  ;;  %v8994_v1 = vld [vmem:[%s15890_s4 + $0x298] sm:$0xff]  ;;  %v9001_v30 = vld [vmem:[%s15890_s4 + $0x2d0] sm:$0xff]  ;;  %v9004_v18 = vld [vmem:[%s15890_s4 + $0x2e8] sm:$0xff] }
 0x4dc   :  { %4071 = vmatmul.mubr.f32.gmra.mrb[156].mxu1 %v3766_v61  ;;  %v10304_v29 = vpack.c.bf16 %v8994_v1, %v8992_v47  ;;  %v8991_v61 = vld [vmem:[%s15890_s4 + $0x280] sm:$0xff]  ;;  %v9005_v47 = vld [vmem:[%s15890_s4 + $0x2f0] sm:$0xff] }
 0x4dd   :  { %4141 = vmatprep.mubr.f32.mxu1 %v15900_v3  ;;  %v10318_v1 = vpack.c.bf16 %v9005_v47, %v9003_v46  ;;  %v9017_v46 = vld [vmem:[%s15890_s4 + $0x350] sm:$0xff] }
 0x4e0   :  { %4142 = vmatmul.mubr.f32.vlgmr.msra.gmra.mrb[88].mxu1 %v13508_v21 }
 0x4e1   :  { %4147 = vmatprep.mubr.f32.mxu1 %v15900_v3  ;;  %10291 = vmatpush1.bf16.msra.mxu1 %v10290_v0  ;;  %v8998_v0 = vld [vmem:[%s15890_s4 + $0x2b8] sm:$0xff] }
 0x4e2   :  { %10293 = vmatprep.subr.bf16.mxu1 %v10292_v31  ;;  %v10306_v31 = vpack.c.bf16 %v8993_v34, %v8991_v61  ;;  %v10308_v10 = vpack.c.bf16 %v8998_v0, %v8996_v39  ;;  %v9007_v34 = vld [vmem:[%s15890_s4 + $0x300] sm:$0xff]  ;;  %v9009_v39 = vld [vmem:[%s15890_s4 + $0x310] sm:$0xff]  ;;  %v4386_v0 = vrot.slane %v13510_v50, 4 }
 0x4e4   :  { %4148 = vmatmul.mubr.f32.gmra.mrb[90].mxu1 %v13510_v50 }
 0x4e5   :  { %4153 = vmatprep.mubr.f32.mxu1 %v15900_v3  ;;  %10295 = vmatpush1.bf16.msra.mxu1 %v10294_v8  ;;  %v9002_v8 = vld [vmem:[%s15890_s4 + $0x2d8] sm:$0xff] }
 0x4e6   :  { %10297 = vmatprep.subr.bf16.mxu1 %v10296_v53  ;;  %v10310_v53 = vpack.c.bf16 %v8997_v58, %v8995_v24  ;;  %v10312_v57 = vpack.c.bf16 %v9002_v8, %v9000_v19  ;;  %v4385_v24 = vrot.slane %v13508_v21, 4  ;;  %v10322_v58 = vpack.c.bf16 %v9009_v39, %v9007_v34  ;;  %v9011_v8 = vld [vmem:[%s15890_s4 + $0x320] sm:$0xff] }
 0x4e7   :  { %v9019_v39 = vld [vmem:[%s15890_s4 + $0x360] sm:$0xff] }
 0x4e8   :  { %4154 = vmatmul.mubr.f32.gmra.mrb[92].mxu1 %v13514_v49 }
 0x4e9   :  { %4159 = vmatprep.mubr.f32.mxu1 %v15900_v3  ;;  %10299 = vmatpush1.bf16.msra.mxu1 %v10298_v60  ;;  %v9006_v60 = vld [vmem:[%s15890_s4 + $0x2f8] sm:$0xff] }
 0x4ea   :  { %10301 = vmatprep.subr.bf16.mxu1 %v10300_v43  ;;  %v10314_v43 = vpack.c.bf16 %v9001_v30, %v8999_v59  ;;  %v10316_v51 = vpack.c.bf16 %v9006_v60, %v9004_v18  ;;  %v4388_v59 = vrot.slane %v13514_v49, 4  ;;  %v9016_v30 = vld [vmem:[%s15890_s4 + $0x348] sm:$0xff]  ;;  %v9018_v18 = vld [vmem:[%s15890_s4 + $0x358] sm:$0xff] }
 0x4ec   :  { %4160 = vmatmul.mubr.f32.gmra.mrb[94].mxu1 %v13519_v17  ;;  %v4389_v47 = vsel %vm1919_vm3, %v4386_v0, %v4388_v59 }
 0x4ed   :  { %4165 = vmatprep.mubr.f32.mxu1 %v15900_v3  ;;  %10303 = vmatpush1.bf16.msra.mxu1 %v10302_v41  ;;  %v9008_v41 = vld [vmem:[%s15890_s4 + $0x308] sm:$0xff] }
 0x4ee   :  { %10305 = vmatprep.subr.bf16.mxu1 %v10304_v29  ;;  %v9010_v29 = vld [vmem:[%s15890_s4 + $0x318] sm:$0xff] }
 0x4ef   :  { %v10320_v61 = vpack.c.bf16 %v9010_v29, %v9008_v41  ;;  %v9020_v41 = vld [vmem:[%s15890_s4 + $0x368] sm:$0xff]  ;;  %v9022_v29 = vld [vmem:[%s15890_s4 + $0x378] sm:$0xff] }
 0x4f0   :  { %4166 = vmatmul.mubr.f32.gmra.mrb[96].mxu1 %v13524_v7  ;;  %v10332_v34 = vpack.c.bf16 %v9022_v29, %v9020_v41  ;;  %v4396_v41 = vrot.slane %v13558_v12, 4  ;;  %v9032_v29 = vld [vmem:[%s15890_s4 + $0x3c8] sm:$0xff] }
 0x4f1   :  { %4171 = vmatprep.mubr.f32.mxu1 %v15900_v3  ;;  %10307 = vmatpush1.bf16.msra.mxu1 %v10306_v31  ;;  %v9012_v31 = vld [vmem:[%s15890_s4 + $0x328] sm:$0xff] }
 0x4f2   :  { %10309 = vmatprep.subr.bf16.mxu1 %v10308_v10  ;;  %v9014_v10 = vld [vmem:[%s15890_s4 + $0x338] sm:$0xff] }
 0x4f3   :  { %v10324_v19 = vpack.c.bf16 %v9014_v10, %v9012_v31  ;;  %v4392_v10 = vrot.slane %v13524_v7, 4 }
 0x4f4   :  { %4172 = vmatmul.mubr.f32.gmra.mrb[98].mxu1 %v13541_v44 }
 0x4f5   :  { %4177 = vmatprep.mubr.f32.mxu1 %v15900_v3  ;;  %10311 = vmatpush1.bf16.msra.mxu1 %v10310_v53  ;;  %v9013_v53 = vld [vmem:[%s15890_s4 + $0x330] sm:$0xff] }
 0x4f6   :  { %10313 = vmatprep.subr.bf16.mxu1 %v10312_v57  ;;  %v4387_v57 = vsel %vm1919_vm3, %v4385_v24, %v4386_v0  ;;  %v10326_v60 = vpack.c.bf16 %v9013_v53, %v9011_v8  ;;  %v9021_v0 = vld [vmem:[%s15890_s4 + $0x370] sm:$0xff]  ;;  %v9024_v24 = vld [vmem:[%s15890_s4 + $0x388] sm:$0xff]  ;;  %v9023_v53 = vld [vmem:[%s15890_s4 + $0x380] sm:$0xff] }
 0x4f8   :  { %4178 = vmatmul.mubr.f32.gmra.mrb[100].mxu1 %v13558_v12 }
 0x4f9   :  { %4183 = vmatprep.mubr.f32.mxu1 %v15900_v3  ;;  %10315 = vmatpush1.bf16.msra.mxu1 %v10314_v43  ;;  %v10328_v43 = vpack.c.bf16 %v9018_v18, %v9016_v30  ;;  %v4394_v30 = vrot.slane %v13541_v44, 4  ;;  %v9028_v18 = vld [vmem:[%s15890_s4 + $0x3a8] sm:$0xff] }
 0x4fa   :  { %10317 = vmatprep.subr.bf16.mxu1 %v10316_v51  ;;  %v9015_v51 = vld [vmem:[%s15890_s4 + $0x340] sm:$0xff] }
 0x4fc   :  { %4184 = vmatmul.mubr.f32.gmra.mrb[102].mxu1 %v13575_v56 }
 0x4fd   :  { %4189 = vmatprep.mubr.f32.mxu1 %v15900_v3  ;;  %10319 = vmatpush1.bf16.msra.mxu1 %v10318_v1  ;;  %v4390_v1 = vrot.slane %v13519_v17, 4 }
 0x4fe   :  { %10321 = vmatprep.subr.bf16.mxu1 %v10320_v61  ;;  %v10330_v61 = vpack.c.bf16 %v9017_v46, %v9015_v51  ;;  %v9027_v46 = vld [vmem:[%s15890_s4 + $0x3a0] sm:$0xff] }
 0x4ff   :  { %v4391_v31 = vsel %vm1919_vm3, %v4388_v59, %v4390_v1  ;;  %v4393_v59 = vsel %vm1919_vm3, %v4390_v1, %v4392_v10  ;;  %v4395_v1 = vsel %vm1919_vm3, %v4392_v10, %v4394_v30  ;;  %v4397_v10 = vsel %vm1919_vm3, %v4394_v30, %v4396_v41 }
 0x500   :  { %4190 = vmatmul.mubr.f32.gmra.mrb[104].mxu1 %v13592_v2 }
 0x501   :  { %4195 = vmatprep.mubr.f32.mxu1 %v15900_v3 }
 0x504   :  { %4196 = vmatmul.mubr.f32.gmra.mrb[106].mxu1 %v13609_v33 }
 0x505   :  { %4201 = vmatprep.mubr.f32.mxu1 %v15900_v3 }
 0x508   :  { %4202 = vmatmul.mubr.f32.gmra.mrb[108].mxu1 %v13626_v40 }
 0x509   :  { %4207 = vmatprep.mubr.f32.mxu1 %v15900_v3 }
 0x50c   :  { %4208 = vmatmul.mubr.f32.gmra.mrb[110].mxu1 %v13643_v22 }
 0x50d   :  { %4213 = vmatprep.mubr.f32.mxu1 %v15900_v3 }
 0x510   :  { %4214 = vmatmul.mubr.f32.gmra.mrb[112].mxu1 %v13660_v35 }
 0x511   :  { %4219 = vmatprep.mubr.f32.mxu1 %v15900_v3 }
 0x514   :  { %4220 = vmatmul.mubr.f32.gmra.mrb[114].mxu1 %v13665_v16 }
 0x515   :  { %4225 = vmatprep.mubr.f32.mxu1 %v15900_v3 }
 0x518   :  { %4226 = vmatmul.mubr.f32.gmra.mrb[116].mxu1 %v13670_v13 }
 0x519   :  { %4231 = vmatprep.mubr.f32.mxu1 %v15900_v3 }
 0x51c   :  { %4232 = vmatmul.mubr.f32.gmra.mrb[118].mxu1 %v13675_v20 }
 0x51d   :  { %4237 = vmatprep.mubr.f32.mxu1 %v15900_v3 }
 0x520   :  { %4238 = vmatmul.mubr.f32.gmra.mrb[120].mxu1 %v13680_v37 }
 0x521   :  { %4243 = vmatprep.mubr.f32.mxu1 %v15900_v3 }
 0x524   :  { %4244 = vmatmul.mubr.f32.gmra.mrb[122].mxu1 %v13685_v4 }
 0x525   :  { %4249 = vmatprep.mubr.f32.mxu1 %v15900_v3 }
 0x528   :  { %4250 = vmatmul.mubr.f32.gmra.mrb[124].mxu1 %v13690_v25 }
 0x529   :  { %4255 = vmatprep.mubr.f32.mxu1 %v15900_v3 }
 0x52c   :  { %4256 = vmatmul.mubr.f32.gmra.mrb[126].mxu1 %v13695_v26 }
 0x52d   :  { %4261 = vmatprep.mubr.f32.mxu1 %v15900_v3 }
 0x530   :  { %4262 = vmatmul.mubr.f32.gmra.mrb[128].mxu1 %v13700_v14 }
 0x531   :  { %4267 = vmatprep.mubr.f32.mxu1 %v15900_v3 }
 0x534   :  { %4268 = vmatmul.mubr.f32.gmra.mrb[130].mxu1 %v13705_v23 }
 0x535   :  { %4273 = vmatprep.mubr.f32.mxu1 %v15900_v3 }
 0x538   :  { %4274 = vmatmul.mubr.f32.gmra.mrb[132].mxu1 %v13710_v15 }
 0x539   :  { %4279 = vmatprep.mubr.f32.mxu1 %v15900_v3 }
 0x53c   :  { %4280 = vmatmul.mubr.f32.gmra.mrb[134].mxu1 %v13715_v36 }
 0x53d   :  { %4285 = vmatprep.mubr.f32.mxu1 %v15900_v3 }
 0x540   :  { %4286 = vmatmul.mubr.f32.gmra.mrb[136].mxu1 %v13720_v48 }
 0x541   :  { %4291 = vmatprep.mubr.f32.mxu1 %v15900_v3 }
 0x544   :  { %4292 = vmatmul.mubr.f32.gmra.mrb[138].mxu1 %v13725_v6 }
 0x545   :  { %4297 = vmatprep.mubr.f32.mxu1 %v15900_v3 }
 0x548   :  { %4298 = vmatmul.mubr.f32.gmra.mrb[140].mxu1 %v13730_v55 }
 0x549   :  { %4303 = vmatprep.mubr.f32.mxu1 %v15900_v3 }
 0x54c   :  { %4304 = vmatmul.mubr.f32.gmra.mrb[142].mxu1 %v13735_v38 }
 0x54d   :  { %4309 = vmatprep.mubr.f32.mxu1 %v15900_v3 }
 0x550   :  { %4310 = vmatmul.mubr.f32.gmra.mrb[144].mxu1 %v13742_v62 }
 0x551   :  { %4315 = vmatprep.mubr.f32.mxu1 %v15900_v3 }
 0x554   :  { %4316 = vmatmul.mubr.f32.gmra.mrb[146].mxu1 %v13745_v28 }
 0x555   :  { %4321 = vmatprep.mubr.f32.mxu1 %v15900_v3 }
 0x558   :  { %4322 = vmatmul.mubr.f32.gmra.mrb[148].mxu1 %v13750_v52 }
 0x559   :  { %4327 = vmatprep.mubr.f32.mxu1 %v15900_v3 }
 0x55c   :  { %4328 = vmatmul.mubr.f32.gmra.mrb[150].mxu1 %v13755_v54 }
 0x55d   :  { %4333 = vmatprep.mubr.f32.mxu1 %v15900_v3 }
 0x560   :  { %4334 = vmatmul.mubr.f32.gmra.mrb[152].mxu1 %v13766_v5 }
 0x561   :  { %4339 = vmatprep.mubr.f32.mxu1 %v15900_v3 }
 0x564   :  { %4340 = vmatmul.mubr.f32.gmra.mrb[154].mxu1 %v13771_v45 }
 0x565   :  { %4345 = vmatprep.mubr.f32.mxu1 %v15900_v3 }
 0x568   :  { %4346 = vmatmul.mubr.f32.gmra.mrb[156].mxu1 %v13776_v32 }
 0x569   :  { %4555 = vmatprep.mubr.f32.mxu1 %v15900_v3 }
 0x56c   :  { %4556 = vmatmul.mubr.f32.vlgmr.msra.gmra.mrb[88].mxu1 %v4387_v57  ;;  %v9025_v57 = vld [vmem:[%s15890_s4 + $0x390] sm:$0xff] }
 0x56d   :  { %4561 = vmatprep.mubr.f32.mxu1 %v15900_v3  ;;  %10323 = vmatpush1.bf16.msra.mxu1 %v10322_v58  ;;  %v9026_v58 = vld [vmem:[%s15890_s4 + $0x398] sm:$0xff] }
 0x56e   :  { %10325 = vmatprep.subr.bf16.mxu1 %v10324_v19  ;;  %v10334_v19 = vpack.c.bf16 %v9021_v0, %v9019_v39  ;;  %v10336_v8 = vpack.c.bf16 %v9026_v58, %v9024_v24  ;;  %v9031_v0 = vld [vmem:[%s15890_s4 + $0x3c0] sm:$0xff]  ;;  %v4398_v24 = vrot.slane %v13575_v56, 4  ;;  %v9036_v58 = vld [vmem:[%s15890_s4 + $0x3e8] sm:$0xff] }
 0x570   :  { %4562 = vmatmul.mubr.f32.gmra.mrb[90].mxu1 %v4389_v47  ;;  %v9029_v47 = vld [vmem:[%s15890_s4 + $0x3b0] sm:$0xff]  ;;  %v4399_v30 = vsel %vm1919_vm3, %v4396_v41, %v4398_v24  ;;  %v4406_v41 = vrot.slane %v13643_v22, 4 }
 0x571   :  { %4567 = vmatprep.mubr.f32.mxu1 %v15900_v3  ;;  %10327 = vmatpush1.bf16.msra.mxu1 %v10326_v60  ;;  %v9030_v60 = vld [vmem:[%s15890_s4 + $0x3b8] sm:$0xff] }
 0x572   :  { %10329 = vmatprep.subr.bf16.mxu1 %v10328_v43  ;;  %v10338_v43 = vpack.c.bf16 %v9025_v57, %v9023_v53  ;;  %v10340_v51 = vpack.c.bf16 %v9030_v60, %v9028_v18  ;;  %v9035_v57 = vld [vmem:[%s15890_s4 + $0x3e0] sm:$0xff]  ;;  %v4400_v18 = vrot.slane %v13592_v2, 4 }
 0x574   :  { %4568 = vmatmul.mubr.f32.gmra.mrb[92].mxu1 %v4391_v31  ;;  %v9033_v31 = vld [vmem:[%s15890_s4 + $0x3d0] sm:$0xff] }
 0x575   :  { %4573 = vmatprep.mubr.f32.mxu1 %v15900_v3  ;;  %10331 = vmatpush1.bf16.msra.mxu1 %v10330_v61  ;;  %v9034_v61 = vld [vmem:[%s15890_s4 + $0x3d8] sm:$0xff] }
 0x576   :  { %10333 = vmatprep.subr.bf16.mxu1 %v10332_v34  ;;  %v10342_v34 = vpack.c.bf16 %v9029_v47, %v9027_v46  ;;  %v10344_v39 = vpack.c.bf16 %v9034_v61, %v9032_v29  ;;  %v4404_v47 = vrot.slane %v13626_v40, 4  ;;  %v4408_v61 = vrot.slane %v13660_v35, 4 }
 0x578   :  { %4574 = vmatmul.mubr.f32.gmra.mrb[94].mxu1 %v4393_v59  ;;  %v9037_v59 = vld [vmem:[%s15890_s4 + $0x3f0] sm:$0xff]  ;;  %v4407_v29 = vsel %vm1919_vm3, %v4404_v47, %v4406_v41 }
 0x579   :  { %4579 = vmatprep.mubr.f32.mxu1 %v15900_v3  ;;  %10335 = vmatpush1.bf16.msra.mxu1 %v10334_v19  ;;  %v9038_v19 = vld [vmem:[%s15890_s4 + $0x3f8] sm:$0xff]  ;;  %v10350_v60 = vpack.c.bf16 %v9037_v59, %v9035_v57  ;;  %v4420_v59 = vrot.slane %v13690_v25, 4 }
 0x57a   :  { %10337 = vmatprep.subr.bf16.mxu1 %v10336_v8  ;;  %v10346_v8 = vpack.c.bf16 %v9033_v31, %v9031_v0  ;;  %v10348_v53 = vpack.c.bf16 %v9038_v19, %v9036_v58  ;;  %v4412_v31 = vrot.slane %v13670_v13, 4  ;;  %v4416_v19 = vrot.slane %v13680_v37, 4 }
 0x57c   :  { %4580 = vmatmul.mubr.f32.gmra.mrb[96].mxu1 %v4395_v1 }
 0x57d   :  { %4585 = vmatprep.mubr.f32.mxu1 %v15900_v3  ;;  %10339 = vmatpush1.bf16.msra.mxu1 %v10338_v43  ;;  %v4401_v43 = vsel %vm1919_vm3, %v4398_v24, %v4400_v18  ;;  %v4414_v24 = vrot.slane %v13675_v20, 4 }
 0x57e   :  { %10341 = vmatprep.subr.bf16.mxu1 %v10340_v51  ;;  %v4402_v51 = vrot.slane %v13609_v33, 4 }
 0x57f   :  { %v4415_v58 = vsel %vm1919_vm3, %v4412_v31, %v4414_v24 }
 0x580   :  { %4586 = vmatmul.mubr.f32.gmra.mrb[98].mxu1 %v4397_v10  ;;  %v4403_v46 = vsel %vm1919_vm3, %v4400_v18, %v4402_v51  ;;  %v4405_v1 = vsel %vm1919_vm3, %v4402_v51, %v4404_v47  ;;  %v4422_v18 = vrot.slane %v13695_v26, 4 }
 0x581   :  { %4591 = vmatprep.mubr.f32.mxu1 %v15900_v3  ;;  %10343 = vmatpush1.bf16.msra.mxu1 %v10342_v34  ;;  %v4409_v34 = vsel %vm1919_vm3, %v4406_v41, %v4408_v61 }
 0x582   :  { %10345 = vmatprep.subr.bf16.mxu1 %v10344_v39  ;;  %v4410_v39 = vrot.slane %v13665_v16, 4 }
 0x584   :  { %4592 = vmatmul.mubr.f32.gmra.mrb[100].mxu1 %v4399_v30  ;;  %v4411_v0 = vsel %vm1919_vm3, %v4408_v61, %v4410_v39  ;;  %v4413_v10 = vsel %vm1919_vm3, %v4410_v39, %v4412_v31 }
 0x585   :  { %4597 = vmatprep.mubr.f32.mxu1 %v15900_v3  ;;  %10347 = vmatpush1.bf16.msra.mxu1 %v10346_v8  ;;  %v4417_v8 = vsel %vm1919_vm3, %v4414_v24, %v4416_v19 }
 0x586   :  { %10349 = vmatprep.subr.bf16.mxu1 %v10348_v53  ;;  %v4418_v53 = vrot.slane %v13685_v4, 4 }
 0x588   :  { %4598 = vmatmul.mubr.f32.gmra.mrb[102].mxu1 %v4401_v43  ;;  %v4419_v57 = vsel %vm1919_vm3, %v4416_v19, %v4418_v53  ;;  %v4421_v30 = vsel %vm1919_vm3, %v4418_v53, %v4420_v59  ;;  %v4424_v43 = vrot.slane %v13700_v14, 4 }
 0x589   :  { %4603 = vmatprep.mubr.f32.mxu1 %v15900_v3  ;;  %10351 = vmatpush1.bf16.msra.mxu1 %v10350_v60  ;;  %v4423_v60 = vsel %vm1919_vm3, %v4420_v59, %v4422_v18 }
 0x58a   :  { %v4425_v51 = vsel %vm1919_vm3, %v4422_v18, %v4424_v43 }
 0x58c   :  { %4604 = vmatmul.mubr.f32.gmra.mrb[104].mxu1 %v4403_v46  ;;  %v4426_v46 = vrot.slane %v13705_v23, 4 }
 0x58d   :  { %4609 = vmatprep.mubr.f32.mxu1 %v15900_v3 }
 0x58e   :  { %v4427_v47 = vsel %vm1919_vm3, %v4424_v43, %v4426_v46  ;;  %v9040_v43 = vld [vmem:[%s15890_s4 + $0x408] sm:$0xff] }
 0x590   :  { %4610 = vmatmul.mubr.f32.gmra.mrb[106].mxu1 %v4405_v1  ;;  %v4428_v1 = vrot.slane %v13710_v15, 4 }
 0x591   :  { %4615 = vmatprep.mubr.f32.mxu1 %v15900_v3 }
 0x592   :  { %v4429_v41 = vsel %vm1919_vm3, %v4426_v46, %v4428_v1 }
 0x594   :  { %4616 = vmatmul.mubr.f32.gmra.mrb[108].mxu1 %v4407_v29  ;;  %v4430_v29 = vrot.slane %v13715_v36, 4 }
 0x595   :  { %4621 = vmatprep.mubr.f32.mxu1 %v15900_v3 }
 0x596   :  { %v4431_v61 = vsel %vm1919_vm3, %v4428_v1, %v4430_v29  ;;  %v4448_v1 = vrot.slane %v13766_v5, 4 }
 0x598   :  { %4622 = vmatmul.mubr.f32.gmra.mrb[110].mxu1 %v4409_v34  ;;  %v4432_v34 = vrot.slane %v13720_v48, 4 }
 0x599   :  { %4627 = vmatprep.mubr.f32.mxu1 %v15900_v3 }
 0x59a   :  { %v4433_v39 = vsel %vm1919_vm3, %v4430_v29, %v4432_v34  ;;  %v4450_v29 = vrot.slane %v13771_v45, 4 }
 0x59c   :  { %4628 = vmatmul.mubr.f32.gmra.mrb[112].mxu1 %v4411_v0  ;;  %v4434_v0 = vrot.slane %v13725_v6, 4 }
 0x59d   :  { %4633 = vmatprep.mubr.f32.mxu1 %v15900_v3 }
 0x59e   :  { %v4435_v31 = vsel %vm1919_vm3, %v4432_v34, %v4434_v0  ;;  %v4452_v34 = vrot.slane %v13776_v32, 4 }
 0x5a0   :  { %4634 = vmatmul.mubr.f32.gmra.mrb[114].mxu1 %v4413_v10  ;;  %v4436_v10 = vrot.slane %v13730_v55, 4 }
 0x5a1   :  { %4639 = vmatprep.mubr.f32.mxu1 %v15900_v3 }
 0x5a2   :  { %v4437_v24 = vsel %vm1919_vm3, %v4434_v0, %v4436_v10  ;;  %v4454_v0 = vrot.slane %v13781_v42, 4 }
 0x5a4   :  { %4640 = vmatmul.mubr.f32.gmra.mrb[116].mxu1 %v4415_v58  ;;  %v4438_v58 = vrot.slane %v13735_v38, 4 }
 0x5a5   :  { %4645 = vmatprep.mubr.f32.mxu1 %v15900_v3 }
 0x5a6   :  { %v4439_v19 = vsel %vm1919_vm3, %v4436_v10, %v4438_v58  ;;  %v9041_v10 = vld [vmem:[%s15890_s4 + $0x410] sm:$0xff] }
 0x5a8   :  { %4646 = vmatmul.mubr.f32.gmra.mrb[118].mxu1 %v4417_v8  ;;  %v4440_v8 = vrot.slane %v13742_v62, 4 }
 0x5a9   :  { %4651 = vmatprep.mubr.f32.mxu1 %v15900_v3 }
 0x5aa   :  { %v4441_v53 = vsel %vm1919_vm3, %v4438_v58, %v4440_v8  ;;  %v4871_v58 = vrot.slane %v13510_v50, 6 }
 0x5ac   :  { %4652 = vmatmul.mubr.f32.gmra.mrb[120].mxu1 %v4419_v57  ;;  %v4442_v57 = vrot.slane %v13745_v28, 4 }
 0x5ad   :  { %4657 = vmatprep.mubr.f32.mxu1 %v15900_v3 }
 0x5ae   :  { %v4443_v59 = vsel %vm1919_vm3, %v4440_v8, %v4442_v57  ;;  %v9046_v8 = vld [vmem:[%s15890_s4 + $0x438] sm:$0xff] }
 0x5b0   :  { %4658 = vmatmul.mubr.f32.gmra.mrb[122].mxu1 %v4421_v30  ;;  %v4444_v30 = vrot.slane %v13750_v52, 4 }
 0x5b1   :  { %4663 = vmatprep.mubr.f32.mxu1 %v15900_v3 }
 0x5b2   :  { %v4445_v18 = vsel %vm1919_vm3, %v4442_v57, %v4444_v30 }
 0x5b4   :  { %4664 = vmatmul.mubr.f32.gmra.mrb[124].mxu1 %v4423_v60  ;;  %v4446_v60 = vrot.slane %v13755_v54, 4 }
 0x5b5   :  { %4669 = vmatprep.mubr.f32.mxu1 %v15900_v3 }
 0x5b8   :  { %4670 = vmatmul.mubr.f32.gmra.mrb[126].mxu1 %v4425_v51  ;;  %v9042_v51 = vld [vmem:[%s15890_s4 + $0x418] sm:$0xff] }
 0x5b9   :  { %4675 = vmatprep.mubr.f32.mxu1 %v15900_v3  ;;  %v10352_v46 = vpack.c.bf16 %v9042_v51, %v9040_v43  ;;  %v4873_v43 = vrot.slane %v13514_v49, 6  ;;  %v9050_v51 = vld [vmem:[%s15890_s4 + $0x458] sm:$0xff] }
 0x5bb   :  { %10353 = vmatprep.subr.bf16.mxu1 %v10352_v46 }
 0x5bc   :  { %4676 = vmatmul.mubr.f32.gmra.mrb[128].mxu1 %v4427_v47  ;;  %v4447_v47 = vsel %vm1919_vm3, %v4444_v30, %v4446_v60  ;;  %v9043_v30 = vld [vmem:[%s15890_s4 + $0x420] sm:$0xff] }
 0x5bd   :  { %4681 = vmatprep.mubr.f32.mxu1 %v15900_v3 }
 0x5c0   :  { %4682 = vmatmul.mubr.f32.gmra.mrb[130].mxu1 %v4429_v41  ;;  %v4449_v41 = vsel %vm1919_vm3, %v4446_v60, %v4448_v1 }
 0x5c1   :  { %4687 = vmatprep.mubr.f32.mxu1 %v15900_v3 }
 0x5c4   :  { %4688 = vmatmul.mubr.f32.gmra.mrb[132].mxu1 %v4431_v61  ;;  %v4451_v61 = vsel %vm1919_vm3, %v4448_v1, %v4450_v29  ;;  %v9047_v1 = vld [vmem:[%s15890_s4 + $0x440] sm:$0xff] }
 0x5c5   :  { %4693 = vmatprep.mubr.f32.mxu1 %v15900_v3 }
 0x5c8   :  { %4694 = vmatmul.mubr.f32.gmra.mrb[134].mxu1 %v4433_v39  ;;  %v4453_v39 = vsel %vm1919_vm3, %v4450_v29, %v4452_v34  ;;  %v4874_v29 = vsel %vm4869_vm5, %v4871_v58, %v4873_v43 }
 0x5c9   :  { %4699 = vmatprep.mubr.f32.mxu1 %v15900_v3 }
 0x5cc   :  { %4700 = vmatmul.mubr.f32.gmra.mrb[136].mxu1 %v4435_v31  ;;  %v9039_v31 = vld [vmem:[%s15890_s4 + $0x400] sm:$0xff] }
 0x5cd   :  { %4705 = vmatprep.mubr.f32.mxu1 %v15900_v3  ;;  %v10354_v57 = vpack.c.bf16 %v9041_v10, %v9039_v31  ;;  %v9051_v10 = vld [vmem:[%s15890_s4 + $0x460] sm:$0xff] }
 0x5d0   :  { %4706 = vmatmul.mubr.f32.gmra.mrb[138].mxu1 %v4437_v24  ;;  %v4455_v24 = vsel %vm1919_vm3, %v4452_v34, %v4454_v0  ;;  %v9052_v34 = vld [vmem:[%s15890_s4 + $0x468] sm:$0xff] }
 0x5d1   :  { %4711 = vmatprep.mubr.f32.mxu1 %v15900_v3 }
 0x5d4   :  { %4712 = vmatmul.mubr.f32.gmra.mrb[140].mxu1 %v4439_v19  ;;  %v9044_v19 = vld [vmem:[%s15890_s4 + $0x428] sm:$0xff] }
 0x5d5   :  { %4717 = vmatprep.mubr.f32.mxu1 %v15900_v3 }
 0x5d8   :  { %4718 = vmatmul.mubr.f32.gmra.mrb[142].mxu1 %v4441_v53  ;;  %v4870_v53 = vrot.slane %v13508_v21, 6  ;;  %v9048_v21 = vld [vmem:[%s15890_s4 + $0x448] sm:$0xff] }
 0x5d9   :  { %4723 = vmatprep.mubr.f32.mxu1 %v15900_v3 }
 0x5da   :  { %v4872_v60 = vsel %vm4869_vm5, %v4870_v53, %v4871_v58  ;;  %v9058_v53 = vld [vmem:[%s15890_s4 + $0x498] sm:$0xff] }
 0x5dc   :  { %4724 = vmatmul.mubr.f32.gmra.mrb[144].mxu1 %v4443_v59  ;;  %v10356_v59 = vpack.c.bf16 %v9046_v8, %v9044_v19  ;;  %v4877_v19 = vrot.slane %v13524_v7, 6  ;;  %v9056_v8 = vld [vmem:[%s15890_s4 + $0x488] sm:$0xff] }
 0x5dd   :  { %4729 = vmatprep.mubr.f32.mxu1 %v15900_v3 }
 0x5e0   :  { %4730 = vmatmul.mubr.f32.gmra.mrb[146].mxu1 %v4445_v18  ;;  %v9045_v18 = vld [vmem:[%s15890_s4 + $0x430] sm:$0xff] }
 0x5e1   :  { %4735 = vmatprep.mubr.f32.mxu1 %v15900_v3  ;;  %v10358_v46 = vpack.c.bf16 %v9045_v18, %v9043_v30  ;;  %v9055_v30 = vld [vmem:[%s15890_s4 + $0x480] sm:$0xff]  ;;  %v9057_v18 = vld [vmem:[%s15890_s4 + $0x490] sm:$0xff] }
 0x5e4   :  { %4736 = vmatmul.mubr.f32.gmra.mrb[148].mxu1 %v4447_v47  ;;  %v10360_v47 = vpack.c.bf16 %v9050_v51, %v9048_v21  ;;  %v9060_v21 = vld [vmem:[%s15890_s4 + $0x4a8] sm:$0xff]  ;;  %v9062_v51 = vld [vmem:[%s15890_s4 + $0x4b8] sm:$0xff] }
 0x5e5   :  { %4741 = vmatprep.mubr.f32.mxu1 %v15900_v3 }
 0x5e8   :  { %4742 = vmatmul.mubr.f32.gmra.mrb[150].mxu1 %v4449_v41  ;;  %v9049_v41 = vld [vmem:[%s15890_s4 + $0x450] sm:$0xff] }
 0x5e9   :  { %4747 = vmatprep.mubr.f32.mxu1 %v15900_v3  ;;  %v10362_v0 = vpack.c.bf16 %v9049_v41, %v9047_v1  ;;  %v9059_v1 = vld [vmem:[%s15890_s4 + $0x4a0] sm:$0xff]  ;;  %v9061_v41 = vld [vmem:[%s15890_s4 + $0x4b0] sm:$0xff] }
 0x5ec   :  { %4748 = vmatmul.mubr.f32.gmra.mrb[152].mxu1 %v4451_v61  ;;  %v4875_v61 = vrot.slane %v13519_v17, 6 }
 0x5ed   :  { %4753 = vmatprep.mubr.f32.mxu1 %v15900_v3 }
 0x5ee   :  { %v4876_v58 = vsel %vm4869_vm5, %v4873_v43, %v4875_v61  ;;  %v4879_v43 = vrot.slane %v13541_v44, 6 }
 0x5f0   :  { %4754 = vmatmul.mubr.f32.gmra.mrb[154].mxu1 %v4453_v39  ;;  %v9054_v39 = vld [vmem:[%s15890_s4 + $0x478] sm:$0xff] }
 0x5f1   :  { %4759 = vmatprep.mubr.f32.mxu1 %v15900_v3  ;;  %v10364_v31 = vpack.c.bf16 %v9054_v39, %v9052_v34  ;;  %v9064_v34 = vld [vmem:[%s15890_s4 + $0x4c8] sm:$0xff]  ;;  %v9066_v39 = vld [vmem:[%s15890_s4 + $0x4d8] sm:$0xff] }
 0x5f4   :  { %4760 = vmatmul.mubr.f32.gmra.mrb[156].mxu1 %v4455_v24  ;;  %v9053_v24 = vld [vmem:[%s15890_s4 + $0x470] sm:$0xff] }
 0x5f5   :  { %5040 = vmatprep.mubr.f32.mxu1 %v15900_v3 }
 0x5f8   :  { %5041 = vmatmul.mubr.f32.vlgmr.msra.gmra.mrb[88].mxu1 %v4872_v60  ;;  %v4878_v60 = vsel %vm4869_vm5, %v4875_v61, %v4877_v19  ;;  %v4881_v61 = vrot.slane %v13558_v12, 6 }
 0x5f9   :  { %5046 = vmatprep.mubr.f32.mxu1 %v15900_v3  ;;  %10355 = vmatpush1.bf16.msra.mxu1 %v10354_v57  ;;  %v10366_v57 = vpack.c.bf16 %v9053_v24, %v9051_v10  ;;  %v9063_v10 = vld [vmem:[%s15890_s4 + $0x4c0] sm:$0xff]  ;;  %v9065_v24 = vld [vmem:[%s15890_s4 + $0x4d0] sm:$0xff] }
 0x5fa   :  { %10357 = vmatprep.subr.bf16.mxu1 %v10356_v59  ;;  %v10368_v59 = vpack.c.bf16 %v9058_v53, %v9056_v8  ;;  %v9068_v8 = vld [vmem:[%s15890_s4 + $0x4e8] sm:$0xff]  ;;  %v9070_v53 = vld [vmem:[%s15890_s4 + $0x4f8] sm:$0xff] }
 0x5fc   :  { %5047 = vmatmul.mubr.f32.gmra.mrb[90].mxu1 %v4874_v29  ;;  %v4880_v29 = vsel %vm4869_vm5, %v4877_v19, %v4879_v43  ;;  %v4883_v19 = vrot.slane %v13575_v56, 6 }
 0x5fd   :  { %5052 = vmatprep.mubr.f32.mxu1 %v15900_v3  ;;  %10359 = vmatpush1.bf16.msra.mxu1 %v10358_v46  ;;  %v10370_v46 = vpack.c.bf16 %v9057_v18, %v9055_v30  ;;  %v9067_v30 = vld [vmem:[%s15890_s4 + $0x4e0] sm:$0xff]  ;;  %v9069_v18 = vld [vmem:[%s15890_s4 + $0x4f0] sm:$0xff] }
 0x5fe   :  { %10361 = vmatprep.subr.bf16.mxu1 %v10360_v47  ;;  %v10372_v47 = vpack.c.bf16 %v9062_v51, %v9060_v21  ;;  %v10382_v21 = vpack.c.bf16 %v9069_v18, %v9067_v30  ;;  %v4905_v30 = vrot.slane %v13690_v25, 6 }
 0x600   :  { %5053 = vmatmul.mubr.f32.gmra.mrb[92].mxu1 %v4876_v58  ;;  %v4882_v58 = vsel %vm4869_vm5, %v4879_v43, %v4881_v61  ;;  %v4885_v43 = vrot.slane %v13592_v2, 6 }
 0x601   :  { %5058 = vmatprep.mubr.f32.mxu1 %v15900_v3  ;;  %10363 = vmatpush1.bf16.msra.mxu1 %v10362_v0  ;;  %v10374_v0 = vpack.c.bf16 %v9061_v41, %v9059_v1  ;;  %v4889_v1 = vrot.slane %v13626_v40, 6 }
 0x602   :  { %10365 = vmatprep.subr.bf16.mxu1 %v10364_v31  ;;  %v10376_v31 = vpack.c.bf16 %v9066_v39, %v9064_v34  ;;  %v4886_v51 = vsel %vm4869_vm5, %v4883_v19, %v4885_v43  ;;  %v4893_v34 = vrot.slane %v13660_v35, 6 }
 0x604   :  { %5059 = vmatmul.mubr.f32.gmra.mrb[94].mxu1 %v4878_v60  ;;  %v4884_v60 = vsel %vm4869_vm5, %v4881_v61, %v4883_v19 }
 0x605   :  { %5064 = vmatprep.mubr.f32.mxu1 %v15900_v3  ;;  %10367 = vmatpush1.bf16.msra.mxu1 %v10366_v57  ;;  %v10378_v57 = vpack.c.bf16 %v9065_v24, %v9063_v10  ;;  %v4897_v10 = vrot.slane %v13670_v13, 6 }
 0x606   :  { %10369 = vmatprep.subr.bf16.mxu1 %v10368_v59  ;;  %v10380_v59 = vpack.c.bf16 %v9070_v53, %v9068_v8  ;;  %v4901_v8 = vrot.slane %v13680_v37, 6 }
 0x608   :  { %5065 = vmatmul.mubr.f32.gmra.mrb[96].mxu1 %v4880_v29  ;;  %v4891_v29 = vrot.slane %v13643_v22, 6 }
 0x609   :  { %5070 = vmatprep.mubr.f32.mxu1 %v15900_v3  ;;  %10371 = vmatpush1.bf16.msra.mxu1 %v10370_v46  ;;  %v4887_v46 = vrot.slane %v13609_v33, 6 }
 0x60a   :  { %10373 = vmatprep.subr.bf16.mxu1 %v10372_v47  ;;  %v4892_v61 = vsel %vm4869_vm5, %v4889_v1, %v4891_v29  ;;  %v4894_v39 = vsel %vm4869_vm5, %v4891_v29, %v4893_v34  ;;  %v4915_v29 = vrot.slane %v13715_v36, 6 }
 0x60b   :  { %v4888_v47 = vsel %vm4869_vm5, %v4885_v43, %v4887_v46  ;;  %v4890_v41 = vsel %vm4869_vm5, %v4887_v46, %v4889_v1  ;;  %v4911_v46 = vrot.slane %v13705_v23, 6  ;;  %v4913_v1 = vrot.slane %v13710_v15, 6 }
 0x60c   :  { %5071 = vmatmul.mubr.f32.gmra.mrb[98].mxu1 %v4882_v58  ;;  %v4899_v58 = vrot.slane %v13675_v20, 6 }
 0x60d   :  { %5076 = vmatprep.mubr.f32.mxu1 %v15900_v3  ;;  %10375 = vmatpush1.bf16.msra.mxu1 %v10374_v0  ;;  %v4895_v0 = vrot.slane %v13665_v16, 6 }
 0x60e   :  { %10377 = vmatprep.subr.bf16.mxu1 %v10376_v31  ;;  %v4900_v19 = vsel %vm4869_vm5, %v4897_v10, %v4899_v58  ;;  %v4902_v53 = vsel %vm4869_vm5, %v4899_v58, %v4901_v8  ;;  %v4923_v58 = vrot.slane %v13735_v38, 6 }
 0x60f   :  { %v4896_v31 = vsel %vm4869_vm5, %v4893_v34, %v4895_v0  ;;  %v4898_v24 = vsel %vm4869_vm5, %v4895_v0, %v4897_v10  ;;  %v4917_v34 = vrot.slane %v13720_v48, 6  ;;  %v4919_v0 = vrot.slane %v13725_v6, 6 }
 0x610   :  { %5077 = vmatmul.mubr.f32.gmra.mrb[100].mxu1 %v4884_v60  ;;  %v4907_v60 = vrot.slane %v13695_v26, 6  ;;  %v4921_v10 = vrot.slane %v13730_v55, 6 }
 0x611   :  { %5082 = vmatprep.mubr.f32.mxu1 %v15900_v3  ;;  %10379 = vmatpush1.bf16.msra.mxu1 %v10378_v57  ;;  %v4903_v57 = vrot.slane %v13685_v4, 6 }
 0x612   :  { %10381 = vmatprep.subr.bf16.mxu1 %v10380_v59  ;;  %v4908_v43 = vsel %vm4869_vm5, %v4905_v30, %v4907_v60 }
 0x613   :  { %v4904_v59 = vsel %vm4869_vm5, %v4901_v8, %v4903_v57  ;;  %v4906_v18 = vsel %vm4869_vm5, %v4903_v57, %v4905_v30  ;;  %v4925_v8 = vrot.slane %v13742_v62, 6  ;;  %v4927_v57 = vrot.slane %v13745_v28, 6 }
 0x614   :  { %5083 = vmatmul.mubr.f32.gmra.mrb[102].mxu1 %v4886_v51  ;;  %v4929_v30 = vrot.slane %v13750_v52, 6 }
 0x615   :  { %5088 = vmatprep.mubr.f32.mxu1 %v15900_v3  ;;  %10383 = vmatpush1.bf16.msra.mxu1 %v10382_v21  ;;  %v4909_v21 = vrot.slane %v13700_v14, 6 }
 0x617   :  { %v4910_v51 = vsel %vm4869_vm5, %v4907_v60, %v4909_v21  ;;  %v4931_v60 = vrot.slane %v13755_v54, 6 }
 0x618   :  { %5089 = vmatmul.mubr.f32.gmra.mrb[104].mxu1 %v4888_v47  ;;  %v4912_v47 = vsel %vm4869_vm5, %v4909_v21, %v4911_v46  ;;  %v4933_v21 = vrot.slane %v13766_v5, 6 }
 0x619   :  { %5094 = vmatprep.mubr.f32.mxu1 %v15900_v3 }
 0x61c   :  { %5095 = vmatmul.mubr.f32.gmra.mrb[106].mxu1 %v4890_v41  ;;  %v4914_v41 = vsel %vm4869_vm5, %v4911_v46, %v4913_v1  ;;  %v4935_v46 = vrot.slane %v13771_v45, 6 }
 0x61d   :  { %5100 = vmatprep.mubr.f32.mxu1 %v15900_v3 }
 0x620   :  { %5101 = vmatmul.mubr.f32.gmra.mrb[108].mxu1 %v4892_v61  ;;  %v4916_v61 = vsel %vm4869_vm5, %v4913_v1, %v4915_v29  ;;  %v4937_v1 = vrot.slane %v13776_v32, 6 }
 0x621   :  { %5106 = vmatprep.mubr.f32.mxu1 %v15900_v3 }
 0x624   :  { %5107 = vmatmul.mubr.f32.gmra.mrb[110].mxu1 %v4894_v39  ;;  %v4918_v39 = vsel %vm4869_vm5, %v4915_v29, %v4917_v34  ;;  %v4939_v29 = vrot.slane %v13781_v42, 6 }
 0x625   :  { %5112 = vmatprep.mubr.f32.mxu1 %v15900_v3 }
 0x628   :  { %5113 = vmatmul.mubr.f32.gmra.mrb[112].mxu1 %v4896_v31  ;;  %v4920_v31 = vsel %vm4869_vm5, %v4917_v34, %v4919_v0  ;;  %v6335_v34 = vld [vmem:[%s15891_s6] sm:$0xff] }
 0x629   :  { %5118 = vmatprep.mubr.f32.mxu1 %v15900_v3 }
 0x62c   :  { %5119 = vmatmul.mubr.f32.gmra.mrb[114].mxu1 %v4898_v24  ;;  %v4922_v24 = vsel %vm4869_vm5, %v4919_v0, %v4921_v10 }
 0x62d   :  { %5124 = vmatprep.mubr.f32.mxu1 %v15900_v3 }
 0x630   :  { %5125 = vmatmul.mubr.f32.gmra.mrb[116].mxu1 %v4900_v19  ;;  %v4924_v19 = vsel %vm4869_vm5, %v4921_v10, %v4923_v58  ;;  %v6340_v10 = vld [vmem:[%s15891_s6 + $0x28] sm:$0xff] }
 0x631   :  { %5130 = vmatprep.mubr.f32.mxu1 %v15900_v3 }
 0x634   :  { %5131 = vmatmul.mubr.f32.gmra.mrb[118].mxu1 %v4902_v53  ;;  %v4926_v53 = vsel %vm4869_vm5, %v4923_v58, %v4925_v8  ;;  %v6342_v58 = vld [vmem:[%s15891_s6 + $0x38] sm:$0xff] }
 0x635   :  { %5136 = vmatprep.mubr.f32.mxu1 %v15900_v3 }
 0x638   :  { %5137 = vmatmul.mubr.f32.gmra.mrb[120].mxu1 %v4904_v59  ;;  %v4928_v59 = vsel %vm4869_vm5, %v4925_v8, %v4927_v57  ;;  %v6344_v8 = vld [vmem:[%s15891_s6 + $0x48] sm:$0xff] }
 0x639   :  { %5142 = vmatprep.mubr.f32.mxu1 %v15900_v3 }
 0x63c   :  { %5143 = vmatmul.mubr.f32.gmra.mrb[122].mxu1 %v4906_v18  ;;  %v4930_v18 = vsel %vm4869_vm5, %v4927_v57, %v4929_v30  ;;  %v6346_v57 = vld [vmem:[%s15891_s6 + $0x58] sm:$0xff] }
 0x63d   :  { %5148 = vmatprep.mubr.f32.mxu1 %v15900_v3 }
 0x640   :  { %5149 = vmatmul.mubr.f32.gmra.mrb[124].mxu1 %v4908_v43  ;;  %v4932_v43 = vsel %vm4869_vm5, %v4929_v30, %v4931_v60 }
 0x641   :  { %5154 = vmatprep.mubr.f32.mxu1 %v15900_v3 }
 0x644   :  { %5155 = vmatmul.mubr.f32.gmra.mrb[126].mxu1 %v4910_v51  ;;  %v4934_v51 = vsel %vm4869_vm5, %v4931_v60, %v4933_v21  ;;  %v9105_v60 = vld [vmem:[%s15891_s6 + $0xa0] sm:$0xff] }
 0x645   :  { %5160 = vmatprep.mubr.f32.mxu1 %v15900_v3 }
 0x648   :  { %5161 = vmatmul.mubr.f32.gmra.mrb[128].mxu1 %v4912_v47  ;;  %v4936_v47 = vsel %vm4869_vm5, %v4933_v21, %v4935_v46 }
 0x649   :  { %5166 = vmatprep.mubr.f32.mxu1 %v15900_v3 }
 0x64c   :  { %5167 = vmatmul.mubr.f32.gmra.mrb[130].mxu1 %v4914_v41  ;;  %v4938_v41 = vsel %vm4869_vm5, %v4935_v46, %v4937_v1 }
 0x64d   :  { %5172 = vmatprep.mubr.f32.mxu1 %v15900_v3 }
 0x650   :  { %5173 = vmatmul.mubr.f32.gmra.mrb[132].mxu1 %v4916_v61  ;;  %v4940_v61 = vsel %vm4869_vm5, %v4937_v1, %v4939_v29 }
 0x651   :  { %5178 = vmatprep.mubr.f32.mxu1 %v15900_v3 }
 0x654   :  { %5179 = vmatmul.mubr.f32.gmra.mrb[134].mxu1 %v4918_v39  ;;  %v6336_v39 = vld [vmem:[%s15891_s6 + $0x8] sm:$0xff] }
 0x655   :  { %5184 = vmatprep.mubr.f32.mxu1 %v15900_v3  ;;  %v10385_v0 = vpack.c.bf16 %v6336_v39, %v6335_v34 }
 0x657   :  { %10386 = vmatpush1.bf16.msra.mxu0 %v10385_v0 }
 0x658   :  { %5185 = vmatmul.mubr.f32.gmra.mrb[136].mxu1 %v4920_v31  ;;  %10387 = vmatprep.subr.bf16.mxu0 %v15902_v27  ;;  %v6339_v31 = vld [vmem:[%s15891_s6 + $0x20] sm:$0xff] }
 0x659   :  { %5190 = vmatprep.mubr.f32.mxu1 %v15900_v3 }
 0x65c   :  { %5191 = vmatmul.mubr.f32.gmra.mrb[138].mxu1 %v4922_v24  ;;  %v10391_v24 = vpack.c.bf16 %v6340_v10, %v6339_v31 }
 0x65d   :  { %5196 = vmatprep.mubr.f32.mxu1 %v15900_v3 }
 0x660   :  { %5197 = vmatmul.mubr.f32.gmra.mrb[140].mxu1 %v4924_v19 }
 0x661   :  { %5202 = vmatprep.mubr.f32.mxu1 %v15900_v3 }
 0x664   :  { %5203 = vmatmul.mubr.f32.gmra.mrb[142].mxu1 %v4926_v53 }
 0x665   :  { %5208 = vmatprep.mubr.f32.mxu1 %v15900_v3 }
 0x668   :  { %5209 = vmatmul.mubr.f32.gmra.mrb[144].mxu1 %v4928_v59 }
 0x669   :  { %5214 = vmatprep.mubr.f32.mxu1 %v15900_v3 }
 0x66c   :  { %5215 = vmatmul.mubr.f32.gmra.mrb[146].mxu1 %v4930_v18 }
 0x66d   :  { %5220 = vmatprep.mubr.f32.mxu1 %v15900_v3 }
 0x670   :  { %5221 = vmatmul.mubr.f32.gmra.mrb[148].mxu1 %v4932_v43  ;;  %v9106_v43 = vld [vmem:[%s15891_s6 + $0xa8] sm:$0xff] }
 0x671   :  { %5226 = vmatprep.mubr.f32.mxu1 %v15900_v3 }
 0x674   :  { %5227 = vmatmul.mubr.f32.gmra.mrb[150].mxu1 %v4934_v51 }
 0x675   :  { %5232 = vmatprep.mubr.f32.mxu1 %v15900_v3 }
 0x678   :  { %5233 = vmatmul.mubr.f32.gmra.mrb[152].mxu1 %v4936_v47 }
 0x679   :  { %5238 = vmatprep.mubr.f32.mxu1 %v15900_v3 }
 0x67c   :  { %5239 = vmatmul.mubr.f32.gmra.mrb[154].mxu1 %v4938_v41 }
 0x67d   :  { %5244 = vmatprep.mubr.f32.mxu1 %v15900_v3 }
 0x680   :  { %5245 = vmatmul.mubr.f32.gmra.mrb[156].mxu1 %v4940_v61 }
 0x681   :  { %5418 = vmatprep.mubr.f32.mxu1 %v15900_v3 }
 0x684   :  { %5419 = vmatmul.mubr.f32.vlgmr.msra.gmra.mrb[88].mxu1 %v13510_v50  ;;  %v6337_v50 = vld [vmem:[%s15891_s6 + $0x10] sm:$0xff] }
 0x685   :  { %5424 = vmatprep.mubr.f32.mxu1 %v15900_v3 }
 0x688   :  { %5425 = vmatmul.mubr.f32.gmra.mrb[90].mxu1 %v13514_v49  ;;  %v6338_v49 = vld [vmem:[%s15891_s6 + $0x18] sm:$0xff] }
 0x689   :  { %5430 = vmatprep.mubr.f32.mxu1 %v15900_v3 }
 0x68c   :  { %5431 = vmatmul.mubr.f32.gmra.mrb[92].mxu1 %v13519_v17  ;;  %v10388_v17 = vpack.c.bf16 %v6338_v49, %v6337_v50  ;;  %v10415_v50 = vpack.c.bf16 %v9106_v43, %v9105_v60 }
 0x68d   :  { %5436 = vmatprep.mubr.f32.mxu1 %v15900_v3 }
 0x68e   :  { %10389 = vmatpush1.bf16.msra.mxu0 %v10388_v17 }
 0x68f   :  { %10390 = vmatprep.subr.bf16.mxu0 %v15902_v27 }
 0x690   :  { %5437 = vmatmul.mubr.f32.gmra.mrb[94].mxu1 %v13524_v7  ;;  %v6341_v7 = vld [vmem:[%s15891_s6 + $0x30] sm:$0xff] }
 0x691   :  { %5442 = vmatprep.mubr.f32.mxu1 %v15900_v3  ;;  %v10394_v19 = vpack.c.bf16 %v6342_v58, %v6341_v7  ;;  %v9108_v7 = vld [vmem:[%s15891_s6 + $0xb8] sm:$0xff] }
 0x692   :  { %10392 = vmatpush1.bf16.msra.mxu0 %v10391_v24  ;;  %v9107_v24 = vld [vmem:[%s15891_s6 + $0xb0] sm:$0xff] }
 0x693   :  { %10393 = vmatprep.subr.bf16.mxu0 %v15902_v27 }
 0x694   :  { %5443 = vmatmul.mubr.f32.gmra.mrb[96].mxu1 %v13541_v44  ;;  %v6343_v44 = vld [vmem:[%s15891_s6 + $0x40] sm:$0xff] }
 0x695   :  { %5448 = vmatprep.mubr.f32.mxu1 %v15900_v3  ;;  %v10397_v53 = vpack.c.bf16 %v6344_v8, %v6343_v44 }
 0x696   :  { %10395 = vmatpush1.bf16.msra.mxu0 %v10394_v19 }
 0x697   :  { %10396 = vmatprep.subr.bf16.mxu0 %v15902_v27 }
 0x698   :  { %5449 = vmatmul.mubr.f32.gmra.mrb[98].mxu1 %v13558_v12  ;;  %v6345_v12 = vld [vmem:[%s15891_s6 + $0x50] sm:$0xff] }
 0x699   :  { %5454 = vmatprep.mubr.f32.mxu1 %v15900_v3  ;;  %v10400_v59 = vpack.c.bf16 %v6346_v57, %v6345_v12 }
 0x69a   :  { %10398 = vmatpush1.bf16.msra.mxu0 %v10397_v53 }
 0x69b   :  { %10399 = vmatprep.subr.bf16.mxu0 %v15902_v27 }
 0x69c   :  { %5455 = vmatmul.mubr.f32.gmra.mrb[100].mxu1 %v13575_v56  ;;  %v6347_v56 = vld [vmem:[%s15891_s6 + $0x60] sm:$0xff] }
 0x69d   :  { %5460 = vmatprep.mubr.f32.mxu1 %v15900_v3 }
 0x69e   :  { %10401 = vmatpush1.bf16.msra.mxu0 %v10400_v59 }
 0x69f   :  { %10402 = vmatprep.subr.bf16.mxu0 %v15902_v27 }
 0x6a0   :  { %5461 = vmatmul.mubr.f32.gmra.mrb[102].mxu1 %v13592_v2  ;;  %v6348_v2 = vld [vmem:[%s15891_s6 + $0x68] sm:$0xff] }
 0x6a1   :  { %5466 = vmatprep.mubr.f32.mxu1 %v15900_v3 }
 0x6a4   :  { %5467 = vmatmul.mubr.f32.gmra.mrb[104].mxu1 %v13609_v33  ;;  %v10403_v33 = vpack.c.bf16 %v6348_v2, %v6347_v56  ;;  %v10418_v2 = vpack.c.bf16 %v9108_v7, %v9107_v24 }
 0x6a5   :  { %5472 = vmatprep.mubr.f32.mxu1 %v15900_v3 }
 0x6a6   :  { %10404 = vmatpush1.bf16.msra.mxu0 %v10403_v33 }
 0x6a7   :  { %10405 = vmatprep.subr.bf16.mxu0 %v15902_v27 }
 0x6a8   :  { %5473 = vmatmul.mubr.f32.gmra.mrb[106].mxu1 %v13626_v40  ;;  %v6349_v40 = vld [vmem:[%s15891_s6 + $0x70] sm:$0xff] }
 0x6a9   :  { %5478 = vmatprep.mubr.f32.mxu1 %v15900_v3 }
 0x6ac   :  { %5479 = vmatmul.mubr.f32.gmra.mrb[108].mxu1 %v13643_v22  ;;  %v6350_v22 = vld [vmem:[%s15891_s6 + $0x78] sm:$0xff] }
 0x6ad   :  { %5484 = vmatprep.mubr.f32.mxu1 %v15900_v3 }
 0x6b0   :  { %5485 = vmatmul.mubr.f32.gmra.mrb[110].mxu1 %v13660_v35  ;;  %v10406_v35 = vpack.c.bf16 %v6350_v22, %v6349_v40 }
 0x6b1   :  { %5490 = vmatprep.mubr.f32.mxu1 %v15900_v3 }
 0x6b2   :  { %10407 = vmatpush1.bf16.msra.mxu0 %v10406_v35 }
 0x6b3   :  { %10408 = vmatprep.subr.bf16.mxu0 %v15902_v27 }
 0x6b4   :  { %5491 = vmatmul.mubr.f32.gmra.mrb[112].mxu1 %v13665_v16  ;;  %v6351_v16 = vld [vmem:[%s15891_s6 + $0x80] sm:$0xff] }
 0x6b5   :  { %5496 = vmatprep.mubr.f32.mxu1 %v15900_v3 }
 0x6b8   :  { %5497 = vmatmul.mubr.f32.gmra.mrb[114].mxu1 %v13670_v13  ;;  %v6352_v13 = vld [vmem:[%s15891_s6 + $0x88] sm:$0xff] }
 0x6b9   :  { %5502 = vmatprep.mubr.f32.mxu1 %v15900_v3 }
 0x6bc   :  { %5503 = vmatmul.mubr.f32.gmra.mrb[116].mxu1 %v13675_v20  ;;  %v10409_v20 = vpack.c.bf16 %v6352_v13, %v6351_v16  ;;  %v9109_v13 = vld [vmem:[%s15891_s6 + $0xc0] sm:$0xff] }
 0x6bd   :  { %5508 = vmatprep.mubr.f32.mxu1 %v15900_v3 }
 0x6be   :  { %10410 = vmatpush1.bf16.msra.mxu0 %v10409_v20  ;;  %v9110_v20 = vld [vmem:[%s15891_s6 + $0xc8] sm:$0xff] }
 0x6bf   :  { %10411 = vmatprep.subr.bf16.mxu0 %v15902_v27 }
 0x6c0   :  { %5509 = vmatmul.mubr.f32.gmra.mrb[118].mxu1 %v13680_v37  ;;  %v6353_v37 = vld [vmem:[%s15891_s6 + $0x90] sm:$0xff] }
 0x6c1   :  { %5514 = vmatprep.mubr.f32.mxu1 %v15900_v3 }
 0x6c4   :  { %5515 = vmatmul.mubr.f32.gmra.mrb[120].mxu1 %v13685_v4  ;;  %v6354_v4 = vld [vmem:[%s15891_s6 + $0x98] sm:$0xff] }
 0x6c5   :  { %5520 = vmatprep.mubr.f32.mxu1 %v15900_v3 }
 0x6c8   :  { %5521 = vmatmul.mubr.f32.gmra.mrb[122].mxu1 %v13690_v25  ;;  %v10412_v25 = vpack.c.bf16 %v6354_v4, %v6353_v37 }
 0x6c9   :  { %5526 = vmatprep.mubr.f32.mxu1 %v15900_v3 }
 0x6ca   :  { %10413 = vmatpush1.bf16.msra.mxu0 %v10412_v25 }
 0x6cb   :  { %10414 = vmatprep.subr.bf16.mxu0 %v15902_v27 }
 0x6cc   :  { %5527 = vmatmul.mubr.f32.gmra.mrb[124].mxu1 %v13695_v26  ;;  %v5699_v26 = vld [vmem:[%s15892_s5] sm:$0x3] }
 0x6cd   :  { %5532 = vmatprep.mubr.f32.mxu1 %v15900_v3 }
 0x6d0   :  { %5533 = vmatmul.mubr.f32.gmra.mrb[126].mxu1 %v13700_v14  ;;  %v14496_v14 = vrot.slane %v5699_v26, %v2397_v9 }
 0x6d1   :  { %5538 = vmatprep.mubr.f32.mxu1 %v15900_v3 }
 0x6d4   :  { %5539 = vmatmul.mubr.f32.gmra.mrb[128].mxu1 %v13705_v23  ;;  %v14500_v23 = vrot.slane %v5699_v26, %v2401_v11 }
 0x6d5   :  { %5544 = vmatprep.mubr.f32.mxu1 %v15900_v3 }
 0x6d8   :  { %5545 = vmatmul.mubr.f32.gmra.mrb[130].mxu1 %v13710_v15 }
 0x6d9   :  { %5550 = vmatprep.mubr.f32.mxu1 %v15900_v3 }
 0x6dc   :  { %5551 = vmatmul.mubr.f32.gmra.mrb[132].mxu1 %v13715_v36 }
 0x6dd   :  { %5556 = vmatprep.mubr.f32.mxu1 %v15900_v3 }
 0x6e0   :  { %5557 = vmatmul.mubr.f32.gmra.mrb[134].mxu1 %v13720_v48 }
 0x6e1   :  { %5562 = vmatprep.mubr.f32.mxu1 %v15900_v3 }
 0x6e4   :  { %5563 = vmatmul.mubr.f32.gmra.mrb[136].mxu1 %v13725_v6 }
 0x6e5   :  { %5568 = vmatprep.mubr.f32.mxu1 %v15900_v3 }
 0x6e8   :  { %5569 = vmatmul.mubr.f32.gmra.mrb[138].mxu1 %v13730_v55 }
 0x6e9   :  { %5574 = vmatprep.mubr.f32.mxu1 %v15900_v3 }
 0x6ec   :  { %5575 = vmatmul.mubr.f32.gmra.mrb[140].mxu1 %v13735_v38 }
 0x6ed   :  { %5580 = vmatprep.mubr.f32.mxu1 %v15900_v3 }
 0x6f0   :  { %5581 = vmatmul.mubr.f32.gmra.mrb[142].mxu1 %v13742_v62 }
 0x6f1   :  { %5586 = vmatprep.mubr.f32.mxu1 %v15900_v3 }
 0x6f4   :  { %5587 = vmatmul.mubr.f32.gmra.mrb[144].mxu1 %v13745_v28 }
 0x6f5   :  { %5592 = vmatprep.mubr.f32.mxu1 %v15900_v3 }
 0x6f8   :  { %5593 = vmatmul.mubr.f32.gmra.mrb[146].mxu1 %v13750_v52 }
 0x6f9   :  { %5598 = vmatprep.mubr.f32.mxu1 %v15900_v3 }
 0x6fc   :  { %5599 = vmatmul.mubr.f32.gmra.mrb[148].mxu1 %v13755_v54 }
 0x6fd   :  { %5604 = vmatprep.mubr.f32.mxu1 %v15900_v3 }
 0x700   :  { %5605 = vmatmul.mubr.f32.gmra.mrb[150].mxu1 %v13766_v5 }
 0x701   :  { %5610 = vmatprep.mubr.f32.mxu1 %v15900_v3 }
 0x704   :  { %5611 = vmatmul.mubr.f32.gmra.mrb[152].mxu1 %v13771_v45 }
 0x705   :  { %5616 = vmatprep.mubr.f32.mxu1 %v15900_v3 }
 0x708   :  { %5617 = vmatmul.mubr.f32.gmra.mrb[154].mxu1 %v13776_v32 }
 0x709   :  { %5622 = vmatprep.mubr.f32.mxu1 %v15900_v3 }
 0x70c   :  { %5623 = vmatmul.mubr.f32.gmra.mrb[156].mxu1 %v13781_v42 }
 0x757   :  { %v5420_v15 = vpop.f32.mrb[88].mxu1 }
 0x758   :  { %v5711_v36 = vadd.f32 %v14496_v14, %v5420_v15  ;;  %v5422_v48 = vpop.f32.mrb[89].mxu1 }
 0x759   :  { %v5712_v6 = vadd.f32 %v14500_v23, %v5422_v48 }
 0x75a   :  { %v5851_v55 = vmul.f32 0.01, %v5711_v36  ;;  %vm5781_vm6 = vcmp.gt.f32.partialorder %v5711_v36, 0.0 }
 0x75b   :  { %v5852_v38 = vmul.f32 0.01, %v5712_v6  ;;  %v5426_v62 = vpop.f32.mrb[90].mxu1  ;;  %vm5782_vm7 = vcmp.gt.f32.partialorder %v5712_v6, 0.0 }
 0x75c   :  { %v5713_v28 = vadd.f32 %v14496_v14, %v5426_v62  ;;  %v5428_v52 = vpop.f32.mrb[91].mxu1  ;;  %v5921_v54 = vsel %vm5781_vm6, %v5711_v36, %v5851_v55 }
 0x75d   :  { %v5714_v9 = vadd.f32 %v14500_v23, %v5428_v52  ;;  %v5922_v5 = vsel %vm5782_vm7, %v5712_v6, %v5852_v38  ;;  %v6061_v21 = vrot.slane %v5921_v54, 2  ;;  %v10421_v38 = vpack.c.bf16 %v9110_v20, %v9109_v13 }
 0x75e   :  { %vm5783_vm8 = vcmp.gt.f32.partialorder %v5713_v28, 0.0  ;;  %v5853_v11 = vmul.f32 0.01, %v5713_v28  ;;  %v6064_v1 = vrot.slane %v5922_v5, 2 }
 0x75f   :  { %vm5784_vm9 = vcmp.gt.f32.partialorder %v5714_v9, 0.0  ;;  %v5854_v45 = vmul.f32 0.01, %v5714_v9  ;;  %v5432_v32 = vpop.f32.mrb[92].mxu1 }
 0x760   :  { %v5923_v42 = vsel %vm5783_vm8, %v5713_v28, %v5853_v11  ;;  %v5715_v30 = vadd.f32 %v14496_v14, %v5432_v32  ;;  %v5434_v18 = vpop.f32.mrb[93].mxu1  ;;  %v9111_v11 = vld [vmem:[%s15891_s6 + $0xd0] sm:$0xff] }
 0x761   :  { %v6062_v51 = vrot.slane %v5923_v42, 2  ;;  %v5924_v46 = vsel %vm5784_vm9, %v5714_v9, %v5854_v45  ;;  %v5716_v47 = vadd.f32 %v14500_v23, %v5434_v18 }
 0x762   :  { %v6065_v41 = vrot.slane %v5924_v46, 2  ;;  %vm5785_vm11 = vcmp.gt.f32.partialorder %v5715_v30, 0.0  ;;  %v5855_v29 = vmul.f32 0.01, %v5715_v30 }
 0x763   :  { %v6063_v61 = vsel %vm905_vm1, %v6061_v21, %v6062_v51  ;;  %vm5786_vm12 = vcmp.gt.f32.partialorder %v5716_v47, 0.0  ;;  %v5856_v34 = vmul.f32 0.01, %v5716_v47  ;;  %v5438_v39 = vpop.f32.mrb[94].mxu1 }
 0x764   :  { %v14515_v0 = vmax.f32 %v5921_v54, %v6063_v61  ;;  %v5925_v49 = vsel %vm5785_vm11, %v5715_v30, %v5855_v29  ;;  %v5717_v17 = vadd.f32 %v14496_v14, %v5438_v39  ;;  %v5440_v31 = vpop.f32.mrb[95].mxu1  ;;  %v6066_v10 = vsel %vm905_vm1, %v6064_v1, %v6065_v41  ;;  %v9114_v39 = vld [vmem:[%s15891_s6 + $0xe8] sm:$0xff] }
 0x765   :  { %v6067_v58 = vrot.slane %v5925_v49, 2  ;;  %v5926_v19 = vsel %vm5786_vm12, %v5716_v47, %v5856_v34  ;;  %v5718_v44 = vadd.f32 %v14500_v23, %v5440_v31  ;;  %v14526_v8 = vmax.f32 %v5922_v5, %v6066_v10  ;;  %v9112_v5 = vld [vmem:[%s15891_s6 + $0xd8] sm:$0xff]  ;;  %v9113_v34 = vld [vmem:[%s15891_s6 + $0xe0] sm:$0xff] }
 0x766   :  { %v6069_v53 = vrot.slane %v5926_v19, 2  ;;  %vm5787_vm13 = vcmp.gt.f32.partialorder %v5717_v17, 0.0  ;;  %v5857_v12 = vmul.f32 0.01, %v5717_v17 }
 0x767   :  { %vm5788_vm14 = vcmp.gt.f32.partialorder %v5718_v44, 0.0  ;;  %v5858_v57 = vmul.f32 0.01, %v5718_v44  ;;  %v5444_v59 = vpop.f32.mrb[96].mxu1  ;;  %9071 = vmatprep.mubr.msk.f32.mxu0 %vm6355_vm10, %v14526_v8  ;;  %v6068_v56 = vsel %vm905_vm1, %v6062_v51, %v6067_v58 }
 0x768   :  { %v5927_v33 = vsel %vm5787_vm13, %v5717_v17, %v5857_v12  ;;  %v5719_v40 = vadd.f32 %v14496_v14, %v5444_v59  ;;  %v5446_v22 = vpop.f32.mrb[97].mxu1  ;;  %6523 = vmatmul.mubr.f32.vlgmr.msra.gmra.mrb[130].mxu0 %v14515_v0  ;;  %v6070_v35 = vsel %vm905_vm1, %v6065_v41, %v6069_v53  ;;  %v14534_v16 = vmax.f32 %v5923_v42, %v6068_v56 }
 0x769   :  { %v6071_v37 = vrot.slane %v5927_v33, 2  ;;  %v5928_v4 = vsel %vm5788_vm14, %v5718_v44, %v5858_v57  ;;  %v5720_v25 = vadd.f32 %v14500_v23, %v5446_v22  ;;  %v14543_v26 = vmax.f32 %v5924_v46, %v6070_v35  ;;  %10416 = vmatpush1.bf16.msra.mxu0 %v10415_v50 }
 0x76a   :  { %v6073_v15 = vrot.slane %v5928_v4, 2  ;;  %vm5789_vm15 = vcmp.gt.f32.partialorder %v5719_v40, 0.0  ;;  %v5859_v36 = vmul.f32 0.01, %v5719_v40  ;;  %10417 = vmatprep.subr.bf16.mxu0 %v15902_v27  ;;  %v10424_v46 = vpack.c.bf16 %v9112_v5, %v9111_v11 }
 0x76b   :  { %vm5790_vm0 = vcmp.gt.f32.partialorder %v5720_v25, 0.0  ;;  %v5860_v48 = vmul.f32 0.01, %v5720_v25  ;;  %v5450_v6 = vpop.f32.mrb[98].mxu1  ;;  %9072 = vmatprep.mubr.msk.f32.mxu0 %vm6355_vm10, %v14543_v26  ;;  %v6072_v55 = vsel %vm905_vm1, %v6067_v58, %v6071_v37  ;;  %v10427_v44 = vpack.c.bf16 %v9114_v39, %v9113_v34  ;;  %v9120_v34 = vld [vmem:[%s15891_s6 + $0x118] sm:$0xff] }
 0x76c   :  { %v5929_v62 = vsel %vm5789_vm15, %v5719_v40, %v5859_v36  ;;  %v5721_v28 = vadd.f32 %v14496_v14, %v5450_v6  ;;  %v5452_v52 = vpop.f32.mrb[99].mxu1  ;;  %6528 = vmatmul.mubr.f32.gmra.mrb[132].mxu0 %v14534_v16  ;;  %v6074_v9 = vsel %vm905_vm1, %v6069_v53, %v6073_v15  ;;  %v14552_v54 = vmax.f32 %v5925_v49, %v6072_v55 }
 0x76d   :  { %v6075_v45 = vrot.slane %v5929_v62, 2  ;;  %v5930_v32 = vsel %vm5790_vm0, %v5720_v25, %v5860_v48  ;;  %v5722_v42 = vadd.f32 %v14500_v23, %v5452_v52  ;;  %v14561_v30 = vmax.f32 %v5926_v19, %v6074_v9  ;;  %10419 = vmatpush1.bf16.msra.mxu0 %v10418_v2  ;;  %v9115_v2 = vld [vmem:[%s15891_s6 + $0xf0] sm:$0xff]  ;;  %v9118_v52 = vld [vmem:[%s15891_s6 + $0x108] sm:$0xff] }
 0x76e   :  { %v6077_v18 = vrot.slane %v5930_v32, 2  ;;  %vm5791_vm2 = vcmp.gt.f32.partialorder %v5721_v28, 0.0  ;;  %v5861_v60 = vmul.f32 0.01, %v5721_v28  ;;  %10420 = vmatprep.subr.bf16.mxu0 %v15902_v27 }
 0x76f   :  { %vm5792_vm4 = vcmp.gt.f32.partialorder %v5722_v42, 0.0  ;;  %v5862_v43 = vmul.f32 0.01, %v5722_v42  ;;  %v5456_v21 = vpop.f32.mrb[100].mxu1  ;;  %9073 = vmatprep.mubr.msk.f32.mxu0 %vm6355_vm10, %v14561_v30  ;;  %v6076_v51 = vsel %vm905_vm1, %v6071_v37, %v6075_v45 }
 0x770   :  { %v5931_v47 = vsel %vm5791_vm2, %v5721_v28, %v5861_v60  ;;  %v5723_v1 = vadd.f32 %v14496_v14, %v5456_v21  ;;  %v5458_v41 = vpop.f32.mrb[101].mxu1  ;;  %6533 = vmatmul.mubr.f32.gmra.mrb[134].mxu0 %v14552_v54  ;;  %v6078_v29 = vsel %vm905_vm1, %v6073_v15, %v6077_v18  ;;  %v14570_v61 = vmax.f32 %v5927_v33, %v6076_v51  ;;  %v9116_v33 = vld [vmem:[%s15891_s6 + $0xf8] sm:$0xff]  ;;  %v9117_v28 = vld [vmem:[%s15891_s6 + $0x100] sm:$0xff] }
 0x771   :  { %v6079_v50 = vrot.slane %v5931_v47, 2  ;;  %v5932_v49 = vsel %vm5792_vm4, %v5722_v42, %v5862_v43  ;;  %v5724_v17 = vadd.f32 %v14500_v23, %v5458_v41  ;;  %v14579_v31 = vmax.f32 %v5928_v4, %v6078_v29  ;;  %10422 = vmatpush1.bf16.msra.mxu0 %v10421_v38  ;;  %v9119_v29 = vld [vmem:[%s15891_s6 + $0x110] sm:$0xff] }
 0x772   :  { %v6081_v10 = vrot.slane %v5932_v49, 2  ;;  %vm5793_vm5 = vcmp.gt.f32.partialorder %v5723_v1, 0.0  ;;  %v5863_v24 = vmul.f32 0.01, %v5723_v1  ;;  %10423 = vmatprep.subr.bf16.mxu0 %v15902_v27  ;;  %v10430_v36 = vpack.c.bf16 %v9116_v33, %v9115_v2  ;;  %v9121_v33 = vld [vmem:[%s15891_s6 + $0x120] sm:$0xff] }
 0x773   :  { %vm5794_vm6 = vcmp.gt.f32.partialorder %v5724_v17, 0.0  ;;  %v5864_v7 = vmul.f32 0.01, %v5724_v17  ;;  %v5462_v58 = vpop.f32.mrb[102].mxu1  ;;  %9074 = vmatprep.mubr.msk.f32.mxu0 %vm6355_vm10, %v14579_v31  ;;  %v6080_v19 = vsel %vm905_vm1, %v6075_v45, %v6079_v50  ;;  %v10433_v21 = vpack.c.bf16 %v9118_v52, %v9117_v28 }
 0x774   :  { %v5933_v53 = vsel %vm5793_vm5, %v5723_v1, %v5863_v24  ;;  %v5725_v12 = vadd.f32 %v14496_v14, %v5462_v58  ;;  %v5464_v57 = vpop.f32.mrb[103].mxu1  ;;  %6538 = vmatmul.mubr.f32.gmra.mrb[136].mxu0 %v14570_v61  ;;  %v6082_v59 = vsel %vm905_vm1, %v6077_v18, %v6081_v10  ;;  %v14588_v56 = vmax.f32 %v5929_v62, %v6080_v19 }
 0x775   :  { %v6083_v40 = vrot.slane %v5933_v53, 2  ;;  %v5934_v22 = vsel %vm5794_vm6, %v5724_v17, %v5864_v7  ;;  %v5726_v35 = vadd.f32 %v14500_v23, %v5464_v57  ;;  %v14597_v13 = vmax.f32 %v5930_v32, %v6082_v59  ;;  %10425 = vmatpush1.bf16.msra.mxu0 %v10424_v46 }
 0x776   :  { %v6085_v20 = vrot.slane %v5934_v22, 2  ;;  %vm5795_vm7 = vcmp.gt.f32.partialorder %v5725_v12, 0.0  ;;  %v5865_v37 = vmul.f32 0.01, %v5725_v12  ;;  %10426 = vmatprep.subr.bf16.mxu0 %v15902_v27 }
 0x777   :  { %vm5796_vm8 = vcmp.gt.f32.partialorder %v5726_v35, 0.0  ;;  %v5866_v4 = vmul.f32 0.01, %v5726_v35  ;;  %v5468_v25 = vpop.f32.mrb[104].mxu1  ;;  %9075 = vmatprep.mubr.msk.f32.mxu0 %vm6355_vm10, %v14597_v13  ;;  %v6084_v15 = vsel %vm905_vm1, %v6079_v50, %v6083_v40 }
 0x778   :  { %v5935_v48 = vsel %vm5795_vm7, %v5725_v12, %v5865_v37  ;;  %v5727_v6 = vadd.f32 %v14496_v14, %v5468_v25  ;;  %v5470_v55 = vpop.f32.mrb[105].mxu1  ;;  %6543 = vmatmul.mubr.f32.gmra.mrb[138].mxu0 %v14588_v56  ;;  %v6086_v38 = vsel %vm905_vm1, %v6081_v10, %v6085_v20  ;;  %v14606_v62 = vmax.f32 %v5931_v47, %v6084_v15 }
 0x779   :  { %v6087_v9 = vrot.slane %v5935_v48, 2  ;;  %v5936_v11 = vsel %vm5796_vm8, %v5726_v35, %v5866_v4  ;;  %v5728_v5 = vadd.f32 %v14500_v23, %v5470_v55  ;;  %v14615_v45 = vmax.f32 %v5932_v49, %v6086_v38  ;;  %10428 = vmatpush1.bf16.msra.mxu0 %v10427_v44 }
 0x77a   :  { %v6089_v32 = vrot.slane %v5936_v11, 2  ;;  %vm5797_vm9 = vcmp.gt.f32.partialorder %v5727_v6, 0.0  ;;  %v5867_v42 = vmul.f32 0.01, %v5727_v6  ;;  %10429 = vmatprep.subr.bf16.mxu0 %v15902_v27  ;;  %v10436_v44 = vpack.c.bf16 %v9120_v34, %v9119_v29 }
 0x77b   :  { %vm5798_vm11 = vcmp.gt.f32.partialorder %v5728_v5, 0.0  ;;  %v5868_v18 = vmul.f32 0.01, %v5728_v5  ;;  %v5474_v60 = vpop.f32.mrb[106].mxu1  ;;  %9076 = vmatprep.mubr.msk.f32.mxu0 %vm6355_vm10, %v14615_v45  ;;  %v6088_v43 = vsel %vm905_vm1, %v6083_v40, %v6087_v9  ;;  %v9122_v40 = vld [vmem:[%s15891_s6 + $0x128] sm:$0xff] }
 0x77c   :  { %v5937_v51 = vsel %vm5797_vm9, %v5727_v6, %v5867_v42  ;;  %v5729_v46 = vadd.f32 %v14496_v14, %v5474_v60  ;;  %v5476_v47 = vpop.f32.mrb[107].mxu1  ;;  %6548 = vmatmul.mubr.f32.gmra.mrb[140].mxu0 %v14606_v62  ;;  %v6090_v1 = vsel %vm905_vm1, %v6085_v20, %v6089_v32  ;;  %v14624_v41 = vmax.f32 %v5933_v53, %v6088_v43 }
 0x77d   :  { %v6091_v39 = vrot.slane %v5937_v51, 2  ;;  %v5938_v50 = vsel %vm5798_vm11, %v5728_v5, %v5868_v18  ;;  %v5730_v49 = vadd.f32 %v14500_v23, %v5476_v47  ;;  %v14633_v17 = vmax.f32 %v5934_v22, %v6090_v1  ;;  %10431 = vmatpush1.bf16.msra.mxu0 %v10430_v36  ;;  %v9124_v5 = vld [vmem:[%s15891_s6 + $0x138] sm:$0xff] }
 0x77e   :  { %v6093_v10 = vrot.slane %v5938_v50, 2  ;;  %vm5799_vm12 = vcmp.gt.f32.partialorder %v5729_v46, 0.0  ;;  %v5869_v24 = vmul.f32 0.01, %v5729_v46  ;;  %10432 = vmatprep.subr.bf16.mxu0 %v15902_v27  ;;  %v10439_v6 = vpack.c.bf16 %v9122_v40, %v9121_v33 }
 0x77f   :  { %vm5800_vm13 = vcmp.gt.f32.partialorder %v5730_v49, 0.0  ;;  %v5870_v7 = vmul.f32 0.01, %v5730_v49  ;;  %v5480_v58 = vpop.f32.mrb[108].mxu1  ;;  %9077 = vmatprep.mubr.msk.f32.mxu0 %vm6355_vm10, %v14633_v17  ;;  %v6092_v19 = vsel %vm905_vm1, %v6087_v9, %v6091_v39 }
 0x780   :  { %v5939_v53 = vsel %vm5799_vm12, %v5729_v46, %v5869_v24  ;;  %v5731_v12 = vadd.f32 %v14496_v14, %v5480_v58  ;;  %v5482_v57 = vpop.f32.mrb[109].mxu1  ;;  %6553 = vmatmul.mubr.f32.gmra.mrb[142].mxu0 %v14624_v41  ;;  %v6094_v59 = vsel %vm905_vm1, %v6089_v32, %v6093_v10  ;;  %v14642_v2 = vmax.f32 %v5935_v48, %v6092_v19 }
 0x781   :  { %v6095_v22 = vrot.slane %v5939_v53, 2  ;;  %v5940_v35 = vsel %vm5800_vm13, %v5730_v49, %v5870_v7  ;;  %v5732_v20 = vadd.f32 %v14500_v23, %v5482_v57  ;;  %v14651_v37 = vmax.f32 %v5936_v11, %v6094_v59  ;;  %10434 = vmatpush1.bf16.msra.mxu0 %v10433_v21  ;;  %v9123_v11 = vld [vmem:[%s15891_s6 + $0x130] sm:$0xff] }
 0x782   :  { %v6097_v4 = vrot.slane %v5940_v35, 2  ;;  %vm5801_vm14 = vcmp.gt.f32.partialorder %v5731_v12, 0.0  ;;  %v5871_v25 = vmul.f32 0.01, %v5731_v12  ;;  %10435 = vmatprep.subr.bf16.mxu0 %v15902_v27  ;;  %v10442_v1 = vpack.c.bf16 %v9124_v5, %v9123_v11 }
 0x783   :  { %vm5802_vm15 = vcmp.gt.f32.partialorder %v5732_v20, 0.0  ;;  %v5872_v15 = vmul.f32 0.01, %v5732_v20  ;;  %v5486_v36 = vpop.f32.mrb[110].mxu1  ;;  %9078 = vmatprep.mubr.msk.f32.mxu0 %vm6355_vm10, %v14651_v37  ;;  %v6096_v48 = vsel %vm905_vm1, %v6091_v39, %v6095_v22 }
 0x784   :  { %v5941_v55 = vsel %vm5801_vm14, %v5731_v12, %v5871_v25  ;;  %v5733_v38 = vadd.f32 %v14496_v14, %v5486_v36  ;;  %v5488_v28 = vpop.f32.mrb[111].mxu1  ;;  %6558 = vmatmul.mubr.f32.gmra.mrb[144].mxu0 %v14642_v2  ;;  %v6098_v52 = vsel %vm905_vm1, %v6093_v10, %v6097_v4  ;;  %v14660_v9 = vmax.f32 %v5937_v51, %v6096_v48 }
 0x785   :  { %v6099_v32 = vrot.slane %v5941_v55, 2  ;;  %v5942_v42 = vsel %vm5802_vm15, %v5732_v20, %v5872_v15  ;;  %v5734_v18 = vadd.f32 %v14500_v23, %v5488_v28  ;;  %v14669_v60 = vmax.f32 %v5938_v50, %v6098_v52  ;;  %10437 = vmatpush1.bf16.msra.mxu0 %v10436_v44 }
 0x786   :  { %v6101_v43 = vrot.slane %v5942_v42, 2  ;;  %vm5803_vm0 = vcmp.gt.f32.partialorder %v5733_v38, 0.0  ;;  %v5873_v21 = vmul.f32 0.01, %v5733_v38  ;;  %10438 = vmatprep.subr.bf16.mxu0 %v15902_v27 }
 0x787   :  { %vm5804_vm2 = vcmp.gt.f32.partialorder %v5734_v18, 0.0  ;;  %v5874_v51 = vmul.f32 0.01, %v5734_v18  ;;  %v5492_v46 = vpop.f32.mrb[112].mxu1  ;;  %9079 = vmatprep.mubr.msk.f32.mxu0 %vm6355_vm10, %v14669_v60  ;;  %v6100_v47 = vsel %vm905_vm1, %v6095_v22, %v6099_v32 }
 0x788   :  { %v5943_v29 = vsel %vm5803_vm0, %v5733_v38, %v5873_v21  ;;  %v5735_v34 = vadd.f32 %v14496_v14, %v5492_v46  ;;  %v5494_v39 = vpop.f32.mrb[113].mxu1  ;;  %6563 = vmatmul.mubr.f32.gmra.mrb[146].mxu0 %v14660_v9  ;;  %v6102_v50 = vsel %vm905_vm1, %v6097_v4, %v6101_v43  ;;  %v14678_v49 = vmax.f32 %v5939_v53, %v6100_v47 }
 0x789   :  { %v6103_v10 = vrot.slane %v5943_v29, 2  ;;  %v5944_v24 = vsel %vm5804_vm2, %v5734_v18, %v5874_v51  ;;  %v5736_v7 = vadd.f32 %v14500_v23, %v5494_v39  ;;  %v14681_v58 = vmax.f32 %v5940_v35, %v6102_v50  ;;  %10440 = vmatpush1.bf16.msra.mxu0 %v10439_v6 }
 0x78a   :  { %v6105_v19 = vrot.slane %v5944_v24, 2  ;;  %vm5805_vm4 = vcmp.gt.f32.partialorder %v5735_v34, 0.0  ;;  %v5875_v44 = vmul.f32 0.01, %v5735_v34  ;;  %10441 = vmatprep.subr.bf16.mxu0 %v15902_v27 }
 0x78b   :  { %vm5806_vm5 = vcmp.gt.f32.partialorder %v5736_v7, 0.0  ;;  %v5876_v12 = vmul.f32 0.01, %v5736_v7  ;;  %v5498_v57 = vpop.f32.mrb[114].mxu1  ;;  %9080 = vmatprep.mubr.msk.f32.mxu0 %vm6355_vm10, %v14681_v58  ;;  %v6104_v53 = vsel %vm905_vm1, %v6099_v32, %v6103_v10 }
 0x78c   :  { %v5945_v59 = vsel %vm5805_vm4, %v5735_v34, %v5875_v44  ;;  %v5737_v33 = vadd.f32 %v14496_v14, %v5498_v57  ;;  %v5500_v40 = vpop.f32.mrb[115].mxu1  ;;  %6568 = vmatmul.mubr.f32.gmra.mrb[148].mxu0 %v14678_v49  ;;  %v6106_v22 = vsel %vm905_vm1, %v6101_v43, %v6105_v19  ;;  %v14690_v35 = vmax.f32 %v5941_v55, %v6104_v53 }
 0x78d   :  { %v6107_v20 = vrot.slane %v5945_v59, 2  ;;  %v5946_v4 = vsel %vm5806_vm5, %v5736_v7, %v5876_v12  ;;  %v5738_v25 = vadd.f32 %v14500_v23, %v5500_v40  ;;  %v14693_v15 = vmax.f32 %v5942_v42, %v6106_v22  ;;  %10443 = vmatpush1.bf16.msra.mxu0 %v10442_v1 }
 0x78e   :  { %v6109_v36 = vrot.slane %v5946_v4, 2  ;;  %vm5807_vm6 = vcmp.gt.f32.partialorder %v5737_v33, 0.0  ;;  %v5877_v48 = vmul.f32 0.01, %v5737_v33 }
 0x78f   :  { %vm5808_vm7 = vcmp.gt.f32.partialorder %v5738_v25, 0.0  ;;  %v5878_v6 = vmul.f32 0.01, %v5738_v25  ;;  %v5504_v38 = vpop.f32.mrb[116].mxu1  ;;  %9081 = vmatprep.mubr.msk.f32.mxu0 %vm6355_vm10, %v14693_v15  ;;  %v6108_v28 = vsel %vm905_vm1, %v6103_v10, %v6107_v20 }
 0x790   :  { %v5947_v55 = vsel %vm5807_vm6, %v5737_v33, %v5877_v48  ;;  %v5739_v52 = vadd.f32 %v14496_v14, %v5504_v38  ;;  %v5506_v11 = vpop.f32.mrb[117].mxu1  ;;  %6573 = vmatmul.mubr.f32.gmra.mrb[150].mxu0 %v14690_v35  ;;  %v6110_v5 = vsel %vm905_vm1, %v6105_v19, %v6109_v36  ;;  %v14701_v32 = vmax.f32 %v5943_v29, %v6108_v28 }
 0x791   :  { %v6111_v42 = vrot.slane %v5947_v55, 2  ;;  %v5948_v18 = vsel %vm5808_vm7, %v5738_v25, %v5878_v6  ;;  %v5740_v43 = vadd.f32 %v14500_v23, %v5506_v11  ;;  %v14704_v21 = vmax.f32 %v5944_v24, %v6110_v5 }
 0x792   :  { %v6113_v51 = vrot.slane %v5948_v18, 2  ;;  %vm5809_vm8 = vcmp.gt.f32.partialorder %v5739_v52, 0.0  ;;  %v5879_v46 = vmul.f32 0.01, %v5739_v52 }
 0x793   :  { %vm5810_vm9 = vcmp.gt.f32.partialorder %v5740_v43, 0.0  ;;  %v5880_v47 = vmul.f32 0.01, %v5740_v43  ;;  %v5510_v1 = vpop.f32.mrb[118].mxu1  ;;  %9082 = vmatprep.mubr.msk.f32.mxu0 %vm6355_vm10, %v14704_v21  ;;  %v6112_v34 = vsel %vm905_vm1, %v6107_v20, %v6111_v42 }
 0x794   :  { %v5949_v39 = vsel %vm5809_vm8, %v5739_v52, %v5879_v46  ;;  %v5741_v29 = vadd.f32 %v14496_v14, %v5510_v1  ;;  %v5512_v50 = vpop.f32.mrb[119].mxu1  ;;  %6578 = vmatmul.mubr.f32.gmra.mrb[152].mxu0 %v14701_v32  ;;  %v6114_v10 = vsel %vm905_vm1, %v6109_v36, %v6113_v51  ;;  %v14712_v24 = vmax.f32 %v5945_v59, %v6112_v34 }
 0x795   :  { %v6115_v7 = vrot.slane %v5949_v39, 2  ;;  %v5950_v19 = vsel %vm5810_vm9, %v5740_v43, %v5880_v47  ;;  %v5742_v44 = vadd.f32 %v14500_v23, %v5512_v50  ;;  %v14715_v12 = vmax.f32 %v5946_v4, %v6114_v10 }
 0x796   :  { %v6117_v57 = vrot.slane %v5950_v19, 2  ;;  %vm5811_vm11 = vcmp.gt.f32.partialorder %v5741_v29, 0.0  ;;  %v5881_v53 = vmul.f32 0.01, %v5741_v29 }
 0x797   :  { %vm5812_vm12 = vcmp.gt.f32.partialorder %v5742_v44, 0.0  ;;  %v5882_v33 = vmul.f32 0.01, %v5742_v44  ;;  %v5516_v40 = vpop.f32.mrb[120].mxu1  ;;  %9083 = vmatprep.mubr.msk.f32.mxu0 %vm6355_vm10, %v14715_v12  ;;  %v6116_v22 = vsel %vm905_vm1, %v6111_v42, %v6115_v7 }
 0x798   :  { %v5951_v20 = vsel %vm5811_vm11, %v5741_v29, %v5881_v53  ;;  %v5743_v59 = vadd.f32 %v14496_v14, %v5516_v40  ;;  %v5518_v25 = vpop.f32.mrb[121].mxu1  ;;  %6583 = vmatmul.mubr.f32.gmra.mrb[154].mxu0 %v14712_v24  ;;  %v6118_v4 = vsel %vm905_vm1, %v6113_v51, %v6117_v57  ;;  %v14723_v36 = vmax.f32 %v5947_v55, %v6116_v22 }
 0x799   :  { %v6119_v48 = vrot.slane %v5951_v20, 2  ;;  %v5952_v6 = vsel %vm5812_vm12, %v5742_v44, %v5882_v33  ;;  %v5744_v38 = vadd.f32 %v14500_v23, %v5518_v25  ;;  %v14726_v28 = vmax.f32 %v5948_v18, %v6118_v4 }
 0x79a   :  { %v6121_v52 = vrot.slane %v5952_v6, 2  ;;  %vm5813_vm13 = vcmp.gt.f32.partialorder %v5743_v59, 0.0  ;;  %v5883_v11 = vmul.f32 0.01, %v5743_v59 }
 0x79b   :  { %vm5814_vm14 = vcmp.gt.f32.partialorder %v5744_v38, 0.0  ;;  %v5884_v5 = vmul.f32 0.01, %v5744_v38  ;;  %v5522_v42 = vpop.f32.mrb[122].mxu1  ;;  %9084 = vmatprep.mubr.msk.f32.mxu0 %vm6355_vm10, %v14726_v28  ;;  %v6120_v43 = vsel %vm905_vm1, %v6115_v7, %v6119_v48 }
 0x79c   :  { %v5953_v51 = vsel %vm5813_vm13, %v5743_v59, %v5883_v11  ;;  %v5745_v55 = vadd.f32 %v14496_v14, %v5522_v42  ;;  %v5524_v46 = vpop.f32.mrb[123].mxu1  ;;  %6588 = vmatmul.mubr.f32.gmra.mrb[156].mxu0 %v14723_v36  ;;  %v6122_v18 = vsel %vm905_vm1, %v6117_v57, %v6121_v52  ;;  %v14734_v47 = vmax.f32 %v5949_v39, %v6120_v43 }
 0x79d   :  { %v6123_v1 = vrot.slane %v5953_v51, 2  ;;  %v5954_v34 = vsel %vm5814_vm14, %v5744_v38, %v5884_v5  ;;  %v5746_v29 = vadd.f32 %v14500_v23, %v5524_v46  ;;  %v14737_v50 = vmax.f32 %v5950_v19, %v6122_v18 }
 0x79e   :  { %v6125_v10 = vrot.slane %v5954_v34, 2  ;;  %vm5815_vm15 = vcmp.gt.f32.partialorder %v5745_v55, 0.0  ;;  %v5885_v44 = vmul.f32 0.01, %v5745_v55 }
 0x79f   :  { %vm5816_vm0 = vcmp.gt.f32.partialorder %v5746_v29, 0.0  ;;  %v5886_v7 = vmul.f32 0.01, %v5746_v29  ;;  %v5528_v53 = vpop.f32.mrb[124].mxu1  ;;  %9085 = vmatprep.mubr.msk.f32.mxu0 %vm6355_vm10, %v14737_v50  ;;  %v6124_v33 = vsel %vm905_vm1, %v6119_v48, %v6123_v1 }
 0x7a0   :  { %v5955_v57 = vsel %vm5815_vm15, %v5745_v55, %v5885_v44  ;;  %v5747_v39 = vadd.f32 %v14496_v14, %v5528_v53  ;;  %v5530_v40 = vpop.f32.mrb[125].mxu1  ;;  %6593 = vmatmul.mubr.f32.gmra.mrb[158].mxu0 %v14734_v47  ;;  %v6126_v19 = vsel %vm905_vm1, %v6121_v52, %v6125_v10  ;;  %v14745_v22 = vmax.f32 %v5951_v20, %v6124_v33 }
 0x7a1   :  { %v6127_v59 = vrot.slane %v5955_v57, 2  ;;  %v5956_v25 = vsel %vm5816_vm0, %v5746_v29, %v5886_v7  ;;  %v5748_v4 = vadd.f32 %v14500_v23, %v5530_v40  ;;  %v14748_v38 = vmax.f32 %v5952_v6, %v6126_v19 }
 0x7a2   :  { %v6129_v11 = vrot.slane %v5956_v25, 2  ;;  %vm5817_vm2 = vcmp.gt.f32.partialorder %v5747_v39, 0.0  ;;  %v5887_v5 = vmul.f32 0.01, %v5747_v39 }
 0x7a3   :  { %vm5818_vm4 = vcmp.gt.f32.partialorder %v5748_v4, 0.0  ;;  %v5888_v48 = vmul.f32 0.01, %v5748_v4  ;;  %v5534_v42 = vpop.f32.mrb[126].mxu1  ;;  %9086 = vmatprep.mubr.msk.f32.mxu0 %vm6355_vm10, %v14748_v38  ;;  %v6128_v43 = vsel %vm905_vm1, %v6123_v1, %v6127_v59 }
 0x7a4   :  { %v5957_v52 = vsel %vm5817_vm2, %v5747_v39, %v5887_v5  ;;  %v5749_v20 = vadd.f32 %v14496_v14, %v5534_v42  ;;  %v5536_v55 = vpop.f32.mrb[127].mxu1  ;;  %6598 = vmatmul.mubr.f32.gmra.mrb[160].mxu0 %v14745_v22  ;;  %v6130_v6 = vsel %vm905_vm1, %v6125_v10, %v6129_v11  ;;  %v14756_v46 = vmax.f32 %v5953_v51, %v6128_v43 }
 0x7a5   :  { %v6131_v18 = vrot.slane %v5957_v52, 2  ;;  %v5958_v29 = vsel %vm5818_vm4, %v5748_v4, %v5888_v48  ;;  %v5750_v44 = vadd.f32 %v14500_v23, %v5536_v55  ;;  %v14759_v7 = vmax.f32 %v5954_v34, %v6130_v6 }
 0x7a6   :  { %v6133_v53 = vrot.slane %v5958_v29, 2  ;;  %vm5819_vm5 = vcmp.gt.f32.partialorder %v5749_v20, 0.0  ;;  %v5889_v33 = vmul.f32 0.01, %v5749_v20 }
 0x7a7   :  { %vm5820_vm6 = vcmp.gt.f32.partialorder %v5750_v44, 0.0  ;;  %v5890_v1 = vmul.f32 0.01, %v5750_v44  ;;  %v5540_v39 = vpop.f32.mrb[128].mxu1  ;;  %9087 = vmatprep.mubr.msk.f32.mxu0 %vm6355_vm10, %v14759_v7  ;;  %v6132_v40 = vsel %vm905_vm1, %v6127_v59, %v6131_v18 }
 0x7a8   :  { %v5959_v10 = vsel %vm5819_vm5, %v5749_v20, %v5889_v33  ;;  %v5751_v51 = vadd.f32 %v14496_v14, %v5540_v39  ;;  %v5542_v19 = vpop.f32.mrb[129].mxu1  ;;  %6603 = vmatmul.mubr.f32.gmra.mrb[162].mxu0 %v14756_v46  ;;  %v6134_v34 = vsel %vm905_vm1, %v6129_v11, %v6133_v53  ;;  %v14767_v4 = vmax.f32 %v5955_v57, %v6132_v40 }
 0x7a9   :  { %v6135_v5 = vrot.slane %v5959_v10, 2  ;;  %v5960_v48 = vsel %vm5820_vm6, %v5750_v44, %v5890_v1  ;;  %v5752_v42 = vadd.f32 %v14500_v23, %v5542_v19  ;;  %v14770_v43 = vmax.f32 %v5956_v25, %v6134_v34 }
 0x7aa   :  { %v6137_v55 = vrot.slane %v5960_v48, 2  ;;  %vm5821_vm7 = vcmp.gt.f32.partialorder %v5751_v51, 0.0  ;;  %v5891_v6 = vmul.f32 0.01, %v5751_v51 }
 0x7ab   :  { %vm5822_vm8 = vcmp.gt.f32.partialorder %v5752_v42, 0.0  ;;  %v5892_v59 = vmul.f32 0.01, %v5752_v42  ;;  %v5546_v20 = vpop.f32.mrb[130].mxu1  ;;  %9088 = vmatprep.mubr.msk.f32.mxu0 %vm6355_vm10, %v14770_v43  ;;  %v6136_v33 = vsel %vm905_vm1, %v6131_v18, %v6135_v5 }
 0x7ac   :  { %v5961_v11 = vsel %vm5821_vm7, %v5751_v51, %v5891_v6  ;;  %v5753_v57 = vadd.f32 %v14496_v14, %v5546_v20  ;;  %v5548_v39 = vpop.f32.mrb[131].mxu1  ;;  %6608 = vmatmul.mubr.f32.gmra.mrb[164].mxu0 %v14767_v4  ;;  %v6138_v25 = vsel %vm905_vm1, %v6133_v53, %v6137_v55  ;;  %v14778_v44 = vmax.f32 %v5957_v52, %v6136_v33 }
 0x7ad   :  { %v6139_v1 = vrot.slane %v5961_v11, 2  ;;  %v5962_v40 = vsel %vm5822_vm8, %v5752_v42, %v5892_v59  ;;  %v5754_v19 = vadd.f32 %v14500_v23, %v5548_v39  ;;  %v14781_v34 = vmax.f32 %v5958_v29, %v6138_v25 }
 0x7ae   :  { %15942 = vst [vmem:[#allocation3_spill] sm:$0xff] %v14778_v44  ;;  %v6141_v3 = vrot.slane %v5962_v40, 2  ;;  %vm5823_vm9 = vcmp.gt.f32.partialorder %v5753_v57, 0.0  ;;  %v5893_v27 = vmul.f32 0.01, %v5753_v57 }
 0x7af   :  { %15943 = vst [vmem:[#allocation4_spill] sm:$0xff] %v14781_v34  ;;  %vm5824_vm11 = vcmp.gt.f32.partialorder %v5754_v19, 0.0  ;;  %v5894_v18 = vmul.f32 0.01, %v5754_v19  ;;  %v5552_v51 = vpop.f32.mrb[132].mxu1  ;;  %9089 = vmatprep.mubr.msk.f32.mxu0 %vm6355_vm10, %v14781_v34  ;;  %v6140_v6 = vsel %vm905_vm1, %v6135_v5, %v6139_v1 }
 0x7b0   :  { %v5963_v53 = vsel %vm5823_vm9, %v5753_v57, %v5893_v27  ;;  %v5755_v52 = vadd.f32 %v14496_v14, %v5552_v51  ;;  %v5554_v20 = vpop.f32.mrb[133].mxu1  ;;  %6613 = vmatmul.mubr.f32.gmra.mrb[166].mxu0 %v14778_v44  ;;  %v6142_v29 = vsel %vm905_vm1, %v6137_v55, %v6141_v3  ;;  %v14789_v42 = vmax.f32 %v5959_v10, %v6140_v6 }
 0x7b1   :  { %v6143_v59 = vrot.slane %v5963_v53, 2  ;;  %v5964_v33 = vsel %vm5824_vm11, %v5754_v19, %v5894_v18  ;;  %v5756_v39 = vadd.f32 %v14500_v23, %v5554_v20  ;;  %v14792_v25 = vmax.f32 %v5960_v48, %v6142_v29 }
 0x7b2   :  { %15944 = vst [vmem:[#allocation5_spill] sm:$0xff] %v14789_v42  ;;  %v6145_v63 = vrot.slane %v5964_v33, 2  ;;  %vm5825_vm12 = vcmp.gt.f32.partialorder %v5755_v52, 0.0  ;;  %v5895_v34 = vmul.f32 0.01, %v5755_v52 }
 0x7b3   :  { %15945 = vst [vmem:[#allocation6_spill] sm:$0xff] %v14792_v25  ;;  %vm5826_vm13 = vcmp.gt.f32.partialorder %v5756_v39, 0.0  ;;  %v5896_v27 = vmul.f32 0.01, %v5756_v39  ;;  %v5558_v5 = vpop.f32.mrb[134].mxu1  ;;  %9090 = vmatprep.mubr.msk.f32.mxu0 %vm6355_vm10, %v14792_v25  ;;  %v6144_v57 = vsel %vm905_vm1, %v6139_v1, %v6143_v59 }
 0x7b4   :  { %v5965_v55 = vsel %vm5825_vm12, %v5755_v52, %v5895_v34  ;;  %v5757_v10 = vadd.f32 %v14496_v14, %v5558_v5  ;;  %v5560_v51 = vpop.f32.mrb[135].mxu1  ;;  %6618 = vmatmul.mubr.f32.gmra.mrb[168].mxu0 %v14789_v42  ;;  %v6146_v48 = vsel %vm905_vm1, %v6141_v3, %v6145_v63  ;;  %v14800_v19 = vmax.f32 %v5961_v11, %v6144_v57 }
 0x7b5   :  { %v6147_v18 = vrot.slane %v5965_v55, 2  ;;  %v5966_v6 = vsel %vm5826_vm13, %v5756_v39, %v5896_v27  ;;  %v5758_v20 = vadd.f32 %v14500_v23, %v5560_v51  ;;  %v14803_v29 = vmax.f32 %v5962_v40, %v6146_v48 }
 0x7b6   :  { %15946 = vst [vmem:[#allocation7_spill] sm:$0xff] %v14800_v19  ;;  %v6149_v44 = vrot.slane %v5966_v6, 2  ;;  %vm5827_vm14 = vcmp.gt.f32.partialorder %v5757_v10, 0.0  ;;  %v5897_v25 = vmul.f32 0.01, %v5757_v10 }
 0x7b7   :  { %15947 = vst [vmem:[#allocation8_spill] sm:$0xff] %v14803_v29  ;;  %vm5828_vm15 = vcmp.gt.f32.partialorder %v5758_v20, 0.0  ;;  %v5898_v1 = vmul.f32 0.01, %v5758_v20  ;;  %v5564_v34 = vpop.f32.mrb[136].mxu1  ;;  %9091 = vmatprep.mubr.msk.f32.mxu0 %vm6355_vm10, %v14803_v29  ;;  %v6148_v52 = vsel %vm905_vm1, %v6143_v59, %v6147_v18 }
 0x7b8   :  { %v5967_v3 = vsel %vm5827_vm14, %v5757_v10, %v5897_v25  ;;  %v5759_v11 = vadd.f32 %v14496_v14, %v5564_v34  ;;  %v5566_v5 = vpop.f32.mrb[137].mxu1  ;;  %6623 = vmatmul.mubr.f32.gmra.mrb[170].mxu0 %v14800_v19  ;;  %v6150_v40 = vsel %vm905_vm1, %v6145_v63, %v6149_v44  ;;  %v14811_v39 = vmax.f32 %v5963_v53, %v6148_v52 }
 0x7b9   :  { %v6151_v27 = vrot.slane %v5967_v3, 2  ;;  %v5968_v57 = vsel %vm5828_vm15, %v5758_v20, %v5898_v1  ;;  %v5760_v51 = vadd.f32 %v14500_v23, %v5566_v5  ;;  %v14814_v48 = vmax.f32 %v5964_v33, %v6150_v40 }
 0x7ba   :  { %15948 = vst [vmem:[#allocation9_spill] sm:$0xff] %v14811_v39  ;;  %v6153_v42 = vrot.slane %v5968_v57, 2  ;;  %vm5829_vm0 = vcmp.gt.f32.partialorder %v5759_v11, 0.0  ;;  %v5899_v29 = vmul.f32 0.01, %v5759_v11 }
 0x7bb   :  { %15949 = vst [vmem:[#allocation10_spill] sm:$0xff] %v14814_v48  ;;  %vm5830_vm2 = vcmp.gt.f32.partialorder %v5760_v51, 0.0  ;;  %v5900_v59 = vmul.f32 0.01, %v5760_v51  ;;  %v5570_v25 = vpop.f32.mrb[138].mxu1  ;;  %9092 = vmatprep.mubr.msk.f32.mxu0 %vm6355_vm10, %v14814_v48  ;;  %v6152_v10 = vsel %vm905_vm1, %v6147_v18, %v6151_v27 }
 0x7bc   :  { %v5969_v63 = vsel %vm5829_vm0, %v5759_v11, %v5899_v29  ;;  %v5761_v53 = vadd.f32 %v14496_v14, %v5570_v25  ;;  %v5572_v34 = vpop.f32.mrb[139].mxu1  ;;  %6628 = vmatmul.mubr.f32.gmra.mrb[172].mxu0 %v14811_v39  ;;  %v6154_v33 = vsel %vm905_vm1, %v6149_v44, %v6153_v42  ;;  %v14822_v20 = vmax.f32 %v5965_v55, %v6152_v10 }
 0x7bd   :  { %v6155_v1 = vrot.slane %v5969_v63, 2  ;;  %v5970_v52 = vsel %vm5830_vm2, %v5760_v51, %v5900_v59  ;;  %v5762_v5 = vadd.f32 %v14500_v23, %v5572_v34  ;;  %v14825_v40 = vmax.f32 %v5966_v6, %v6154_v33 }
 0x7be   :  { %15950 = vst [vmem:[#allocation11_spill] sm:$0xff] %v14822_v20  ;;  %v6157_v19 = vrot.slane %v5970_v52, 2  ;;  %vm5831_vm4 = vcmp.gt.f32.partialorder %v5761_v53, 0.0  ;;  %v5901_v48 = vmul.f32 0.01, %v5761_v53 }
 0x7bf   :  { %15951 = vst [vmem:[#allocation12_spill] sm:$0xff] %v14825_v40  ;;  %vm5832_vm5 = vcmp.gt.f32.partialorder %v5762_v5, 0.0  ;;  %v5902_v18 = vmul.f32 0.01, %v5762_v5  ;;  %v5576_v29 = vpop.f32.mrb[140].mxu1  ;;  %9093 = vmatprep.mubr.msk.f32.mxu0 %vm6355_vm10, %v14825_v40  ;;  %v6156_v11 = vsel %vm905_vm1, %v6151_v27, %v6155_v1 }
 0x7c0   :  { %v5971_v44 = vsel %vm5831_vm4, %v5761_v53, %v5901_v48  ;;  %v5763_v55 = vadd.f32 %v14496_v14, %v5576_v29  ;;  %v5578_v25 = vpop.f32.mrb[141].mxu1  ;;  %6633 = vmatmul.mubr.f32.gmra.mrb[174].mxu0 %v14822_v20  ;;  %v6158_v6 = vsel %vm905_vm1, %v6153_v42, %v6157_v19  ;;  %v14833_v51 = vmax.f32 %v5967_v3, %v6156_v11 }
 0x7c1   :  { %v6159_v59 = vrot.slane %v5971_v44, 2  ;;  %v5972_v10 = vsel %vm5832_vm5, %v5762_v5, %v5902_v18  ;;  %v5764_v34 = vadd.f32 %v14500_v23, %v5578_v25  ;;  %v14836_v33 = vmax.f32 %v5968_v57, %v6158_v6 }
 0x7c2   :  { %15952 = vst [vmem:[#allocation13_spill] sm:$0xff] %v14833_v51  ;;  %v6161_v39 = vrot.slane %v5972_v10, 2  ;;  %vm5833_vm6 = vcmp.gt.f32.partialorder %v5763_v55, 0.0  ;;  %v5903_v40 = vmul.f32 0.01, %v5763_v55 }
 0x7c3   :  { %15953 = vst [vmem:[#allocation14_spill] sm:$0xff] %v14836_v33  ;;  %vm5834_vm7 = vcmp.gt.f32.partialorder %v5764_v34, 0.0  ;;  %v5904_v27 = vmul.f32 0.01, %v5764_v34  ;;  %v5582_v48 = vpop.f32.mrb[142].mxu1  ;;  %9094 = vmatprep.mubr.msk.f32.mxu0 %vm6355_vm10, %v14836_v33  ;;  %v6160_v53 = vsel %vm905_vm1, %v6155_v1, %v6159_v59 }
 0x7c4   :  { %v5973_v42 = vsel %vm5833_vm6, %v5763_v55, %v5903_v40  ;;  %v5765_v3 = vadd.f32 %v14496_v14, %v5582_v48  ;;  %v5584_v29 = vpop.f32.mrb[143].mxu1  ;;  %6638 = vmatmul.mubr.f32.gmra.mrb[176].mxu0 %v14833_v51  ;;  %v6162_v57 = vsel %vm905_vm1, %v6157_v19, %v6161_v39  ;;  %v14844_v5 = vmax.f32 %v5969_v63, %v6160_v53 }
 0x7c5   :  { %v6163_v18 = vrot.slane %v5973_v42, 2  ;;  %v5974_v11 = vsel %vm5834_vm7, %v5764_v34, %v5904_v27  ;;  %v5766_v25 = vadd.f32 %v14500_v23, %v5584_v29  ;;  %v14847_v6 = vmax.f32 %v5970_v52, %v6162_v57 }
 0x7c6   :  { %15954 = vst [vmem:[#allocation15_spill] sm:$0xff] %v14844_v5  ;;  %v6165_v20 = vrot.slane %v5974_v11, 2  ;;  %vm5835_vm8 = vcmp.gt.f32.partialorder %v5765_v3, 0.0  ;;  %v5905_v33 = vmul.f32 0.01, %v5765_v3 }
 0x7c7   :  { %15955 = vst [vmem:[#allocation16_spill] sm:$0xff] %v14847_v6  ;;  %vm5836_vm9 = vcmp.gt.f32.partialorder %v5766_v25, 0.0  ;;  %v5906_v1 = vmul.f32 0.01, %v5766_v25  ;;  %v5588_v40 = vpop.f32.mrb[144].mxu1  ;;  %9095 = vmatprep.mubr.msk.f32.mxu0 %vm6355_vm10, %v14847_v6  ;;  %v6164_v55 = vsel %vm905_vm1, %v6159_v59, %v6163_v18 }
 0x7c8   :  { %v5975_v19 = vsel %vm5835_vm8, %v5765_v3, %v5905_v33  ;;  %v5767_v63 = vadd.f32 %v14496_v14, %v5588_v40  ;;  %v5590_v48 = vpop.f32.mrb[145].mxu1  ;;  %6643 = vmatmul.mubr.f32.gmra.mrb[178].mxu0 %v14844_v5  ;;  %v6166_v52 = vsel %vm905_vm1, %v6161_v39, %v6165_v20  ;;  %v14855_v34 = vmax.f32 %v5971_v44, %v6164_v55 }
 0x7c9   :  { %v6167_v27 = vrot.slane %v5975_v19, 2  ;;  %v5976_v53 = vsel %vm5836_vm9, %v5766_v25, %v5906_v1  ;;  %v5768_v29 = vadd.f32 %v14500_v23, %v5590_v48  ;;  %v14858_v57 = vmax.f32 %v5972_v10, %v6166_v52 }
 0x7ca   :  { %15956 = vst [vmem:[#allocation17_spill] sm:$0xff] %v14855_v34  ;;  %v6169_v51 = vrot.slane %v5976_v53, 2  ;;  %vm5837_vm11 = vcmp.gt.f32.partialorder %v5767_v63, 0.0  ;;  %v5907_v6 = vmul.f32 0.01, %v5767_v63 }
 0x7cb   :  { %15957 = vst [vmem:[#allocation18_spill] sm:$0xff] %v14858_v57  ;;  %vm5838_vm12 = vcmp.gt.f32.partialorder %v5768_v29, 0.0  ;;  %v5908_v59 = vmul.f32 0.01, %v5768_v29  ;;  %v5594_v33 = vpop.f32.mrb[146].mxu1  ;;  %9096 = vmatprep.mubr.msk.f32.mxu0 %vm6355_vm10, %v14858_v57  ;;  %v6168_v3 = vsel %vm905_vm1, %v6163_v18, %v6167_v27 }
 0x7cc   :  { %v5977_v39 = vsel %vm5837_vm11, %v5767_v63, %v5907_v6  ;;  %v5769_v44 = vadd.f32 %v14496_v14, %v5594_v33  ;;  %v5596_v40 = vpop.f32.mrb[147].mxu1  ;;  %6648 = vmatmul.mubr.f32.gmra.mrb[180].mxu0 %v14855_v34  ;;  %v6170_v10 = vsel %vm905_vm1, %v6165_v20, %v6169_v51  ;;  %v14866_v25 = vmax.f32 %v5973_v42, %v6168_v3 }
 0x7cd   :  { %v6171_v1 = vrot.slane %v5977_v39, 2  ;;  %v5978_v55 = vsel %vm5838_vm12, %v5768_v29, %v5908_v59  ;;  %v5770_v48 = vadd.f32 %v14500_v23, %v5596_v40  ;;  %v14869_v52 = vmax.f32 %v5974_v11, %v6170_v10 }
 0x7ce   :  { %15958 = vst [vmem:[#allocation19_spill] sm:$0xff] %v14866_v25  ;;  %v6173_v5 = vrot.slane %v5978_v55, 2  ;;  %vm5839_vm13 = vcmp.gt.f32.partialorder %v5769_v44, 0.0  ;;  %v5909_v57 = vmul.f32 0.01, %v5769_v44 }
 0x7cf   :  { %15959 = vst [vmem:[#allocation20_spill] sm:$0xff] %v14869_v52  ;;  %vm5840_vm14 = vcmp.gt.f32.partialorder %v5770_v48, 0.0  ;;  %v5910_v18 = vmul.f32 0.01, %v5770_v48  ;;  %v5600_v6 = vpop.f32.mrb[148].mxu1  ;;  %9097 = vmatprep.mubr.msk.f32.mxu0 %vm6355_vm10, %v14869_v52  ;;  %v6172_v63 = vsel %vm905_vm1, %v6167_v27, %v6171_v1 }
 0x7d0   :  { %v5979_v20 = vsel %vm5839_vm13, %v5769_v44, %v5909_v57  ;;  %v5771_v42 = vadd.f32 %v14496_v14, %v5600_v6  ;;  %v5602_v33 = vpop.f32.mrb[149].mxu1  ;;  %6653 = vmatmul.mubr.f32.gmra.mrb[182].mxu0 %v14866_v25  ;;  %v6174_v11 = vsel %vm905_vm1, %v6169_v51, %v6173_v5  ;;  %v14877_v29 = vmax.f32 %v5975_v19, %v6172_v63 }
 0x7d1   :  { %v6175_v59 = vrot.slane %v5979_v20, 2  ;;  %v5980_v3 = vsel %vm5840_vm14, %v5770_v48, %v5910_v18  ;;  %v5772_v40 = vadd.f32 %v14500_v23, %v5602_v33  ;;  %v14880_v10 = vmax.f32 %v5976_v53, %v6174_v11 }
 0x7d2   :  { %15960 = vst [vmem:[#allocation21_spill] sm:$0xff] %v14877_v29  ;;  %v6177_v34 = vrot.slane %v5980_v3, 2  ;;  %vm5841_vm15 = vcmp.gt.f32.partialorder %v5771_v42, 0.0  ;;  %v5911_v52 = vmul.f32 0.01, %v5771_v42 }
 0x7d3   :  { %15961 = vst [vmem:[#allocation22_spill] sm:$0xff] %v14880_v10  ;;  %vm5842_vm0 = vcmp.gt.f32.partialorder %v5772_v40, 0.0  ;;  %v5912_v27 = vmul.f32 0.01, %v5772_v40  ;;  %v5606_v57 = vpop.f32.mrb[150].mxu1  ;;  %9098 = vmatprep.mubr.msk.f32.mxu0 %vm6355_vm10, %v14880_v10  ;;  %v6176_v44 = vsel %vm905_vm1, %v6171_v1, %v6175_v59 }
 0x7d4   :  { %v5981_v51 = vsel %vm5841_vm15, %v5771_v42, %v5911_v52  ;;  %v5773_v19 = vadd.f32 %v14496_v14, %v5606_v57  ;;  %v5608_v6 = vpop.f32.mrb[151].mxu1  ;;  %6658 = vmatmul.mubr.f32.gmra.mrb[184].mxu0 %v14877_v29  ;;  %v6178_v53 = vsel %vm905_vm1, %v6173_v5, %v6177_v34  ;;  %v14888_v48 = vmax.f32 %v5977_v39, %v6176_v44 }
 0x7d5   :  { %v6179_v18 = vrot.slane %v5981_v51, 2  ;;  %v5982_v63 = vsel %vm5842_vm0, %v5772_v40, %v5912_v27  ;;  %v5774_v33 = vadd.f32 %v14500_v23, %v5608_v6  ;;  %v14891_v11 = vmax.f32 %v5978_v55, %v6178_v53 }
 0x7d6   :  { %15962 = vst [vmem:[#allocation23_spill] sm:$0xff] %v14888_v48  ;;  %v6181_v25 = vrot.slane %v5982_v63, 2  ;;  %vm5843_vm2 = vcmp.gt.f32.partialorder %v5773_v19, 0.0  ;;  %v5913_v10 = vmul.f32 0.01, %v5773_v19 }
 0x7d7   :  { %15963 = vst [vmem:[#allocation24_spill] sm:$0xff] %v14891_v11  ;;  %vm5844_vm4 = vcmp.gt.f32.partialorder %v5774_v33, 0.0  ;;  %v5914_v1 = vmul.f32 0.01, %v5774_v33  ;;  %v5612_v52 = vpop.f32.mrb[152].mxu1  ;;  %9099 = vmatprep.mubr.msk.f32.mxu0 %vm6355_vm10, %v14891_v11  ;;  %v6180_v42 = vsel %vm905_vm1, %v6175_v59, %v6179_v18 }
 0x7d8   :  { %v5983_v5 = vsel %vm5843_vm2, %v5773_v19, %v5913_v10  ;;  %v5775_v39 = vadd.f32 %v14496_v14, %v5612_v52  ;;  %v5614_v57 = vpop.f32.mrb[153].mxu1  ;;  %6663 = vmatmul.mubr.f32.gmra.mrb[186].mxu0 %v14888_v48  ;;  %v6182_v55 = vsel %vm905_vm1, %v6177_v34, %v6181_v25  ;;  %v14899_v40 = vmax.f32 %v5979_v20, %v6180_v42 }
 0x7d9   :  { %v6183_v27 = vrot.slane %v5983_v5, 2  ;;  %v5984_v44 = vsel %vm5844_vm4, %v5774_v33, %v5914_v1  ;;  %v5776_v6 = vadd.f32 %v14500_v23, %v5614_v57  ;;  %v14902_v53 = vmax.f32 %v5980_v3, %v6182_v55 }
 0x7da   :  { %15964 = vst [vmem:[#allocation25_spill] sm:$0xff] %v14899_v40  ;;  %v6185_v29 = vrot.slane %v5984_v44, 2  ;;  %vm5845_vm5 = vcmp.gt.f32.partialorder %v5775_v39, 0.0  ;;  %v5915_v11 = vmul.f32 0.01, %v5775_v39 }
 0x7db   :  { %15965 = vst [vmem:[#allocation26_spill] sm:$0xff] %v14902_v53  ;;  %vm5846_vm6 = vcmp.gt.f32.partialorder %v5776_v6, 0.0  ;;  %v5916_v59 = vmul.f32 0.01, %v5776_v6  ;;  %v5618_v10 = vpop.f32.mrb[154].mxu1  ;;  %9100 = vmatprep.mubr.msk.f32.mxu0 %vm6355_vm10, %v14902_v53  ;;  %v6184_v19 = vsel %vm905_vm1, %v6179_v18, %v6183_v27 }
 0x7dc   :  { %v5985_v34 = vsel %vm5845_vm5, %v5775_v39, %v5915_v11  ;;  %v5777_v20 = vadd.f32 %v14496_v14, %v5618_v10  ;;  %v5620_v52 = vpop.f32.mrb[155].mxu1  ;;  %6668 = vmatmul.mubr.f32.gmra.mrb[188].mxu0 %v14899_v40  ;;  %v6186_v3 = vsel %vm905_vm1, %v6181_v25, %v6185_v29  ;;  %v14910_v33 = vmax.f32 %v5981_v51, %v6184_v19 }
 0x7dd   :  { %v6187_v1 = vrot.slane %v5985_v34, 2  ;;  %v5986_v42 = vsel %vm5846_vm6, %v5776_v6, %v5916_v59  ;;  %v5778_v57 = vadd.f32 %v14500_v23, %v5620_v52  ;;  %v14913_v55 = vmax.f32 %v5982_v63, %v6186_v3 }
 0x7de   :  { %v6189_v48 = vrot.slane %v5986_v42, 2  ;;  %vm5847_vm7 = vcmp.gt.f32.partialorder %v5777_v20, 0.0  ;;  %v5917_v53 = vmul.f32 0.01, %v5777_v20 }
 0x7df   :  { %15966 = vst [vmem:[#allocation27_spill] sm:$0xff] %v14913_v55  ;;  %vm5848_vm8 = vcmp.gt.f32.partialorder %v5778_v57, 0.0  ;;  %v5918_v18 = vmul.f32 0.01, %v5778_v57  ;;  %v5624_v11 = vpop.f32.mrb[156].mxu1  ;;  %9101 = vmatprep.mubr.msk.f32.mxu0 %vm6355_vm10, %v14913_v55  ;;  %v6188_v39 = vsel %vm905_vm1, %v6183_v27, %v6187_v1 }
 0x7e0   :  { %v5987_v25 = vsel %vm5847_vm7, %v5777_v20, %v5917_v53  ;;  %v5779_v51 = vadd.f32 %v14496_v14, %v5624_v11  ;;  %v5626_v10 = vpop.f32.mrb[157].mxu1  ;;  %6673 = vmatmul.mubr.f32.gmra.mrb[190].mxu0 %v14910_v33  ;;  %v6190_v63 = vsel %vm905_vm1, %v6185_v29, %v6189_v48  ;;  %v14921_v6 = vmax.f32 %v5983_v5, %v6188_v39 }
 0x7e1   :  { %v6191_v59 = vrot.slane %v5987_v25, 2  ;;  %v5988_v19 = vsel %vm5848_vm8, %v5778_v57, %v5918_v18  ;;  %v5780_v52 = vadd.f32 %v14500_v23, %v5626_v10  ;;  %v14924_v3 = vmax.f32 %v5984_v44, %v6190_v63  ;;  %v15978_v63 = vld [vmem:[#allocation13_spill] sm:$0xff] }
 0x7e2   :  { %v6193_v40 = vrot.slane %v5988_v19, 2  ;;  %vm5849_vm9 = vcmp.gt.f32.partialorder %v5779_v51, 0.0  ;;  %v5919_v55 = vmul.f32 0.01, %v5779_v51 }
 0x7e3   :  { %vm5850_vm11 = vcmp.gt.f32.partialorder %v5780_v52, 0.0  ;;  %v5920_v27 = vmul.f32 0.01, %v5780_v52  ;;  %9102 = vmatprep.mubr.msk.f32.mxu0 %vm6355_vm10, %v14924_v3  ;;  %v6192_v14 = vsel %vm905_vm1, %v6187_v1, %v6191_v59 }
 0x7e4   :  { %v5989_v53 = vsel %vm5849_vm9, %v5779_v51, %v5919_v55  ;;  %6678 = vmatmul.mubr.f32.gmra.mrb[192].mxu0 %v14921_v6  ;;  %v6194_v29 = vsel %vm905_vm1, %v6189_v48, %v6193_v40  ;;  %v14931_v5 = vmax.f32 %v5985_v34, %v6192_v14  ;;  %v9174_v51 = vld [vmem:[%s15893_s7 + $0xf8] sm:$0xff]  ;;  %v15980_v14 = vld [vmem:[#allocation15_spill] sm:$0xff] }
 0x7e5   :  { %v6195_v23 = vrot.slane %v5989_v53, 2  ;;  %v5990_v44 = vsel %vm5850_vm11, %v5780_v52, %v5920_v27  ;;  %v14933_v20 = vmax.f32 %v5986_v42, %v6194_v29  ;;  %v15977_v42 = vld [vmem:[#allocation14_spill] sm:$0xff] }
 0x7e6   :  { %v6197_v57 = vrot.slane %v5990_v44, 2  ;;  %v15981_v53 = vld [vmem:[#allocation18_spill] sm:$0xff]  ;;  %v15982_v44 = vld [vmem:[#allocation17_spill] sm:$0xff] }
 0x7e7   :  { %9103 = vmatprep.mubr.msk.f32.mxu0 %vm6355_vm10, %v14933_v20  ;;  %v6196_v18 = vsel %vm905_vm1, %v6191_v59, %v6195_v23 }
 0x7e8   :  { %6683 = vmatmul.mubr.f32.gmra.mrb[194].mxu0 %v14931_v5  ;;  %v6198_v1 = vsel %vm905_vm1, %v6193_v40, %v6197_v57  ;;  %v14940_v55 = vmax.f32 %v5987_v25, %v6196_v18  ;;  %v15976_v40 = vld [vmem:[#allocation11_spill] sm:$0xff]  ;;  %v9173_v25 = vld [vmem:[%s15893_s7 + $0xf0] sm:$0xff]  ;;  %vm11457_vm1 = vmmov 0  }
 0x7e9   :  { %v14942_v11 = vmax.f32 %v5988_v19, %v6198_v1  ;;  %v10472_v59 = vpack.c.bf16 %v9174_v51, %v9173_v25  ;;  %v15979_v19 = vld [vmem:[#allocation16_spill] sm:$0xff] }
 0x7ea   :  { %v15983_v57 = vld [vmem:[#allocation20_spill] sm:$0xff] }
 0x7eb   :  { %9104 = vmatprep.mubr.msk.f32.mxu0 %vm6355_vm10, %v14942_v11 }
 0x7ec   :  { %6688 = vmatmul.mubr.f32.gmra.mrb[196].mxu0 %v14940_v55 }
 0x7ed   :  { %9125 = vmatprep.mubr.msk.f32.mxu0 %vm6355_vm10, %v14526_v8  ;;  %v9160_v8 = vld [vmem:[%s15893_s7 + $0x88] sm:$0xff] }
 0x7f0   :  { %6779 = vmatmul.mubr.f32.vlgmr.msra.gmra.mrb[198].mxu0 %v14515_v0  ;;  %v9159_v0 = vld [vmem:[%s15893_s7 + $0x80] sm:$0xff] }
 0x7f1   :  { %9126 = vmatprep.mubr.msk.f32.mxu0 %vm6355_vm10, %v14543_v26  ;;  %v9161_v26 = vld [vmem:[%s15893_s7 + $0x90] sm:$0xff] }
 0x7f4   :  { %6784 = vmatmul.mubr.f32.gmra.mrb[200].mxu0 %v14534_v16  ;;  %v10444_v16 = vpack.c.bf16 %v9160_v8, %v9159_v0  ;;  %v15984_v0 = vld [vmem:[#allocation19_spill] sm:$0xff]  ;;  %v15985_v8 = vld [vmem:[#allocation22_spill] sm:$0xff] }
 0x7f5   :  { %9127 = vmatprep.mubr.msk.f32.mxu0 %vm6355_vm10, %v14561_v30 }
 0x7f6   :  { %10445 = vmatprep.subr.bf16.mxu1 %v10444_v16 }
 0x7f7   :  { %10447 = vmatpush3.bf16.msra.mxu1 %v10444_v16 }
 0x7f8   :  { %6789 = vmatmul.mubr.f32.gmra.mrb[202].mxu0 %v14552_v54  ;;  %v9162_v54 = vld [vmem:[%s15893_s7 + $0x98] sm:$0xff] }
 0x7f9   :  { %9128 = vmatprep.mubr.msk.f32.mxu0 %vm6355_vm10, %v14579_v31  ;;  %v10448_v30 = vpack.c.bf16 %v9162_v54, %v9161_v26  ;;  %v9163_v31 = vld [vmem:[%s15893_s7 + $0xa0] sm:$0xff]  ;;  %v15986_v54 = vld [vmem:[#allocation21_spill] sm:$0xff] }
 0x7fb   :  { %10449 = vmatprep.subr.bf16.mxu1 %v10448_v30 }
 0x7fc   :  { %6794 = vmatmul.mubr.f32.gmra.mrb[204].mxu0 %v14570_v61  ;;  %v15967_v61 = vld [vmem:[#allocation4_spill] sm:$0xff]  ;;  %10451 = vmatpush3.bf16.msra.mxu1 %v10448_v30 }
 0x7fd   :  { %9129 = vmatprep.mubr.msk.f32.mxu0 %vm6355_vm10, %v14597_v13  ;;  %v15968_v13 = vld [vmem:[#allocation3_spill] sm:$0xff]  ;;  %v15987_v30 = vld [vmem:[#allocation24_spill] sm:$0xff] }
 0x800   :  { %6799 = vmatmul.mubr.f32.gmra.mrb[206].mxu0 %v14588_v56  ;;  %v9164_v56 = vld [vmem:[%s15893_s7 + $0xa8] sm:$0xff] }
 0x801   :  { %9130 = vmatprep.mubr.msk.f32.mxu0 %vm6355_vm10, %v14615_v45  ;;  %v15969_v45 = vld [vmem:[#allocation6_spill] sm:$0xff] }
 0x804   :  { %6804 = vmatmul.mubr.f32.gmra.mrb[208].mxu0 %v14606_v62  ;;  %v10452_v62 = vpack.c.bf16 %v9164_v56, %v9163_v31  ;;  %v15988_v56 = vld [vmem:[#allocation23_spill] sm:$0xff] }
 0x805   :  { %9131 = vmatprep.mubr.msk.f32.mxu0 %vm6355_vm10, %v14633_v17  ;;  %v9165_v17 = vld [vmem:[%s15893_s7 + $0xb0] sm:$0xff] }
 0x806   :  { %10453 = vmatprep.subr.bf16.mxu1 %v10452_v62 }
 0x807   :  { %10455 = vmatpush3.bf16.msra.mxu1 %v10452_v62 }
 0x808   :  { %6809 = vmatmul.mubr.f32.gmra.mrb[210].mxu0 %v14624_v41 }
 0x809   :  { %9132 = vmatprep.mubr.msk.f32.mxu0 %vm6355_vm10, %v14651_v37 }
 0x80c   :  { %6814 = vmatmul.mubr.f32.gmra.mrb[212].mxu0 %v14642_v2  ;;  %v9166_v2 = vld [vmem:[%s15893_s7 + $0xb8] sm:$0xff] }
 0x80d   :  { %9133 = vmatprep.mubr.msk.f32.mxu0 %vm6355_vm10, %v14669_v60  ;;  %v10456_v60 = vpack.c.bf16 %v9166_v2, %v9165_v17  ;;  %v15990_v17 = vld [vmem:[#allocation25_spill] sm:$0xff]  ;;  %v15991_v2 = vld [vmem:[#allocation27_spill] sm:$0xff] }
 0x80f   :  { %10457 = vmatprep.subr.bf16.mxu1 %v10456_v60 }
 0x810   :  { %6819 = vmatmul.mubr.f32.gmra.mrb[214].mxu0 %v14660_v9  ;;  %v15970_v9 = vld [vmem:[#allocation5_spill] sm:$0xff]  ;;  %10459 = vmatpush3.bf16.msra.mxu1 %v10456_v60 }
 0x811   :  { %9134 = vmatprep.mubr.msk.f32.mxu0 %vm6355_vm10, %v14681_v58 }
 0x814   :  { %6824 = vmatmul.mubr.f32.gmra.mrb[216].mxu0 %v14678_v49  ;;  %v15971_v49 = vld [vmem:[#allocation8_spill] sm:$0xff] }
 0x815   :  { %9135 = vmatprep.mubr.msk.f32.mxu0 %vm6355_vm10, %v14693_v15  ;;  %v9168_v15 = vld [vmem:[%s15893_s7 + $0xc8] sm:$0xff] }
 0x818   :  { %6829 = vmatmul.mubr.f32.gmra.mrb[218].mxu0 %v14690_v35  ;;  %v9167_v35 = vld [vmem:[%s15893_s7 + $0xc0] sm:$0xff] }
 0x819   :  { %9136 = vmatprep.mubr.msk.f32.mxu0 %vm6355_vm10, %v14704_v21  ;;  %v15972_v21 = vld [vmem:[#allocation7_spill] sm:$0xff] }
 0x81c   :  { %6834 = vmatmul.mubr.f32.gmra.mrb[220].mxu0 %v14701_v32 }
 0x81d   :  { %9137 = vmatprep.mubr.msk.f32.mxu0 %vm6355_vm10, %v14715_v12  ;;  %v15973_v12 = vld [vmem:[#allocation10_spill] sm:$0xff] }
 0x820   :  { %6839 = vmatmul.mubr.f32.gmra.mrb[222].mxu0 %v14712_v24  ;;  %v10460_v24 = vpack.c.bf16 %v9168_v15, %v9167_v35 }
 0x821   :  { %9138 = vmatprep.mubr.msk.f32.mxu0 %vm6355_vm10, %v14726_v28  ;;  %v9169_v28 = vld [vmem:[%s15893_s7 + $0xd0] sm:$0xff] }
 0x822   :  { %10461 = vmatprep.subr.bf16.mxu1 %v10460_v24 }
 0x823   :  { %10463 = vmatpush3.bf16.msra.mxu1 %v10460_v24 }
 0x824   :  { %6844 = vmatmul.mubr.f32.gmra.mrb[224].mxu0 %v14723_v36 }
 0x825   :  { %9139 = vmatprep.mubr.msk.f32.mxu0 %vm6355_vm10, %v14737_v50 }
 0x828   :  { %6849 = vmatmul.mubr.f32.gmra.mrb[226].mxu0 %v14734_v47  ;;  %v9170_v47 = vld [vmem:[%s15893_s7 + $0xd8] sm:$0xff] }
 0x829   :  { %9140 = vmatprep.mubr.msk.f32.mxu0 %vm6355_vm10, %v14748_v38  ;;  %v10464_v38 = vpack.c.bf16 %v9170_v47, %v9169_v28 }
 0x82b   :  { %10465 = vmatprep.subr.bf16.mxu1 %v10464_v38 }
 0x82c   :  { %6854 = vmatmul.mubr.f32.gmra.mrb[228].mxu0 %v14745_v22  ;;  %v15974_v22 = vld [vmem:[#allocation9_spill] sm:$0xff]  ;;  %10467 = vmatpush3.bf16.msra.mxu1 %v10464_v38 }
 0x82d   :  { %9141 = vmatprep.mubr.msk.f32.mxu0 %vm6355_vm10, %v14759_v7 }
 0x830   :  { %6859 = vmatmul.mubr.f32.gmra.mrb[230].mxu0 %v14756_v46  ;;  %v15975_v46 = vld [vmem:[#allocation12_spill] sm:$0xff] }
 0x831   :  { %9142 = vmatprep.mubr.msk.f32.mxu0 %vm6355_vm10, %v14770_v43  ;;  %v9172_v43 = vld [vmem:[%s15893_s7 + $0xe8] sm:$0xff] }
 0x834   :  { %6864 = vmatmul.mubr.f32.gmra.mrb[232].mxu0 %v14767_v4  ;;  %v9171_v4 = vld [vmem:[%s15893_s7 + $0xe0] sm:$0xff] }
 0x835   :  { %9143 = vmatprep.mubr.msk.f32.mxu0 %vm6355_vm10, %v15967_v61  ;;  %v10468_v34 = vpack.c.bf16 %v9172_v43, %v9171_v4 }
 0x837   :  { %10469 = vmatprep.subr.bf16.mxu1 %v10468_v34 }
 0x838   :  { %6869 = vmatmul.mubr.f32.gmra.mrb[234].mxu0 %v15968_v13  ;;  %10471 = vmatpush3.bf16.msra.mxu1 %v10468_v34  ;;  %v15989_v13 = vld [vmem:[#allocation26_spill] sm:$0xff] }
 0x839   :  { %9144 = vmatprep.mubr.msk.f32.mxu0 %vm6355_vm10, %v15969_v45  ;;  %10473 = vmatprep.subr.bf16.mxu1 %v10472_v59 }
 0x83b   :  { %v15024_v41 = vpop.f32.mrb[130].mxu0 }
 0x83c   :  { %v6526_v37 = vpop.f32.mrb[131].mxu0  ;;  %6874 = vmatmul.mubr.f32.gmra.mrb[236].mxu0 %v15970_v9  ;;  %10475 = vmatpush3.bf16.msra.mxu1 %v10472_v59 }
 0x83d   :  { %9145 = vmatprep.mubr.msk.f32.mxu0 %vm6355_vm10, %v15971_v49 }
 0x83f   :  { %v15035_v58 = vpop.f32.mrb[132].mxu0 }
 0x840   :  { %v6531_v32 = vpop.f32.mrb[133].mxu0  ;;  %6879 = vmatmul.mubr.f32.gmra.mrb[238].mxu0 %v15972_v21 }
 0x841   :  { %9146 = vmatprep.mubr.msk.f32.mxu0 %vm6355_vm10, %v15973_v12 }
 0x843   :  { %v15046_v36 = vpop.f32.mrb[134].mxu0 }
 0x844   :  { %v6536_v50 = vpop.f32.mrb[135].mxu0  ;;  %6884 = vmatmul.mubr.f32.gmra.mrb[240].mxu0 %v15974_v22 }
 0x845   :  { %9147 = vmatprep.mubr.msk.f32.mxu0 %vm6355_vm10, %v15975_v46 }
 0x847   :  { %v15057_v7 = vpop.f32.mrb[136].mxu0 }
 0x848   :  { %v6541_v48 = vpop.f32.mrb[137].mxu0  ;;  %6889 = vmatmul.mubr.f32.gmra.mrb[242].mxu0 %v15976_v40 }
 0x849   :  { %9148 = vmatprep.mubr.msk.f32.mxu0 %vm6355_vm10, %v15977_v42 }
 0x84b   :  { %v15068_v39 = vpop.f32.mrb[138].mxu0 }
 0x84c   :  { %v6546_v10 = vpop.f32.mrb[139].mxu0  ;;  %6894 = vmatmul.mubr.f32.gmra.mrb[244].mxu0 %v15978_v63 }
 0x84d   :  { %9149 = vmatprep.mubr.msk.f32.mxu0 %vm6355_vm10, %v15979_v19 }
 0x84f   :  { %v15079_v52 = vpop.f32.mrb[140].mxu0 }
 0x850   :  { %v6551_v27 = vpop.f32.mrb[141].mxu0  ;;  %6899 = vmatmul.mubr.f32.gmra.mrb[246].mxu0 %v15980_v14  ;;  %v6984_v14 = vld [vmem:[%s15893_s7 + $0x8] sm:$0xff] }
 0x851   :  { %9150 = vmatprep.mubr.msk.f32.mxu0 %vm6355_vm10, %v15981_v53  ;;  %v6983_v27 = vld [vmem:[%s15893_s7] sm:$0xff] }
 0x853   :  { %v15084_v29 = vpop.f32.mrb[142].mxu0 }
 0x854   :  { %v6556_v23 = vpop.f32.mrb[143].mxu0  ;;  %6904 = vmatmul.mubr.f32.gmra.mrb[248].mxu0 %v15982_v44 }
 0x855   :  { %9151 = vmatprep.mubr.msk.f32.mxu0 %vm6355_vm10, %v15983_v57  ;;  %v10476_v23 = vpack.c.bf16 %v6984_v14, %v6983_v27 }
 0x857   :  { %v15089_v18 = vpop.f32.mrb[144].mxu0  ;;  %10477 = vmatprep.subr.bf16.mxu1 %v10476_v23 }
 0x858   :  { %v6561_v1 = vpop.f32.mrb[145].mxu0  ;;  %6909 = vmatmul.mubr.f32.gmra.mrb[250].mxu0 %v15984_v0 }
 0x859   :  { %9152 = vmatprep.mubr.msk.f32.mxu0 %vm6355_vm10, %v15985_v8 }
 0x85b   :  { %v15094_v16 = vpop.f32.mrb[146].mxu0 }
 0x85c   :  { %v6566_v26 = vpop.f32.mrb[147].mxu0  ;;  %6914 = vmatmul.mubr.f32.gmra.mrb[252].mxu0 %v15986_v54 }
 0x85d   :  { %9153 = vmatprep.mubr.msk.f32.mxu0 %vm6355_vm10, %v15987_v30 }
 0x85f   :  { %v15099_v61 = vpop.f32.mrb[148].mxu0 }
 0x860   :  { %v6571_v31 = vpop.f32.mrb[149].mxu0  ;;  %6919 = vmatmul.mubr.f32.gmra.mrb[254].mxu0 %v15988_v56 }
 0x861   :  { %9154 = vmatprep.mubr.msk.f32.mxu0 %vm6355_vm10, %v15989_v13 }
 0x863   :  { %v15104_v62 = vpop.f32.mrb[150].mxu0 }
 0x864   :  { %v6576_v45 = vpop.f32.mrb[151].mxu0  ;;  %6924 = vmatmul.mubr.f32.gmra.mrb[0].mxu0 %v15990_v17 }
 0x865   :  { %9155 = vmatprep.mubr.msk.f32.mxu0 %vm6355_vm10, %v15991_v2 }
 0x867   :  { %v15109_v37 = vpop.f32.mrb[152].mxu0 }
 0x868   :  { %v6581_v9 = vpop.f32.mrb[153].mxu0  ;;  %6929 = vmatmul.mubr.f32.gmra.mrb[2].mxu0 %v14910_v33 }
 0x869   :  { %9156 = vmatprep.mubr.msk.f32.mxu0 %vm6355_vm10, %v14924_v3 }
 0x86b   :  { %v15114_v60 = vpop.f32.mrb[154].mxu0 }
 0x86c   :  { %v6586_v49 = vpop.f32.mrb[155].mxu0  ;;  %6934 = vmatmul.mubr.f32.gmra.mrb[4].mxu0 %v14921_v6 }
 0x86d   :  { %9157 = vmatprep.mubr.msk.f32.mxu0 %vm6355_vm10, %v14933_v20 }
 0x86f   :  { %v15119_v35 = vpop.f32.mrb[156].mxu0 }
 0x870   :  { %v6591_v15 = vpop.f32.mrb[157].mxu0  ;;  %6939 = vmatmul.mubr.f32.gmra.mrb[6].mxu0 %v14931_v5 }
 0x871   :  { %9158 = vmatprep.mubr.msk.f32.mxu0 %vm6355_vm10, %v14942_v11 }
 0x873   :  { %v15124_v33 = vpop.f32.mrb[158].mxu0 }
 0x874   :  { %v6596_v32 = vpop.f32.mrb[159].mxu0  ;;  %6944 = vmatmul.mubr.f32.gmra.mrb[8].mxu0 %v14940_v55 }
 0x877   :  { %v15127_v3 = vpop.f32.mrb[160].mxu0 }
 0x878   :  { %v6601_v21 = vpop.f32.mrb[161].mxu0 }
 0x87b   :  { %v15129_v6 = vpop.f32.mrb[162].mxu0 }
 0x87c   :  { %v6606_v24 = vpop.f32.mrb[163].mxu0 }
 0x87f   :  { %v15131_v20 = vpop.f32.mrb[164].mxu0 }
 0x880   :  { %v6611_v12 = vpop.f32.mrb[165].mxu0 }
 0x883   :  { %v15133_v28 = vpop.f32.mrb[166].mxu0 }
 0x884   :  { %v6616_v5 = vpop.f32.mrb[167].mxu0 }
 0x887   :  { %v15135_v47 = vpop.f32.mrb[168].mxu0 }
 0x888   :  { %v6621_v11 = vpop.f32.mrb[169].mxu0 }
 0x88b   :  { %v15137_v50 = vpop.f32.mrb[170].mxu0 }
 0x88c   :  { %v6626_v22 = vpop.f32.mrb[171].mxu0 }
 0x88f   :  { %v15139_v38 = vpop.f32.mrb[172].mxu0 }
 0x890   :  { %v6631_v55 = vpop.f32.mrb[173].mxu0 }
 0x893   :  { %v15141_v46 = vpop.f32.mrb[174].mxu0 }
 0x894   :  { %v6636_v4 = vpop.f32.mrb[175].mxu0 }
 0x897   :  { %v15143_v43 = vpop.f32.mrb[176].mxu0 }
 0x898   :  { %v6641_v48 = vpop.f32.mrb[177].mxu0 }
 0x89b   :  { %v15145_v40 = vpop.f32.mrb[178].mxu0 }
 0x89c   :  { %v6646_v34 = vpop.f32.mrb[179].mxu0 }
 0x89d   :  { %v6987_v34 = vld [vmem:[%s15893_s7 + $0x20] sm:$0xff] }
 0x89f   :  { %v15147_v42 = vpop.f32.mrb[180].mxu0 }
 0x8a0   :  { %v6651_v25 = vpop.f32.mrb[181].mxu0 }
 0x8a1   :  { %v6988_v25 = vld [vmem:[%s15893_s7 + $0x28] sm:$0xff] }
 0x8a3   :  { %v15149_v51 = vpop.f32.mrb[182].mxu0 }
 0x8a4   :  { %v6656_v10 = vpop.f32.mrb[183].mxu0 }
 0x8a7   :  { %v15151_v63 = vpop.f32.mrb[184].mxu0 }
 0x8a8   :  { %v6661_v59 = vpop.f32.mrb[185].mxu0 }
 0x8ab   :  { %v15153_v19 = vpop.f32.mrb[186].mxu0 }
 0x8ac   :  { %v6666_v53 = vpop.f32.mrb[187].mxu0 }
 0x8af   :  { %v15161_v44 = vpop.f32.mrb[188].mxu0 }
 0x8b0   :  { %v6671_v57 = vpop.f32.mrb[189].mxu0 }
 0x8b1   :  { %v6989_v57 = vld [vmem:[%s15893_s7 + $0x30] sm:$0xff] }
 0x8b3   :  { %v15163_v1 = vpop.f32.mrb[190].mxu0 }
 0x8b4   :  { %v6676_v0 = vpop.f32.mrb[191].mxu0 }
 0x8b5   :  { %v6990_v0 = vld [vmem:[%s15893_s7 + $0x38] sm:$0xff] }
 0x8b7   :  { %v15165_v8 = vpop.f32.mrb[192].mxu0 }
 0x8b8   :  { %v6681_v26 = vpop.f32.mrb[193].mxu0 }
 0x8bb   :  { %v15167_v54 = vpop.f32.mrb[194].mxu0 }
 0x8bc   :  { %v6686_v30 = vpop.f32.mrb[195].mxu0 }
 0x8bf   :  { %v15169_v31 = vpop.f32.mrb[196].mxu0 }
 0x8c0   :  { %v6691_v56 = vpop.f32.mrb[197].mxu0 }
 0x8c3   :  { %v6780_v13 = vpop.f32.mrb[198].mxu0 }
 0x8c4   :  { %v15172_v45 = vmax.f32 %v15024_v41, %v6780_v13  ;;  %v6782_v17 = vpop.f32.mrb[199].mxu0  ;;  %v6985_v41 = vld [vmem:[%s15893_s7 + $0x10] sm:$0xff] }
 0x8c5   :  { %v6991_v17 = vld [vmem:[%s15893_s7 + $0x40] sm:$0xff] }
 0x8c6   :  { %v7049_v15 = vrot.slane %v15172_v45, 4 }
 0x8c7   :  { %v6785_v2 = vpop.f32.mrb[200].mxu0 }
 0x8c8   :  { %v15175_v9 = vmax.f32 %v15035_v58, %v6785_v2  ;;  %v6787_v49 = vpop.f32.mrb[201].mxu0  ;;  %v6986_v58 = vld [vmem:[%s15893_s7 + $0x18] sm:$0xff]  ;;  %v6992_v2 = vld [vmem:[%s15893_s7 + $0x48] sm:$0xff] }
 0x8c9   :  { %v10480_v55 = vpack.c.bf16 %v6986_v58, %v6985_v41  ;;  %v6994_v41 = vld [vmem:[%s15893_s7 + $0x58] sm:$0xff] }
 0x8ca   :  { %v7050_v32 = vrot.slane %v15175_v9, 4 }
 0x8cb   :  { %v6790_v21 = vpop.f32.mrb[202].mxu0 }
 0x8cc   :  { %v15180_v24 = vmax.f32 %v15046_v36, %v6790_v21  ;;  %v6792_v12 = vpop.f32.mrb[203].mxu0  ;;  %v7051_v5 = vsel %vm1919_vm3, %v7049_v15, %v7050_v32 }
 0x8cd   :  { %9566 = vmatprep.mubr.f32.mxu1 %v7051_v5  ;;  %v6993_v5 = vld [vmem:[%s15893_s7 + $0x50] sm:$0xff] }
 0x8ce   :  { %v7052_v11 = vrot.slane %v15180_v24, 4 }
 0x8cf   :  { %v6795_v22 = vpop.f32.mrb[204].mxu0 }
 0x8d0   :  { %v15191_v4 = vmax.f32 %v15057_v7, %v6795_v22  ;;  %v6797_v36 = vpop.f32.mrb[205].mxu0  ;;  %v15194_v48 = vsel %vm1919_vm3, %v7050_v32, %v7052_v11  ;;  %v10484_v7 = vpack.c.bf16 %v6988_v25, %v6987_v34  ;;  %v6995_v34 = vld [vmem:[%s15893_s7 + $0x60] sm:$0xff]  ;;  %v6996_v25 = vld [vmem:[%s15893_s7 + $0x68] sm:$0xff] }
 0x8d1   :  { %9567 = vmatmul.mubr.f32.vlgmr.msra.gmra.mrb[158].mxu1 %v15194_v48 }
 0x8d2   :  { %v7054_v10 = vrot.slane %v15191_v4, 4  ;;  %10479 = vmatpush3.bf16.msra.mxu1 %v10476_v23 }
 0x8d3   :  { %v6800_v59 = vpop.f32.mrb[206].mxu0  ;;  %10481 = vmatprep.subr.bf16.mxu1 %v10480_v55 }
 0x8d4   :  { %v15205_v27 = vmax.f32 %v15068_v39, %v6800_v59  ;;  %v6802_v14 = vpop.f32.mrb[207].mxu0  ;;  %v15208_v53 = vsel %vm1919_vm3, %v7052_v11, %v7054_v10  ;;  %v10488_v39 = vpack.c.bf16 %v6990_v0, %v6989_v57  ;;  %v6997_v0 = vld [vmem:[%s15893_s7 + $0x70] sm:$0xff] }
 0x8d5   :  { %9569 = vmatprep.mubr.f32.mxu1 %v15208_v53 }
 0x8d6   :  { %v7056_v23 = vrot.slane %v15205_v27, 4  ;;  %10483 = vmatpush3.bf16.msra.mxu1 %v10480_v55 }
 0x8d7   :  { %v6805_v26 = vpop.f32.mrb[208].mxu0  ;;  %10485 = vmatprep.subr.bf16.mxu1 %v10484_v7 }
 0x8d8   :  { %v15219_v30 = vmax.f32 %v15079_v52, %v6805_v26  ;;  %v6807_v56 = vpop.f32.mrb[209].mxu0  ;;  %v15222_v13 = vsel %vm1919_vm3, %v7054_v10, %v7056_v23  ;;  %v10492_v52 = vpack.c.bf16 %v6992_v2, %v6991_v17 }
 0x8d9   :  { %9570 = vmatmul.mubr.f32.gmra.mrb[160].mxu1 %v15222_v13 }
 0x8da   :  { %v7058_v49 = vrot.slane %v15219_v30, 4  ;;  %10487 = vmatpush3.bf16.msra.mxu1 %v10484_v7 }
 0x8db   :  { %v6810_v15 = vpop.f32.mrb[210].mxu0  ;;  %10489 = vmatprep.subr.bf16.mxu1 %v10488_v39 }
 0x8dc   :  { %v15233_v32 = vmax.f32 %v15084_v29, %v6810_v15  ;;  %v6812_v21 = vpop.f32.mrb[211].mxu0  ;;  %v15236_v12 = vsel %vm1919_vm3, %v7056_v23, %v7058_v49  ;;  %v10496_v29 = vpack.c.bf16 %v6994_v41, %v6993_v5  ;;  %v6998_v23 = vld [vmem:[%s15893_s7 + $0x78] sm:$0xff] }
 0x8dd   :  { %9572 = vmatprep.mubr.f32.mxu1 %v15236_v12 }
 0x8de   :  { %v7060_v58 = vrot.slane %v15233_v32, 4  ;;  %10491 = vmatpush3.bf16.msra.mxu1 %v10488_v39 }
 0x8df   :  { %v6815_v11 = vpop.f32.mrb[212].mxu0  ;;  %10493 = vmatprep.subr.bf16.mxu1 %v10492_v52 }
 0x8e0   :  { %v15247_v22 = vmax.f32 %v15089_v18, %v6815_v11  ;;  %v6817_v55 = vpop.f32.mrb[213].mxu0  ;;  %v15250_v36 = vsel %vm1919_vm3, %v7058_v49, %v7060_v58  ;;  %v10500_v18 = vpack.c.bf16 %v6996_v25, %v6995_v34 }
 0x8e1   :  { %9573 = vmatmul.mubr.f32.gmra.mrb[162].mxu1 %v15250_v36 }
 0x8e2   :  { %v7062_v10 = vrot.slane %v15247_v22, 4  ;;  %10495 = vmatpush3.bf16.msra.mxu1 %v10492_v52  ;;  %v9175_v52 = vld [vmem:[%s15893_s7 + $0x100] sm:$0xff] }
 0x8e3   :  { %v6820_v59 = vpop.f32.mrb[214].mxu0  ;;  %10497 = vmatprep.subr.bf16.mxu1 %v10496_v29 }
 0x8e4   :  { %v15261_v7 = vmax.f32 %v15094_v16, %v6820_v59  ;;  %v6822_v14 = vpop.f32.mrb[215].mxu0  ;;  %v15264_v57 = vsel %vm1919_vm3, %v7060_v58, %v7062_v10  ;;  %v10504_v16 = vpack.c.bf16 %v6998_v23, %v6997_v0 }
 0x8e5   :  { %9575 = vmatprep.mubr.f32.mxu1 %v15264_v57 }
 0x8e6   :  { %v7064_v26 = vrot.slane %v15261_v7, 4  ;;  %10499 = vmatpush3.bf16.msra.mxu1 %v10496_v29 }
 0x8e7   :  { %v6825_v39 = vpop.f32.mrb[216].mxu0  ;;  %10501 = vmatprep.subr.bf16.mxu1 %v10500_v18 }
 0x8e8   :  { %v15275_v56 = vmax.f32 %v15099_v61, %v6825_v39  ;;  %v6827_v17 = vpop.f32.mrb[217].mxu0  ;;  %v15278_v2 = vsel %vm1919_vm3, %v7062_v10, %v7064_v26  ;;  %v9176_v61 = vld [vmem:[%s15893_s7 + $0x108] sm:$0xff] }
 0x8e9   :  { %9576 = vmatmul.mubr.f32.gmra.mrb[164].mxu1 %v15278_v2  ;;  %v15294_v58 = vpack.c.bf16 %v9176_v61, %v9175_v52 }
 0x8ea   :  { %v7066_v49 = vrot.slane %v15275_v56, 4  ;;  %10503 = vmatpush3.bf16.msra.mxu1 %v10500_v18 }
 0x8eb   :  { %v6830_v15 = vpop.f32.mrb[218].mxu0  ;;  %10505 = vmatprep.subr.bf16.mxu1 %v10504_v16 }
 0x8ec   :  { %v15289_v21 = vmax.f32 %v15104_v62, %v6830_v15  ;;  %v6832_v5 = vpop.f32.mrb[219].mxu0  ;;  %v15292_v41 = vsel %vm1919_vm3, %v7064_v26, %v7066_v49 }
 0x8ed   :  { %9578 = vmatprep.mubr.f32.mxu1 %v15292_v41 }
 0x8ee   :  { %v7068_v11 = vrot.slane %v15289_v21, 4  ;;  %10507 = vmatpush3.bf16.msra.mxu1 %v10504_v16 }
 0x8ef   :  { %v6835_v29 = vpop.f32.mrb[220].mxu0  ;;  %10509 = vmatprep.subr.bf16.mxu1 %v15294_v58 }
 0x8f0   :  { %v15300_v55 = vmax.f32 %v15109_v37, %v6835_v29  ;;  %v6837_v34 = vpop.f32.mrb[221].mxu0  ;;  %v15303_v62 = vsel %vm1919_vm3, %v7066_v49, %v7068_v11 }
 0x8f1   :  { %9579 = vmatmul.mubr.f32.gmra.mrb[166].mxu1 %v15303_v62 }
 0x8f2   :  { %v7070_v25 = vrot.slane %v15300_v55, 4 }
 0x8f3   :  { %v6840_v10 = vpop.f32.mrb[222].mxu0 }
 0x8f4   :  { %v15308_v59 = vmax.f32 %v15114_v60, %v6840_v10  ;;  %v6842_v18 = vpop.f32.mrb[223].mxu0  ;;  %v15311_v14 = vsel %vm1919_vm3, %v7068_v11, %v7070_v25 }
 0x8f5   :  { %9581 = vmatprep.mubr.f32.mxu1 %v15311_v14 }
 0x8f6   :  { %v7072_v37 = vrot.slane %v15308_v59, 4 }
 0x8f7   :  { %v6845_v0 = vpop.f32.mrb[224].mxu0 }
 0x8f8   :  { %v15316_v23 = vmax.f32 %v15119_v35, %v6845_v0  ;;  %v6847_v26 = vpop.f32.mrb[225].mxu0  ;;  %v15319_v39 = vsel %vm1919_vm3, %v7070_v25, %v7072_v37 }
 0x8f9   :  { %9582 = vmatmul.mubr.f32.gmra.mrb[168].mxu1 %v15319_v39 }
 0x8fa   :  { %v7074_v60 = vrot.slane %v15316_v23, 4 }
 0x8fb   :  { %v6850_v16 = vpop.f32.mrb[226].mxu0 }
 0x8fc   :  { %v15324_v17 = vmax.f32 %v15124_v33, %v6850_v16  ;;  %v6852_v49 = vpop.f32.mrb[227].mxu0  ;;  %v15327_v15 = vsel %vm1919_vm3, %v7072_v37, %v7074_v60 }
 0x8fd   :  { %9584 = vmatprep.mubr.f32.mxu1 %v15327_v15 }
 0x8fe   :  { %v7076_v35 = vrot.slane %v15324_v17, 4 }
 0x8ff   :  { %v6855_v52 = vpop.f32.mrb[228].mxu0 }
 0x900   :  { %v15332_v61 = vmax.f32 %v15127_v3, %v6855_v52  ;;  %v6857_v5 = vpop.f32.mrb[229].mxu0  ;;  %v15335_v11 = vsel %vm1919_vm3, %v7074_v60, %v7076_v35 }
 0x901   :  { %9585 = vmatmul.mubr.f32.gmra.mrb[170].mxu1 %v15335_v11 }
 0x902   :  { %v7078_v33 = vrot.slane %v15332_v61, 4 }
 0x903   :  { %v6860_v29 = vpop.f32.mrb[230].mxu0 }
 0x904   :  { %v15340_v34 = vmax.f32 %v15129_v6, %v6860_v29  ;;  %v6862_v25 = vpop.f32.mrb[231].mxu0  ;;  %v15343_v10 = vsel %vm1919_vm3, %v7076_v35, %v7078_v33 }
 0x905   :  { %9587 = vmatprep.mubr.f32.mxu1 %v15343_v10 }
 0x906   :  { %v7080_v3 = vrot.slane %v15340_v34, 4 }
 0x907   :  { %v6865_v18 = vpop.f32.mrb[232].mxu0 }
 0x908   :  { %v15348_v37 = vmax.f32 %v15131_v20, %v6865_v18  ;;  %v6867_v0 = vpop.f32.mrb[233].mxu0  ;;  %v15351_v26 = vsel %vm1919_vm3, %v7078_v33, %v7080_v3 }
 0x909   :  { %9588 = vmatmul.mubr.f32.gmra.mrb[172].mxu1 %v15351_v26 }
 0x90a   :  { %v7082_v6 = vrot.slane %v15348_v37, 4 }
 0x90b   :  { %v6870_v60 = vpop.f32.mrb[234].mxu0 }
 0x90c   :  { %v15356_v16 = vmax.f32 %v15133_v28, %v6870_v60  ;;  %v6872_v49 = vpop.f32.mrb[235].mxu0  ;;  %v15359_v35 = vsel %vm1919_vm3, %v7080_v3, %v7082_v6 }
 0x90d   :  { %9590 = vmatprep.mubr.f32.mxu1 %v15359_v35 }
 0x90e   :  { %v7084_v20 = vrot.slane %v15356_v16, 4 }
 0x90f   :  { %v6875_v52 = vpop.f32.mrb[236].mxu0 }
 0x910   :  { %v15364_v5 = vmax.f32 %v15135_v47, %v6875_v52  ;;  %v6877_v33 = vpop.f32.mrb[237].mxu0  ;;  %v15367_v29 = vsel %vm1919_vm3, %v7082_v6, %v7084_v20 }
 0x911   :  { %9591 = vmatmul.mubr.f32.gmra.mrb[174].mxu1 %v15367_v29 }
 0x912   :  { %v7086_v28 = vrot.slane %v15364_v5, 4 }
 0x913   :  { %v6880_v25 = vpop.f32.mrb[238].mxu0 }
 0x914   :  { %v15372_v3 = vmax.f32 %v15137_v50, %v6880_v25  ;;  %v6882_v18 = vpop.f32.mrb[239].mxu0  ;;  %v15375_v0 = vsel %vm1919_vm3, %v7084_v20, %v7086_v28 }
 0x915   :  { %9593 = vmatprep.mubr.f32.mxu1 %v15375_v0 }
 0x916   :  { %v7088_v47 = vrot.slane %v15372_v3, 4 }
 0x917   :  { %v6885_v60 = vpop.f32.mrb[240].mxu0 }
 0x918   :  { %v15380_v6 = vmax.f32 %v15139_v38, %v6885_v60  ;;  %v6887_v49 = vpop.f32.mrb[241].mxu0  ;;  %v15383_v52 = vsel %vm1919_vm3, %v7086_v28, %v7088_v47 }
 0x919   :  { %15992 = vst [vmem:[#allocation4_spill] sm:$0xff] %v15383_v52  ;;  %9594 = vmatmul.mubr.f32.gmra.mrb[176].mxu1 %v15383_v52 }
 0x91a   :  { %v7090_v50 = vrot.slane %v15380_v6, 4 }
 0x91b   :  { %v6890_v33 = vpop.f32.mrb[242].mxu0 }
 0x91c   :  { %v15388_v20 = vmax.f32 %v15141_v46, %v6890_v33  ;;  %v6892_v25 = vpop.f32.mrb[243].mxu0  ;;  %v15391_v18 = vsel %vm1919_vm3, %v7088_v47, %v7090_v50 }
 0x91d   :  { %15993 = vst [vmem:[#allocation3_spill] sm:$0xff] %v15391_v18  ;;  %9596 = vmatprep.mubr.f32.mxu1 %v15391_v18 }
 0x91e   :  { %v7092_v38 = vrot.slane %v15388_v20, 4 }
 0x91f   :  { %v6895_v60 = vpop.f32.mrb[244].mxu0 }
 0x920   :  { %v15396_v28 = vmax.f32 %v15143_v43, %v6895_v60  ;;  %v6897_v49 = vpop.f32.mrb[245].mxu0  ;;  %v15399_v52 = vsel %vm1919_vm3, %v7090_v50, %v7092_v38 }
 0x921   :  { %15994 = vst [vmem:[#allocation6_spill] sm:$0xff] %v15399_v52  ;;  %9597 = vmatmul.mubr.f32.gmra.mrb[178].mxu1 %v15399_v52 }
 0x922   :  { %v7094_v46 = vrot.slane %v15396_v28, 4 }
 0x923   :  { %v6900_v33 = vpop.f32.mrb[246].mxu0 }
 0x924   :  { %v15404_v47 = vmax.f32 %v15145_v40, %v6900_v33  ;;  %v6902_v25 = vpop.f32.mrb[247].mxu0  ;;  %v15407_v18 = vsel %vm1919_vm3, %v7092_v38, %v7094_v46 }
 0x925   :  { %15995 = vst [vmem:[#allocation5_spill] sm:$0xff] %v15407_v18  ;;  %9599 = vmatprep.mubr.f32.mxu1 %v15407_v18 }
 0x926   :  { %v7096_v43 = vrot.slane %v15404_v47, 4 }
 0x927   :  { %v6905_v60 = vpop.f32.mrb[248].mxu0 }
 0x928   :  { %v15412_v50 = vmax.f32 %v15147_v42, %v6905_v60  ;;  %v6907_v49 = vpop.f32.mrb[249].mxu0  ;;  %v15415_v52 = vsel %vm1919_vm3, %v7094_v46, %v7096_v43 }
 0x929   :  { %15996 = vst [vmem:[#allocation8_spill] sm:$0xff] %v15415_v52  ;;  %9600 = vmatmul.mubr.f32.gmra.mrb[180].mxu1 %v15415_v52 }
 0x92a   :  { %v7098_v40 = vrot.slane %v15412_v50, 4 }
 0x92b   :  { %v6910_v33 = vpop.f32.mrb[250].mxu0 }
 0x92c   :  { %v15420_v38 = vmax.f32 %v15149_v51, %v6910_v33  ;;  %v6912_v25 = vpop.f32.mrb[251].mxu0  ;;  %v15423_v18 = vsel %vm1919_vm3, %v7096_v43, %v7098_v40 }
 0x92d   :  { %15997 = vst [vmem:[#allocation7_spill] sm:$0xff] %v15423_v18  ;;  %9602 = vmatprep.mubr.f32.mxu1 %v15423_v18 }
 0x92e   :  { %v7100_v42 = vrot.slane %v15420_v38, 4 }
 0x92f   :  { %v6915_v60 = vpop.f32.mrb[252].mxu0 }
 0x930   :  { %v15428_v46 = vmax.f32 %v15151_v63, %v6915_v60  ;;  %v6917_v49 = vpop.f32.mrb[253].mxu0  ;;  %v15431_v52 = vsel %vm1919_vm3, %v7098_v40, %v7100_v42 }
 0x931   :  { %15998 = vst [vmem:[#allocation10_spill] sm:$0xff] %v15431_v52  ;;  %9603 = vmatmul.mubr.f32.gmra.mrb[182].mxu1 %v15431_v52 }
 0x932   :  { %v7102_v51 = vrot.slane %v15428_v46, 4 }
 0x933   :  { %v6920_v33 = vpop.f32.mrb[254].mxu0 }
 0x934   :  { %v15436_v43 = vmax.f32 %v15153_v19, %v6920_v33  ;;  %v6922_v25 = vpop.f32.mrb[255].mxu0  ;;  %v15439_v18 = vsel %vm1919_vm3, %v7100_v42, %v7102_v51 }
 0x935   :  { %15999 = vst [vmem:[#allocation9_spill] sm:$0xff] %v15439_v18  ;;  %9605 = vmatprep.mubr.f32.mxu1 %v15439_v18 }
 0x936   :  { %v7104_v63 = vrot.slane %v15436_v43, 4 }
 0x937   :  { %v6925_v60 = vpop.f32.mrb[0].mxu0 }
 0x938   :  { %v15444_v40 = vmax.f32 %v15161_v44, %v6925_v60  ;;  %v6927_v49 = vpop.f32.mrb[1].mxu0  ;;  %v15447_v52 = vsel %vm1919_vm3, %v7102_v51, %v7104_v63 }
 0x939   :  { %16000 = vst [vmem:[#allocation12_spill] sm:$0xff] %v15447_v52  ;;  %9606 = vmatmul.mubr.f32.gmra.mrb[184].mxu1 %v15447_v52 }
 0x93a   :  { %v7106_v19 = vrot.slane %v15444_v40, 4 }
 0x93b   :  { %v6930_v33 = vpop.f32.mrb[2].mxu0 }
 0x93c   :  { %v15452_v42 = vmax.f32 %v15163_v1, %v6930_v33  ;;  %v6932_v25 = vpop.f32.mrb[3].mxu0  ;;  %v15455_v18 = vsel %vm1919_vm3, %v7104_v63, %v7106_v19 }
 0x93d   :  { %16001 = vst [vmem:[#allocation11_spill] sm:$0xff] %v15455_v18  ;;  %9608 = vmatprep.mubr.f32.mxu1 %v15455_v18 }
 0x93e   :  { %v7108_v44 = vrot.slane %v15452_v42, 4 }
 0x93f   :  { %v6935_v60 = vpop.f32.mrb[4].mxu0 }
 0x940   :  { %v15460_v51 = vmax.f32 %v15165_v8, %v6935_v60  ;;  %v6937_v49 = vpop.f32.mrb[5].mxu0  ;;  %v15463_v52 = vsel %vm1919_vm3, %v7106_v19, %v7108_v44 }
 0x941   :  { %16002 = vst [vmem:[#allocation14_spill] sm:$0xff] %v15463_v52  ;;  %9609 = vmatmul.mubr.f32.gmra.mrb[186].mxu1 %v15463_v52 }
 0x942   :  { %v7110_v1 = vrot.slane %v15460_v51, 4 }
 0x943   :  { %v6940_v33 = vpop.f32.mrb[6].mxu0 }
 0x944   :  { %v15468_v63 = vmax.f32 %v15167_v54, %v6940_v33  ;;  %v6942_v25 = vpop.f32.mrb[7].mxu0  ;;  %v15471_v18 = vsel %vm1919_vm3, %v7108_v44, %v7110_v1  ;;  %v9177_v54 = vld [vmem:[%s15893_s7 + $0x110] sm:$0xff]  ;;  %v9178_v44 = vld [vmem:[%s15893_s7 + $0x118] sm:$0xff]  ;;  %v9179_v33 = vld [vmem:[%s15893_s7 + $0x120] sm:$0xff] }
 0x945   :  { %9611 = vmatprep.mubr.f32.mxu1 %v15471_v18 }
 0x946   :  { %v7112_v8 = vrot.slane %v15468_v63, 4 }
 0x947   :  { %v6945_v60 = vpop.f32.mrb[8].mxu0 }
 0x948   :  { %v15476_v19 = vmax.f32 %v15169_v31, %v6945_v60  ;;  %v6947_v49 = vpop.f32.mrb[9].mxu0  ;;  %v15481_v52 = vsel %vm1919_vm3, %v7110_v1, %v7112_v8  ;;  %v10512_v31 = vpack.c.bf16 %v9178_v44, %v9177_v54  ;;  %v9180_v1 = vld [vmem:[%s15893_s7 + $0x128] sm:$0xff]  ;;  %v9182_v60 = vld [vmem:[%s15893_s7 + $0x138] sm:$0xff] }
 0x949   :  { %9612 = vmatmul.mubr.f32.gmra.mrb[188].mxu1 %v15481_v52  ;;  %v10516_v25 = vpack.c.bf16 %v9180_v1, %v9179_v33  ;;  %v9184_v54 = vld [vmem:[%s15893_s7 + $0x148] sm:$0xff]  ;;  %v9186_v33 = vld [vmem:[%s15893_s7 + $0x158] sm:$0xff] }
 0x94a   :  { %9646 = vmatprep.mubr.f32.mxu1 %v15172_v45  ;;  %v9181_v45 = vld [vmem:[%s15893_s7 + $0x130] sm:$0xff] }
 0x94b   :  { %v10520_v49 = vpack.c.bf16 %v9182_v60, %v9181_v45  ;;  %v9188_v45 = vld [vmem:[%s15893_s7 + $0x168] sm:$0xff] }
 0x94d   :  { %9647 = vmatmul.mubr.f32.vlgmr.msra.gmra.mrb[158].mxu1 %v15175_v9 }
 0x94e   :  { %9649 = vmatprep.mubr.f32.mxu1 %v15180_v24  ;;  %10511 = vmatpush3.bf16.msra.mxu1 %v15294_v58  ;;  %v9183_v58 = vld [vmem:[%s15893_s7 + $0x140] sm:$0xff] }
 0x94f   :  { %10513 = vmatprep.subr.bf16.mxu1 %v10512_v31  ;;  %v10524_v44 = vpack.c.bf16 %v9184_v54, %v9183_v58  ;;  %v9190_v58 = vld [vmem:[%s15893_s7 + $0x178] sm:$0xff] }
 0x951   :  { %9650 = vmatmul.mubr.f32.gmra.mrb[160].mxu1 %v15191_v4 }
 0x952   :  { %9652 = vmatprep.mubr.f32.mxu1 %v15205_v27  ;;  %10515 = vmatpush3.bf16.msra.mxu1 %v10512_v31  ;;  %v9185_v31 = vld [vmem:[%s15893_s7 + $0x150] sm:$0xff] }
 0x953   :  { %10517 = vmatprep.subr.bf16.mxu1 %v10516_v25  ;;  %v10528_v1 = vpack.c.bf16 %v9186_v33, %v9185_v31  ;;  %v9192_v31 = vld [vmem:[%s15893_s7 + $0x188] sm:$0xff] }
 0x955   :  { %9653 = vmatmul.mubr.f32.gmra.mrb[162].mxu1 %v15219_v30 }
 0x956   :  { %9655 = vmatprep.mubr.f32.mxu1 %v15233_v32  ;;  %10519 = vmatpush3.bf16.msra.mxu1 %v10516_v25  ;;  %v9187_v25 = vld [vmem:[%s15893_s7 + $0x160] sm:$0xff] }
 0x957   :  { %10521 = vmatprep.subr.bf16.mxu1 %v10520_v49  ;;  %v10532_v60 = vpack.c.bf16 %v9188_v45, %v9187_v25  ;;  %v9194_v25 = vld [vmem:[%s15893_s7 + $0x198] sm:$0xff] }
 0x959   :  { %9656 = vmatmul.mubr.f32.gmra.mrb[164].mxu1 %v15247_v22 }
 0x95a   :  { %9658 = vmatprep.mubr.f32.mxu1 %v15261_v7  ;;  %10523 = vmatpush3.bf16.msra.mxu1 %v10520_v49  ;;  %v9189_v49 = vld [vmem:[%s15893_s7 + $0x170] sm:$0xff] }
 0x95b   :  { %10525 = vmatprep.subr.bf16.mxu1 %v10524_v44  ;;  %v10536_v54 = vpack.c.bf16 %v9190_v58, %v9189_v49  ;;  %v9196_v49 = vld [vmem:[%s15893_s7 + $0x1a8] sm:$0xff] }
 0x95d   :  { %9659 = vmatmul.mubr.f32.gmra.mrb[166].mxu1 %v15275_v56 }
 0x95e   :  { %9661 = vmatprep.mubr.f32.mxu1 %v15289_v21  ;;  %10527 = vmatpush3.bf16.msra.mxu1 %v10524_v44  ;;  %v9191_v44 = vld [vmem:[%s15893_s7 + $0x180] sm:$0xff] }
 0x95f   :  { %10529 = vmatprep.subr.bf16.mxu1 %v10528_v1  ;;  %v10540_v33 = vpack.c.bf16 %v9192_v31, %v9191_v44  ;;  %v9199_v31 = vld [vmem:[%s15893_s7 + $0x1c0] sm:$0xff] }
 0x961   :  { %9662 = vmatmul.mubr.f32.gmra.mrb[168].mxu1 %v15300_v55 }
 0x962   :  { %9664 = vmatprep.mubr.f32.mxu1 %v15308_v59  ;;  %10531 = vmatpush3.bf16.msra.mxu1 %v10528_v1  ;;  %v9193_v1 = vld [vmem:[%s15893_s7 + $0x190] sm:$0xff] }
 0x963   :  { %10533 = vmatprep.subr.bf16.mxu1 %v10532_v60  ;;  %v10544_v45 = vpack.c.bf16 %v9194_v25, %v9193_v1  ;;  %v9201_v25 = vld [vmem:[%s15893_s7 + $0x1d0] sm:$0xff] }
 0x965   :  { %9665 = vmatmul.mubr.f32.gmra.mrb[170].mxu1 %v15316_v23 }
 0x966   :  { %9667 = vmatprep.mubr.f32.mxu1 %v15324_v17  ;;  %10535 = vmatpush3.bf16.msra.mxu1 %v10532_v60  ;;  %v9195_v60 = vld [vmem:[%s15893_s7 + $0x1a0] sm:$0xff] }
 0x967   :  { %10537 = vmatprep.subr.bf16.mxu1 %v10536_v54  ;;  %v10548_v58 = vpack.c.bf16 %v9196_v49, %v9195_v60  ;;  %v9203_v49 = vld [vmem:[%s15893_s7 + $0x1e0] sm:$0xff] }
 0x969   :  { %9668 = vmatmul.mubr.f32.gmra.mrb[172].mxu1 %v15332_v61 }
 0x96a   :  { %9670 = vmatprep.mubr.f32.mxu1 %v15340_v34  ;;  %10539 = vmatpush3.bf16.msra.mxu1 %v10536_v54  ;;  %v9198_v54 = vld [vmem:[%s15893_s7 + $0x1b8] sm:$0xff] }
 0x96b   :  { %10541 = vmatprep.subr.bf16.mxu1 %v10540_v33 }
 0x96d   :  { %9671 = vmatmul.mubr.f32.gmra.mrb[174].mxu1 %v15348_v37 }
 0x96e   :  { %9673 = vmatprep.mubr.f32.mxu1 %v15356_v16 }
 0x971   :  { %9674 = vmatmul.mubr.f32.gmra.mrb[176].mxu1 %v15364_v5 }
 0x972   :  { %9676 = vmatprep.mubr.f32.mxu1 %v15372_v3 }
 0x975   :  { %9677 = vmatmul.mubr.f32.gmra.mrb[178].mxu1 %v15380_v6 }
 0x976   :  { %9679 = vmatprep.mubr.f32.mxu1 %v15388_v20 }
 0x979   :  { %9680 = vmatmul.mubr.f32.gmra.mrb[180].mxu1 %v15396_v28 }
 0x97a   :  { %9682 = vmatprep.mubr.f32.mxu1 %v15404_v47 }
 0x97d   :  { %9683 = vmatmul.mubr.f32.gmra.mrb[182].mxu1 %v15412_v50 }
 0x97e   :  { %9685 = vmatprep.mubr.f32.mxu1 %v15420_v38 }
 0x981   :  { %9686 = vmatmul.mubr.f32.gmra.mrb[184].mxu1 %v15428_v46 }
 0x982   :  { %9688 = vmatprep.mubr.f32.mxu1 %v15436_v43 }
 0x985   :  { %9689 = vmatmul.mubr.f32.gmra.mrb[186].mxu1 %v15444_v40 }
 0x986   :  { %9691 = vmatprep.mubr.f32.mxu1 %v15452_v42 }
 0x989   :  { %9692 = vmatmul.mubr.f32.gmra.mrb[188].mxu1 %v15460_v51 }
 0x98a   :  { %9726 = vmatprep.mubr.f32.mxu1 %v15175_v9  ;;  %v9197_v9 = vld [vmem:[%s15893_s7 + $0x1b0] sm:$0xff] }
 0x98b   :  { %v10552_v44 = vpack.c.bf16 %v9198_v54, %v9197_v9  ;;  %v9205_v54 = vld [vmem:[%s15893_s7 + $0x1f0] sm:$0xff] }
 0x98d   :  { %9727 = vmatmul.mubr.f32.vlgmr.msra.gmra.mrb[158].mxu1 %v15180_v24 }
 0x98e   :  { %9729 = vmatprep.mubr.f32.mxu1 %v15191_v4  ;;  %10543 = vmatpush3.bf16.msra.mxu1 %v10540_v33  ;;  %v9200_v33 = vld [vmem:[%s15893_s7 + $0x1c8] sm:$0xff] }
 0x98f   :  { %10545 = vmatprep.subr.bf16.mxu1 %v10544_v45  ;;  %v10556_v1 = vpack.c.bf16 %v9200_v33, %v9199_v31  ;;  %v9207_v33 = vld [vmem:[%s15893_s7 + $0x200] sm:$0xff] }
 0x991   :  { %9730 = vmatmul.mubr.f32.gmra.mrb[160].mxu1 %v15205_v27 }
 0x992   :  { %9732 = vmatprep.mubr.f32.mxu1 %v15219_v30  ;;  %10547 = vmatpush3.bf16.msra.mxu1 %v10544_v45  ;;  %v9202_v45 = vld [vmem:[%s15893_s7 + $0x1d8] sm:$0xff] }
 0x993   :  { %10549 = vmatprep.subr.bf16.mxu1 %v10548_v58  ;;  %v10560_v60 = vpack.c.bf16 %v9202_v45, %v9201_v25  ;;  %v9209_v45 = vld [vmem:[%s15893_s7 + $0x210] sm:$0xff] }
 0x995   :  { %9733 = vmatmul.mubr.f32.gmra.mrb[162].mxu1 %v15233_v32 }
 0x996   :  { %9735 = vmatprep.mubr.f32.mxu1 %v15247_v22  ;;  %10551 = vmatpush3.bf16.msra.mxu1 %v10548_v58  ;;  %v9204_v58 = vld [vmem:[%s15893_s7 + $0x1e8] sm:$0xff] }
 0x997   :  { %10553 = vmatprep.subr.bf16.mxu1 %v10552_v44  ;;  %v10564_v9 = vpack.c.bf16 %v9204_v58, %v9203_v49  ;;  %v9211_v58 = vld [vmem:[%s15893_s7 + $0x220] sm:$0xff] }
 0x999   :  { %9736 = vmatmul.mubr.f32.gmra.mrb[164].mxu1 %v15261_v7 }
 0x99a   :  { %9738 = vmatprep.mubr.f32.mxu1 %v15275_v56  ;;  %10555 = vmatpush3.bf16.msra.mxu1 %v10552_v44  ;;  %v9206_v44 = vld [vmem:[%s15893_s7 + $0x1f8] sm:$0xff] }
 0x99b   :  { %10557 = vmatprep.subr.bf16.mxu1 %v10556_v1  ;;  %v10568_v31 = vpack.c.bf16 %v9206_v44, %v9205_v54  ;;  %v9214_v44 = vld [vmem:[%s15893_s7 + $0x238] sm:$0xff] }
 0x99d   :  { %9739 = vmatmul.mubr.f32.gmra.mrb[166].mxu1 %v15289_v21 }
 0x99e   :  { %9741 = vmatprep.mubr.f32.mxu1 %v15300_v55  ;;  %10559 = vmatpush3.bf16.msra.mxu1 %v10556_v1  ;;  %v9208_v1 = vld [vmem:[%s15893_s7 + $0x208] sm:$0xff] }
 0x99f   :  { %10561 = vmatprep.subr.bf16.mxu1 %v10560_v60  ;;  %v10572_v25 = vpack.c.bf16 %v9208_v1, %v9207_v33  ;;  %v9218_v33 = vld [vmem:[%s15893_s7 + $0x258] sm:$0xff]  ;;  %v9220_v1 = vld [vmem:[%s15893_s7 + $0x268] sm:$0xff] }
 0x9a1   :  { %9742 = vmatmul.mubr.f32.gmra.mrb[168].mxu1 %v15308_v59 }
 0x9a2   :  { %9744 = vmatprep.mubr.f32.mxu1 %v15316_v23  ;;  %10563 = vmatpush3.bf16.msra.mxu1 %v10560_v60  ;;  %v9210_v60 = vld [vmem:[%s15893_s7 + $0x218] sm:$0xff] }
 0x9a3   :  { %10565 = vmatprep.subr.bf16.mxu1 %v10564_v9  ;;  %v10576_v49 = vpack.c.bf16 %v9210_v60, %v9209_v45  ;;  %v16006_v45 = vld [vmem:[#allocation5_spill] sm:$0xff]  ;;  %v16009_v60 = vld [vmem:[#allocation10_spill] sm:$0xff] }
 0x9a5   :  { %9745 = vmatmul.mubr.f32.gmra.mrb[170].mxu1 %v15324_v17 }
 0x9a6   :  { %9747 = vmatprep.mubr.f32.mxu1 %v15332_v61  ;;  %10567 = vmatpush3.bf16.msra.mxu1 %v10564_v9  ;;  %v9212_v9 = vld [vmem:[%s15893_s7 + $0x228] sm:$0xff] }
 0x9a7   :  { %10569 = vmatprep.subr.bf16.mxu1 %v10568_v31  ;;  %v10580_v54 = vpack.c.bf16 %v9212_v9, %v9211_v58  ;;  %v7888_v58 = vrot.slane %v15476_v19, 4 }
 0x9a9   :  { %9748 = vmatmul.mubr.f32.gmra.mrb[172].mxu1 %v15340_v34  ;;  %v7889_v9 = vsel %vm1919_vm3, %v7112_v8, %v7888_v58 }
 0x9aa   :  { %9750 = vmatprep.mubr.f32.mxu1 %v15348_v37  ;;  %10571 = vmatpush3.bf16.msra.mxu1 %v10568_v31  ;;  %v9216_v31 = vld [vmem:[%s15893_s7 + $0x248] sm:$0xff] }
 0x9ab   :  { %10573 = vmatprep.subr.bf16.mxu1 %v10572_v25 }
 0x9ad   :  { %9751 = vmatmul.mubr.f32.gmra.mrb[174].mxu1 %v15356_v16 }
 0x9ae   :  { %9753 = vmatprep.mubr.f32.mxu1 %v15364_v5 }
 0x9b1   :  { %9754 = vmatmul.mubr.f32.gmra.mrb[176].mxu1 %v15372_v3 }
 0x9b2   :  { %9756 = vmatprep.mubr.f32.mxu1 %v15380_v6 }
 0x9b5   :  { %9757 = vmatmul.mubr.f32.gmra.mrb[178].mxu1 %v15388_v20 }
 0x9b6   :  { %9759 = vmatprep.mubr.f32.mxu1 %v15396_v28 }
 0x9b9   :  { %9760 = vmatmul.mubr.f32.gmra.mrb[180].mxu1 %v15404_v47 }
 0x9ba   :  { %9762 = vmatprep.mubr.f32.mxu1 %v15412_v50 }
 0x9bd   :  { %9763 = vmatmul.mubr.f32.gmra.mrb[182].mxu1 %v15420_v38 }
 0x9be   :  { %9765 = vmatprep.mubr.f32.mxu1 %v15428_v46 }
 0x9c1   :  { %9766 = vmatmul.mubr.f32.gmra.mrb[184].mxu1 %v15436_v43 }
 0x9c2   :  { %9768 = vmatprep.mubr.f32.mxu1 %v15444_v40 }
 0x9c5   :  { %9769 = vmatmul.mubr.f32.gmra.mrb[186].mxu1 %v15452_v42 }
 0x9c6   :  { %9771 = vmatprep.mubr.f32.mxu1 %v15460_v51 }
 0x9c9   :  { %9772 = vmatmul.mubr.f32.gmra.mrb[188].mxu1 %v15468_v63 }
 0x9ca   :  { %9806 = vmatprep.mubr.f32.mxu1 %v15194_v48  ;;  %v9213_v48 = vld [vmem:[%s15893_s7 + $0x230] sm:$0xff] }
 0x9cd   :  { %9807 = vmatmul.mubr.f32.vlgmr.msra.gmra.mrb[158].mxu1 %v15208_v53  ;;  %v10584_v53 = vpack.c.bf16 %v9214_v44, %v9213_v48 }
 0x9ce   :  { %9809 = vmatprep.mubr.f32.mxu1 %v15222_v13  ;;  %10575 = vmatpush3.bf16.msra.mxu1 %v10572_v25  ;;  %v9215_v13 = vld [vmem:[%s15893_s7 + $0x240] sm:$0xff]  ;;  %v9222_v25 = vld [vmem:[%s15893_s7 + $0x278] sm:$0xff] }
 0x9cf   :  { %10577 = vmatprep.subr.bf16.mxu1 %v10576_v49 }
 0x9d1   :  { %9810 = vmatmul.mubr.f32.gmra.mrb[160].mxu1 %v15236_v12  ;;  %v10588_v12 = vpack.c.bf16 %v9216_v31, %v9215_v13 }
 0x9d2   :  { %9812 = vmatprep.mubr.f32.mxu1 %v15250_v36  ;;  %10579 = vmatpush3.bf16.msra.mxu1 %v10576_v49  ;;  %v9217_v36 = vld [vmem:[%s15893_s7 + $0x250] sm:$0xff]  ;;  %v16012_v49 = vld [vmem:[#allocation11_spill] sm:$0xff] }
 0x9d3   :  { %10581 = vmatprep.subr.bf16.mxu1 %v10580_v54 }
 0x9d5   :  { %9813 = vmatmul.mubr.f32.gmra.mrb[162].mxu1 %v15264_v57  ;;  %v10592_v57 = vpack.c.bf16 %v9218_v33, %v9217_v36 }
 0x9d6   :  { %9815 = vmatprep.mubr.f32.mxu1 %v15278_v2  ;;  %10583 = vmatpush3.bf16.msra.mxu1 %v10580_v54  ;;  %v9219_v2 = vld [vmem:[%s15893_s7 + $0x260] sm:$0xff] }
 0x9d7   :  { %10585 = vmatprep.subr.bf16.mxu1 %v10584_v53 }
 0x9d9   :  { %9816 = vmatmul.mubr.f32.gmra.mrb[164].mxu1 %v15292_v41  ;;  %v10596_v41 = vpack.c.bf16 %v9220_v1, %v9219_v2 }
 0x9da   :  { %9818 = vmatprep.mubr.f32.mxu1 %v15303_v62  ;;  %10587 = vmatpush3.bf16.msra.mxu1 %v10584_v53  ;;  %v9221_v62 = vld [vmem:[%s15893_s7 + $0x270] sm:$0xff] }
 0x9db   :  { %10589 = vmatprep.subr.bf16.mxu1 %v10588_v12 }
 0x9dd   :  { %9819 = vmatmul.mubr.f32.gmra.mrb[166].mxu1 %v15311_v14  ;;  %v10600_v14 = vpack.c.bf16 %v9222_v25, %v9221_v62  ;;  %v8504_v25 = vld [vmem:[%s15895_s9] sm:$0xff] }
 0x9de   :  { %9821 = vmatprep.mubr.f32.mxu1 %v15319_v39  ;;  %10591 = vmatpush3.bf16.msra.mxu1 %v10588_v12  ;;  %v16003_v39 = vld [vmem:[#allocation4_spill] sm:$0xff] }
 0x9df   :  { %10593 = vmatprep.subr.bf16.mxu1 %v10592_v57 }
 0x9e1   :  { %9822 = vmatmul.mubr.f32.gmra.mrb[168].mxu1 %v15327_v15  ;;  %v16004_v15 = vld [vmem:[#allocation3_spill] sm:$0xff] }
 0x9e2   :  { %9824 = vmatprep.mubr.f32.mxu1 %v15335_v11  ;;  %10595 = vmatpush3.bf16.msra.mxu1 %v10592_v57  ;;  %v16005_v11 = vld [vmem:[#allocation6_spill] sm:$0xff] }
 0x9e3   :  { %10597 = vmatprep.subr.bf16.mxu1 %v10596_v41 }
 0x9e5   :  { %9825 = vmatmul.mubr.f32.gmra.mrb[170].mxu1 %v15343_v10  ;;  %v16007_v10 = vld [vmem:[#allocation8_spill] sm:$0xff] }
 0x9e6   :  { %9827 = vmatprep.mubr.f32.mxu1 %v15351_v26  ;;  %10599 = vmatpush3.bf16.msra.mxu1 %v10596_v41  ;;  %v16008_v26 = vld [vmem:[#allocation7_spill] sm:$0xff] }
 0x9e7   :  { %10601 = vmatprep.subr.bf16.mxu1 %v10600_v14 }
 0x9e9   :  { %9828 = vmatmul.mubr.f32.gmra.mrb[172].mxu1 %v15359_v35  ;;  %v16010_v35 = vld [vmem:[#allocation9_spill] sm:$0xff] }
 0x9ea   :  { %9830 = vmatprep.mubr.f32.mxu1 %v15367_v29  ;;  %10603 = vmatpush3.bf16.msra.mxu1 %v10600_v14  ;;  %v16011_v29 = vld [vmem:[#allocation12_spill] sm:$0xff]  ;;  %v8505_v14 = vld [vmem:[%s15895_s9 + $0x8] sm:$0xff] }
 0x9ed   :  { %9831 = vmatmul.mubr.f32.gmra.mrb[174].mxu1 %v15375_v0  ;;  %v16013_v0 = vld [vmem:[#allocation14_spill] sm:$0xff] }
 0x9ee   :  { %9833 = vmatprep.mubr.f32.mxu1 %v16003_v39  ;;  %v8422_v39 = vld [vmem:[%s15894_s12] sm:$0xff] }
 0x9f1   :  { %9834 = vmatmul.mubr.f32.gmra.mrb[176].mxu1 %v16004_v15  ;;  %v10637_v15 = vpack.c.bf16 %v8505_v14, %v8504_v25  ;;  %v16016_v25 = vld [vmem:[#allocation2_spill] sm:$0xff] }
 0x9f2   :  { %9836 = vmatprep.mubr.f32.mxu1 %v16005_v11  ;;  %v16014_v11 = vmov 0.0|0.0   ;;  %vm8696_vm12 = vcmp.lt.s32.totalorder %v16016_v25, 2 }
 0x9f5   :  { %9837 = vmatmul.mubr.f32.gmra.mrb[178].mxu1 %v16006_v45  ;;  %v8506_v45 = vld [vmem:[%s15895_s9 + $0x10] sm:$0xff] }
 0x9f6   :  { %9839 = vmatprep.mubr.f32.mxu1 %v16007_v10  ;;  %v8507_v10 = vld [vmem:[%s15895_s9 + $0x18] sm:$0xff] }
 0x9f9   :  { %9840 = vmatmul.mubr.f32.gmra.mrb[180].mxu1 %v16008_v26  ;;  %v10640_v26 = vpack.c.bf16 %v8507_v10, %v8506_v45 }
 0x9fa   :  { %9842 = vmatprep.mubr.f32.mxu1 %v16009_v60  ;;  %v8508_v60 = vld [vmem:[%s15895_s9 + $0x20] sm:$0xff] }
 0x9fd   :  { %9843 = vmatmul.mubr.f32.gmra.mrb[182].mxu1 %v16010_v35  ;;  %v8509_v35 = vld [vmem:[%s15895_s9 + $0x28] sm:$0xff] }
 0x9fe   :  { %9845 = vmatprep.mubr.f32.mxu1 %v16011_v29  ;;  %v10643_v29 = vpack.c.bf16 %v8509_v35, %v8508_v60 }
 0xa01   :  { %9846 = vmatmul.mubr.f32.gmra.mrb[184].mxu1 %v16012_v49  ;;  %v8510_v49 = vld [vmem:[%s15895_s9 + $0x30] sm:$0xff] }
 0xa02   :  { %9848 = vmatprep.mubr.f32.mxu1 %v16013_v0  ;;  %v8511_v0 = vld [vmem:[%s15895_s9 + $0x38] sm:$0xff] }
 0xa03   :  { %v10646_v58 = vpack.c.bf16 %v8511_v0, %v8510_v49 }
 0xa05   :  { %9849 = vmatmul.mubr.f32.gmra.mrb[186].mxu1 %v15471_v18 }
 0xa06   :  { %9851 = vmatprep.mubr.f32.mxu1 %v15481_v52 }
 0xa09   :  { %9852 = vmatmul.mubr.f32.gmra.mrb[188].mxu1 %v7889_v9  ;;  %v8512_v9 = vld [vmem:[%s15895_s9 + $0x40] sm:$0xff] }
 0xa0a   :  { %9886 = vmatprep.mubr.f32.mxu1 %v15180_v24  ;;  %v8423_v24 = vld [vmem:[%s15894_s12 + $0x8] sm:$0xff] }
 0xa0b   :  { %8495 = vmatprep.mubr.f32.mxu0 %v8423_v24  ;;  %v8513_v24 = vld [vmem:[%s15895_s9 + $0x48] sm:$0xff] }
 0xa0d   :  { %9887 = vmatmul.mubr.f32.vlgmr.msra.gmra.mrb[158].mxu1 %v15191_v4 }
 0xa0e   :  { %9889 = vmatprep.mubr.f32.mxu1 %v15205_v27 }
 0xa11   :  { %9890 = vmatmul.mubr.f32.gmra.mrb[160].mxu1 %v15219_v30 }
 0xa12   :  { %9892 = vmatprep.mubr.f32.mxu1 %v15233_v32 }
 0xa15   :  { %9893 = vmatmul.mubr.f32.gmra.mrb[162].mxu1 %v15247_v22 }
 0xa16   :  { %9895 = vmatprep.mubr.f32.mxu1 %v15261_v7 }
 0xa19   :  { %9896 = vmatmul.mubr.f32.gmra.mrb[164].mxu1 %v15275_v56 }
 0xa1a   :  { %9898 = vmatprep.mubr.f32.mxu1 %v15289_v21 }
 0xa1d   :  { %9899 = vmatmul.mubr.f32.gmra.mrb[166].mxu1 %v15300_v55 }
 0xa1e   :  { %9901 = vmatprep.mubr.f32.mxu1 %v15308_v59 }
 0xa21   :  { %9902 = vmatmul.mubr.f32.gmra.mrb[168].mxu1 %v15316_v23 }
 0xa22   :  { %9904 = vmatprep.mubr.f32.mxu1 %v15324_v17 }
 0xa25   :  { %9905 = vmatmul.mubr.f32.gmra.mrb[170].mxu1 %v15332_v61 }
 0xa26   :  { %9907 = vmatprep.mubr.f32.mxu1 %v15340_v34 }
 0xa29   :  { %9908 = vmatmul.mubr.f32.gmra.mrb[172].mxu1 %v15348_v37 }
 0xa2a   :  { %9910 = vmatprep.mubr.f32.mxu1 %v15356_v16 }
 0xa2d   :  { %9911 = vmatmul.mubr.f32.gmra.mrb[174].mxu1 %v15364_v5 }
 0xa2e   :  { %9913 = vmatprep.mubr.f32.mxu1 %v15372_v3 }
 0xa31   :  { %9914 = vmatmul.mubr.f32.gmra.mrb[176].mxu1 %v15380_v6 }
 0xa32   :  { %9916 = vmatprep.mubr.f32.mxu1 %v15388_v20 }
 0xa35   :  { %9917 = vmatmul.mubr.f32.gmra.mrb[178].mxu1 %v15396_v28 }
 0xa36   :  { %9919 = vmatprep.mubr.f32.mxu1 %v15404_v47 }
 0xa39   :  { %9920 = vmatmul.mubr.f32.gmra.mrb[180].mxu1 %v15412_v50 }
 0xa3a   :  { %9922 = vmatprep.mubr.f32.mxu1 %v15420_v38 }
 0xa3d   :  { %9923 = vmatmul.mubr.f32.gmra.mrb[182].mxu1 %v15428_v46 }
 0xa3e   :  { %9925 = vmatprep.mubr.f32.mxu1 %v15436_v43 }
 0xa41   :  { %9926 = vmatmul.mubr.f32.gmra.mrb[184].mxu1 %v15444_v40 }
 0xa42   :  { %9928 = vmatprep.mubr.f32.mxu1 %v15452_v42 }
 0xa45   :  { %9929 = vmatmul.mubr.f32.gmra.mrb[186].mxu1 %v15460_v51 }
 0xa46   :  { %9931 = vmatprep.mubr.f32.mxu1 %v15468_v63 }
 0xa49   :  { %9932 = vmatmul.mubr.f32.gmra.mrb[188].mxu1 %v15476_v19 }
 0xae0   :  { %v9888_v4 = vpop.f32.mrb[158].mxu1 }
 0xae1   :  { %v8231_v27 = vpop.f32.mrb[159].mxu1 }
 0xae2   :  { %v10606_v30 = vpack.c.bf16 %v9888_v4, %v8231_v27  ;;  %v10649_v4 = vpack.c.bf16 %v8513_v24, %v8512_v9  ;;  %v8514_v27 = vld [vmem:[%s15895_s9 + $0x50] sm:$0xff] }
 0xae4   :  { %v9891_v32 = vpop.f32.mrb[160].mxu1 }
 0xae5   :  { %v8241_v22 = vpop.f32.mrb[161].mxu1 }
 0xae6   :  { %v10610_v7 = vpack.c.bf16 %v9891_v32, %v8241_v22  ;;  %v8516_v22 = vld [vmem:[%s15895_s9 + $0x60] sm:$0xff] }
 0xae8   :  { %v9894_v56 = vpop.f32.mrb[162].mxu1 }
 0xae9   :  { %v8251_v21 = vpop.f32.mrb[163].mxu1 }
 0xaea   :  { %v10614_v55 = vpack.c.bf16 %v9894_v56, %v8251_v21  ;;  %v8518_v21 = vld [vmem:[%s15895_s9 + $0x70] sm:$0xff] }
 0xaec   :  { %v9897_v59 = vpop.f32.mrb[164].mxu1 }
 0xaed   :  { %v8261_v23 = vpop.f32.mrb[165].mxu1 }
 0xaee   :  { %v10618_v17 = vpack.c.bf16 %v9897_v59, %v8261_v23  ;;  %v16015_v23 = vmov 0.0  }
 0xaf0   :  { %v9900_v61 = vpop.f32.mrb[166].mxu1 }
 0xaf1   :  { %v8271_v34 = vpop.f32.mrb[167].mxu1 }
 0xaf2   :  { %v10622_v37 = vpack.c.bf16 %v9900_v61, %v8271_v34  ;;  %v9223_v61 = vld [vmem:[%s15896_s8] ss:$0 sm:$0xff] }
 0xaf4   :  { %v9903_v16 = vpop.f32.mrb[168].mxu1 }
 0xaf5   :  { %v8281_v5 = vpop.f32.mrb[169].mxu1 }
 0xaf6   :  { %v10626_v3 = vpack.c.bf16 %v9903_v16, %v8281_v5  ;;  %v8593_v16 = vld [vmem:[%s15897_s10] sm:$0xff]  ;;  %v8594_v5 = vld [vmem:[%s15897_s10 + $0x8] sm:$0xff] }
 0xaf8   :  { %v9906_v6 = vpop.f32.mrb[170].mxu1 }
 0xaf9   :  { %v8291_v52 = vpop.f32.mrb[171].mxu1 }
 0xafa   :  { %v10630_v20 = vpack.c.bf16 %v9906_v6, %v8291_v52  ;;  %v10661_v52 = vpack.c.bf16 %v8594_v5, %v8593_v16 }
 0xafc   :  { %v9909_v18 = vpop.f32.mrb[172].mxu1 }
 0xafd   :  { %v8301_v28 = vpop.f32.mrb[173].mxu1 }
 0xafe   :  { %v10634_v47 = vpack.c.bf16 %v9909_v18, %v8301_v28  ;;  %v8596_v18 = vld [vmem:[%s15897_s10 + $0x18] sm:$0xff] }
 0xb00   :  { %v9912_v50 = vpop.f32.mrb[174].mxu1 }
 0xb01   :  { %v8311_v38 = vpop.f32.mrb[175].mxu1 }
 0xb02   :  { %v10604_v46 = vpack.c.bf16 %v9912_v50, %v8311_v38  ;;  %v8597_v50 = vld [vmem:[%s15897_s10 + $0x20] sm:$0xff]  ;;  %v8598_v38 = vld [vmem:[%s15897_s10 + $0x28] sm:$0xff] }
 0xb04   :  { %v9915_v43 = vpop.f32.mrb[176].mxu1  ;;  %10605 = vmatprep.subr.bf16.mxu0 %v10604_v46  ;;  %v10667_v46 = vpack.c.bf16 %v8598_v38, %v8597_v50 }
 0xb05   :  { %v8321_v40 = vpop.f32.mrb[177].mxu1  ;;  %10607 = vmatpush3.bf16.msra.mxu0 %v10606_v30  ;;  %v8515_v30 = vld [vmem:[%s15895_s9 + $0x58] sm:$0xff] }
 0xb06   :  { %v10608_v42 = vpack.c.bf16 %v9915_v43, %v8321_v40  ;;  %v10652_v32 = vpack.c.bf16 %v8515_v30, %v8514_v27  ;;  %v8599_v43 = vld [vmem:[%s15897_s10 + $0x30] sm:$0xff]  ;;  %v8600_v40 = vld [vmem:[%s15897_s10 + $0x38] sm:$0xff] }
 0xb08   :  { %v9918_v51 = vpop.f32.mrb[178].mxu1  ;;  %10609 = vmatprep.subr.bf16.mxu0 %v10608_v42  ;;  %v10670_v42 = vpack.c.bf16 %v8600_v40, %v8599_v43 }
 0xb09   :  { %v8331_v63 = vpop.f32.mrb[179].mxu1  ;;  %10611 = vmatpush3.bf16.msra.mxu0 %v10610_v7  ;;  %v8517_v7 = vld [vmem:[%s15895_s9 + $0x68] sm:$0xff] }
 0xb0a   :  { %v10612_v8 = vpack.c.bf16 %v9918_v51, %v8331_v63  ;;  %v10655_v56 = vpack.c.bf16 %v8517_v7, %v8516_v22  ;;  %v8601_v51 = vld [vmem:[%s15897_s10 + $0x40] sm:$0xff]  ;;  %v8602_v63 = vld [vmem:[%s15897_s10 + $0x48] sm:$0xff] }
 0xb0c   :  { %v9921_v19 = vpop.f32.mrb[180].mxu1  ;;  %10613 = vmatprep.subr.bf16.mxu0 %v10612_v8  ;;  %v10673_v8 = vpack.c.bf16 %v8602_v63, %v8601_v51 }
 0xb0d   :  { %v8341_v54 = vpop.f32.mrb[181].mxu1  ;;  %10615 = vmatpush3.bf16.msra.mxu0 %v10614_v55  ;;  %v8519_v55 = vld [vmem:[%s15895_s9 + $0x78] sm:$0xff] }
 0xb0e   :  { %v10616_v48 = vpack.c.bf16 %v9921_v19, %v8341_v54  ;;  %v10658_v59 = vpack.c.bf16 %v8519_v55, %v8518_v21  ;;  %v8603_v19 = vld [vmem:[%s15897_s10 + $0x50] sm:$0xff]  ;;  %v8604_v54 = vld [vmem:[%s15897_s10 + $0x58] sm:$0xff] }
 0xb10   :  { %v9924_v44 = vpop.f32.mrb[182].mxu1  ;;  %10617 = vmatprep.subr.bf16.mxu0 %v10616_v48  ;;  %v10676_v48 = vpack.c.bf16 %v8604_v54, %v8603_v19 }
 0xb11   :  { %v8351_v53 = vpop.f32.mrb[183].mxu1  ;;  %10619 = vmatpush3.bf16.msra.mxu0 %v10618_v17 }
 0xb12   :  { %v10620_v13 = vpack.c.bf16 %v9924_v44, %v8351_v53  ;;  %v8605_v44 = vld [vmem:[%s15897_s10 + $0x60] sm:$0xff]  ;;  %v8606_v53 = vld [vmem:[%s15897_s10 + $0x68] sm:$0xff] }
 0xb14   :  { %v9927_v31 = vpop.f32.mrb[184].mxu1  ;;  %10621 = vmatprep.subr.bf16.mxu0 %v10620_v13  ;;  %v10679_v13 = vpack.c.bf16 %v8606_v53, %v8605_v44 }
 0xb15   :  { %v8361_v12 = vpop.f32.mrb[185].mxu1  ;;  %10623 = vmatpush3.bf16.msra.mxu0 %v10622_v37 }
 0xb16   :  { %v10624_v36 = vpack.c.bf16 %v9927_v31, %v8361_v12  ;;  %v8607_v31 = vld [vmem:[%s15897_s10 + $0x70] sm:$0xff]  ;;  %v8608_v12 = vld [vmem:[%s15897_s10 + $0x78] sm:$0xff] }
 0xb18   :  { %v9930_v33 = vpop.f32.mrb[186].mxu1  ;;  %10625 = vmatprep.subr.bf16.mxu0 %v10624_v36  ;;  %v10682_v36 = vpack.c.bf16 %v8608_v12, %v8607_v31 }
 0xb19   :  { %v8371_v57 = vpop.f32.mrb[187].mxu1  ;;  %10627 = vmatpush3.bf16.msra.mxu0 %v10626_v3 }
 0xb1a   :  { %v10628_v2 = vpack.c.bf16 %v9930_v33, %v8371_v57 }
 0xb1c   :  { %v9933_v1 = vpop.f32.mrb[188].mxu1  ;;  %10629 = vmatprep.subr.bf16.mxu0 %v10628_v2 }
 0xb1d   :  { %v8381_v41 = vpop.f32.mrb[189].mxu1  ;;  %10631 = vmatpush3.bf16.msra.mxu0 %v10630_v20  ;;  %v8595_v20 = vld [vmem:[%s15897_s10 + $0x10] sm:$0xff] }
 0xb1e   :  { %v10632_v62 = vpack.c.bf16 %v9933_v1, %v8381_v41  ;;  %v9224_v41 = vld [vmem:[%s15898_s11] ss:$0 sm:$0xff] }
 0xb20   :  { %10633 = vmatprep.subr.bf16.mxu0 %v10632_v62 }
 0xb21   :  { %10635 = vmatpush3.bf16.msra.mxu0 %v10634_v47  ;;  %v10664_v47 = vpack.c.bf16 %v8596_v18, %v8595_v20 }
 0xb22   :  { %10636 = vmatprep.subr.bf16.mxu0 %v16014_v11 }
 0xb24   :  { %8496 = vmatmul.mubr.f32.vlgmr.msra.gmra.mrb[10].mxu0 %v8422_v39 }
 0xb25   :  { %10638 = vmatpush3.bf16.msra.mxu0 %v10637_v15  ;;  %9966 = vmatprep.mubr.msk.f32.mxu0 %vm11457_vm1, %v16015_v23 }
 0xb26   :  { %10639 = vmatprep.subr.bf16.mxu0 %v16014_v11 }
 0xb29   :  { %10641 = vmatpush3.bf16.msra.mxu0 %v10640_v26 }
 0xb2a   :  { %10642 = vmatprep.subr.bf16.mxu0 %v16014_v11 }
 0xb2d   :  { %10644 = vmatpush3.bf16.msra.mxu0 %v10643_v29 }
 0xb2e   :  { %10645 = vmatprep.subr.bf16.mxu0 %v16014_v11 }
 0xb31   :  { %10647 = vmatpush3.bf16.msra.mxu0 %v10646_v58 }
 0xb32   :  { %10648 = vmatprep.subr.bf16.mxu0 %v16014_v11 }
 0xb35   :  { %10650 = vmatpush3.bf16.msra.mxu0 %v10649_v4 }
 0xb36   :  { %10651 = vmatprep.subr.bf16.mxu0 %v16014_v11 }
 0xb39   :  { %10653 = vmatpush3.bf16.msra.mxu0 %v10652_v32 }
 0xb3a   :  { %10654 = vmatprep.subr.bf16.mxu0 %v16014_v11 }
 0xb3d   :  { %10656 = vmatpush3.bf16.msra.mxu0 %v10655_v56 }
 0xb3e   :  { %10657 = vmatprep.subr.bf16.mxu0 %v16014_v11 }
 0xb41   :  { %10659 = vmatpush3.bf16.msra.mxu0 %v10658_v59 }
 0xb42   :  { %10660 = vmatprep.subr.bf16.mxu0 %v16014_v11 }
 0xbf7   :  { %v9497_v17 = vpop.f32.mrb[10].mxu0 }
 0xbf8   :  { %v9498_v34 = vpop.f32.mrb[11].mxu0 }
 0xbf9   :  { %v9499_v37 = vadd.f32 %v9498_v34, %v9497_v17 }
 0xbfb   :  { %v8498_v3 = vadd.f32 %v9499_v37, %v9223_v61 }
 0xbfd   :  { %vm8501_vm3 = vcmp.gt.f32.partialorder %v8498_v3, 0.0  ;;  %v8502_v6 = vmul.f32 0.01, %v8498_v3 }
 0xbff   :  { %v8503_v28 = vsel %vm8501_vm3, %v8498_v3, %v8502_v6 }
 0xc00   :  { %9967 = vmatmul.mubr.f32.vlgmr.msra.gmra.mrb[12].mxu0 %v8503_v28 }
 0xc01   :  { %10662 = vmatpush3.bf16.msra.mxu0 %v10661_v52  ;;  %10001 = vmatprep.mubr.msk.f32.mxu0 %vm11457_vm1, %v16015_v23 }
 0xc02   :  { %10663 = vmatprep.subr.bf16.mxu0 %v16014_v11 }
 0xc05   :  { %10665 = vmatpush3.bf16.msra.mxu0 %v10664_v47 }
 0xc06   :  { %10666 = vmatprep.subr.bf16.mxu0 %v16014_v11 }
 0xc09   :  { %10668 = vmatpush3.bf16.msra.mxu0 %v10667_v46 }
 0xc0a   :  { %10669 = vmatprep.subr.bf16.mxu0 %v16014_v11 }
 0xc0d   :  { %10671 = vmatpush3.bf16.msra.mxu0 %v10670_v42 }
 0xc0e   :  { %10672 = vmatprep.subr.bf16.mxu0 %v16014_v11 }
 0xc11   :  { %10674 = vmatpush3.bf16.msra.mxu0 %v10673_v8 }
 0xc12   :  { %10675 = vmatprep.subr.bf16.mxu0 %v16014_v11 }
 0xc15   :  { %10677 = vmatpush3.bf16.msra.mxu0 %v10676_v48 }
 0xc16   :  { %10678 = vmatprep.subr.bf16.mxu0 %v16014_v11 }
 0xc19   :  { %10680 = vmatpush3.bf16.msra.mxu0 %v10679_v13 }
 0xc1a   :  { %10681 = vmatprep.subr.bf16.mxu0 %v16014_v11 }
 0xc1d   :  { %10683 = vmatpush3.bf16.msra.mxu0 %v10682_v36 }
 0xcd3   :  { %v8586_v33 = vpop.f32.mrb[12].mxu0 }
 0xcd4   :  { %vm8590_vm10 = vcmp.gt.f32.partialorder %v8586_v33, 0.0  ;;  %v8591_v57 = vmul.f32 0.01, %v8586_v33  ;;  %v9968_v2 = vpop.f32.mrb[13].mxu0 }
 0xcd6   :  { %v8592_v1 = vsel %vm8590_vm10, %v8586_v33, %v8591_v57 }
 0xcd7   :  { %10002 = vmatmul.mubr.f32.vlgmr.msra.gmra.mrb[14].mxu0 %v8592_v1 }
 0xdaa   :  { %v8682_v62 = vpop.f32.mrb[14].mxu0 }
 0xdab   :  { %v8683_v14 = vadd.f32 %v9224_v41, %v8682_v62  ;;  %v10003_v39 = vpop.f32.mrb[15].mxu0 }
 0xdad   :  { %v8697_v15 = vsel %vm8696_vm12, %v8683_v14, -inf }
 0xdae   :  { %v8698_v11 = vrot.slane %v8697_v15, 4 }
 0xdb0   :  { %v8699_v45 = vmax.f32 %v8697_v15, %v8698_v11 }
 0xdb2   :  { %v8700_v10 = vrot.slane %v8699_v45, 2 }
 0xdb4   :  { %v8701_v26 = vmax.f32 %v8699_v45, %v8700_v10 }
 0xdb6   :  { %v8702_v60 = vrot.slane %v8701_v26, 1 }
 0xdb8   :  { %v8703_v35 = vmax.f32 %v8701_v26, %v8702_v60 }
 0xdba   :  { %v8704_v29 = vsub.f32 %v8683_v14, %v8703_v35 }
 0xdbc   :  { %v8705_v49 = vmul.f32 1.442695, %v8704_v29 }
 0xdbe   :  { %11413 = vpow2.f32 %v8705_v49 }
 0xdc8   :  { %v11414_v0 = vpop.eup %11413 }
 0xdc9   :  { %v8707_v58 = vsel %vm8696_vm12, %v11414_v0, 0.0 }
 0xdca   :  { %v8708_v9 = vrot.slane %v8707_v58, 4 }
 0xdcc   :  { %v8709_v24 = vadd.f32 %v8708_v9, %v8707_v58 }
 0xdce   :  { %v8710_v4 = vrot.slane %v8709_v24, 2 }
 0xdd0   :  { %v8711_v27 = vadd.f32 %v8710_v4, %v8709_v24 }
 0xdd2   :  { %v8712_v30 = vrot.slane %v8711_v27, 1 }
 0xdd4   :  { %v8713_v32 = vadd.f32 %v8712_v30, %v8711_v27 }
 0xdd6   :  { %11415 = vlog2.f32 %v8713_v32 }
 0xde0   :  { %v11416_v22 = vpop.eup %11415 }
 0xde1   :  { %v8715_v7 = vmul.f32 0.6931472, %v11416_v22 }
 0xde3   :  { %v8716_v56 = vsub.f32 %v8704_v29, %v8715_v7 }
 0xde5   :  { %8717 = vst [vmem:[%s15899_s13] sm:$0xff] %v8716_v56 }

</bundles_post_ra>
